<compile_context>
chip_gen: v6e
topology: v6e:2x2x1
jax: 0.10.0
libtpu: 0.0.40
codegen_flags: <defaults>
</compile_context>

<pallas_src>
import jax
import jax.numpy as jnp
from jax.experimental import pallas as pl
from jax.experimental.pallas import tpu as pltpu

NEG_SLOPE = 0.01   # nn.LeakyReLU default
BN_EPS = 1e-5      # nn.BatchNorm2d default


def _leaky(v):
    return jnp.where(v > 0, v, NEG_SLOPE * v)


def _round_up(n, m):
    return ((n + m - 1) // m) * m


# ------------------------------ Pallas kernel ------------------------------ #

def _block_kernel(x_ref, bns_ref, bnb_ref, mask_ref, w1_ref, b1_ref,
                  w2_ref, b2_ref, o_ref, xp_ref, hp_ref):
    # Shapes (NB batch images per grid step; WC = W*C lane-dense packed axis):
    #   x_ref  : (NB, H, WC) f32
    #   bns/bnb: (1, WC) f32            outer BatchNorm (eval, folded), tiled over W
    #   mask   : (R, 1) f32             1 on real image rows, 0 on zero-pad rows
    #   w1_ref : (3, 3*WC, 3*WC) bf16   per-stage im2row conv1 weight, bn1 scale
    #                                   folded, 3 branches stacked on output cols
    #   b1_ref : (3, 1, 3*WC) f32       bn1 shift (3 branches concatenated)
    #   w2_ref : (3, 9*WC, WC) bf16     per-stage im2row conv2 weight, bn2 scale
    #                                   folded, 3 branches stacked on contraction
    #   b2_ref : (3, 1, WC) f32         sum over branches of bn2 shift
    #   o_ref  : (NB, H, WC) f32
    #   xp_ref : (R+2, WC) f32 scratch  padded stage activation (zero rows between
    #                                   images make SAME-padding correct across the
    #                                   whole slab; interior pads re-zeroed by mask)
    #   hp_ref : (R+2, 3*WC) bf16       padded conv1 output (3 branches on lanes)
    NB, H, WC = o_ref.shape
    R = mask_ref.shape[0]                  # matmul M dimension (multiple of 8)

    # Zero the padded scratch once per grid step (establishes all pad rows = 0).
    xp_ref[...] = jnp.zeros_like(xp_ref)
    hp_ref[...] = jnp.zeros_like(hp_ref)

    mask = mask_ref[...]                   # (R, 1)
    bns = bns_ref[...]
    bnb = bnb_ref[...]

    # Outer BatchNorm2d (eval mode, folded) fused with the padded-layout load.
    for b in range(NB):
        r0 = b * (H + 2) + 1
        xp_ref[r0:r0 + H, :] = x_ref[b] * bns + bnb

    for stage in range(3):
        xres = xp_ref[1:R + 1, :]          # (R, WC) residual, f32 (zero on pad rows)

        # conv1 of all 3 branches (+ bn1 scale) as ONE bf16 MXU matmul:
        # im2row folds the 3 ky taps into the contraction axis (K = 3*WC).
        a1 = jnp.concatenate(
            [xp_ref[0:R, :], xp_ref[1:R + 1, :], xp_ref[2:R + 2, :]],
            axis=-1).astype(jnp.bfloat16)                      # (R, 3*WC)
        h = jnp.dot(a1, w1_ref[stage], preferred_element_type=jnp.float32)
        h = _leaky(h + b1_ref[stage]) * mask                   # bn1 shift + LeakyReLU
        hp_ref[1:R + 1, :] = h.astype(jnp.bfloat16)

        # conv2 of all 3 branches (+ bn2 scale) fused along the contraction axis
        # (K = 9*WC): one matmul replaces the 9 per-branch/per-ky matmuls.
        a2 = jnp.concatenate(
            [hp_ref[0:R, :], hp_ref[1:R + 1, :], hp_ref[2:R + 2, :]],
            axis=-1)                                           # (R, 9*WC) bf16
        g = jnp.dot(a2, w2_ref[stage], preferred_element_type=jnp.float32)
        # sum of the 3 branch outputs: convs + summed bn2 shifts + 3*x residual
        xp_ref[1:R + 1, :] = _leaky(g + b2_ref[stage] + 3.0 * xres) * mask

    # Final x/3 fused into the output copy (exact: applied after the last leaky).
    for b in range(NB):
        r0 = b * (H + 2) + 1
        o_ref[b] = xp_ref[r0:r0 + H, :] * (1.0 / 3.0)


def acresnet_block_pallas(x, bns, bnb, mask, w1, b1, w2, b2, *, nb):
    """Whole ACResNetBlock forward on packed (N, H, W*C) activations."""
    N, H, WC = x.shape
    assert N % nb == 0, (N, nb)
    grid = N // nb
    R = mask.shape[0]

    def full(a):
        nd = a.ndim
        return pl.BlockSpec(a.shape, lambda g, _nd=nd: (0,) * _nd)

    return pl.pallas_call(
        _block_kernel,
        out_shape=jax.ShapeDtypeStruct((N, H, WC), jnp.float32),
        grid_spec=pltpu.PrefetchScalarGridSpec(
            num_scalar_prefetch=0,
            grid=(grid,),
            in_specs=[
                pl.BlockSpec((nb, H, WC), lambda g: (g, 0, 0)),
                full(bns), full(bnb), full(mask),
                full(w1), full(b1), full(w2), full(b2),
            ],
            out_specs=pl.BlockSpec((nb, H, WC), lambda g: (g, 0, 0)),
            scratch_shapes=[pltpu.VMEM((R + 2, WC), jnp.float32),
                            pltpu.VMEM((R + 2, 3 * WC), jnp.bfloat16)],
        ),
        compiler_params=pltpu.CompilerParams(
            dimension_semantics=("parallel",)),
    )(x, bns, bnb, mask, w1, b1, w2, b2)


# -------------------- parameter setup / packing (plain JAX) ----------------- #

def bn_fold(gamma, beta, mean, var):
    scale = gamma / jnp.sqrt(var + BN_EPS)
    shift = beta - mean * scale
    return scale, shift


def make_bn_params(key, C):
    k1, k2, k3, k4 = jax.random.split(key, 4)
    gamma = 1.0 + 0.1 * jax.random.normal(k1, (C,), jnp.float32)
    beta = 0.1 * jax.random.normal(k2, (C,), jnp.float32)
    mean = 0.1 * jax.random.normal(k3, (C,), jnp.float32)
    var = 1.0 + 0.1 * jnp.abs(jax.random.normal(k4, (C,), jnp.float32))
    return gamma, beta, mean, var


def make_conv_full(key, C):
    # nn.Conv2d weight layout: (Cout, Cin, kh, kw)
    return 0.1 * jax.random.normal(key, (C, C, 3, 3), jnp.float32)


def make_conv_diag(key, C):
    # DiagConv2d: parameter (Cout, Cin, 3) placed on the main diagonal of a 3x3
    # kernel (used by both DiagResConv and AntiDiagResConv in the PyTorch code).
    p = 0.1 * jax.random.normal(key, (C, C, 3), jnp.float32)
    w = jnp.zeros((C, C, 3, 3), jnp.float32)
    return w.at[:, :, jnp.arange(3), jnp.arange(3)].set(p)


def make_stage_params(key, C):
    """One stage = 3 residual branches. Returns HWIO weights + folded BN."""
    keys = jax.random.split(key, 3)
    w1s, s1s, b1s, w2s, s2s, b2s = [], [], [], [], [], []
    for br, bkey in enumerate(keys):
        kw1, kbn1, kw2, kbn2 = jax.random.split(bkey, 4)
        make_w = make_conv_full if br == 0 else make_conv_diag
        # (Cout,Cin,kh,kw) -> (kh,kw,Cin,Cout)  (HWIO)
        w1 = jnp.transpose(make_w(kw1, C), (2, 3, 1, 0))
        w2 = jnp.transpose(make_w(kw2, C), (2, 3, 1, 0))
        s1, b1 = bn_fold(*make_bn_params(kbn1, C))
        s2, b2 = bn_fold(*make_bn_params(kbn2, C))
        w1s.append(w1); w2s.append(w2)
        s1s.append(s1); b1s.append(b1); s2s.append(s2); b2s.append(b2)
    return (jnp.stack(w1s), jnp.stack(s1s), jnp.stack(b1s),
            jnp.stack(w2s), jnp.stack(s2s), jnp.stack(b2s))


def _conv_to_blockdiag(w_hwio, W):
    """(3,3,Ci,Co) HWIO conv weight -> (3, W*Ci, W*Co) per-ky block matrices.

    With x packed as padded rows of length W*Ci, the SAME-padded conv is
      out_row[r] = sum_ky  xp_row[r + ky] @ B[ky]
    i.e. kx-shift, W-boundary padding and zero taps are all folded into B.
    """
    kh, kw, Ci, Co = w_hwio.shape
    wi = jnp.arange(W)[None, :, None]
    wo = jnp.arange(W)[None, None, :]
    kx = jnp.arange(kw)[:, None, None]
    sel = (wi == wo + kx - (kw // 2)).astype(jnp.float32)      # (kw, W, W)
    B = jnp.einsum('xaw,yxio->yaiwo', sel, w_hwio)             # (kh, W, Ci, W, Co)
    return B.reshape(kh, W * Ci, W * Co)


def pack_kernel_params(bn_scale, bn_shift, stage_params, W):
    """Outer BN + 3 stages, packed lane-dense with BN scales folded into weights."""
    C = bn_scale.shape[0]
    WC = W * C
    bns = jnp.tile(bn_scale, W)[None, :]                       # (1, W*C)
    bnb = jnp.tile(bn_shift, W)[None, :]
    W1s, B1s, W2s, B2s = [], [], [], []
    for (w1, s1, b1, w2, s2, b2) in stage_params:
        # conv1: fold bn1 scale into output columns, stack the 3 branches along
        # the output axis and the 3 ky taps along the contraction axis.
        bd1 = []
        for br in range(3):
            B = _conv_to_blockdiag(w1[br], W)                  # (3, WC, WC)
            bd1.append(B * jnp.tile(s1[br], W)[None, None, :])
        W1s.append(jnp.concatenate(bd1, axis=-1).reshape(3 * WC, 3 * WC))
        B1s.append(jnp.concatenate([jnp.tile(b1[br], W) for br in range(3)])[None, :])
        # conv2: fold bn2 scale, stack branches AND ky along the contraction axis.
        bd2 = []
        for br in range(3):
            B = _conv_to_blockdiag(w2[br], W)                  # (3, WC, WC)
            bd2.append(B * jnp.tile(s2[br], W)[None, None, :])
        bd2 = jnp.stack(bd2, axis=1)                           # (ky, br, WC, WC)
        W2s.append(bd2.reshape(9 * WC, WC))
        B2s.append(sum(jnp.tile(b2[br], W) for br in range(3))[None, :])
    return (bns, bnb,
            jnp.stack(W1s).astype(jnp.bfloat16),               # (3, 3WC, 3WC) bf16
            jnp.stack(B1s),                                    # (3, 1, 3WC)   f32
            jnp.stack(W2s).astype(jnp.bfloat16),               # (3, 9WC, WC)  bf16
            jnp.stack(B2s))                                    # (3, 1, WC)    f32


def _choose_nb(N, H):
    # Batch images per grid step: raise matmul M toward ~128-256 rows, but keep
    # >= 2 grid steps when possible so ("parallel",) feeds both v7x TensorCores.
    best = 1
    for nb in range(1, N + 1):
        if N % nb == 0 and nb * (H + 2) <= 256 and (N // nb >= 2 or N == 1):
            best = nb
    return best


def _make_row_mask(nb, H):
    R = _round_up(nb * (H + 2) - 2, 8)         # matmul M, multiple of 8
    xprow = jnp.arange(1, R + 1)               # xp-scratch row for each output row
    pos = xprow % (H + 2)
    valid = (pos >= 1) & (pos <= H) & (xprow < nb * (H + 2))
    return valid.astype(jnp.float32)[:, None]  # (R, 1)


# ------------------------------- full forward ------------------------------- #

def acresnet_block_forward(x_nchw, bn_scale, bn_shift, stage_params, nb=None):
    N, C, H, W = x_nchw.shape
    # NCHW (PyTorch) -> NHWC -> lane-dense (N, H, W*C); the reshape is free,
    # only the transpose is boundary plumbing.
    x = jnp.transpose(x_nchw, (0, 2, 3, 1)).astype(jnp.float32).reshape(N, H, W * C)
    if nb is None:
        nb = _choose_nb(N, H)
    params = pack_kernel_params(bn_scale, bn_shift, stage_params, W)
    mask = _make_row_mask(nb, H)
    out = acresnet_block_pallas(x, params[0], params[1], mask, *params[2:], nb=nb)
    out = out.reshape(N, H, W, C)
    return jnp.transpose(out, (0, 3, 1, 2))                    # back to NCHW


# ---------------------------- pure-JAX reference ---------------------------- #

def _conv3x3_ref(x, w_hwio):
    return jax.lax.conv_general_dilated(
        x, w_hwio, window_strides=(1, 1), padding="SAME",
        dimension_numbers=("NHWC", "HWIO", "NHWC"))


def _stage_ref(x, w1, s1, b1, w2, s2, b2):
    acc = jnp.zeros_like(x)
    for br in range(3):
        h = _leaky(_conv3x3_ref(x, w1[br]) * s1[br] + b1[br])
        g = _conv3x3_ref(h, w2[br]) * s2[br] + b2[br]
        acc = acc + g + x
    return _leaky(acc)


def ref_forward(x_nchw, bn_scale, bn_shift, stage_params):
    x = jnp.transpose(x_nchw, (0, 2, 3, 1)).astype(jnp.float32)
    x = x * bn_scale + bn_shift
    for p in stage_params:
        x = _stage_ref(x, *p)
    return jnp.transpose(x / 3.0, (0, 3, 1, 2))


# ------------------------------------ main ----------------------------------- #

if __name__ == "__main__":
    key = jax.random.PRNGKey(0)
    # n_channels=8, 16x16 spatial -> W*C = 128 lanes exactly; batch 8 -> NB=4
    # images per grid step (grid=2, feeds both v7x TensorCores), M = 72 rows.
    N, C, H, W = 8, 8, 16, 16
    k_x, k_bn, k_s0, k_s1, k_s2 = jax.random.split(key, 5)

    x = jax.random.normal(k_x, (N, C, H, W), jnp.float32)
    bn_scale, bn_shift = bn_fold(*make_bn_params(k_bn, C))
    stage_params = [make_stage_params(k, C) for k in (k_s0, k_s1, k_s2)]

    out = acresnet_block_forward(x, bn_scale, bn_shift, stage_params)
    out = jax.block_until_ready(out)

    ref = ref_forward(x, bn_scale, bn_shift, stage_params)
    assert out.shape == x.shape, (out.shape, x.shape)
    max_err = float(jnp.max(jnp.abs(out - ref)))
    # bf16 MXU operands vs. the f32 reference -> tolerance scaled by ref magnitude.
    tol = 3e-2 * (1.0 + float(jnp.max(jnp.abs(ref))))
    assert max_err < tol, f"mismatch vs reference: {max_err} (tol {tol})"

    print("KERNEL_OK")
</pallas_src>

<mosaic_0001>
module attributes {stable_mosaic.version = 11 : i64} {
  func.func @_block_kernel(%arg0: i32, %arg1: memref<4x16x128xf32, #tpu.memory_space<vmem>>, %arg2: memref<1x128xf32, #tpu.memory_space<vmem>>, %arg3: memref<1x128xf32, #tpu.memory_space<vmem>>, %arg4: memref<72x1xf32, #tpu.memory_space<vmem>>, %arg5: memref<3x384x384xbf16, #tpu.memory_space<vmem>>, %arg6: memref<3x1x384xf32, #tpu.memory_space<vmem>>, %arg7: memref<3x1152x128xbf16, #tpu.memory_space<vmem>>, %arg8: memref<3x1x128xf32, #tpu.memory_space<vmem>>, %arg9: memref<4x16x128xf32, #tpu.memory_space<vmem>>, %arg10: memref<74x128xf32, #tpu.memory_space<vmem>>, %arg11: memref<74x384xbf16, #tpu.memory_space<vmem>>) attributes {dimension_semantics = [#tpu.dimension_semantics<parallel>], iteration_bounds = array<i64: 2>, scalar_prefetch = 0 : i64, scratch_operands = 2 : i64, tpu.core_type = #tpu.core_type<tc>, window_params = [{transform_indices = @transform_0, window_bounds = array<i64: 4, 16, 128>}, {pipeline_mode = #tpu.pipeline_mode<synchronous>, transform_indices = @transform_1, window_bounds = array<i64: 1, 128>}, {pipeline_mode = #tpu.pipeline_mode<synchronous>, transform_indices = @transform_2, window_bounds = array<i64: 1, 128>}, {pipeline_mode = #tpu.pipeline_mode<synchronous>, transform_indices = @transform_3, window_bounds = array<i64: 72, 1>}, {pipeline_mode = #tpu.pipeline_mode<synchronous>, transform_indices = @transform_4, window_bounds = array<i64: 3, 384, 384>}, {pipeline_mode = #tpu.pipeline_mode<synchronous>, transform_indices = @transform_5, window_bounds = array<i64: 3, 1, 384>}, {pipeline_mode = #tpu.pipeline_mode<synchronous>, transform_indices = @transform_6, window_bounds = array<i64: 3, 1152, 128>}, {pipeline_mode = #tpu.pipeline_mode<synchronous>, transform_indices = @transform_7, window_bounds = array<i64: 3, 1, 128>}, {transform_indices = @transform_8, window_bounds = array<i64: 4, 16, 128>}]} {
    %cst = arith.constant 0.000000e+00 : f32
    %0 = vector.broadcast %cst : f32 to vector<74x128xf32>
    %c0 = arith.constant 0 : index
    %c0_0 = arith.constant 0 : index
    %1 = vector.load %arg10[%c0, %c0_0] : memref<74x128xf32, #tpu.memory_space<vmem>>, vector<74x128xf32>
    tpu.vector_store %arg10[%c0, %c0_0], %0 {strides = array<i32>} : memref<74x128xf32, #tpu.memory_space<vmem>>, vector<74x128xf32>,
    %cst_1 = arith.constant 0.000000e+00 : bf16
    %2 = vector.broadcast %cst_1 : bf16 to vector<74x384xbf16>
    %c0_2 = arith.constant 0 : index
    %c0_3 = arith.constant 0 : index
    %3 = vector.load %arg11[%c0_2, %c0_3] : memref<74x384xbf16, #tpu.memory_space<vmem>>, vector<74x384xbf16>
    tpu.vector_store %arg11[%c0_2, %c0_3], %2 {strides = array<i32>} : memref<74x384xbf16, #tpu.memory_space<vmem>>, vector<74x384xbf16>,
    %c0_4 = arith.constant 0 : index
    %c0_5 = arith.constant 0 : index
    %4 = vector.load %arg4[%c0_4, %c0_5] : memref<72x1xf32, #tpu.memory_space<vmem>>, vector<72x1xf32>
    %c0_6 = arith.constant 0 : index
    %c0_7 = arith.constant 0 : index
    %5 = vector.load %arg2[%c0_6, %c0_7] : memref<1x128xf32, #tpu.memory_space<vmem>>, vector<1x128xf32>
    %c0_8 = arith.constant 0 : index
    %c0_9 = arith.constant 0 : index
    %6 = vector.load %arg3[%c0_8, %c0_9] : memref<1x128xf32, #tpu.memory_space<vmem>>, vector<1x128xf32>
    %c0_10 = arith.constant 0 : index
    %c0_11 = arith.constant 0 : index
    %c0_12 = arith.constant 0 : index
    %7 = vector.load %arg1[%c0_10, %c0_11, %c0_12] : memref<4x16x128xf32, #tpu.memory_space<vmem>>, vector<1x16x128xf32>
    %8 = vector.shape_cast %7 : vector<1x16x128xf32> to vector<16x128xf32>
    %9 = vector.broadcast %5 : vector<1x128xf32> to vector<16x128xf32>
    %10 = arith.mulf %8, %9 : vector<16x128xf32>
    %11 = vector.broadcast %6 : vector<1x128xf32> to vector<16x128xf32>
    %12 = arith.addf %10, %11 : vector<16x128xf32>
    %c1 = arith.constant 1 : index
    %c0_13 = arith.constant 0 : index
    %13 = vector.load %arg10[%c1, %c0_13] : memref<74x128xf32, #tpu.memory_space<vmem>>, vector<16x128xf32>
    tpu.vector_store %arg10[%c1, %c0_13], %12 {strides = array<i32>} : memref<74x128xf32, #tpu.memory_space<vmem>>, vector<16x128xf32>,
    %c1_14 = arith.constant 1 : index
    %c0_15 = arith.constant 0 : index
    %c0_16 = arith.constant 0 : index
    %14 = vector.load %arg1[%c1_14, %c0_15, %c0_16] : memref<4x16x128xf32, #tpu.memory_space<vmem>>, vector<1x16x128xf32>
    %15 = vector.shape_cast %14 : vector<1x16x128xf32> to vector<16x128xf32>
    %16 = vector.broadcast %5 : vector<1x128xf32> to vector<16x128xf32>
    %17 = arith.mulf %15, %16 : vector<16x128xf32>
    %18 = vector.broadcast %6 : vector<1x128xf32> to vector<16x128xf32>
    %19 = arith.addf %17, %18 : vector<16x128xf32>
    %c19 = arith.constant 19 : index
    %c0_17 = arith.constant 0 : index
    %20 = vector.load %arg10[%c19, %c0_17] : memref<74x128xf32, #tpu.memory_space<vmem>>, vector<16x128xf32>
    tpu.vector_store %arg10[%c19, %c0_17], %19 {strides = array<i32>} : memref<74x128xf32, #tpu.memory_space<vmem>>, vector<16x128xf32>,
    %c2 = arith.constant 2 : index
    %c0_18 = arith.constant 0 : index
    %c0_19 = arith.constant 0 : index
    %21 = vector.load %arg1[%c2, %c0_18, %c0_19] : memref<4x16x128xf32, #tpu.memory_space<vmem>>, vector<1x16x128xf32>
    %22 = vector.shape_cast %21 : vector<1x16x128xf32> to vector<16x128xf32>
    %23 = vector.broadcast %5 : vector<1x128xf32> to vector<16x128xf32>
    %24 = arith.mulf %22, %23 : vector<16x128xf32>
    %25 = vector.broadcast %6 : vector<1x128xf32> to vector<16x128xf32>
    %26 = arith.addf %24, %25 : vector<16x128xf32>
    %c37 = arith.constant 37 : index
    %c0_20 = arith.constant 0 : index
    %27 = vector.load %arg10[%c37, %c0_20] : memref<74x128xf32, #tpu.memory_space<vmem>>, vector<16x128xf32>
    tpu.vector_store %arg10[%c37, %c0_20], %26 {strides = array<i32>} : memref<74x128xf32, #tpu.memory_space<vmem>>, vector<16x128xf32>,
    %c3 = arith.constant 3 : index
    %c0_21 = arith.constant 0 : index
    %c0_22 = arith.constant 0 : index
    %28 = vector.load %arg1[%c3, %c0_21, %c0_22] : memref<4x16x128xf32, #tpu.memory_space<vmem>>, vector<1x16x128xf32>
    %29 = vector.shape_cast %28 : vector<1x16x128xf32> to vector<16x128xf32>
    %30 = vector.broadcast %5 : vector<1x128xf32> to vector<16x128xf32>
    %31 = arith.mulf %29, %30 : vector<16x128xf32>
    %32 = vector.broadcast %6 : vector<1x128xf32> to vector<16x128xf32>
    %33 = arith.addf %31, %32 : vector<16x128xf32>
    %c55 = arith.constant 55 : index
    %c0_23 = arith.constant 0 : index
    %34 = vector.load %arg10[%c55, %c0_23] : memref<74x128xf32, #tpu.memory_space<vmem>>, vector<16x128xf32>
    tpu.vector_store %arg10[%c55, %c0_23], %33 {strides = array<i32>} : memref<74x128xf32, #tpu.memory_space<vmem>>, vector<16x128xf32>,
    %c1_24 = arith.constant 1 : index
    %c0_25 = arith.constant 0 : index
    %35 = vector.load %arg10[%c1_24, %c0_25] : memref<74x128xf32, #tpu.memory_space<vmem>>, vector<72x128xf32>
    %c0_26 = arith.constant 0 : index
    %c0_27 = arith.constant 0 : index
    %36 = vector.load %arg10[%c0_26, %c0_27] : memref<74x128xf32, #tpu.memory_space<vmem>>, vector<72x128xf32>
    %c1_28 = arith.constant 1 : index
    %c0_29 = arith.constant 0 : index
    %37 = vector.load %arg10[%c1_28, %c0_29] : memref<74x128xf32, #tpu.memory_space<vmem>>, vector<72x128xf32>
    %c2_30 = arith.constant 2 : index
    %c0_31 = arith.constant 0 : index
    %38 = vector.load %arg10[%c2_30, %c0_31] : memref<74x128xf32, #tpu.memory_space<vmem>>, vector<72x128xf32>
    %39 = tpu.concatenate %36, %37, %38 in 1 : vector<72x128xf32>, vector<72x128xf32>, vector<72x128xf32> -> vector<72x384xf32>
    %40 = arith.truncf %39 : vector<72x384xf32> to vector<72x384xbf16>
    %c0_32 = arith.constant 0 : index
    %c0_33 = arith.constant 0 : index
    %c0_34 = arith.constant 0 : index
    %41 = vector.load %arg5[%c0_32, %c0_33, %c0_34] : memref<3x384x384xbf16, #tpu.memory_space<vmem>>, vector<1x384x384xbf16>
    %42 = vector.shape_cast %41 : vector<1x384x384xbf16> to vector<384x384xbf16>
    %cst_35 = arith.constant dense<0.000000e+00> : vector<72x384xf32>
    %43 = tpu.matmul %40, %42, %cst_35 {dimension_numbers = #tpu.dot_dimension_numbers<[1], [0], [0], [1], [0, 0, 1, 1], [], []>} : vector<72x384xbf16>, vector<384x384xbf16>, vector<72x384xf32> -> vector<72x384xf32>
    %c0_36 = arith.constant 0 : index
    %c0_37 = arith.constant 0 : index
    %c0_38 = arith.constant 0 : index
    %44 = vector.load %arg6[%c0_36, %c0_37, %c0_38] : memref<3x1x384xf32, #tpu.memory_space<vmem>>, vector<1x1x384xf32>
    %45 = vector.shape_cast %44 : vector<1x1x384xf32> to vector<1x384xf32>
    %46 = vector.broadcast %45 : vector<1x384xf32> to vector<72x384xf32>
    %47 = arith.addf %43, %46 : vector<72x384xf32>
    %cst_39 = arith.constant 0.000000e+00 : f32
    %48 = vector.broadcast %cst_39 : f32 to vector<72x384xf32>
    %49 = arith.cmpf ogt, %47, %48 : vector<72x384xf32>
    %cst_40 = arith.constant 0.00999999977 : f32
    %50 = vector.broadcast %cst_40 : f32 to vector<72x384xf32>
    %51 = arith.mulf %50, %47 : vector<72x384xf32>
    %52 = arith.select %49, %47, %51 : vector<72x384xi1>, vector<72x384xf32>
    %53 = vector.broadcast %4 : vector<72x1xf32> to vector<72x384xf32>
    %54 = arith.mulf %52, %53 : vector<72x384xf32>
    %55 = arith.truncf %54 : vector<72x384xf32> to vector<72x384xbf16>
    %c1_41 = arith.constant 1 : index
    %c0_42 = arith.constant 0 : index
    %56 = vector.load %arg11[%c1_41, %c0_42] : memref<74x384xbf16, #tpu.memory_space<vmem>>, vector<72x384xbf16>
    tpu.vector_store %arg11[%c1_41, %c0_42], %55 {strides = array<i32>} : memref<74x384xbf16, #tpu.memory_space<vmem>>, vector<72x384xbf16>,
    %c0_43 = arith.constant 0 : index
    %c0_44 = arith.constant 0 : index
    %57 = vector.load %arg11[%c0_43, %c0_44] : memref<74x384xbf16, #tpu.memory_space<vmem>>, vector<72x384xbf16>
    %c1_45 = arith.constant 1 : index
    %c0_46 = arith.constant 0 : index
    %58 = vector.load %arg11[%c1_45, %c0_46] : memref<74x384xbf16, #tpu.memory_space<vmem>>, vector<72x384xbf16>
    %c2_47 = arith.constant 2 : index
    %c0_48 = arith.constant 0 : index
    %59 = vector.load %arg11[%c2_47, %c0_48] : memref<74x384xbf16, #tpu.memory_space<vmem>>, vector<72x384xbf16>
    %60 = tpu.concatenate %57, %58, %59 in 1 : vector<72x384xbf16>, vector<72x384xbf16>, vector<72x384xbf16> -> vector<72x1152xbf16>
    %c0_49 = arith.constant 0 : index
    %c0_50 = arith.constant 0 : index
    %c0_51 = arith.constant 0 : index
    %61 = vector.load %arg7[%c0_49, %c0_50, %c0_51] : memref<3x1152x128xbf16, #tpu.memory_space<vmem>>, vector<1x1152x128xbf16>
    %62 = vector.shape_cast %61 : vector<1x1152x128xbf16> to vector<1152x128xbf16>
    %cst_52 = arith.constant dense<0.000000e+00> : vector<72x128xf32>
    %63 = tpu.matmul %60, %62, %cst_52 {dimension_numbers = #tpu.dot_dimension_numbers<[1], [0], [0], [1], [0, 0, 1, 1], [], []>} : vector<72x1152xbf16>, vector<1152x128xbf16>, vector<72x128xf32> -> vector<72x128xf32>
    %c0_53 = arith.constant 0 : index
    %c0_54 = arith.constant 0 : index
    %c0_55 = arith.constant 0 : index
    %64 = vector.load %arg8[%c0_53, %c0_54, %c0_55] : memref<3x1x128xf32, #tpu.memory_space<vmem>>, vector<1x1x128xf32>
    %65 = vector.shape_cast %64 : vector<1x1x128xf32> to vector<1x128xf32>
    %66 = vector.broadcast %65 : vector<1x128xf32> to vector<72x128xf32>
    %67 = arith.addf %63, %66 : vector<72x128xf32>
    %cst_56 = arith.constant 3.000000e+00 : f32
    %68 = vector.broadcast %cst_56 : f32 to vector<72x128xf32>
    %69 = arith.mulf %68, %35 : vector<72x128xf32>
    %70 = arith.addf %67, %69 : vector<72x128xf32>
    %cst_57 = arith.constant 0.000000e+00 : f32
    %71 = vector.broadcast %cst_57 : f32 to vector<72x128xf32>
    %72 = arith.cmpf ogt, %70, %71 : vector<72x128xf32>
    %cst_58 = arith.constant 0.00999999977 : f32
    %73 = vector.broadcast %cst_58 : f32 to vector<72x128xf32>
    %74 = arith.mulf %73, %70 : vector<72x128xf32>
    %75 = arith.select %72, %70, %74 : vector<72x128xi1>, vector<72x128xf32>
    %76 = vector.broadcast %4 : vector<72x1xf32> to vector<72x128xf32>
    %77 = arith.mulf %75, %76 : vector<72x128xf32>
    %c1_59 = arith.constant 1 : index
    %c0_60 = arith.constant 0 : index
    %78 = vector.load %arg10[%c1_59, %c0_60] : memref<74x128xf32, #tpu.memory_space<vmem>>, vector<72x128xf32>
    tpu.vector_store %arg10[%c1_59, %c0_60], %77 {strides = array<i32>} : memref<74x128xf32, #tpu.memory_space<vmem>>, vector<72x128xf32>,
    %c1_61 = arith.constant 1 : index
    %c0_62 = arith.constant 0 : index
    %79 = vector.load %arg10[%c1_61, %c0_62] : memref<74x128xf32, #tpu.memory_space<vmem>>, vector<72x128xf32>
    %c0_63 = arith.constant 0 : index
    %c0_64 = arith.constant 0 : index
    %80 = vector.load %arg10[%c0_63, %c0_64] : memref<74x128xf32, #tpu.memory_space<vmem>>, vector<72x128xf32>
    %c1_65 = arith.constant 1 : index
    %c0_66 = arith.constant 0 : index
    %81 = vector.load %arg10[%c1_65, %c0_66] : memref<74x128xf32, #tpu.memory_space<vmem>>, vector<72x128xf32>
    %c2_67 = arith.constant 2 : index
    %c0_68 = arith.constant 0 : index
    %82 = vector.load %arg10[%c2_67, %c0_68] : memref<74x128xf32, #tpu.memory_space<vmem>>, vector<72x128xf32>
    %83 = tpu.concatenate %80, %81, %82 in 1 : vector<72x128xf32>, vector<72x128xf32>, vector<72x128xf32> -> vector<72x384xf32>
    %84 = arith.truncf %83 : vector<72x384xf32> to vector<72x384xbf16>
    %c1_69 = arith.constant 1 : index
    %c0_70 = arith.constant 0 : index
    %c0_71 = arith.constant 0 : index
    %85 = vector.load %arg5[%c1_69, %c0_70, %c0_71] : memref<3x384x384xbf16, #tpu.memory_space<vmem>>, vector<1x384x384xbf16>
    %86 = vector.shape_cast %85 : vector<1x384x384xbf16> to vector<384x384xbf16>
    %cst_72 = arith.constant dense<0.000000e+00> : vector<72x384xf32>
    %87 = tpu.matmul %84, %86, %cst_72 {dimension_numbers = #tpu.dot_dimension_numbers<[1], [0], [0], [1], [0, 0, 1, 1], [], []>} : vector<72x384xbf16>, vector<384x384xbf16>, vector<72x384xf32> -> vector<72x384xf32>
    %c1_73 = arith.constant 1 : index
    %c0_74 = arith.constant 0 : index
    %c0_75 = arith.constant 0 : index
    %88 = vector.load %arg6[%c1_73, %c0_74, %c0_75] : memref<3x1x384xf32, #tpu.memory_space<vmem>>, vector<1x1x384xf32>
    %89 = vector.shape_cast %88 : vector<1x1x384xf32> to vector<1x384xf32>
    %90 = vector.broadcast %89 : vector<1x384xf32> to vector<72x384xf32>
    %91 = arith.addf %87, %90 : vector<72x384xf32>
    %cst_76 = arith.constant 0.000000e+00 : f32
    %92 = vector.broadcast %cst_76 : f32 to vector<72x384xf32>
    %93 = arith.cmpf ogt, %91, %92 : vector<72x384xf32>
    %cst_77 = arith.constant 0.00999999977 : f32
    %94 = vector.broadcast %cst_77 : f32 to vector<72x384xf32>
    %95 = arith.mulf %94, %91 : vector<72x384xf32>
    %96 = arith.select %93, %91, %95 : vector<72x384xi1>, vector<72x384xf32>
    %97 = vector.broadcast %4 : vector<72x1xf32> to vector<72x384xf32>
    %98 = arith.mulf %96, %97 : vector<72x384xf32>
    %99 = arith.truncf %98 : vector<72x384xf32> to vector<72x384xbf16>
    %c1_78 = arith.constant 1 : index
    %c0_79 = arith.constant 0 : index
    %100 = vector.load %arg11[%c1_78, %c0_79] : memref<74x384xbf16, #tpu.memory_space<vmem>>, vector<72x384xbf16>
    tpu.vector_store %arg11[%c1_78, %c0_79], %99 {strides = array<i32>} : memref<74x384xbf16, #tpu.memory_space<vmem>>, vector<72x384xbf16>,
    %c0_80 = arith.constant 0 : index
    %c0_81 = arith.constant 0 : index
    %101 = vector.load %arg11[%c0_80, %c0_81] : memref<74x384xbf16, #tpu.memory_space<vmem>>, vector<72x384xbf16>
    %c1_82 = arith.constant 1 : index
    %c0_83 = arith.constant 0 : index
    %102 = vector.load %arg11[%c1_82, %c0_83] : memref<74x384xbf16, #tpu.memory_space<vmem>>, vector<72x384xbf16>
    %c2_84 = arith.constant 2 : index
    %c0_85 = arith.constant 0 : index
    %103 = vector.load %arg11[%c2_84, %c0_85] : memref<74x384xbf16, #tpu.memory_space<vmem>>, vector<72x384xbf16>
    %104 = tpu.concatenate %101, %102, %103 in 1 : vector<72x384xbf16>, vector<72x384xbf16>, vector<72x384xbf16> -> vector<72x1152xbf16>
    %c1_86 = arith.constant 1 : index
    %c0_87 = arith.constant 0 : index
    %c0_88 = arith.constant 0 : index
    %105 = vector.load %arg7[%c1_86, %c0_87, %c0_88] : memref<3x1152x128xbf16, #tpu.memory_space<vmem>>, vector<1x1152x128xbf16>
    %106 = vector.shape_cast %105 : vector<1x1152x128xbf16> to vector<1152x128xbf16>
    %cst_89 = arith.constant dense<0.000000e+00> : vector<72x128xf32>
    %107 = tpu.matmul %104, %106, %cst_89 {dimension_numbers = #tpu.dot_dimension_numbers<[1], [0], [0], [1], [0, 0, 1, 1], [], []>} : vector<72x1152xbf16>, vector<1152x128xbf16>, vector<72x128xf32> -> vector<72x128xf32>
    %c1_90 = arith.constant 1 : index
    %c0_91 = arith.constant 0 : index
    %c0_92 = arith.constant 0 : index
    %108 = vector.load %arg8[%c1_90, %c0_91, %c0_92] : memref<3x1x128xf32, #tpu.memory_space<vmem>>, vector<1x1x128xf32>
    %109 = vector.shape_cast %108 : vector<1x1x128xf32> to vector<1x128xf32>
    %110 = vector.broadcast %109 : vector<1x128xf32> to vector<72x128xf32>
    %111 = arith.addf %107, %110 : vector<72x128xf32>
    %cst_93 = arith.constant 3.000000e+00 : f32
    %112 = vector.broadcast %cst_93 : f32 to vector<72x128xf32>
    %113 = arith.mulf %112, %79 : vector<72x128xf32>
    %114 = arith.addf %111, %113 : vector<72x128xf32>
    %cst_94 = arith.constant 0.000000e+00 : f32
    %115 = vector.broadcast %cst_94 : f32 to vector<72x128xf32>
    %116 = arith.cmpf ogt, %114, %115 : vector<72x128xf32>
    %cst_95 = arith.constant 0.00999999977 : f32
    %117 = vector.broadcast %cst_95 : f32 to vector<72x128xf32>
    %118 = arith.mulf %117, %114 : vector<72x128xf32>
    %119 = arith.select %116, %114, %118 : vector<72x128xi1>, vector<72x128xf32>
    %120 = vector.broadcast %4 : vector<72x1xf32> to vector<72x128xf32>
    %121 = arith.mulf %119, %120 : vector<72x128xf32>
    %c1_96 = arith.constant 1 : index
    %c0_97 = arith.constant 0 : index
    %122 = vector.load %arg10[%c1_96, %c0_97] : memref<74x128xf32, #tpu.memory_space<vmem>>, vector<72x128xf32>
    tpu.vector_store %arg10[%c1_96, %c0_97], %121 {strides = array<i32>} : memref<74x128xf32, #tpu.memory_space<vmem>>, vector<72x128xf32>,
    %c1_98 = arith.constant 1 : index
    %c0_99 = arith.constant 0 : index
    %123 = vector.load %arg10[%c1_98, %c0_99] : memref<74x128xf32, #tpu.memory_space<vmem>>, vector<72x128xf32>
    %c0_100 = arith.constant 0 : index
    %c0_101 = arith.constant 0 : index
    %124 = vector.load %arg10[%c0_100, %c0_101] : memref<74x128xf32, #tpu.memory_space<vmem>>, vector<72x128xf32>
    %c1_102 = arith.constant 1 : index
    %c0_103 = arith.constant 0 : index
    %125 = vector.load %arg10[%c1_102, %c0_103] : memref<74x128xf32, #tpu.memory_space<vmem>>, vector<72x128xf32>
    %c2_104 = arith.constant 2 : index
    %c0_105 = arith.constant 0 : index
    %126 = vector.load %arg10[%c2_104, %c0_105] : memref<74x128xf32, #tpu.memory_space<vmem>>, vector<72x128xf32>
    %127 = tpu.concatenate %124, %125, %126 in 1 : vector<72x128xf32>, vector<72x128xf32>, vector<72x128xf32> -> vector<72x384xf32>
    %128 = arith.truncf %127 : vector<72x384xf32> to vector<72x384xbf16>
    %c2_106 = arith.constant 2 : index
    %c0_107 = arith.constant 0 : index
    %c0_108 = arith.constant 0 : index
    %129 = vector.load %arg5[%c2_106, %c0_107, %c0_108] : memref<3x384x384xbf16, #tpu.memory_space<vmem>>, vector<1x384x384xbf16>
    %130 = vector.shape_cast %129 : vector<1x384x384xbf16> to vector<384x384xbf16>
    %cst_109 = arith.constant dense<0.000000e+00> : vector<72x384xf32>
    %131 = tpu.matmul %128, %130, %cst_109 {dimension_numbers = #tpu.dot_dimension_numbers<[1], [0], [0], [1], [0, 0, 1, 1], [], []>} : vector<72x384xbf16>, vector<384x384xbf16>, vector<72x384xf32> -> vector<72x384xf32>
    %c2_110 = arith.constant 2 : index
    %c0_111 = arith.constant 0 : index
    %c0_112 = arith.constant 0 : index
    %132 = vector.load %arg6[%c2_110, %c0_111, %c0_112] : memref<3x1x384xf32, #tpu.memory_space<vmem>>, vector<1x1x384xf32>
    %133 = vector.shape_cast %132 : vector<1x1x384xf32> to vector<1x384xf32>
    %134 = vector.broadcast %133 : vector<1x384xf32> to vector<72x384xf32>
    %135 = arith.addf %131, %134 : vector<72x384xf32>
    %cst_113 = arith.constant 0.000000e+00 : f32
    %136 = vector.broadcast %cst_113 : f32 to vector<72x384xf32>
    %137 = arith.cmpf ogt, %135, %136 : vector<72x384xf32>
    %cst_114 = arith.constant 0.00999999977 : f32
    %138 = vector.broadcast %cst_114 : f32 to vector<72x384xf32>
    %139 = arith.mulf %138, %135 : vector<72x384xf32>
    %140 = arith.select %137, %135, %139 : vector<72x384xi1>, vector<72x384xf32>
    %141 = vector.broadcast %4 : vector<72x1xf32> to vector<72x384xf32>
    %142 = arith.mulf %140, %141 : vector<72x384xf32>
    %143 = arith.truncf %142 : vector<72x384xf32> to vector<72x384xbf16>
    %c1_115 = arith.constant 1 : index
    %c0_116 = arith.constant 0 : index
    %144 = vector.load %arg11[%c1_115, %c0_116] : memref<74x384xbf16, #tpu.memory_space<vmem>>, vector<72x384xbf16>
    tpu.vector_store %arg11[%c1_115, %c0_116], %143 {strides = array<i32>} : memref<74x384xbf16, #tpu.memory_space<vmem>>, vector<72x384xbf16>,
    %c0_117 = arith.constant 0 : index
    %c0_118 = arith.constant 0 : index
    %145 = vector.load %arg11[%c0_117, %c0_118] : memref<74x384xbf16, #tpu.memory_space<vmem>>, vector<72x384xbf16>
    %c1_119 = arith.constant 1 : index
    %c0_120 = arith.constant 0 : index
    %146 = vector.load %arg11[%c1_119, %c0_120] : memref<74x384xbf16, #tpu.memory_space<vmem>>, vector<72x384xbf16>
    %c2_121 = arith.constant 2 : index
    %c0_122 = arith.constant 0 : index
    %147 = vector.load %arg11[%c2_121, %c0_122] : memref<74x384xbf16, #tpu.memory_space<vmem>>, vector<72x384xbf16>
    %148 = tpu.concatenate %145, %146, %147 in 1 : vector<72x384xbf16>, vector<72x384xbf16>, vector<72x384xbf16> -> vector<72x1152xbf16>
    %c2_123 = arith.constant 2 : index
    %c0_124 = arith.constant 0 : index
    %c0_125 = arith.constant 0 : index
    %149 = vector.load %arg7[%c2_123, %c0_124, %c0_125] : memref<3x1152x128xbf16, #tpu.memory_space<vmem>>, vector<1x1152x128xbf16>
    %150 = vector.shape_cast %149 : vector<1x1152x128xbf16> to vector<1152x128xbf16>
    %cst_126 = arith.constant dense<0.000000e+00> : vector<72x128xf32>
    %151 = tpu.matmul %148, %150, %cst_126 {dimension_numbers = #tpu.dot_dimension_numbers<[1], [0], [0], [1], [0, 0, 1, 1], [], []>} : vector<72x1152xbf16>, vector<1152x128xbf16>, vector<72x128xf32> -> vector<72x128xf32>
    %c2_127 = arith.constant 2 : index
    %c0_128 = arith.constant 0 : index
    %c0_129 = arith.constant 0 : index
    %152 = vector.load %arg8[%c2_127, %c0_128, %c0_129] : memref<3x1x128xf32, #tpu.memory_space<vmem>>, vector<1x1x128xf32>
    %153 = vector.shape_cast %152 : vector<1x1x128xf32> to vector<1x128xf32>
    %154 = vector.broadcast %153 : vector<1x128xf32> to vector<72x128xf32>
    %155 = arith.addf %151, %154 : vector<72x128xf32>
    %cst_130 = arith.constant 3.000000e+00 : f32
    %156 = vector.broadcast %cst_130 : f32 to vector<72x128xf32>
    %157 = arith.mulf %156, %123 : vector<72x128xf32>
    %158 = arith.addf %155, %157 : vector<72x128xf32>
    %cst_131 = arith.constant 0.000000e+00 : f32
    %159 = vector.broadcast %cst_131 : f32 to vector<72x128xf32>
    %160 = arith.cmpf ogt, %158, %159 : vector<72x128xf32>
    %cst_132 = arith.constant 0.00999999977 : f32
    %161 = vector.broadcast %cst_132 : f32 to vector<72x128xf32>
    %162 = arith.mulf %161, %158 : vector<72x128xf32>
    %163 = arith.select %160, %158, %162 : vector<72x128xi1>, vector<72x128xf32>
    %164 = vector.broadcast %4 : vector<72x1xf32> to vector<72x128xf32>
    %165 = arith.mulf %163, %164 : vector<72x128xf32>
    %c1_133 = arith.constant 1 : index
    %c0_134 = arith.constant 0 : index
    %166 = vector.load %arg10[%c1_133, %c0_134] : memref<74x128xf32, #tpu.memory_space<vmem>>, vector<72x128xf32>
    tpu.vector_store %arg10[%c1_133, %c0_134], %165 {strides = array<i32>} : memref<74x128xf32, #tpu.memory_space<vmem>>, vector<72x128xf32>,
    %c1_135 = arith.constant 1 : index
    %c0_136 = arith.constant 0 : index
    %167 = vector.load %arg10[%c1_135, %c0_136] : memref<74x128xf32, #tpu.memory_space<vmem>>, vector<16x128xf32>
    %cst_137 = arith.constant 0.333333343 : f32
    %168 = vector.broadcast %cst_137 : f32 to vector<16x128xf32>
    %169 = arith.mulf %167, %168 : vector<16x128xf32>
    %c0_138 = arith.constant 0 : index
    %c0_139 = arith.constant 0 : index
    %c0_140 = arith.constant 0 : index
    %170 = vector.load %arg9[%c0_138, %c0_139, %c0_140] : memref<4x16x128xf32, #tpu.memory_space<vmem>>, vector<1x16x128xf32>
    %171 = vector.shape_cast %170 : vector<1x16x128xf32> to vector<16x128xf32>
    %172 = vector.shape_cast %169 : vector<16x128xf32> to vector<1x16x128xf32>
    tpu.vector_store %arg9[%c0_138, %c0_139, %c0_140], %172 {strides = array<i32>} : memref<4x16x128xf32, #tpu.memory_space<vmem>>, vector<1x16x128xf32>,
    %c19_141 = arith.constant 19 : index
    %c0_142 = arith.constant 0 : index
    %173 = vector.load %arg10[%c19_141, %c0_142] : memref<74x128xf32, #tpu.memory_space<vmem>>, vector<16x128xf32>
    %cst_143 = arith.constant 0.333333343 : f32
    %174 = vector.broadcast %cst_143 : f32 to vector<16x128xf32>
    %175 = arith.mulf %173, %174 : vector<16x128xf32>
    %c1_144 = arith.constant 1 : index
    %c0_145 = arith.constant 0 : index
    %c0_146 = arith.constant 0 : index
    %176 = vector.load %arg9[%c1_144, %c0_145, %c0_146] : memref<4x16x128xf32, #tpu.memory_space<vmem>>, vector<1x16x128xf32>
    %177 = vector.shape_cast %176 : vector<1x16x128xf32> to vector<16x128xf32>
    %178 = vector.shape_cast %175 : vector<16x128xf32> to vector<1x16x128xf32>
    tpu.vector_store %arg9[%c1_144, %c0_145, %c0_146], %178 {strides = array<i32>} : memref<4x16x128xf32, #tpu.memory_space<vmem>>, vector<1x16x128xf32>,
    %c37_147 = arith.constant 37 : index
    %c0_148 = arith.constant 0 : index
    %179 = vector.load %arg10[%c37_147, %c0_148] : memref<74x128xf32, #tpu.memory_space<vmem>>, vector<16x128xf32>
    %cst_149 = arith.constant 0.333333343 : f32
    %180 = vector.broadcast %cst_149 : f32 to vector<16x128xf32>
    %181 = arith.mulf %179, %180 : vector<16x128xf32>
    %c2_150 = arith.constant 2 : index
    %c0_151 = arith.constant 0 : index
    %c0_152 = arith.constant 0 : index
    %182 = vector.load %arg9[%c2_150, %c0_151, %c0_152] : memref<4x16x128xf32, #tpu.memory_space<vmem>>, vector<1x16x128xf32>
    %183 = vector.shape_cast %182 : vector<1x16x128xf32> to vector<16x128xf32>
    %184 = vector.shape_cast %181 : vector<16x128xf32> to vector<1x16x128xf32>
    tpu.vector_store %arg9[%c2_150, %c0_151, %c0_152], %184 {strides = array<i32>} : memref<4x16x128xf32, #tpu.memory_space<vmem>>, vector<1x16x128xf32>,
    %c55_153 = arith.constant 55 : index
    %c0_154 = arith.constant 0 : index
    %185 = vector.load %arg10[%c55_153, %c0_154] : memref<74x128xf32, #tpu.memory_space<vmem>>, vector<16x128xf32>
    %cst_155 = arith.constant 0.333333343 : f32
    %186 = vector.broadcast %cst_155 : f32 to vector<16x128xf32>
    %187 = arith.mulf %185, %186 : vector<16x128xf32>
    %c3_156 = arith.constant 3 : index
    %c0_157 = arith.constant 0 : index
    %c0_158 = arith.constant 0 : index
    %188 = vector.load %arg9[%c3_156, %c0_157, %c0_158] : memref<4x16x128xf32, #tpu.memory_space<vmem>>, vector<1x16x128xf32>
    %189 = vector.shape_cast %188 : vector<1x16x128xf32> to vector<16x128xf32>
    %190 = vector.shape_cast %187 : vector<16x128xf32> to vector<1x16x128xf32>
    tpu.vector_store %arg9[%c3_156, %c0_157, %c0_158], %190 {strides = array<i32>} : memref<4x16x128xf32, #tpu.memory_space<vmem>>, vector<1x16x128xf32>,
    return
  }
  func.func @transform_0(%arg0: i32) -> (i32, i32, i32) {
    %c0_i32 = arith.constant 0 : i32
    %c0_i32_0 = arith.constant 0 : i32
    %c0_i32_1 = arith.constant 0 : i32
    return %arg0, %c0_i32, %c0_i32_0 : i32, i32, i32
  }
  func.func @transform_1(%arg0: i32) -> (i32, i32) {
    %c0_i32 = arith.constant 0 : i32
    %c0_i32_0 = arith.constant 0 : i32
    %c0_i32_1 = arith.constant 0 : i32
    return %c0_i32, %c0_i32_0 : i32, i32
  }
  func.func @transform_2(%arg0: i32) -> (i32, i32) {
    %c0_i32 = arith.constant 0 : i32
    %c0_i32_0 = arith.constant 0 : i32
    %c0_i32_1 = arith.constant 0 : i32
    return %c0_i32, %c0_i32_0 : i32, i32
  }
  func.func @transform_3(%arg0: i32) -> (i32, i32) {
    %c0_i32 = arith.constant 0 : i32
    %c0_i32_0 = arith.constant 0 : i32
    %c0_i32_1 = arith.constant 0 : i32
    return %c0_i32, %c0_i32_0 : i32, i32
  }
  func.func @transform_4(%arg0: i32) -> (i32, i32, i32) {
    %c0_i32 = arith.constant 0 : i32
    %c0_i32_0 = arith.constant 0 : i32
    %c0_i32_1 = arith.constant 0 : i32
    %c0_i32_2 = arith.constant 0 : i32
    return %c0_i32, %c0_i32_0, %c0_i32_1 : i32, i32, i32
  }
  func.func @transform_5(%arg0: i32) -> (i32, i32, i32) {
    %c0_i32 = arith.constant 0 : i32
    %c0_i32_0 = arith.constant 0 : i32
    %c0_i32_1 = arith.constant 0 : i32
    %c0_i32_2 = arith.constant 0 : i32
    return %c0_i32, %c0_i32_0, %c0_i32_1 : i32, i32, i32
  }
  func.func @transform_6(%arg0: i32) -> (i32, i32, i32) {
    %c0_i32 = arith.constant 0 : i32
    %c0_i32_0 = arith.constant 0 : i32
    %c0_i32_1 = arith.constant 0 : i32
    %c0_i32_2 = arith.constant 0 : i32
    return %c0_i32, %c0_i32_0, %c0_i32_1 : i32, i32, i32
  }
  func.func @transform_7(%arg0: i32) -> (i32, i32, i32) {
    %c0_i32 = arith.constant 0 : i32
    %c0_i32_0 = arith.constant 0 : i32
    %c0_i32_1 = arith.constant 0 : i32
    %c0_i32_2 = arith.constant 0 : i32
    return %c0_i32, %c0_i32_0, %c0_i32_1 : i32, i32, i32
  }
  func.func @transform_8(%arg0: i32) -> (i32, i32, i32) {
    %c0_i32 = arith.constant 0 : i32
    %c0_i32_0 = arith.constant 0 : i32
    %c0_i32_1 = arith.constant 0 : i32
    return %arg0, %c0_i32, %c0_i32_0 : i32, i32, i32
  }
}

</mosaic_0001>

<bundles_post_ra>
// kernel: tpu_custom_call.1
= control target key start
LH: loop header
LB: loop body
LE: loop exit
PB: predicated region body
PF: predicated region fallthrough
CT: control target
= control target key end

     0   :  { %s12763_s0 = inlined_call_operand.hbm [shape: f32[8,16,128], index: 0, kind: input, shape index: {}]   ;;  %s12764_s1 = inlined_call_operand.vmem [shape: f32[1,128], index: 1, kind: input, shape index: {}]   ;;  %s12765_s2 = inlined_call_operand.vmem [shape: f32[1,128], index: 2, kind: input, shape index: {}]   ;;  %s12766_s3 = inlined_call_operand.vmem [shape: f32[72,1], index: 3, kind: input, shape index: {}]   ;;  %s12767_s4 = inlined_call_operand.hbm [shape: bf16[3,384,384], index: 4, kind: input, shape index: {}]   ;;  %s12768_s5 = inlined_call_operand.vmem [shape: f32[3,1,384], index: 5, kind: input, shape index: {}]   ;;  %s12769_s6 = inlined_call_operand.hbm [shape: bf16[3,1152,128], index: 6, kind: input, shape index: {}]   ;;  %s12770_s7 = inlined_call_operand.vmem [shape: f32[3,1,128], index: 7, kind: input, shape index: {}]   ;;  %s12771_s8 = inlined_call_operand.hbm [shape: f32[8,16,128], index: 8, kind: output, shape index: {}]  }
   0x1   :  { %12823 = sst [smem:[#allocation37_spill]] %s12767_s4 }
   0x2   :  { %12824 = sst [smem:[#allocation38_spill]] %s12769_s6 }
   0x3   :  { %13 = vsyncpa [#allocation5], 0 }
   0x4   :  { %15 = vsyncpa [#allocation5 + $0x1], 0 }
   0x5   :  { %16 = vsyncpa [#allocation8], 0 }
   0x6   :  { %17 = vsyncpa [#allocation6], 0 }
   0x7   :  { %19 = vsyncpa [#allocation6 + $0x1], 0  ;;  %s10727_s27 = smov 0   ;;  %s10729_s28 = smov 0  }
   0x8   :  { %s10731_s29 = smov 0   ;;  %s10733_s30 = smov 0  }
   0x9 LB: > { %s10748_s9 = sadd.s32 4294967295, %s10665_s30   ;;  %s8237_s10 = sadd.s32 4294967294, %s10665_s30   ;;  %s10665_s30 = sphi %s10733_s30, %s12959_s30   ;;  %s10661_s29 = sphi %s10731_s29, %s12958_s29   ;;  %s10657_s28 = sphi %s10729_s28, %s12957_s28   ;;  %s10653_s27 = sphi %s10727_s27, %s12956_s27  }
   0xa   : > { %p45_p0 = scmp.ne.s32.totalorder %s10657_s28, %s10653_s27  ;;  %p12772_p1 = scmp.eq.s32.totalorder %s10748_s9, 0 }
   0xb   : > { %p222_p3 = scmp.eq.s32.totalorder %s8237_s10, 1  ;;  %p8238_p5 = scmp.ge.s32.totalorder %s10665_s30, 1 }
   0xc   : > { %p10757_p4 = por %p12772_p1, %p45_p0  ;;  %p229_p7 = scmp.lt.s32.totalorder %s10665_s30, 3 }
   0xd   : > { %p10762_p6 = por %p222_p3, %p45_p0  ;;  %s10667_s14 = smov [#allocation7]  }
   0xe   : > { %s12825_s11 = scalar_select %p10757_p4, 1, 0 }
   0xf   : > { %s12826_s12 = scalar_select %p10762_p6, 1, 0 }
  0x10   : > { %p10767_p8 = pnand %p8238_p5, %p229_p7  ;;  %s250_s15 = sshll.u32 %s10667_s14, 4  ;;  %s251_s15 = int_to_ptr.vmem [resolvable:$true] %s250_s15 }
  0x11   : > { %s10668_s17 = smov [#allocation9]   ;;  %s10528_s19 = scalar_lea.vmem %s251_s15, 27648 }
  0x12   : > { %s12827_s13 = scalar_select %p10767_p8, 1, 0 }
  0x13   : > { %p9897_p9 = pneg %p10767_p8  ;;  %s266_s18 = sshll.u32 %s10668_s17, 4  ;;  %s267_s18 = int_to_ptr.vmem [resolvable:$true] %s266_s18 }
  0x14   : > { %p10529_p13 = scmp.ne.s32.totalorder %s251_s15, %s10528_s19  ;;  %p10536_p5 = scmp.lt.s32.totalorder %s251_s15, %s251_s15 }
  0x15   : > { %p10776_p11 = pnand %p9897_p9, %p12772_p1  ;;  %p10537_p7 = scmp.lt.s32.totalorder %s10528_s19, %s10528_s19 }
  0x17   : > { %p10519_p12 = pneg %p10776_p11  ;;  %p10538_p10 = por %p10537_p7, %p10536_p5 }
  0x19   : > { %p10531_p0 = pnand %p10529_p13, %p10519_p12 }
  0x1b   : > { %p10532_p3 = pneg %p10531_p0 }
  0x1d   : > { %p10539_p9 = pnand %p10538_p10, %p10532_p3 }
  0x1f   : > { %10542 = shalt.err (!%p10539_p9)
}
  0x20   : > { %s10669_s20 = smov 192   ;;  %s10670_s21 = smov 12  }
  0x21   : > { %s12829_s4 = sld [smem:[#allocation37_spill]]  ;;  %s10554_s24 = scalar_lea.vmem %s267_s18, 27648 }
  0x22   : > { %p10555_p1 = scmp.ne.s32.totalorder %s267_s18, %s10554_s24  ;;  %p10562_p2 = scmp.lt.s32.totalorder %s267_s18, %s267_s18 }
  0x23   : > { %p10563_p6 = scmp.lt.s32.totalorder %s10554_s24, %s10554_s24 }
  0x24   : > { %p10557_p13 = pnand %p10555_p1, %p10519_p12 }
  0x25   : > { %p10564_p5 = por %p10563_p6, %p10562_p2 }
  0x26   : > { %p10558_p0 = pneg %p10557_p13 }
  0x27   : > { %9900 = dma.hbm_to_vmem [thread:$0]  (!%p10776_p11), %s12829_s4, 27648, %s251_s15, [#allocation8], %s10669_s20, %s10669_s20, %s10670_s21  }
  0x28   : > { %p10565_p10 = pnand %p10564_p5, %p10558_p0 }
  0x2a   : > { %10568 = shalt.err (!%p10565_p10)
}
  0x2b   : > { %s10671_s25 = smov 64   ;;  %s10672_s26 = smov 4  }
  0x2c   : > { %s12830_s6 = sld [smem:[#allocation38_spill]]  ;;  %s10799_s15 = sadd.s32 1, %s10665_s30  }
  0x2d   : > { %s29_s17 = ssub.s32 %s10665_s30, %s10799_s15  ;;  %s32_s19 = sadd.s32 1, %s10661_s29 }
  0x2e   : > { %p30_p1 = scmp.eq.s32.totalorder %s29_s17, 0  ;;  %p39_p2 = scmp.ne.s32.totalorder %s10661_s29, %s10657_s28 }
  0x2f   : > { %p40_p6 = scmp.eq.s32.totalorder %s10665_s30, 0  ;;  %p12831_p3 = scmp.eq.s32.totalorder %s10748_s9, 1 }
  0x30   : > { %s10808_s20 = scalar_select %p30_p1, %s10661_s29, %s32_s19  }
  0x31   : > { %p41_p12 = por %p40_p6, %p39_p2  ;;  %p10812_p7 = por %p12831_p3, %p39_p2 }
  0x32   : > { %9903 = dma.hbm_to_vmem [thread:$0]  (!%p10776_p11), %s12830_s6, 27648, %s267_s18, [#allocation8], %s10671_s25, %s10671_s25, %s10672_s26  }
  0x33   : > { %s12832_s21 = scalar_select %p10812_p7, 1, 0 }
  0x34   : > { %p9914_p9 = scmp.lt.s32.totalorder %s10665_s30, 2  ;;  %s283_s16 = sand.u32 1, %s10661_s29  }
  0x35   : > { %s8242_s22 = sshll.u32 %s283_s16, 6  ;;  %s8828_s18 = sshll.u32 %s10665_s30, 10 }
  0x36   : > { %s10822_s25 = scalar_lea.hbm %s12763_s0, %s8828_s18  ;;  %s287_s26 = scalar_lea.vmem [#allocation4], %s8242_s22 }
  0x37   : > { %s295_s10 = sshll.u32 %s287_s26, 4  ;;  %p10826_p11 = pnand %p9914_p9, %p41_p12  ;;  %s10824_s10 = int_to_ptr.vmem [resolvable:$true] %s295_s10 }
  0x38   : > { %s10830_s17 = scalar_lea.sflag [#allocation5], %s283_s16  ;;  %s10569_s19 = scalar_lea.hbm %s10822_s25, 1024 }
  0x39   : > { %p10570_p13 = scmp.ne.s32.totalorder %s10822_s25, %s10569_s19  ;;  %p10571_p0 = pneg %p10826_p11 }
  0x3a   : > { %s10574_s22 = scalar_lea.hbm %s12763_s0, 2048  ;;  %p10575_p1 = scmp.lt.s32.totalorder %s10822_s25, %s12763_s0 }
  0x3b   : > { %p10572_p5 = pnand %p10571_p0, %p10570_p13  ;;  %p10576_p2 = scmp.lt.s32.totalorder %s10574_s22, %s10569_s19 }
  0x3d   : > { %p10573_p10 = pneg %p10572_p5  ;;  %p10577_p6 = por %p10576_p2, %p10575_p1 }
  0x3f   : > { %p10578_p12 = pnand %p10577_p6, %p10573_p10 }
  0x41   : > { %10581 = shalt.err (!%p10578_p12)
}
  0x42   : > { %s10582_s16 = scalar_lea.vmem %s10824_s10, 1024  ;;  %s10673_s4 = smov [#allocation4]  }
  0x43   : > { %p10583_p3 = scmp.ne.s32.totalorder %s10824_s10, %s10582_s16  ;;  %s10587_s6 = sshll.u32 %s10673_s4, 4  ;;  %s10588_s6 = int_to_ptr.vmem [resolvable:$false] %s10587_s6 }
  0x44   : > { %s10589_s18 = scalar_lea.vmem %s10588_s6, 2048  ;;  %p10590_p5 = scmp.lt.s32.totalorder %s10824_s10, %s10588_s6 }
  0x45   : > { %p10585_p9 = pnand %p10583_p3, %p10571_p0  ;;  %p10591_p7 = scmp.lt.s32.totalorder %s10589_s18, %s10582_s16 }
  0x47   : > { %p10586_p13 = pneg %p10585_p9  ;;  %p10592_p4 = por %p10591_p7, %p10590_p5 }
  0x49   : > { %p10593_p8 = pnand %p10592_p4, %p10586_p13 }
  0x4b   : > { %10596 = shalt.err (!%p10593_p8)
}
  0x4c   : > { %s10674_s19 = smov 128   ;;  %s10675_s23 = smov 8  }
  0x4d   : > { %9907 = dma.hbm_to_vmem [thread:$0]  (!%p10826_p11), %s10822_s25, 1024, %s10824_s10, %s10830_s17, %s10674_s19, %s10674_s19, %s10675_s23  }
  0x4e   : > { %p12834_p0 = scmp.ne.s32.totalorder %s12827_s13, 0 }
  0x50   : > { %307 = sbr.rel (%p12834_p0) target bundleno = 1834 (0x72a), region = 52 }
  0x55   : > { %s10854_s4 = sand.u32 1, %s10657_s28   ;;  %p12835_p4 = scmp.ne.s32.totalorder %s12825_s11, 0 }
  0x56   : > { %s8247_s6 = sshll.u32 %s10854_s4, 6  ;;  %s310_s22 = scalar_lea.sflag [#allocation5], %s10854_s4 }
  0x57   : > { %s10860_s24 = scalar_lea.vmem [#allocation4], %s8247_s6 }
  0x58   : > { %10640 = dma.done.wait (%p12835_p4), %s310_s22, 1024  }
  0x59   : > { %10642 = vsyncadd (%p12835_p4), %s310_s22, 4294966272  ;;  %p12836_p8 = scmp.eq.s32.totalorder %s10748_s9, 0 }
  0x5b   : > { %10644 = dma.done.wait (%p12836_p8), [#allocation8], 55296   ;;  %p12837_p7 = pmov %p12836_p8 }
  0x5c   : > { %v12776_v0 = vmov 0   ;;  %v12778_v1 = vmov 0.0   ;;  %v9965_v2 = vld [vmem:[#allocation7 + $0xac] ss:$12 sps:$4 sm:$0xff]   ;;  %v9967_v3 = vld [vmem:[#allocation7 + $0xa8] ss:$12 sps:$4 sm:$0xff]  }
  0x5d   : > { %10646 = vsyncadd (%p12837_p7), [#allocation8], 4294912000  ;;  %1097 = vmatprep.mubr.bf16.mxu1 %v12776_v0  ;;  %368 = vst [vmem:[#allocation3 + $0x8] sm:$0xf] %v12776_v0  ;;  %9963 = vset.pattern.permute.xlu0 %v12776_v0  ;;  %v9968_v4 = vld [vmem:[#allocation7 + $0x94] ss:$12 sps:$4 sm:$0xff]  }
  0x5e   : > { %370 = vst [vmem:[#allocation3 + $0x14] sm:$0xf] %v12776_v0  ;;  %372 = vst [vmem:[#allocation3 + $0x20] sm:$0xf] %v12776_v0  ;;  %9964 = vset.pattern.permute.xlu1 %v12776_v0  ;;  %984 = vmatprep.subr.bf16.mxu0 %v9965_v2  ;;  %v9970_v5 = vld [vmem:[#allocation7 + $0x90] ss:$12 sps:$4 sm:$0xff]  }
  0x5f   : > { %374 = vst [vmem:[#allocation3 + $0x2c] sm:$0xf] %v12776_v0  ;;  %376 = vst [vmem:[#allocation3 + $0x38] sm:$0xf] %v12776_v0  ;;  %985 = vmatpush1.bf16.msra.mxu0 %v9967_v3  ;;  %v9971_v6 = vld [vmem:[#allocation7 + $0x7c] ss:$12 sps:$4 sm:$0xff]  }
  0x60   : > { %378 = vst [vmem:[#allocation3 + $0x44] sm:$0xf] %v12776_v0  ;;  %380 = vst [vmem:[#allocation3 + $0x50] sm:$0xf] %v12776_v0  ;;  %986 = vmatprep.subr.bf16.mxu0 %v9968_v4  ;;  %v9973_v7 = vld [vmem:[#allocation7 + $0x78] ss:$12 sps:$4 sm:$0xff]  }
  0x61   : > { %382 = vst [vmem:[#allocation3 + $0x5c] sm:$0xf] %v12776_v0  ;;  %384 = vst [vmem:[#allocation3 + $0x68] sm:$0xf] %v12776_v0  ;;  %v9974_v8 = vld [vmem:[#allocation7 + $0x64] ss:$12 sps:$4 sm:$0xff]  }
  0x62   : > { %385 = vst [vmem:[#allocation3 + $0x6c] sm:$0x11] %v12776_v0  ;;  %386 = vst [vmem:[#allocation3 + $0x74] sm:$0x1] %v12776_v0  ;;  %v9983_v9 = vld [vmem:[#allocation7 + $0x22c] ss:$12 sps:$4 sm:$0xff]  }
  0x63   : > { %357 = vst [vmem:[#allocation2] sm:$0xff] %v12778_v1  ;;  %358 = vst [vmem:[#allocation2 + $0x8] sm:$0xff] %v12778_v1  ;;  %987 = vmatpush1.bf16.msra.mxu0 %v9970_v5  ;;  %v9985_v10 = vld [vmem:[#allocation7 + $0x228] ss:$12 sps:$4 sm:$0xff]   ;;  %v9976_v11 = vld [vmem:[#allocation7 + $0x60] ss:$12 sps:$4 sm:$0xff]   ;;  %1065 = vmatprep.subr.bf16.mxu1 %v9983_v9 }
  0x64   : > { %359 = vst [vmem:[#allocation2 + $0x10] sm:$0xff] %v12778_v1  ;;  %360 = vst [vmem:[#allocation2 + $0x18] sm:$0xff] %v12778_v1  ;;  %988 = vmatprep.subr.bf16.mxu0 %v9971_v6  ;;  %1066 = vmatpush1.bf16.msra.mxu1 %v9985_v10  ;;  %v9989_v12 = vld [vmem:[#allocation7 + $0x214] ss:$12 sps:$4 sm:$0xff]   ;;  %v9991_v13 = vld [vmem:[#allocation7 + $0x210] ss:$12 sps:$4 sm:$0xff]  }
  0x65   : > { %361 = vst [vmem:[#allocation2 + $0x20] sm:$0xff] %v12778_v1  ;;  %362 = vst [vmem:[#allocation2 + $0x28] sm:$0xff] %v12778_v1  ;;  %v9977_v14 = vld [vmem:[#allocation7 + $0x4c] ss:$12 sps:$4 sm:$0xff]   ;;  %1067 = vmatprep.subr.bf16.mxu1 %v9989_v12  ;;  %v9979_v15 = vld [vmem:[#allocation7 + $0x48] ss:$12 sps:$4 sm:$0xff]  }
  0x66   : > { %363 = vst [vmem:[#allocation2 + $0x30] sm:$0xff] %v12778_v1  ;;  %364 = vst [vmem:[#allocation2 + $0x38] sm:$0xff] %v12778_v1  ;;  %v9995_v16 = vld [vmem:[#allocation7 + $0x1fc] ss:$12 sps:$4 sm:$0xff]   ;;  %v9980_v17 = vld [vmem:[#allocation7 + $0x34] ss:$12 sps:$4 sm:$0xff]  }
  0x67   : > { %365 = vst [vmem:[#allocation2 + $0x40] sm:$0xff] %v12778_v1  ;;  %366 = vst [vmem:[#allocation2 + $0x48] sm:$0x3] %v12778_v1  ;;  %989 = vmatpush1.bf16.msra.mxu0 %v9973_v7  ;;  %v9997_v18 = vld [vmem:[#allocation7 + $0x1f8] ss:$12 sps:$4 sm:$0xff]   ;;  %v399_v36 = vld [vmem:[%s10860_s24 + $0x8] sm:$0xff] }
  0x68   : > { %990 = vmatprep.subr.bf16.mxu0 %v9974_v8  ;;  %1068 = vmatpush1.bf16.msra.mxu1 %v9991_v13  ;;  %v10001_v19 = vld [vmem:[#allocation7 + $0x1e4] ss:$12 sps:$4 sm:$0xff]   ;;  %v9986_v21 = vld [vmem:[#allocation7 + $0x1c] ss:$12 sps:$4 sm:$0xff]   ;;  %v10003_v22 = vld [vmem:[#allocation7 + $0x1e0] ss:$12 sps:$4 sm:$0xff]  }
  0x69   : > { %1069 = vmatprep.subr.bf16.mxu1 %v9995_v16  ;;  %v9982_v20 = vld [vmem:[#allocation7 + $0x30] ss:$12 sps:$4 sm:$0xff]   ;;  %v10007_v23 = vld [vmem:[#allocation7 + $0x1cc] ss:$12 sps:$4 sm:$0xff]   ;;  %v10009_v26 = vld [vmem:[#allocation7 + $0x1c8] ss:$12 sps:$4 sm:$0xff]  }
  0x6a   : > { %v9988_v24 = vld [vmem:[#allocation7 + $0x18] ss:$12 sps:$4 sm:$0xff]   ;;  %v10013_v27 = vld [vmem:[#allocation7 + $0x1b4] ss:$12 sps:$4 sm:$0xff]   ;;  %v10015_v30 = vld [vmem:[#allocation7 + $0x1b0] ss:$12 sps:$4 sm:$0xff]  }
  0x6b   : > { %991 = vmatpush1.bf16.msra.mxu0 %v9976_v11  ;;  %v9992_v25 = vld [vmem:[#allocation7 + $0x4] ss:$12 sps:$4 sm:$0xff]   ;;  %v9994_v28 = vld [vmem:[#allocation7] ss:$12 sps:$4 sm:$0xff]   ;;  %v10019_v31 = vld [vmem:[#allocation7 + $0x19c] ss:$12 sps:$4 sm:$0xff]  }
  0x6c   : > { %992 = vmatprep.subr.bf16.mxu0 %v9977_v14  ;;  %1070 = vmatpush1.bf16.msra.mxu1 %v9997_v18  ;;  %v9998_v29 = vld [vmem:[#allocation7 + $0x16c] ss:$12 sps:$4 sm:$0xff]   ;;  %v10000_v32 = vld [vmem:[#allocation7 + $0x168] ss:$12 sps:$4 sm:$0xff]   ;;  %v398_v35 = vld [vmem:[%s10860_s24] sm:$0xff]  ;;  %vm10678_vm0 = vmmov 0  }
  0x6d   : > { %1071 = vmatprep.subr.bf16.mxu1 %v10001_v19  ;;  %v10897_v33 = vld [vmem:[%s12764_s1] ss:$0 sm:$0xff]  ;;  %v10004_v37 = vld [vmem:[#allocation7 + $0x154] ss:$12 sps:$4 sm:$0xff]   ;;  %v10025_v41 = vld [vmem:[#allocation7 + $0x184] ss:$12 sps:$4 sm:$0xff]  }
  0x6e   : > { %v10902_v34 = vld [vmem:[%s12765_s2] ss:$0 sm:$0xff]  ;;  %v406_v39 = vmul.f32 %v10897_v33, %v398_v35  ;;  %v407_v40 = vmul.f32 %v10897_v33, %v399_v36  ;;  %v10006_v42 = vld [vmem:[#allocation7 + $0x150] ss:$12 sps:$4 sm:$0xff]   ;;  %v10027_v46 = vld [vmem:[#allocation7 + $0x180] ss:$12 sps:$4 sm:$0xff]  }
  0x6f   : > { %993 = vmatpush1.bf16.msra.mxu0 %v9979_v15  ;;  %v10021_v38 = vld [vmem:[#allocation7 + $0x198] ss:$12 sps:$4 sm:$0xff]   ;;  %v10010_v45 = vld [vmem:[#allocation7 + $0x13c] ss:$12 sps:$4 sm:$0xff]   ;;  %v8253_v47 = vld [vmem:[%s10860_s24 + $0x10] sm:$0xff]  ;;  %vm1701_vm12 = vcmask 1043456  }
  0x70   : > { %994 = vmatprep.subr.bf16.mxu0 %v9980_v17  ;;  %1072 = vmatpush1.bf16.msra.mxu1 %v10003_v22  ;;  %v414_v43 = vadd.f32 %v10902_v34, %v406_v39  ;;  %v415_v44 = vadd.f32 %v10902_v34, %v407_v40  ;;  %v8254_v48 = vld [vmem:[%s10860_s24 + $0x18] sm:$0xff]  ;;  %v421_v51 = vmul.f32 %v8253_v47, %v10897_v33  ;;  %v10016_v56 = vld [vmem:[#allocation7 + $0x124] ss:$12 sps:$4 sm:$0xff]   ;;  %v8256_v58 = vld [vmem:[%s10860_s24 + $0x28] sm:$0xff]  ;;  %vm1702_vm13 = vsmask.f32 7938 }
  0x71   : > { %1073 = vmatprep.subr.bf16.mxu1 %v10007_v23  ;;  %v10034_v50 = vld [vmem:[#allocation7 + $0x170] ss:$12 sps:$4 sm:$0xff]   ;;  %v422_v52 = vmul.f32 %v8254_v48, %v10897_v33  ;;  %v10012_v53 = vld [vmem:[#allocation7 + $0x138] ss:$12 sps:$4 sm:$0xff]   ;;  %v431_v60 = vmul.f32 %v8256_v58, %v10897_v33  ;;  %v10018_v2 = vld [vmem:[#allocation7 + $0x120] ss:$12 sps:$4 sm:$0xff]  }
  0x72   : > { %416 = vst [vmem:[#allocation2 + $0x1] sm:$0xff] %v414_v43  ;;  %417 = vst [vmem:[#allocation2 + $0x9] sm:$0xff] %v415_v44  ;;  %v10912_v49 = vpack.c.bf16 %v415_v44, %v414_v43  ;;  %v423_v54 = vadd.f32 %v10902_v34, %v421_v51  ;;  %v8255_v57 = vld [vmem:[%s10860_s24 + $0x20] sm:$0xff]  ;;  %v10035_v63 = vld [vmem:[#allocation7 + $0xb0] ss:$12 sps:$4 sm:$0xff]   ;;  %vm1704_vm14 = vcmask 1047556  }
  0x73   : > { %995 = vmatpush1.bf16.msra.mxu0 %v9982_v20  ;;  %v424_v55 = vadd.f32 %v10902_v34, %v422_v52  ;;  %v430_v59 = vmul.f32 %v8255_v57, %v10897_v33  ;;  %v10039_v4 = vld [vmem:[#allocation7 + $0x158] ss:$12 sps:$4 sm:$0xff]   ;;  %v433_v6 = vadd.f32 %v10902_v34, %v431_v60  ;;  %v10024_v8 = vld [vmem:[#allocation7 + $0x108] ss:$12 sps:$4 sm:$0xff]   ;;  %v10042_v12 = vld [vmem:[#allocation7 + $0x140] ss:$12 sps:$4 sm:$0xff]  }
  0x74   : > { %996 = vmatprep.subr.bf16.mxu0 %v9986_v21  ;;  %1074 = vmatpush1.bf16.msra.mxu1 %v10009_v26  ;;  %425 = vst [vmem:[#allocation2 + $0x13] sm:$0xff] %v423_v54  ;;  %v10022_v7 = vld [vmem:[#allocation7 + $0x10c] ss:$12 sps:$4 sm:$0xff]   ;;  %v10028_v13 = vld [vmem:[#allocation7 + $0xf4] ss:$12 sps:$4 sm:$0xff]   ;;  %s12676_s18 = scalar_lea.vmem [#allocation10], %s8247_s6 }
  0x75   : > { %1075 = vmatprep.subr.bf16.mxu1 %v10013_v27  ;;  %1016 = vmatprep.mubr.bf16.mxu0 %v10912_v49  ;;  %426 = vst [vmem:[#allocation2 + $0x1b] sm:$0xff] %v424_v55  ;;  %v432_v5 = vadd.f32 %v10902_v34, %v430_v59  ;;  %435 = vst [vmem:[#allocation2 + $0x2d] sm:$0xff] %v433_v6  ;;  %v10040_v9 = vld [vmem:[#allocation7 + $0x98] ss:$12 sps:$4 sm:$0xff]   ;;  %v10030_v14 = vld [vmem:[#allocation7 + $0xf0] ss:$12 sps:$4 sm:$0xff]  }
  0x76   : > { %v8257_v16 = vld [vmem:[%s10860_s24 + $0x30] sm:$0xff]  ;;  %v8258_v17 = vld [vmem:[%s10860_s24 + $0x38] sm:$0xff]  ;;  %v10043_v18 = vld [vmem:[#allocation7 + $0x80] ss:$12 sps:$4 sm:$0xff]   ;;  %vm1705_vm15 = vsmask.f32 7954 }
  0x77   : > { %997 = vmatpush1.bf16.msra.mxu0 %v9988_v24  ;;  %434 = vst [vmem:[#allocation2 + $0x25] sm:$0xff] %v432_v5  ;;  %v439_v19 = vmul.f32 %v8257_v16, %v10897_v33  ;;  %v440_v20 = vmul.f32 %v8258_v17, %v10897_v33  ;;  %v10045_v21 = vld [vmem:[#allocation7 + $0x128] ss:$12 sps:$4 sm:$0xff]   ;;  %v10049_v36 = vld [vmem:[#allocation7 + $0x50] ss:$12 sps:$4 sm:$0xff]   ;;  %s8884_s6 = sshll.u32 %s10748_s9, 10 }
  0x78   : > { %998 = vmatprep.subr.bf16.mxu0 %v9992_v25  ;;  %1076 = vmatpush1.bf16.msra.mxu1 %v10015_v30  ;;  %v10031_v22 = vld [vmem:[#allocation7 + $0xdc] ss:$12 sps:$4 sm:$0xff]   ;;  %v10033_v25 = vld [vmem:[#allocation7 + $0xd8] ss:$12 sps:$4 sm:$0xff]   ;;  %v10055_v51 = vld [vmem:[#allocation7 + $0x20] ss:$12 sps:$4 sm:$0xff]   ;;  %s12717_s24 = scalar_lea.hbm %s12771_s8, %s8884_s6 }
  0x79   : > { %1077 = vmatprep.subr.bf16.mxu1 %v10019_v31  ;;  %v463_v61 = vld [vmem:[#allocation2 + $0x2] sm:$0xff]  ;;  %v464_v62 = vld [vmem:[#allocation2 + $0xa] sm:$0xff]  ;;  %v441_v23 = vadd.f32 %v10902_v34, %v439_v19  ;;  %v442_v24 = vadd.f32 %v10902_v34, %v440_v20  ;;  %v394_v16 = vld [vmem:[%s12766_s3 + $0x38] sm:$0xff]  ;;  %s8145_s19 = sshll.u32 %s12676_s18, 4  ;;  %s8131_s11 = scalar_lea.sflag [#allocation6], %s10854_s4  ;;  %s12719_s19 = int_to_ptr.vmem [resolvable:$true] %s8145_s19 }
  0x7a   : > { %v10923_v3 = vpack.c.bf16 %v464_v62, %v463_v61  ;;  %v10046_v27 = vld [vmem:[#allocation7 + $0x68] ss:$12 sps:$4 sm:$0xff]   ;;  %v10036_v30 = vld [vmem:[#allocation7 + $0xc4] ss:$12 sps:$4 sm:$0xff]   ;;  %v10038_v31 = vld [vmem:[#allocation7 + $0xc0] ss:$12 sps:$4 sm:$0xff]  }
  0x7b   : > { %999 = vmatpush1.bf16.msra.mxu0 %v9994_v28  ;;  %v465_v10 = vld [vmem:[#allocation2 + $0x12] sm:$0xff]  ;;  %443 = vst [vmem:[#allocation2 + $0x37] sm:$0xff] %v441_v23  ;;  %444 = vst [vmem:[#allocation2 + $0x3f] sm:$0xff] %v442_v24  ;;  %v455_v33 = vld [vmem:[#allocation2 + $0x8] sm:$0xff]  ;;  %s10597_s13 = scalar_lea.vmem %s12719_s19, 1024  ;;  %p12953_p10 = scmp.ne.s32.totalorder %s12832_s21, 0 }
  0x7c   : > { %1000 = vmatprep.subr.bf16.mxu0 %v9998_v29  ;;  %1078 = vmatpush1.bf16.msra.mxu1 %v10021_v38  ;;  %v466_v11 = vld [vmem:[#allocation2 + $0x1a] sm:$0xff]  ;;  %v447_v35 = vld [vmem:[#allocation2 + $0x11] sm:$0xff]  ;;  %v388_v61 = vld [vmem:[%s12766_s3 + $0x8] sm:$0xff]  ;;  %p10598_p11 = scmp.ne.s32.totalorder %s12719_s19, %s10597_s13  ;;  %s10679_s9 = smov [#allocation10]  }
  0x7d   : > { %1079 = vmatprep.subr.bf16.mxu1 %v10025_v41  ;;  %v10929_v15 = vpack.c.bf16 %v466_v11, %v465_v10  ;;  %v10048_v29 = vld [vmem:[#allocation7 + $0x110] ss:$12 sps:$4 sm:$0xff]   ;;  %v456_v47 = vld [vmem:[#allocation2 + $0x10] sm:$0xff]  ;;  %v392_v10 = vld [vmem:[%s12766_s3 + $0x28] sm:$0xff]  ;;  %s10601_s25 = sshll.u32 %s10679_s9, 4  ;;  %s10602_s25 = int_to_ptr.vmem [resolvable:$false] %s10601_s25 }
  0x7e   : > { %v467_v26 = vld [vmem:[#allocation2 + $0x22] sm:$0xff]  ;;  %v468_v28 = vld [vmem:[#allocation2 + $0x2a] sm:$0xff]  ;;  %v448_v38 = vld [vmem:[#allocation2 + $0x19] sm:$0xff]  ;;  %p10599_p1 = pnand %p10598_p11, %p12953_p10  ;;  %s10603_s10 = scalar_lea.vmem %s10602_s25, 2048 }
  0x7f   : > { %1001 = vmatpush2.bf16.msra.mxu0 %v10000_v32  ;;  %v454_v32 = vld [vmem:[#allocation2] sm:$0xff]  ;;  %v10939_v34 = vpack.c.bf16 %v468_v28, %v467_v26  ;;  %v10945_v44 = vpack.c.bf16 %v448_v38, %v447_v35  ;;  %v10056_v52 = vld [vmem:[#allocation7 + $0xc8] ss:$12 sps:$4 sm:$0xff]   ;;  %v459_v5 = vld [vmem:[#allocation2 + $0x28] sm:$0xff]  ;;  %p10604_p6 = scmp.lt.s32.totalorder %s12719_s19, %s10602_s25  ;;  %p10605_p12 = scmp.lt.s32.totalorder %s10603_s10, %s10597_s13 }
  0x80   : > { %1002 = vmatprep.subr.bf16.mxu0 %v10004_v37  ;;  %1080 = vmatpush1.bf16.msra.mxu1 %v10027_v46  ;;  %v10051_v37 = vld [vmem:[#allocation7 + $0xf8] ss:$12 sps:$4 sm:$0xff]   ;;  %v10942_v39 = vpack.c.bf16 %v455_v33, %v454_v32  ;;  %v10041_v43 = vld [vmem:[#allocation7 + $0x230] ss:$12 sps:$4 sm:$0xff]   ;;  %v389_v58 = vld [vmem:[%s12766_s3 + $0x10] sm:$0xff]  ;;  %p10600_p2 = pneg %p10599_p1 }
  0x81   : > { %8885 = vmatprep.subr.bf16.mxu1 %v10034_v50  ;;  %v10044_v46 = vld [vmem:[#allocation7 + $0x218] ss:$12 sps:$4 sm:$0xff]   ;;  %v457_v50 = vld [vmem:[#allocation2 + $0x18] sm:$0xff]  ;;  %1383 = vperm.xlu1 %9964, %v389_v58   ;;  %v393_v11 = vld [vmem:[%s12766_s3 + $0x30] sm:$0xff]  ;;  %p10606_p3 = por %p10605_p12, %p10604_p6 }
  0x82   : > { %v469_v40 = vld [vmem:[#allocation2 + $0x32] sm:$0xff]  ;;  %v470_v41 = vld [vmem:[#allocation2 + $0x3a] sm:$0xff]  ;;  %v450_v55 = vld [vmem:[#allocation2 + $0x29] sm:$0xff]  ;;  %v475_v59 = vpack.c.bf16 %v457_v50, %v456_v47 }
  0x83   : > { %1003 = vmatpush2.bf16.msra.mxu0 %v10006_v42  ;;  %1098 = vmatmul.mubr.bf16.vlgmr.msra.gmra.mxu1 %v10923_v3  ;;  %v10052_v42 = vld [vmem:[#allocation7 + $0x38] ss:$12 sps:$4 sm:$0xff]   ;;  %v10948_v48 = vpack.c.bf16 %v470_v41, %v469_v40  ;;  %v10057_v60 = vld [vmem:[#allocation7 + $0x8] ss:$12 sps:$4 sm:$0xff]   ;;  %p10607_p9 = pnand %p10606_p3, %p10600_p2 }
  0x84   : > { %1004 = vmatprep.subr.bf16.mxu0 %v10010_v45  ;;  %8886 = vmatpush3.bf16.msra.mxu1 %v10035_v63  ;;  %v10053_v45 = vld [vmem:[#allocation7 + $0xe0] ss:$12 sps:$4 sm:$0xff]   ;;  %v390_v63 = vld [vmem:[%s12766_s3 + $0x18] sm:$0xff]  ;;  %v395_v17 = vld [vmem:[%s12766_s3 + $0x40] sm:$0xff] }
  0x85   : > { %1107 = vmatprep.mubr.bf16.mxu1 %v12776_v0  ;;  %8887 = vmatprep.subr.bf16.mxu1 %v10039_v4  ;;  %v449_v54 = vld [vmem:[#allocation2 + $0x21] sm:$0xff]  ;;  %v10050_v6 = vld [vmem:[#allocation7 + $0x1e8] ss:$12 sps:$4 sm:$0xff]  }
  0x86   : > { %v471_v57 = vld [vmem:[#allocation2 + $0x42] sm:$0xff]  ;;  %v479_v62 = vpack.c.bf16 %v450_v55, %v449_v54  ;;  %1388 = vperm.xlu1 %9964, %v390_v63   ;;  %v461_v19 = vld [vmem:[#allocation2 + $0x38] sm:$0xff]  ;;  %v10074_v38 = vld [vmem:[#allocation9 + $0x8] sm:$0xff]  }
  0x87   : > { %1005 = vmatpush2.bf16.msra.mxu0 %v10012_v53  ;;  %v387_v53 = vld [vmem:[%s12766_s3] sm:$0xff]  ;;  %v10068_v32 = vld [vmem:[#allocation9 + $0x20] sm:$0xff]   ;;  %v10071_v35 = vld [vmem:[#allocation9 + $0x50] sm:$0xff]  }
  0x88   : > { %1006 = vmatprep.subr.bf16.mxu0 %v10016_v56  ;;  %8888 = vmatpush3.bf16.msra.mxu1 %v10040_v9  ;;  %v10047_v56 = vld [vmem:[#allocation7 + $0x200] ss:$12 sps:$4 sm:$0xff]   ;;  %v458_v4 = vld [vmem:[#allocation2 + $0x20] sm:$0xff]  ;;  %v10094_v54 = vld [vmem:[#allocation9 + $0x90] sm:$0xff]  }
  0x89   : > { %8889 = vmatprep.subr.bf16.mxu1 %v10042_v12  ;;  %1373 = vperm.xlu0 %9963, %v387_v53   ;;  %v452_v9 = vld [vmem:[#allocation2 + $0x39] sm:$0xff]  ;;  %v10076_v40 = vld [vmem:[#allocation9] sm:$0xff]   ;;  %v10084_v47 = vld [vmem:[#allocation9 + $0xa8] sm:$0xff]  }
  0x8a   : > { %v10054_v12 = vld [vmem:[#allocation7 + $0x1d0] ss:$12 sps:$4 sm:$0xff]   ;;  %1398 = vperm.xlu1 %9964, %v392_v10   ;;  %v10058_v20 = vld [vmem:[#allocation7 + $0x1b8] ss:$12 sps:$4 sm:$0xff]   ;;  %v10097_v55 = vld [vmem:[#allocation9 + $0xc8] sm:$0xff]  }
  0x8b   : > { %1007 = vmatpush2.bf16.msra.mxu0 %v10018_v2  ;;  %1108 = vmatmul.mubr.bf16.gmra.mxu1 %v10929_v15  ;;  %v391_v2 = vld [vmem:[%s12766_s3 + $0x20] sm:$0xff]  ;;  %v10088_v50 = vld [vmem:[#allocation9 + $0xa0] sm:$0xff]   ;;  %v10093_v53 = vld [vmem:[#allocation9 + $0xd0] sm:$0xff]  }
  0x8c   : > { %1008 = vmatprep.subr.bf16.mxu0 %v10022_v7  ;;  %1117 = vmatprep.mubr.bf16.mxu1 %v12776_v0  ;;  %v10971_v7 = vpack.c.bf16 %v471_v57, %v471_v57  ;;  %v462_v24 = vld [vmem:[#allocation2 + $0x40] sm:$0xff]  ;;  %v10101_v57 = vld [vmem:[#allocation9 + $0xc0] sm:$0xff]  }
  0x8d   : > { %8890 = vmatpush3.bf16.msra.mxu1 %v10043_v18  ;;  %1378 = vperm.xlu0 %9963, %v388_v61   ;;  %v460_v18 = vld [vmem:[#allocation2 + $0x30] sm:$0xff]  ;;  %v484_v26 = vpack.c.bf16 %v462_v24, %v462_v24  ;;  %v10062_v28 = vld [vmem:[#allocation9 + $0x38] sm:$0xff]   ;;  %v10102_v58 = vld [vmem:[#allocation9 + $0x80] sm:$0xff]  }
  0x8e   : > { %8891 = vmatprep.subr.bf16.mxu1 %v10045_v21  ;;  %v453_v21 = vld [vmem:[#allocation2 + $0x41] sm:$0xff]  ;;  %1408 = vperm.xlu1 %9964, %v394_v16  }
  0x8f   : > { %1009 = vmatpush2.bf16.msra.mxu0 %v10024_v8  ;;  %v451_v8 = vld [vmem:[#allocation2 + $0x31] sm:$0xff]  ;;  %v485_v23 = vpack.c.bf16 %v453_v21, %v453_v21  ;;  %v10069_v33 = vld [vmem:[#allocation9 + $0x58] sm:$0xff]  }
  0x90   : > { %1010 = vmatprep.subr.bf16.mxu0 %v10028_v13  ;;  %v478_v13 = vpack.c.bf16 %v459_v5, %v458_v4  ;;  %v10077_v41 = vld [vmem:[#allocation9 + $0xf8] sm:$0xff]  }
  0x91   : > { %8892 = vmatpush3.bf16.msra.mxu1 %v10046_v27  ;;  %1393 = vperm.xlu0 %9963, %v391_v2   ;;  %v10061_v27 = vld [vmem:[#allocation9 + $0x78] sm:$0xff]  }
  0x92   : > { %8893 = vmatprep.subr.bf16.mxu1 %v10048_v29  ;;  %v10064_v29 = vld [vmem:[#allocation9 + $0x30] sm:$0xff]  }
  0x93   : > { %1011 = vmatpush2.bf16.msra.mxu0 %v10030_v14  ;;  %1118 = vmatmul.mubr.bf16.gmra.mxu1 %v10939_v34  ;;  %v482_v14 = vpack.c.bf16 %v452_v9, %v451_v8  ;;  %v11014_v8 = vld [vmem:[%s12768_s5] sm:$0x7] }
  0x94   : > { %1012 = vmatprep.subr.bf16.mxu0 %v10031_v22  ;;  %1127 = vmatprep.mubr.bf16.mxu1 %v12776_v0  ;;  %v481_v22 = vpack.c.bf16 %v461_v19, %v460_v18 }
  0x95   : > { %8894 = vmatpush3.bf16.msra.mxu1 %v10049_v36  ;;  %1403 = vperm.xlu0 %9963, %v393_v11   ;;  %v10072_v36 = vld [vmem:[#allocation9 + $0x10] sm:$0xff]  }
  0x96   : > { %8895 = vmatprep.subr.bf16.mxu1 %v10051_v37  ;;  %v10073_v37 = vld [vmem:[#allocation9 + $0x48] sm:$0xff]  }
  0x97   : > { %1013 = vmatpush2.bf16.msra.mxu0 %v10033_v25  ;;  %v10060_v25 = vld [vmem:[#allocation7 + $0x188] ss:$12 sps:$4 sm:$0xff]  }
  0x98   : > { %1014 = vmatprep.subr.bf16.mxu0 %v10036_v30  ;;  %v10066_v30 = vld [vmem:[#allocation9 + $0x28] sm:$0xff]  }
  0x99   : > { %8896 = vmatpush3.bf16.msra.mxu1 %v10052_v42  ;;  %1413 = vperm.xlu0 %9963, %v395_v17   ;;  %v10078_v42 = vld [vmem:[#allocation9 + $0xb8] sm:$0xff]  }
  0x9a   : > { %8897 = vmatprep.subr.bf16.mxu1 %v10053_v45  ;;  %v10081_v45 = vld [vmem:[#allocation9 + $0x178] sm:$0xff]  }
  0x9b   : > { %1015 = vmatpush2.bf16.msra.mxu0 %v10038_v31  ;;  %1128 = vmatmul.mubr.bf16.gmra.mxu1 %v10948_v48  ;;  %v10067_v31 = vld [vmem:[#allocation9 + $0x60] sm:$0xff]  }
  0x9c   : > { %9653 = vmatprep.subr.bf16.mxu0 %v12778_v1  ;;  %1137 = vmatprep.mubr.bf16.mxu1 %v12776_v0 }
  0x9d   : > { %8898 = vmatpush3.bf16.msra.mxu1 %v10055_v51  ;;  %v10089_v51 = vld [vmem:[#allocation9 + $0xd8] sm:$0xff]  }
  0x9e   : > { %1017 = vmatmul.mubr.bf16.vlgmr.msra.gmra.mxu0 %v10942_v39  ;;  %8899 = vmatprep.subr.bf16.mxu1 %v10056_v52  ;;  %v10091_v52 = vld [vmem:[#allocation9 + $0x98] sm:$0xff]  }
  0x9f   : > { %9654 = vmatpush3.bf16.msra.mxu0 %v10041_v43  ;;  %1026 = vmatprep.mubr.bf16.mxu0 %v10945_v44  ;;  %v10079_v43 = vld [vmem:[#allocation9 + $0xf0] sm:$0xff]  }
  0xa0   : > { %9655 = vmatprep.subr.bf16.mxu0 %v12778_v1 }
  0xa1   : > { %8900 = vmatpush3.bf16.msra.mxu1 %v10057_v60 }
  0xa2   : > { %8944 = vmatprep.subr.bf16.mxu1 %v10061_v27 }
  0xa3   : > { %9656 = vmatpush3.bf16.msra.mxu0 %v10044_v46  ;;  %1138 = vmatmul.mubr.bf16.gmra.mxu1 %v10971_v7  ;;  %v10083_v46 = vld [vmem:[#allocation9 + $0xe8] sm:$0xff]  }
  0xa4   : > { %9657 = vmatprep.subr.bf16.mxu0 %v12778_v1  ;;  %1178 = vmatprep.mubr.bf16.mxu1 %v10912_v49  ;;  %v10059_v49 = vld [vmem:[#allocation7 + $0x1a0] ss:$12 sps:$4 sm:$0xff]  }
  0xa6   : > { %1027 = vmatmul.mubr.bf16.gmra.mxu0 %v475_v59 }
  0xa7   : > { %9658 = vmatpush3.bf16.msra.mxu0 %v10047_v56  ;;  %1036 = vmatprep.mubr.bf16.mxu0 %v479_v62  ;;  %v10098_v56 = vld [vmem:[#allocation9 + $0x88] sm:$0xff]  }
  0xa8   : > { %9659 = vmatprep.subr.bf16.mxu0 %v12778_v1 }
  0xab   : > { %9660 = vmatpush3.bf16.msra.mxu0 %v10050_v6  ;;  %1179 = vmatmul.mubr.bf16.vlgmr.msra.gmra.mxu1 %v10942_v39  ;;  %v10075_v39 = vld [vmem:[#allocation9 + $0x40] sm:$0xff]  }
  0xac   : > { %9661 = vmatprep.subr.bf16.mxu0 %v12778_v1  ;;  %1186 = vmatprep.mubr.bf16.mxu1 %v10945_v44  ;;  %v10080_v44 = vld [vmem:[#allocation9 + $0xb0] sm:$0xff]  }
  0xad   : > { %8945 = vmatpush3.bf16.msra.mxu1 %v10062_v28 }
  0xae   : > { %1037 = vmatmul.mubr.bf16.gmra.mxu0 %v478_v13 }
  0xaf   : > { %9662 = vmatpush3.bf16.msra.mxu0 %v10054_v12  ;;  %1046 = vmatprep.mubr.bf16.mxu0 %v482_v14 }
  0xb0   : > { %9663 = vmatprep.subr.bf16.mxu0 %v12778_v1 }
  0xb3   : > { %9664 = vmatpush3.bf16.msra.mxu0 %v10058_v20  ;;  %1187 = vmatmul.mubr.bf16.gmra.mxu1 %v475_v59  ;;  %v10109_v59 = vld [vmem:[#allocation9 + $0x1f8] sm:$0xff]  }
  0xb4   : > { %9665 = vmatprep.subr.bf16.mxu0 %v12778_v1  ;;  %1194 = vmatprep.mubr.bf16.mxu1 %v479_v62  ;;  %v585_v62 = vlaneseq }
  0xb6   : > { %1047 = vmatmul.mubr.bf16.gmra.mxu0 %v481_v22  ;;  %v586_v4 = vshrl.u32 %v585_v62, 7 }
  0xb7   : > { %1056 = vmatprep.mubr.bf16.mxu0 %v485_v23  ;;  %9666 = vmatpush3.bf16.msra.mxu0 %v10059_v49 }
  0xb8   : > { %9667 = vmatprep.subr.bf16.mxu0 %v12778_v1  ;;  %v11016_v9 = vsub.s32 0, %v586_v4  ;;  %v11020_v11 = vsub.s32 1, %v586_v4 }
  0xba   : > { %12838 = vst [vmem:[#allocation14_spill] sm:$0xff] %v11016_v9  ;;  %12839 = vst [vmem:[#allocation15_spill] sm:$0xff] %v11020_v11  ;;  %v11032_v16 = vrot.slane %v11014_v8, %v11020_v11 }
  0xbb   : > { %9668 = vmatpush3.bf16.msra.mxu0 %v10060_v25  ;;  %1195 = vmatmul.mubr.bf16.gmra.mxu1 %v478_v13  ;;  %v11026_v13 = vrot.slane %v11014_v8, %v11016_v9 }
  0xbc   : > { %1202 = vmatprep.mubr.bf16.mxu1 %v482_v14  ;;  %8990 = vmatprep.subr.bf16.mxu0 %v10077_v41 }
  0xbe   : > { %1057 = vmatmul.mubr.bf16.gmra.mxu0 %v484_v26 }
  0xbf   : > { %9669 = vmatprep.mubr.msk.bf16.mxu0 %vm10678_vm0, %v12778_v1 }
  0xc3   : > { %1203 = vmatmul.mubr.bf16.gmra.mxu1 %v481_v22 }
  0xc4   : > { %1210 = vmatprep.mubr.bf16.mxu1 %v485_v23 }
  0xc6   : > { %9670 = vmatmul.mubr.bf16.vlgmr.msra.gmra.mxu0 %v10923_v3  ;;  %v10063_v3 = vld [vmem:[#allocation9 + $0x70] sm:$0xff]  }
  0xc7   : > { %9673 = vmatprep.mubr.msk.bf16.mxu0 %vm10678_vm0, %v12778_v1  ;;  %8946 = vmatprep.subr.bf16.mxu1 %v10063_v3 }
  0xc8   : > { %8947 = vmatpush3.bf16.msra.mxu1 %v10064_v29  ;;  %8991 = vmatpush3.bf16.msra.mxu0 %v10078_v42 }
  0xc9   : > { %8992 = vmatprep.subr.bf16.mxu0 %v10079_v43 }
  0xcb   : > { %1211 = vmatmul.mubr.bf16.gmra.mxu1 %v484_v26 }
  0xcc   : > { %8993 = vmatpush3.bf16.msra.mxu0 %v10080_v44 }
  0xcd   : > { %8994 = vmatprep.subr.bf16.mxu0 %v10083_v46 }
  0xce   : > { %9674 = vmatmul.mubr.bf16.gmra.mxu0 %v10929_v15  ;;  %v10065_v15 = vld [vmem:[#allocation9 + $0x68] sm:$0xff]  }
  0xcf   : > { %9677 = vmatprep.mubr.msk.bf16.mxu0 %vm10678_vm0, %v12778_v1  ;;  %8948 = vmatprep.subr.bf16.mxu1 %v10065_v15 }
  0xd0   : > { %8949 = vmatpush3.bf16.msra.mxu1 %v10066_v30  ;;  %8995 = vmatpush3.bf16.msra.mxu0 %v10084_v47 }
  0xd1   : > { %8950 = vmatprep.subr.bf16.mxu1 %v10067_v31 }
  0xd4   : > { %8951 = vmatpush3.bf16.msra.mxu1 %v10068_v32 }
  0xd5   : > { %8952 = vmatprep.subr.bf16.mxu1 %v10069_v33 }
  0xd6   : > { %9678 = vmatmul.mubr.bf16.gmra.mxu0 %v10939_v34  ;;  %v10070_v34 = vld [vmem:[#allocation9 + $0x18] sm:$0xff]  }
  0xd7   : > { %9681 = vmatprep.mubr.msk.bf16.mxu0 %vm10678_vm0, %v12778_v1 }
  0xd8   : > { %8953 = vmatpush3.bf16.msra.mxu1 %v10070_v34 }
  0xd9   : > { %8954 = vmatprep.subr.bf16.mxu1 %v10071_v35 }
  0xdc   : > { %8955 = vmatpush3.bf16.msra.mxu1 %v10072_v36 }
  0xdd   : > { %8956 = vmatprep.subr.bf16.mxu1 %v10073_v37 }
  0xde   : > { %9682 = vmatmul.mubr.bf16.gmra.mxu0 %v10948_v48  ;;  %v10086_v48 = vld [vmem:[#allocation9 + $0xe0] sm:$0xff]  }
  0xdf   : > { %9685 = vmatprep.mubr.msk.bf16.mxu0 %vm10678_vm0, %v12778_v1  ;;  %8996 = vmatprep.subr.bf16.mxu0 %v10086_v48 }
  0xe0   : > { %8957 = vmatpush3.bf16.msra.mxu1 %v10074_v38  ;;  %8997 = vmatpush3.bf16.msra.mxu0 %v10088_v50 }
  0xe1   : > { %8958 = vmatprep.subr.bf16.mxu1 %v10075_v39  ;;  %8998 = vmatprep.subr.bf16.mxu0 %v10089_v51 }
  0xe4   : > { %8959 = vmatpush3.bf16.msra.mxu1 %v10076_v40  ;;  %8999 = vmatpush3.bf16.msra.mxu0 %v10091_v52 }
  0xe5   : > { %9036 = vmatprep.subr.bf16.mxu1 %v10081_v45  ;;  %9000 = vmatprep.subr.bf16.mxu0 %v10093_v53 }
  0xe6   : > { %9686 = vmatmul.mubr.bf16.gmra.mxu0 %v10971_v7 }
  0xe8   : > { %9001 = vmatpush3.bf16.msra.mxu0 %v10094_v54 }
  0xe9   : > { %9002 = vmatprep.subr.bf16.mxu0 %v10097_v55 }
  0xec   : > { %9003 = vmatpush3.bf16.msra.mxu0 %v10098_v56 }
  0xed   : > { %9004 = vmatprep.subr.bf16.mxu0 %v10101_v57 }
  0xf0   : > { %9005 = vmatpush3.bf16.msra.mxu0 %v10102_v58 }
  0xf1   : > { %9082 = vmatprep.subr.bf16.mxu0 %v10109_v59 }
 0x104   : > { %v11042_v27 = vpop.permute.xlu0 %1373 }
 0x108   : > { %v11055_v44 = vpop.permute.xlu0 %1378 }
 0x143   : > { %v1099_v60 = vpop.f32.mrf.mxu1 }
 0x145   : > { %v1101_v61 = vpop.f32.mrf.mxu1 }
 0x147   : > { %v1103_v63 = vpop.f32.mrf.mxu1 }
 0x149   : > { %v1105_v2 = vpop.f32.mrf.mxu1 }
 0x14b   : > { %v1109_v5 = vpop.f32.mrf.mxu1 }
 0x14d   : > { %v1111_v6 = vpop.f32.mrf.mxu1 }
 0x14f   : > { %v11009_v7 = vpop.f32.mrf.mxu1 }
 0x151   : > { %v11018_v10 = vpop.f32.mrf.mxu1 }
 0x153   : > { %v11022_v12 = vpop.f32.mrf.mxu1 }
 0x155   : > { %v11028_v14 = vpop.f32.mrf.mxu1 }
 0x157   : > { %v11034_v17 = vpop.f32.mrf.mxu1 }
 0x159   : > { %v11037_v20 = vpop.f32.mrf.mxu1 }
 0x15b   : > { %v11040_v23 = vpop.f32.mrf.mxu1 }
 0x15d   : > { %v11045_v3 = vpop.f32.mrf.mxu1 }
 0x15e   : > { %v1018_v18 = vpop.f32.mrf.mxu0 }
 0x15f   : > { %v1019_v19 = vadd.f32 %v1018_v18, %v11026_v13  ;;  %v11047_v32 = vpop.f32.mrf.mxu1 }
 0x160   : > { %v1020_v21 = vpop.f32.mrf.mxu0 }
 0x161   : > { %v1100_v49 = vadd.f32 %v1099_v60, %v1019_v19  ;;  %v1021_v22 = vadd.f32 %v1020_v21, %v11032_v16  ;;  %v11051_v38 = vpop.f32.mrf.mxu1  ;;  %v11067_v60 = vpop.permute.xlu1 %1383 }
 0x162   : > { %v1022_v24 = vpop.f32.mrf.mxu0 }
 0x163   : > { %vm1290_vm1 = vcmp.gt.f32.partialorder %v1100_v49, 0.0  ;;  %v1317_v25 = vmul.f32 0.01, %v1100_v49  ;;  %v1102_v26 = vadd.f32 %v1101_v61, %v1021_v22  ;;  %v1023_v28 = vadd.f32 %v1022_v24, %v11026_v13  ;;  %v11058_v47 = vpop.f32.mrf.mxu1 }
 0x164   : > { %v1024_v29 = vpop.f32.mrf.mxu0  ;;  %v11069_v61 = vsub.s32 2, %v586_v4 }
 0x165   : > { %v1344_v15 = vsel %vm1290_vm1, %v1100_v49, %v1317_v25  ;;  %vm1291_vm2 = vcmp.gt.f32.partialorder %v1102_v26, 0.0  ;;  %v1318_v30 = vmul.f32 0.01, %v1102_v26  ;;  %v1104_v31 = vadd.f32 %v1103_v63, %v1023_v28  ;;  %v11063_v55 = vpop.f32.mrf.mxu1 }
 0x166   : > { %v1025_v33 = vadd.f32 %v1024_v29, %v11032_v16  ;;  %v1028_v34 = vpop.f32.mrf.mxu0  ;;  %v1416_v39 = vmul.f32 %v11042_v27, %v1344_v15  ;;  %12840 = vst [vmem:[#allocation16_spill] sm:$0xff] %v11069_v61 }
 0x167   : > { %v1345_v35 = vsel %vm1291_vm2, %v1102_v26, %v1318_v30  ;;  %vm1293_vm3 = vcmp.gt.f32.partialorder %v1104_v31, 0.0  ;;  %v1320_v36 = vmul.f32 0.01, %v1104_v31  ;;  %v1029_v37 = vadd.f32 %v1028_v34, %v11026_v13 }
 0x168   : > { %v1417_v40 = vmul.f32 %v11042_v27, %v1345_v35  ;;  %v1106_v41 = vadd.f32 %v1105_v2, %v1025_v33  ;;  %v1030_v42 = vpop.f32.mrf.mxu0  ;;  %vm1518_vm2 = vsmask.f32 256 }
 0x169   : > { %v1347_v43 = vsel %vm1293_vm3, %v1104_v31, %v1320_v36  ;;  %v1110_v45 = vadd.f32 %v1109_v5, %v1029_v37  ;;  %v1031_v46 = vadd.f32 %v1030_v42, %v11032_v16  ;;  %v1143_v5 = vpop.f32.mrf.mxu1  ;;  %vm1519_vm3 = vsmask.f32 4368 }
 0x16a   : > { %v11060_v48 = vpack.c.bf16 %v1417_v40, %v1416_v39  ;;  %vm1294_vm4 = vcmp.gt.f32.partialorder %v1106_v41, 0.0  ;;  %v1321_v50 = vmul.f32 0.01, %v1106_v41  ;;  %v1032_v51 = vpop.f32.mrf.mxu0  ;;  %v1419_v58 = vmul.f32 %v11055_v44, %v1347_v43  ;;  %v11084_v40 = vpop.permute.xlu1 %1388 }
 0x16b   : > { %vm1296_vm5 = vcmp.gt.f32.partialorder %v1110_v45, 0.0  ;;  %v1323_v52 = vmul.f32 0.01, %v1110_v45  ;;  %v1112_v53 = vadd.f32 %v1111_v6, %v1031_v46  ;;  %v1033_v54 = vadd.f32 %v1032_v51, %v11026_v13  ;;  %v1144_v26 = vpop.f32.mrf.mxu1  ;;  %12841 = vst [vmem:[#allocation17_spill] sm:$0xff] %v11084_v40 }
 0x16c   : > { %v1522_v56 = vshrl.u32 %v11060_v48, 16  ;;  %v1348_v57 = vsel %vm1294_vm4, %v1106_v41, %v1321_v50  ;;  %v1034_v59 = vpop.f32.mrf.mxu0  ;;  %v1525_v18 = vshll.u32 %v11060_v48, 16 }
 0x16d   : > { %v1420_v62 = vmul.f32 %v11055_v44, %v1348_v57  ;;  %v1350_v63 = vsel %vm1296_vm5, %v1110_v45, %v1323_v52  ;;  %vm1297_vm6 = vcmp.gt.f32.partialorder %v1112_v53, 0.0  ;;  %v1324_v2 = vmul.f32 0.01, %v1112_v53  ;;  %v8901_v35 = vpop.f32.mrf.mxu1 }
 0x16e   : > { %v11072_v6 = vrot.slane %v1522_v56, 7  ;;  %v1114_v19 = vadd.f32 %v11009_v7, %v1033_v54  ;;  %v1035_v21 = vadd.f32 %v1034_v59, %v11032_v16  ;;  %v1038_v49 = vpop.f32.mrf.mxu0  ;;  %v1422_v4 = vmul.f32 %v11067_v60, %v1350_v63 }
 0x16f   : > { %v8831_v22 = vpack.c.bf16 %v1420_v62, %v1419_v58  ;;  %v1351_v24 = vsel %vm1297_vm6, %v1112_v53, %v1324_v2  ;;  %v1039_v25 = vadd.f32 %v1038_v49, %v11026_v13  ;;  %v8902_v45 = vpop.f32.mrf.mxu1  ;;  %v11092_v52 = vrot.slane %v11014_v8, %v11069_v61  ;;  %v11102_v2 = vpop.permute.xlu0 %1393 }
 0x170   : > { %v1535_v28 = vrot.slane %v11072_v6, 4  ;;  %vm1299_vm7 = vcmp.gt.f32.partialorder %v1114_v19, 0.0  ;;  %v1326_v29 = vmul.f32 0.01, %v1114_v19  ;;  %v1116_v15 = vadd.f32 %v11018_v10, %v1035_v21  ;;  %v1040_v30 = vpop.f32.mrf.mxu0  ;;  %12842 = vst [vmem:[#allocation18_spill] sm:$0xff] %v11102_v2 }
 0x171   : > { %v1537_v31 = vshrl.u32 %v8831_v22, 16  ;;  %v1540_v33 = vshll.u32 %v8831_v22, 16  ;;  %v1423_v7 = vmul.f32 %v11067_v60, %v1351_v24  ;;  %v1120_v34 = vadd.f32 %v11022_v12, %v1039_v25  ;;  %v11099_v58 = vpop.f32.mrf.mxu1 }
 0x172   : > { %v1353_v36 = vsel %vm1299_vm7, %v1114_v19, %v1326_v29  ;;  %vm1300_vm8 = vcmp.gt.f32.partialorder %v1116_v15, 0.0  ;;  %v1327_v37 = vmul.f32 0.01, %v1116_v15  ;;  %v1041_v39 = vadd.f32 %v1040_v30, %v11032_v16  ;;  %v1042_v41 = vpop.f32.mrf.mxu0 }
 0x173   : > { %v11086_v42 = vrot.slane %v1537_v31, 7  ;;  %v8833_v43 = vpack.c.bf16 %v1423_v7, %v1422_v4  ;;  %vm1302_vm9 = vcmp.gt.f32.partialorder %v1120_v34, 0.0  ;;  %v1329_v10 = vmul.f32 0.01, %v1120_v34  ;;  %v11108_v49 = vpop.f32.mrf.mxu1 }
 0x174   : > { %v1354_v46 = vsel %vm1300_vm8, %v1116_v15, %v1327_v37  ;;  %v1122_v50 = vadd.f32 %v11028_v14, %v1041_v39  ;;  %v1043_v12 = vadd.f32 %v1042_v41, %v11026_v13  ;;  %v1044_v51 = vpop.f32.mrf.mxu0  ;;  %v1425_v57 = vmul.f32 %v11084_v40, %v1353_v36 }
 0x175   : > { %v11095_v53 = vor.u32 %v1540_v33, %v11086_v42  ;;  %v1553_v54 = vrot.slane %v11086_v42, 4  ;;  %v1555_v56 = vshrl.u32 %v8833_v43, 16  ;;  %v1356_v59 = vsel %vm1302_vm9, %v1120_v34, %v1329_v10 }
 0x176   : > { %vm1303_vm10 = vcmp.gt.f32.partialorder %v1122_v50, 0.0  ;;  %v1330_v14 = vmul.f32 0.01, %v1122_v50  ;;  %v1426_v62 = vmul.f32 %v11084_v40, %v1354_v46  ;;  %v1048_v63 = vpop.f32.mrf.mxu0  ;;  %v1558_v5 = vshll.u32 %v8833_v43, 16  ;;  %v11129_v46 = vpop.permute.xlu1 %1398 }
 0x177   : > { %v11104_v8 = vrot.slane %v1555_v56, 7  ;;  %v1124_v19 = vadd.f32 %v11034_v17, %v1043_v12  ;;  %v1045_v21 = vadd.f32 %v1044_v51, %v11032_v16  ;;  %v1428_v22 = vmul.f32 %v11102_v2, %v1356_v59  ;;  %v11118_v17 = vpop.f32.mrf.mxu1  ;;  %12843 = vst [vmem:[#allocation19_spill] sm:$0xff] %v11129_v46 }
 0x178   : > { %v1357_v24 = vsel %vm1303_vm10, %v1122_v50, %v1330_v14  ;;  %v8835_v4 = vpack.c.bf16 %v1426_v62, %v1425_v57  ;;  %v1049_v25 = vadd.f32 %v1048_v63, %v11026_v13  ;;  %v1050_v26 = vpop.f32.mrf.mxu0  ;;  %v11116_v30 = vadd.f32 %v8902_v45, %v8901_v35 }
 0x179   : > { %v11113_v29 = vor.u32 %v1558_v5, %v11104_v8  ;;  %v1429_v15 = vmul.f32 %v11102_v2, %v1357_v24  ;;  %vm1305_vm11 = vcmp.gt.f32.partialorder %v1124_v19, 0.0  ;;  %v1332_v7 = vmul.f32 0.01, %v1124_v19  ;;  %v11124_v35 = vpop.f32.mrf.mxu1 }
 0x17a   : > { %v1573_v31 = vshrl.u32 %v8835_v4, 16  ;;  %v1576_v33 = vshll.u32 %v8835_v4, 16  ;;  %v1126_v34 = vadd.f32 %v11037_v20, %v1045_v21  ;;  %v1052_v36 = vpop.f32.mrf.mxu0  ;;  %v1130_v39 = vadd.f32 %v11040_v23, %v1049_v25  ;;  %v11142_v4 = vpop.permute.xlu0 %1403 }
 0x17b   : > { %v8837_v37 = vpack.c.bf16 %v1429_v15, %v1428_v22  ;;  %v1051_v41 = vadd.f32 %v1050_v26, %v11032_v16  ;;  %v1053_v43 = vadd.f32 %v1052_v36, %v11026_v13  ;;  %v1359_v45 = vsel %vm1305_vm11, %v1124_v19, %v1332_v7  ;;  %v11132_v56 = vpop.f32.mrf.mxu1  ;;  %12844 = vst [vmem:[#allocation20_spill] sm:$0xff] %v11142_v4  ;;  %vm11167_vm11 = vmand %vm1701_vm12, %vm1702_vm13 }
 0x17c   : > { %v11126_v10 = vrot.slane %v1573_v31, 7  ;;  %vm1306_vm1 = vcmp.gt.f32.partialorder %v1126_v34, 0.0  ;;  %v1333_v20 = vmul.f32 0.01, %v1126_v34  ;;  %v1054_v50 = vpop.f32.mrf.mxu0  ;;  %v1571_v23 = vrot.slane %v11104_v8, 4  ;;  %vm11184_vm12 = vmor %vm1518_vm2, %vm1519_vm3 }
 0x17d   : > { %v1591_v12 = vshrl.u32 %v8837_v37, 16  ;;  %vm1308_vm4 = vcmp.gt.f32.partialorder %v1130_v39, 0.0  ;;  %v1335_v51 = vmul.f32 0.01, %v1130_v39  ;;  %v1594_v57 = vshll.u32 %v8837_v37, 16  ;;  %v11140_v24 = vpop.f32.mrf.mxu1 }
 0x17e   : > { %v11135_v59 = vor.u32 %v1576_v33, %v11126_v10  ;;  %v1360_v14 = vsel %vm1306_vm1, %v1126_v34, %v1333_v20  ;;  %v1132_v62 = vadd.f32 %v11045_v3, %v1051_v41  ;;  %v1058_v63 = vpop.f32.mrf.mxu0  ;;  %v1431_v21 = vmul.f32 %v11129_v46, %v1359_v45 }
 0x17f   : > { %v1593_v5 = vrot.slane %v1591_v12, 7  ;;  %v1362_v19 = vsel %vm1308_vm4, %v1130_v39, %v1335_v51  ;;  %v1432_v22 = vmul.f32 %v11129_v46, %v1360_v14  ;;  %v1134_v15 = vadd.f32 %v11047_v32, %v1053_v43  ;;  %v11148_v36 = vpop.f32.mrf.mxu1  ;;  %vm11178_vm4 = vmand %vm1704_vm14, %vm1705_vm15 }
 0x180   : > { %vm1309_vm5 = vcmp.gt.f32.partialorder %v1132_v62, 0.0  ;;  %v1336_v26 = vmul.f32 0.01, %v1132_v62  ;;  %v1060_v31 = vpop.f32.mrf.mxu0  ;;  %vm1730_vm6 = vcmask 1040384   ;;  %v1434_v33 = vmul.f32 %v11142_v4, %v1362_v19  ;;  %vm11207_vm14 = vmor %vm11178_vm4, %vm11167_vm11 }
 0x181   : > { %v1607_v3 = vrot.slane %v1593_v5, 4  ;;  %v8839_v7 = vpack.c.bf16 %v1432_v22, %v1431_v21  ;;  %v1055_v34 = vadd.f32 %v1054_v50, %v11032_v16  ;;  %vm1311_vm7 = vcmp.gt.f32.partialorder %v1134_v15, 0.0  ;;  %v11153_v51 = vpop.f32.mrf.mxu1  ;;  %vm11230_vm15 = vmand %vm1730_vm6, %vm1518_vm2 }
 0x182   : > { %v1363_v37 = vsel %vm1309_vm5, %v1132_v62, %v1336_v26  ;;  %v1338_v39 = vmul.f32 0.01, %v1134_v15  ;;  %v1059_v41 = vadd.f32 %v1058_v63, %v11026_v13  ;;  %vm1732_vm8 = vcmask 1044484   ;;  %v1062_v45 = vpop.f32.mrf.mxu0 }
 0x183   : > { %vm1733_vm9 = vsmask.f32 4352  ;;  %v1435_v32 = vmul.f32 %v11142_v4, %v1363_v37  ;;  %v1609_v43 = vshrl.u32 %v8839_v7, 16  ;;  %v1612_v20 = vshll.u32 %v8839_v7, 16 }
 0x184   : > { %v1136_v12 = vadd.f32 %v11051_v38, %v1055_v34  ;;  %v11155_v14 = vor.u32 %v1594_v57, %v1593_v5  ;;  %v1365_v50 = vsel %vm1311_vm7, %v1134_v15, %v1338_v39  ;;  %v1140_v62 = vadd.f32 %v11058_v47, %v1059_v41  ;;  %v1063_v21 = vpop.f32.mrf.mxu0  ;;  %v11171_v57 = vpop.f32.mrf.mxu1  ;;  %vm11249_vm2 = vmand %vm1732_vm8, %vm1733_vm9 }
 0x185   : > { %v1061_v19 = vadd.f32 %v1060_v31, %v11032_v16  ;;  %v8841_v13 = vpack.c.bf16 %v1435_v32, %v1434_v33  ;;  %v11159_v63 = vrot.slane %v1609_v43, 7  ;;  %v11163_v22 = vadd.f32 %v11108_v49, %v11099_v58  ;;  %v11173_v47 = vpop.permute.xlu1 %1408  ;;  %v11194_v32 = vpop.permute.xlu0 %1413  ;;  %vm11286_vm6 = vmor %vm11249_vm2, %vm11230_vm15 }
 0x186   : > { %vm1312_vm10 = vcmp.gt.f32.partialorder %v1136_v12, 0.0  ;;  %v12845_v38 = vmov 0  ;;  %12848 = vst [vmem:[#allocation22_spill] sm:$0xff] %v11173_v47  ;;  %v1339_v16 = vmul.f32 0.01, %v1136_v12  ;;  %vm1314_vm1 = vcmp.gt.f32.partialorder %v1140_v62, 0.0  ;;  %v1252_v49 = vpop.f32.mrf.mxu0  ;;  %v11191_v34 = vpop.f32.mrf.mxu1 }
 0x187   : > { %v12846_v38 = vsel %vm11167_vm11, 4294967295, %v12845_v38  ;;  %v1341_v5 = vmul.f32 0.01, %v1140_v62  ;;  %v1142_v26 = vadd.f32 %v11063_v55, %v1061_v19  ;;  %v12851_v15 = vmov 0  ;;  %12854 = vst [vmem:[#allocation24_spill] sm:$0xff] %v11194_v32 }
 0x188   : > { %12847 = vst [vmem:[#allocation21_spill] sm:$0xff] %v12846_v38  ;;  %v12852_v15 = vsel %vm11184_vm12, 4294967295, %v12851_v15  ;;  %v1614_v31 = vor.u32 %v1612_v20, %v11159_v63  ;;  %v1625_v33 = vrot.slane %v11159_v63, 4  ;;  %v1627_v7 = vshrl.u32 %v8841_v13, 16  ;;  %v9671_v45 = vpop.f32.mrf.mxu0 }
 0x189   : > { %12853 = vst [vmem:[#allocation23_spill] sm:$0xff] %v12852_v15  ;;  %v1437_v55 = vmul.f32 %v11173_v47, %v1365_v50  ;;  %v1366_v37 = vsel %vm1312_vm10, %v1136_v12, %v1339_v16  ;;  %v1368_v39 = vsel %vm1314_vm1, %v1140_v62, %v1341_v5  ;;  %vm1315_vm13 = vcmp.gt.f32.partialorder %v1142_v26, 0.0  ;;  %v11211_v50 = vpop.f32.mrf.mxu1 }
 0x18a   : > { %v1342_v41 = vmul.f32 0.01, %v1142_v26  ;;  %v11198_v43 = vsel %vm11184_vm12, %v1607_v3, %v1614_v31  ;;  %v11200_v20 = vrot.slane %v1627_v7, 7  ;;  %v1630_v19 = vshll.u32 %v8841_v13, 16  ;;  %v11224_v16 = vpop.f32.mrf.mxu0 }
 0x18b   : > { %v1438_v21 = vmul.f32 %v11173_v47, %v1366_v37  ;;  %v12855_v12 = vmov 0  ;;  %v1440_v62 = vmul.f32 %v11194_v32, %v1368_v39  ;;  %v1527_v3 = vor.u32 %v1525_v18, %v11072_v6  ;;  %v11236_v6 = vpop.f32.mrf.mxu1  ;;  %v10082_v37 = vld [vmem:[#allocation9 + $0x138] sm:$0xff]  }
 0x18c   : > { %v12856_v12 = vsel %vm11207_vm14, 4294967295, %v12855_v12  ;;  %v1369_v63 = vsel %vm1315_vm13, %v1142_v26, %v1342_v41  ;;  %v11222_v13 = vsel %vm11184_vm12, %v1535_v28, %v11095_v53  ;;  %v1643_v5 = vrot.slane %v11200_v20, 4 }
 0x18d   : > { %12857 = vst [vmem:[#allocation25_spill] sm:$0xff] %v12856_v12  ;;  %v8843_v58 = vpack.c.bf16 %v1438_v21, %v1437_v55  ;;  %v1441_v31 = vmul.f32 %v11194_v32, %v1369_v63  ;;  %v12858_v26 = vmov 0  ;;  %v8909_v48 = vadd.f32 %v11124_v35, %v11118_v17  ;;  %v9672_v55 = vpop.f32.mrf.mxu0  ;;  %v11258_v35 = vpop.f32.mrf.mxu1  ;;  %v11576_v12 = vld [vmem:[%s12770_s7] ss:$0 sm:$0xff] }
 0x18e   : > { %v12859_v26 = vsel %vm11230_vm15, 4294967295, %v12858_v26  ;;  %v1632_v18 = vor.u32 %v1630_v19, %v11200_v20  ;;  %v1709_v28 = vsel %vm11207_vm14, %v1527_v3, 0  ;;  %v1181_v53 = vadd.f32 %v11116_v30, %v11092_v52 }
 0x18f   : > { %12860 = vst [vmem:[#allocation26_spill] sm:$0xff] %v12859_v26  ;;  %v11245_v7 = vadd.f32 %v11140_v24, %v11132_v56  ;;  %v1645_v39 = vshrl.u32 %v8843_v58, 16  ;;  %v1648_v41 = vshll.u32 %v8843_v58, 16  ;;  %v8845_v45 = vpack.c.bf16 %v1441_v31, %v1440_v62  ;;  %1710 = vst [vmem:[#allocation3] sm:$0xff] %v1709_v28  ;;  %v1260_v21 = vpop.f32.mrf.mxu0  ;;  %v11273_v3 = vpop.f32.mrf.mxu1  ;;  %v1736_v58 = vld [vmem:[#allocation3 + $0x6c] sm:$0x11] }
 0x190   : > { %v1561_v30 = vsel %vm11184_vm12, %v1553_v54, %v11113_v29  ;;  %v11261_v56 = vcombine.low %v1709_v28, %v11222_v13  ;;  %v11264_v24 = vcombine.high %v1709_v28, %v11222_v13  ;;  %v1253_v20 = vadd.f32 %v1252_v49, %v1181_v53  ;;  %v10085_v29 = vld [vmem:[#allocation9 + $0x170] sm:$0xff]  }
 0x191   : > { %v1579_v19 = vsel %vm11184_vm12, %v1571_v23, %v11135_v59  ;;  %v1647_v42 = vrot.slane %v1645_v39, 7  ;;  %v1663_v62 = vshrl.u32 %v8845_v45, 16  ;;  %v1666_v63 = vshll.u32 %v8845_v45, 16  ;;  %v9675_v23 = vpop.f32.mrf.mxu0  ;;  %v11291_v45 = vpop.f32.mrf.mxu1 }
 0x192   : > { %v11271_v54 = vcombine.high %v1561_v30, %v1579_v19  ;;  %vm1847_vm3 = vsmask.f32 7424  ;;  %v1863_v49 = vshll.u32 %v11264_v24, 16  ;;  %2646 = vmatprep.mubr.bf16.mxu1 %v11264_v24  ;;  %vm1292_vm5 = vcmp.gt.f32.partialorder %v1253_v20, 0.0 }
 0x193   : > { %v1319_v8 = vmul.f32 0.01, %v1253_v20  ;;  %v11280_v59 = vsel %vm11184_vm12, %v1625_v33, %v1632_v18  ;;  %v1650_v28 = vor.u32 %v1648_v41, %v1647_v42  ;;  %v1661_v53 = vrot.slane %v1647_v42, 4  ;;  %2647 = vmatmul.mubr.bf16.vlgmr.msra.gmra.mxu1 %v11261_v56  ;;  %v10087_v41 = vld [vmem:[#allocation9 + $0x130] sm:$0xff]   ;;  %v1263_v17 = vpop.f32.mrf.mxu0 }
 0x194   : > { %v1665_v55 = vrot.slane %v1663_v62, 7  ;;  %v12863_v39 = vmov 0  ;;  %v11293_v23 = vrot.slane %v1863_v49, 1  ;;  %2654 = vmatprep.mubr.bf16.mxu1 %v11271_v54  ;;  %v1184_v33 = vadd.f32 %v11163_v22, %v11092_v52  ;;  %9037 = vmatpush3.bf16.msra.mxu1 %v10082_v37  ;;  %v10090_v49 = vld [vmem:[#allocation9 + $0x168] sm:$0xff]  }
 0x195   : > { %v12864_v39 = vsel %vm11286_vm6, 4294967295, %v12863_v39  ;;  %v1346_v0 = vsel %vm1292_vm5, %v1253_v20, %v1319_v8  ;;  %v11298_v18 = vcombine.low %v1561_v30, %v1579_v19  ;;  %v8915_v1 = vadd.f32 %v11153_v51, %v11148_v36  ;;  %9038 = vmatprep.subr.bf16.mxu1 %v10085_v29  ;;  %v11303_v20 = vpop.f32.mrf.mxu1  ;;  %v9676_v19 = vpop.f32.mrf.mxu0 }
 0x196   : > { %12865 = vst [vmem:[#allocation27_spill] sm:$0xff] %v12864_v39  ;;  %v1668_v42 = vor.u32 %v1666_v63, %v1665_v55  ;;  %v1679_v62 = vrot.slane %v1665_v55, 4  ;;  %v1418_v31 = vmul.f32 %v11042_v27, %v1346_v0  ;;  %v11307_v8 = vsel %vm11184_vm12, %v1643_v5, %v1650_v28  ;;  %v10092_v63 = vld [vmem:[#allocation9 + $0x128] sm:$0xff]  }
 0x197   : > { %v1256_v22 = vadd.f32 %v11224_v16, %v1184_v33  ;;  %v1189_v37 = vadd.f32 %v8909_v48, %v11092_v52  ;;  %v1851_v30 = vshll.u32 %v11261_v56, 16  ;;  %v1849_v51 = vshrl.u32 %v11261_v56, 16  ;;  %v8928_v55 = vpop.f32.mrf.mxu1  ;;  %v1268_v48 = vpop.f32.mrf.mxu0  ;;  %v10095_v56 = vld [vmem:[#allocation9 + $0x160] sm:$0xff]  }
 0x198   : > { %v1737_v0 = vsel %vm11286_vm6, %v1679_v62, %v1736_v58  ;;  %v8830_v36 = vpack.c.bf16 %v1418_v31, %v1418_v31  ;;  %v1856_v29 = vshll.u32 %v11298_v18, 16  ;;  %9039 = vmatpush3.bf16.msra.mxu1 %v10087_v41  ;;  %v11318_v33 = vsel %vm11184_vm12, %v1661_v53, %v1668_v42  ;;  %v1711_v62 = vld [vmem:[#allocation3 + $0x8] sm:$0xf] }
 0x199   : > { %1738 = vst [vmem:[#allocation3 + $0x6c] sm:$0x11] %v1737_v0  ;;  %vm1295_vm7 = vcmp.gt.f32.partialorder %v1256_v22, 0.0  ;;  %v1322_v5 = vmul.f32 0.01, %v1256_v22  ;;  %v1261_v28 = vadd.f32 %v1260_v21, %v1189_v37  ;;  %v1853_v16 = vrot.slane %v1851_v30, 1  ;;  %9040 = vmatprep.subr.bf16.mxu1 %v10090_v49  ;;  %v8929_v31 = vpop.f32.mrf.mxu1  ;;  %v9679_v21 = vpop.f32.mrf.mxu0 }
 0x19a   : > { %v1529_v19 = vshrl.u32 %v8830_v36, 16  ;;  %v1532_v25 = vshll.u32 %v8830_v36, 16  ;;  %v11320_v58 = vrot.slane %v1856_v29, 1  ;;  %v8918_v53 = vadd.f32 %v11191_v34, %v11171_v57  ;;  %v10096_v30 = vld [vmem:[#allocation9 + $0x120] sm:$0xff]  }
 0x19b   : > { %v1349_v55 = vsel %vm1295_vm7, %v1256_v22, %v1322_v5  ;;  %vm1298_vm8 = vcmp.gt.f32.partialorder %v1261_v28, 0.0  ;;  %v1325_v0 = vmul.f32 0.01, %v1261_v28  ;;  %v1854_v39 = vor.u32 %v1853_v16, %v1849_v51  ;;  %2655 = vmatmul.mubr.bf16.gmra.mxu1 %v11298_v18  ;;  %v1271_v5 = vpop.f32.mrf.mxu0 }
 0x19c   : > { %v1531_v37 = vrot.slane %v1529_v19, 7  ;;  %v1421_v41 = vmul.f32 %v11055_v44, %v1349_v55  ;;  %v12866_v42 = vrot.slane %v11126_v10, 4  ;;  %v1192_v29 = vadd.f32 %v11245_v7, %v11092_v52  ;;  %9041 = vmatpush3.bf16.msra.mxu1 %v10092_v63 }
 0x19d   : > { %v1352_v22 = vsel %vm1298_vm8, %v1261_v28, %v1325_v0  ;;  %v1859_v36 = vsel %vm1847_vm3, %v1854_v39, %v11320_v58  ;;  %9042 = vmatprep.subr.bf16.mxu1 %v10095_v56  ;;  %v8921_v19 = vadd.f32 %v11236_v6, %v11211_v50  ;;  %v1197_v7 = vadd.f32 %v8915_v1, %v11092_v52  ;;  %v9680_v63 = vpop.f32.mrf.mxu0  ;;  %v10100_v1 = vld [vmem:[#allocation9 + $0x118] sm:$0xff]  }
 0x19e   : > { %v1597_v49 = vsel %vm11184_vm12, %v12866_v42, %v11155_v14  ;;  %v1534_v57 = vor.u32 %v1532_v25, %v1531_v37  ;;  %v1544_v34 = vrot.slane %v1531_v37, 4  ;;  %v8832_v16 = vpack.c.bf16 %v1421_v41, %v1421_v41  ;;  %2718 = vmatprep.mubr.bf16.mxu0 %v1859_v36  ;;  %v10099_v14 = vld [vmem:[#allocation9 + $0x158] sm:$0xff]  }
 0x19f   : > { %v11334_v51 = vcombine.high %v1597_v49, %v11198_v43  ;;  %v1424_v10 = vmul.f32 %v11067_v60, %v1352_v22  ;;  %v1264_v28 = vadd.f32 %v1263_v17, %v1192_v29  ;;  %v11341_v39 = vcombine.low %v1597_v49, %v11198_v43  ;;  %v1276_v50 = vpop.f32.mrf.mxu0  ;;  %v10103_v49 = vld [vmem:[#allocation9 + $0x150] sm:$0xff]  }
 0x1a0   : > { %v1712_v25 = vsel %vm11167_vm11, %v1534_v57, %v1711_v62  ;;  %v1546_v31 = vshrl.u32 %v8832_v16, 16  ;;  %v8924_v56 = vadd.f32 %v11273_v3, %v11258_v35  ;;  %v1269_v0 = vadd.f32 %v1268_v48, %v1197_v7  ;;  %9043 = vmatpush3.bf16.msra.mxu1 %v10096_v30 }
 0x1a1   : > { %2662 = vmatprep.mubr.bf16.mxu1 %v11334_v51  ;;  %v8834_v55 = vpack.c.bf16 %v1424_v10, %v1424_v10  ;;  %1713 = vst [vmem:[#allocation3 + $0x8] sm:$0xf] %v1712_v25  ;;  %vm1301_vm9 = vcmp.gt.f32.partialorder %v1264_v28, 0.0  ;;  %v1328_v17 = vmul.f32 0.01, %v1264_v28  ;;  %v11352_v43 = vcombine.high %v11280_v59, %v11307_v8  ;;  %9044 = vmatprep.subr.bf16.mxu1 %v10099_v14  ;;  %v9683_v3 = vpop.f32.mrf.mxu0  ;;  %v10105_v25 = vld [vmem:[#allocation9 + $0x110] sm:$0xff]  }
 0x1a2   : > { %v1548_v6 = vrot.slane %v1546_v31, 7  ;;  %v1549_v21 = vshll.u32 %v8832_v16, 16  ;;  %vm1304_vm10 = vcmp.gt.f32.partialorder %v1269_v0, 0.0  ;;  %v1331_v42 = vmul.f32 0.01, %v1269_v0 }
 0x1a3   : > { %v1564_v37 = vshrl.u32 %v8834_v55, 16  ;;  %v1567_v62 = vshll.u32 %v8834_v55, 16  ;;  %v1355_v41 = vsel %vm1301_vm9, %v1264_v28, %v1328_v17  ;;  %v1200_v35 = vadd.f32 %v8918_v53, %v11092_v52  ;;  %2663 = vmatmul.mubr.bf16.gmra.mxu1 %v11341_v39  ;;  %v1279_v53 = vpop.f32.mrf.mxu0 }
 0x1a4   : > { %v1551_v48 = vor.u32 %v1549_v21, %v1548_v6  ;;  %v1562_v22 = vrot.slane %v1548_v6, 4  ;;  %v1427_v29 = vmul.f32 %v11084_v40, %v1355_v41  ;;  %v1358_v30 = vsel %vm1304_vm10, %v1269_v0, %v1331_v42  ;;  %2670 = vmatprep.mubr.bf16.mxu1 %v11352_v43  ;;  %9045 = vmatpush3.bf16.msra.mxu1 %v10100_v1 }
 0x1a5   : > { %v1566_v36 = vrot.slane %v1564_v37, 7  ;;  %v1272_v57 = vadd.f32 %v1271_v5, %v1200_v35  ;;  %v11360_v16 = vcombine.low %v11280_v59, %v11307_v8  ;;  %v1205_v10 = vadd.f32 %v8921_v19, %v11092_v52  ;;  %v9684_v8 = vpop.f32.mrf.mxu0  ;;  %9046 = vmatprep.subr.bf16.mxu1 %v10103_v49  ;;  %v10106_v19 = vld [vmem:[#allocation9 + $0x148] sm:$0xff]  }
 0x1a6   : > { %v1552_v14 = vsel %vm11184_vm12, %v1544_v34, %v1551_v48  ;;  %v8836_v7 = vpack.c.bf16 %v1427_v29, %v1427_v29  ;;  %v8362_v63 = vcombine.high %v11318_v33, %v11318_v33  ;;  %v1430_v5 = vmul.f32 %v11102_v2, %v1358_v30 }
 0x1a7   : > { %v1569_v28 = vor.u32 %v1567_v62, %v1566_v36  ;;  %1715 = vst [vmem:[#allocation3 + $0x14] sm:$0xf] %v1552_v14  ;;  %vm1307_vm1 = vcmp.gt.f32.partialorder %v1272_v57, 0.0  ;;  %v1334_v31 = vmul.f32 0.01, %v1272_v57  ;;  %v1277_v59 = vadd.f32 %v1276_v50, %v1205_v10  ;;  %v1284_v37 = vpop.f32.mrf.mxu0  ;;  %v10107_v62 = vld [vmem:[#allocation9 + $0x108] sm:$0xff]  }
 0x1a8   : > { %v1580_v34 = vrot.slane %v1566_v36, 4  ;;  %v1582_v17 = vshrl.u32 %v8836_v7, 16  ;;  %v8927_v0 = vadd.f32 %v11303_v20, %v11291_v45  ;;  %v8838_v1 = vpack.c.bf16 %v1430_v5, %v1430_v5  ;;  %9047 = vmatpush3.bf16.msra.mxu1 %v10105_v25  ;;  %v10112_v10 = vld [vmem:[#allocation9 + $0x100] sm:$0xff]  }
 0x1a9   : > { %v1570_v55 = vsel %vm11184_vm12, %v1562_v22, %v1569_v28  ;;  %v1361_v6 = vsel %vm1307_vm1, %v1272_v57, %v1334_v31  ;;  %vm1310_vm4 = vcmp.gt.f32.partialorder %v1277_v59, 0.0  ;;  %v1337_v21 = vmul.f32 0.01, %v1277_v59  ;;  %v9687_v20 = vpop.f32.mrf.mxu0  ;;  %9048 = vmatprep.subr.bf16.mxu1 %v10106_v19  ;;  %v10110_v22 = vld [vmem:[#allocation9 + $0x140] sm:$0xff]   ;;  %v10111_v31 = vld [vmem:[#allocation9 + $0x1b8] sm:$0xff]  }
 0x1aa   : > { %1717 = vst [vmem:[#allocation3 + $0x20] sm:$0xf] %v1570_v55  ;;  %v1584_v41 = vrot.slane %v1582_v17, 7  ;;  %v1585_v50 = vshll.u32 %v8836_v7, 16  ;;  %v1433_v42 = vmul.f32 %v11129_v46, %v1361_v6  ;;  %v1208_v35 = vadd.f32 %v8924_v56, %v11092_v52  ;;  %v1743_v7 = vld [vmem:[#allocation3 + $0x8] sm:$0xf] }
 0x1ab   : > { %v1600_v3 = vshrl.u32 %v8838_v1, 16  ;;  %v1364_v49 = vsel %vm1310_vm4, %v1277_v59, %v1337_v21  ;;  %v8361_v48 = vcombine.low %v11318_v33, %v11318_v33  ;;  %v1213_v45 = vadd.f32 %v8927_v0, %v11092_v52  ;;  %2671 = vmatmul.mubr.bf16.gmra.mxu1 %v11360_v16  ;;  %v1287_v5 = vpop.f32.mrf.mxu0 }
 0x1ac   : > { %v1587_v36 = vor.u32 %v1585_v50, %v1584_v41  ;;  %v1603_v29 = vshll.u32 %v8838_v1, 16  ;;  %v8840_v30 = vpack.c.bf16 %v1433_v42, %v1433_v42  ;;  %v1436_v57 = vmul.f32 %v11142_v4, %v1364_v49  ;;  %2678 = vmatprep.mubr.bf16.mxu1 %v8362_v63  ;;  %9049 = vmatpush3.bf16.msra.mxu1 %v10107_v62  ;;  %v10114_v42 = vld [vmem:[#allocation9 + $0x1b0] sm:$0xff]  }
 0x1ad   : > { %v1598_v56 = vrot.slane %v1584_v41, 4  ;;  %v1602_v14 = vrot.slane %v1600_v3, 7  ;;  %v1280_v28 = vadd.f32 %v1279_v53, %v1208_v35  ;;  %v1285_v25 = vadd.f32 %v1284_v37, %v1213_v45  ;;  %v9688_v53 = vpop.f32.mrf.mxu0  ;;  %9050 = vmatprep.subr.bf16.mxu1 %v10110_v22 }
 0x1ae   : > { %v1588_v52 = vsel %vm11184_vm12, %v1580_v34, %v1587_v36  ;;  %v1618_v59 = vshrl.u32 %v8840_v30, 16  ;;  %v8842_v8 = vpack.c.bf16 %v1436_v57, %v1436_v57  ;;  %v11381_v19 = vld [vmem:[#allocation3 + $0x14] sm:$0xf]  ;;  %v1884_v55 = vshrl.u32 %v11298_v18, 16  ;;  %v10113_v34 = vld [vmem:[#allocation9 + $0x1f0] sm:$0xff]  }
 0x1af   : > { %1719 = vst [vmem:[#allocation3 + $0x2c] sm:$0xf] %v1588_v52  ;;  %v1605_v17 = vor.u32 %v1603_v29, %v1602_v14  ;;  %v1621_v0 = vshll.u32 %v8840_v30, 16  ;;  %vm1313_vm13 = vcmp.gt.f32.partialorder %v1280_v28, 0.0  ;;  %v1340_v63 = vmul.f32 0.01, %v1280_v28 }
 0x1b0   : > { %v1616_v1 = vrot.slane %v1602_v14, 4  ;;  %v1620_v6 = vrot.slane %v1618_v59, 7  ;;  %v1636_v21 = vshrl.u32 %v8842_v8, 16  ;;  %v11385_v37 = vcombine.low %v1743_v7, %v11381_v19  ;;  %9051 = vmatpush3.bf16.msra.mxu1 %v10112_v10  ;;  %v10117_v7 = vld [vmem:[#allocation9 + $0x1e8] sm:$0xff]   ;;  %v11397_v10 = vld [vmem:[#allocation3 + $0x6c] sm:$0x11] }
 0x1b1   : > { %v1606_v41 = vsel %vm11184_vm12, %v1598_v56, %v1605_v17  ;;  %v1367_v50 = vsel %vm1313_vm13, %v1280_v28, %v1340_v63  ;;  %vm1316_vm2 = vcmp.gt.f32.partialorder %v1285_v25, 0.0  ;;  %v1343_v62 = vmul.f32 0.01, %v1285_v25  ;;  %v10118_v52 = vld [vmem:[#allocation9 + $0x1a8] sm:$0xff]  }
 0x1b2   : > { %1721 = vst [vmem:[#allocation3 + $0x38] sm:$0xf] %v1606_v41  ;;  %v1623_v35 = vor.u32 %v1621_v0, %v1620_v6  ;;  %v1638_v3 = vrot.slane %v1636_v21, 7  ;;  %v1639_v49 = vshll.u32 %v8842_v8, 16  ;;  %v1439_v45 = vmul.f32 %v11173_v47, %v1367_v50  ;;  %2719 = vmatmul.mubr.bf16.vlgmr.msra.gmra.mxu0 %v11385_v37 }
 0x1b3   : > { %v1634_v20 = vrot.slane %v1620_v6, 4  ;;  %v1370_v22 = vsel %vm1316_vm2, %v1285_v25, %v1343_v62  ;;  %v1886_v36 = vor.u32 %v1884_v55, %v11320_v58  ;;  %v1888_v29 = vshll.u32 %v11341_v39, 16  ;;  %9083 = vmatpush3.bf16.msra.mxu0 %v10111_v31  ;;  %2679 = vmatmul.mubr.bf16.gmra.mxu1 %v8361_v48 }
 0x1b4   : > { %v12867_v30 = vmov 0.0   ;;  %v1624_v57 = vsel %vm11184_vm12, %v1616_v1, %v1623_v35  ;;  %v1641_v56 = vor.u32 %v1639_v49, %v1638_v3  ;;  %v8844_v14 = vpack.c.bf16 %v1439_v45, %v1439_v45  ;;  %9084 = vmatprep.subr.bf16.mxu0 %v10113_v34  ;;  %v10119_v1 = vld [vmem:[#allocation9 + $0x1e0] sm:$0xff]   ;;  %v1739_v49 = vld [vmem:[#allocation3 + $0x74] sm:$0x1] }
 0x1b5   : > { %9689 = vmatprep.subr.bf16.mxu1 %v12867_v30  ;;  %v1908_v28 = vshrl.u32 %v11341_v39, 16  ;;  %1723 = vst [vmem:[#allocation3 + $0x44] sm:$0xf] %v1624_v57  ;;  %v1652_v25 = vrot.slane %v1638_v3, 4  ;;  %v1442_v58 = vmul.f32 %v11194_v32, %v1370_v22  ;;  %v1890_v5 = vrot.slane %v1888_v29, 1  ;;  %v10121_v22 = vld [vmem:[#allocation9 + $0x1a0] sm:$0xff]  }
 0x1b6   : > { %v1912_v31 = vshll.u32 %v11360_v16, 16  ;;  %v1642_v59 = vsel %vm11184_vm12, %v1634_v20, %v1641_v56  ;;  %v1654_v8 = vshrl.u32 %v8844_v14, 16  ;;  %v1657_v55 = vshll.u32 %v8844_v14, 16  ;;  %v11403_v48 = vld [vmem:[#allocation3 + $0x20] ss:$12 sps:$4 sm:$0xff]  }
 0x1b7   : > { %1725 = vst [vmem:[#allocation3 + $0x50] sm:$0xf] %v1642_v59  ;;  %v8846_v17 = vpack.c.bf16 %v1442_v58, %v1442_v58  ;;  %v1891_v0 = vsel %vm1847_vm3, %v1886_v36, %v1890_v5  ;;  %v1910_v63 = vor.u32 %v1908_v28, %v1890_v5  ;;  %9085 = vmatpush3.bf16.msra.mxu0 %v10114_v42  ;;  %v1875_v21 = vshll.u32 %v11385_v37, 16  ;;  %v10123_v5 = vld [vmem:[#allocation9 + $0x1d8] sm:$0xff]  }
 0x1b8   : > { %v1914_v53 = vrot.slane %v1912_v31, 1  ;;  %v1656_v6 = vrot.slane %v1654_v8, 7  ;;  %2726 = vmatprep.mubr.bf16.mxu0 %v1891_v0  ;;  %v1880_v34 = vshll.u32 %v11403_v48, 16  ;;  %v1868_v41 = vshll.u32 %v11271_v54, 16  ;;  %9086 = vmatprep.subr.bf16.mxu0 %v10117_v7 }
 0x1b9   : > { %v1672_v50 = vshrl.u32 %v8846_v17, 16  ;;  %v1873_v62 = vshrl.u32 %v11385_v37, 16  ;;  %v11412_v35 = vcombine.low %v11318_v33, %v11397_v10  ;;  %v1877_v45 = vrot.slane %v1875_v21, 1 }
 0x1ba   : > { %v1659_v3 = vor.u32 %v1657_v55, %v1656_v6  ;;  %2727 = vmatmul.mubr.bf16.gmra.mxu0 %v11403_v48  ;;  %v1915_v42 = vsel %vm1847_vm3, %v1910_v63, %v1914_v53  ;;  %v1882_v20 = vrot.slane %v1880_v34, 1  ;;  %v1675_v29 = vshll.u32 %v8846_v17, 16  ;;  %v10115_v55 = vld [vmem:[#allocation9 + $0x238] sm:$0xff]  }
 0x1bb   : > { %v1674_v36 = vrot.slane %v1672_v50, 7  ;;  %2734 = vmatprep.mubr.bf16.mxu0 %v1915_v42  ;;  %v1870_v57 = vrot.slane %v1868_v41, 1  ;;  %v1936_v56 = vshll.u32 %v11412_v35, 16  ;;  %9087 = vmatpush3.bf16.msra.mxu0 %v10118_v52  ;;  %v1878_v14 = vor.u32 %v1877_v45, %v1873_v62  ;;  %v10124_v50 = vld [vmem:[#allocation9 + $0x198] sm:$0xff]   ;;  %v10120_v62 = vld [vmem:[#allocation9 + $0x230] sm:$0xff]  }
 0x1bc   : > { %v1660_v37 = vsel %vm11184_vm12, %v1652_v25, %v1659_v3  ;;  %v12868_v28 = vshrl.u32 %v11264_v24, 16  ;;  %v11422_v58 = vld [vmem:[#allocation3 + $0x38] ss:$12 sps:$4 sm:$0xff]   ;;  %9088 = vmatprep.subr.bf16.mxu0 %v10119_v1  ;;  %v1670_v31 = vrot.slane %v1656_v6, 4  ;;  %v1932_v17 = vshrl.u32 %v11360_v16, 16  ;;  %v10126_v3 = vld [vmem:[#allocation9 + $0x1d0] sm:$0xff]  }
 0x1bd   : > { %1727 = vst [vmem:[#allocation3 + $0x5c] sm:$0xf] %v1660_v37  ;;  %v1677_v59 = vor.u32 %v1675_v29, %v1674_v36  ;;  %v1680_v8 = vrot.slane %v1674_v36, 4  ;;  %v1883_v52 = vsel %vm1847_vm3, %v1878_v14, %v1882_v20  ;;  %v1938_v0 = vrot.slane %v1936_v56, 1  ;;  %v10125_v29 = vld [vmem:[#allocation9 + $0x228] sm:$0xff]  }
 0x1be   : > { %v1866_v7 = vor.u32 %v11293_v23, %v12868_v28  ;;  %v1900_v25 = vshrl.u32 %v11403_v48, 16  ;;  %v1904_v24 = vshll.u32 %v11422_v58, 16  ;;  %2790 = vmatprep.mubr.bf16.mxu1 %v1883_v52  ;;  %v1896_v6 = vshll.u32 %v11334_v51, 16  ;;  %v10130_v56 = vld [vmem:[#allocation9 + $0x1c8] sm:$0xff]  }
 0x1bf   : > { %v1678_v23 = vsel %vm11184_vm12, %v1670_v31, %v1677_v59  ;;  %v1740_v63 = vsel %vm11230_vm15, %v1680_v8, %v1739_v49  ;;  %9089 = vmatpush3.bf16.msra.mxu0 %v10121_v22  ;;  %v1934_v21 = vor.u32 %v1932_v17, %v1914_v53  ;;  %v1892_v45 = vshrl.u32 %v11271_v54, 16  ;;  %v10127_v22 = vld [vmem:[#allocation9 + $0x190] sm:$0xff]   ;;  %v10132_v17 = vld [vmem:[#allocation9 + $0x188] sm:$0xff]  }
 0x1c0   : > { %v1871_v1 = vsel %vm1847_vm3, %v1866_v7, %v1870_v57  ;;  %1729 = vst [vmem:[#allocation3 + $0x68] sm:$0xf] %v1678_v23  ;;  %1741 = vst [vmem:[#allocation3 + $0x74] sm:$0x1] %v1740_v63  ;;  %v1902_v34 = vor.u32 %v1900_v25, %v1882_v20  ;;  %v1906_v41 = vrot.slane %v1904_v24, 1  ;;  %9090 = vmatprep.subr.bf16.mxu0 %v10123_v5  ;;  %v1898_v53 = vrot.slane %v1896_v6, 1 }
 0x1c1   : > { %2791 = vmatmul.mubr.bf16.vlgmr.msra.gmra.mxu1 %v1871_v1  ;;  %v1939_v49 = vsel %vm1847_vm3, %v1934_v21, %v1938_v0  ;;  %v1894_v36 = vor.u32 %v1892_v45, %v1870_v57  ;;  %v1924_v37 = vshrl.u32 %v11422_v58, 16  ;;  %v1956_v7 = vshrl.u32 %v11412_v35, 16  ;;  %v10128_v25 = vld [vmem:[#allocation9 + $0x220] sm:$0xff]   ;;  %v1762_v24 = vld [vmem:[#allocation3] sm:$0xee] }
 0x1c2   : > { %9690 = vmatpush3.bf16.msra.mxu1 %v10115_v55  ;;  %2735 = vmatmul.mubr.bf16.gmra.mxu0 %v11422_v58  ;;  %v1907_v42 = vsel %vm1847_vm3, %v1902_v34, %v1906_v41  ;;  %v1920_v5 = vshll.u32 %v11352_v43, 16  ;;  %v10134_v23 = vld [vmem:[#allocation9 + $0x1c0] sm:$0xff]   ;;  %v1916_v21 = vshrl.u32 %v11334_v51, 16  ;;  %v11457_v34 = vcombine.high %v11318_v33, %v11397_v10 }
 0x1c3   : > { %9691 = vmatprep.subr.bf16.mxu1 %v12867_v30  ;;  %2742 = vmatprep.mubr.bf16.mxu0 %v1939_v49  ;;  %v1899_v28 = vsel %vm1847_vm3, %v1894_v36, %v1898_v53  ;;  %v1926_v8 = vor.u32 %v1924_v37, %v1906_v41  ;;  %v1958_v52 = vor.u32 %v1956_v7, %v1938_v0  ;;  %vm1988_vm5 = vcmask 1046528  }
 0x1c4   : > { %2798 = vmatprep.mubr.bf16.mxu1 %v1907_v42  ;;  %v11439_v20 = vld [vmem:[#allocation3 + $0x50] ss:$12 sps:$4 sm:$0xff]   ;;  %9091 = vmatpush3.bf16.msra.mxu0 %v10124_v50  ;;  %v1922_v0 = vrot.slane %v1920_v5, 1  ;;  %v1918_v49 = vor.u32 %v1916_v21, %v1898_v53  ;;  %v1944_v33 = vshll.u32 %v11457_v34, 16  ;;  %v10136_v53 = vld [vmem:[#allocation9 + $0x210] sm:$0xff]   ;;  %v1990_v5 = vrot.slane %v11298_v18, 1 }
 0x1c5   : > { %9092 = vmatprep.subr.bf16.mxu0 %v10126_v3  ;;  %v1928_v14 = vshll.u32 %v11439_v20, 16  ;;  %v1948_v1 = vshrl.u32 %v11439_v20, 16  ;;  %v10135_v3 = vld [vmem:[#allocation9 + $0x180] sm:$0xff]   ;;  %v10133_v42 = vld [vmem:[#allocation9 + $0x218] sm:$0xff]   ;;  %v1959_v18 = vshrl.u32 %v11457_v34, 16 }
 0x1c6   : > { %9692 = vmatpush3.bf16.msra.mxu1 %v10120_v62  ;;  %v8368_v62 = vcombine.high %v1762_v24, %v11222_v13  ;;  %v1923_v36 = vsel %vm1847_vm3, %v1918_v49, %v1922_v0  ;;  %v1946_v37 = vrot.slane %v1944_v33, 1  ;;  %v2008_v49 = vrot.slane %v11439_v20, 1 }
 0x1c7   : > { %9693 = vmatprep.subr.bf16.mxu1 %v12867_v30  ;;  %v1759_v31 = vld [vmem:[#allocation3 + $0x68] sm:$0xf]  ;;  %v1761_v59 = vld [vmem:[#allocation3 + $0x74] sm:$0x1]  ;;  %v1930_v57 = vrot.slane %v1928_v14, 1  ;;  %v8367_v14 = vcombine.low %v1762_v24, %v11222_v13  ;;  %v10138_v13 = vld [vmem:[#allocation9 + $0x200] sm:$0xff]  }
 0x1c8   : > { %9093 = vmatpush3.bf16.msra.mxu0 %v10127_v22  ;;  %v11447_v55 = vcombine.low %v1759_v31, %v1761_v59  ;;  %v1993_v22 = vrot.slane %v11271_v54, 1  ;;  %v8363_v10 = vcombine.low %v1759_v31, %v1759_v31  ;;  %v1940_v54 = vshrl.u32 %v11352_v43, 16  ;;  %v10137_v31 = vld [vmem:[#allocation9 + $0x208] sm:$0xff]  }
 0x1c9   : > { %2799 = vmatmul.mubr.bf16.gmra.mxu1 %v1899_v28  ;;  %9094 = vmatprep.subr.bf16.mxu0 %v10130_v56  ;;  %v1931_v63 = vsel %vm1847_vm3, %v1926_v8, %v1930_v57  ;;  %v1950_v41 = vor.u32 %v1948_v1, %v1930_v57  ;;  %v2000_v59 = vrot.slane %v11334_v51, 1  ;;  %v1998_v51 = vrot.slane %v11341_v39, 1 }
 0x1ca   : > { %9694 = vmatpush3.bf16.msra.mxu1 %v10125_v29  ;;  %2743 = vmatmul.mubr.bf16.gmra.mxu0 %v11439_v20  ;;  %v1952_v6 = vshll.u32 %v11447_v55, 16  ;;  %v1992_v29 = vrot.slane %v8368_v62, 1  ;;  %v1942_v28 = vor.u32 %v1940_v54, %v1922_v0  ;;  %v1962_v7 = vshrl.u32 %v11447_v55, 16  ;;  %v10143_v20 = vld [vmem:[#allocation7 + $0x2d0] ss:$12 sps:$4 sm:$0xff]  }
 0x1cb   : > { %9695 = vmatprep.subr.bf16.mxu1 %v12867_v30  ;;  %2750 = vmatprep.mubr.bf16.mxu0 %v1958_v52  ;;  %v1961_v24 = vor.u32 %v1959_v18, %v1946_v37  ;;  %v1999_v1 = vsel %vm1988_vm5, %v1990_v5, %v1998_v51  ;;  %v1996_v0 = vrot.slane %v11403_v48, 1  ;;  %v2010_v48 = vrot.slane %v11412_v35, 1  ;;  %v10154_v54 = vld [vmem:[#allocation7 + $0x28c] ss:$12 sps:$4 sm:$0xff]   ;;  %v10173_v18 = vld [vmem:[#allocation7 + $0x390] ss:$12 sps:$4 sm:$0xff]  }
 0x1cc   : > { %2806 = vmatprep.mubr.bf16.mxu1 %v1931_v63  ;;  %v1954_v50 = vrot.slane %v1952_v6, 1  ;;  %9095 = vmatpush3.bf16.msra.mxu0 %v10132_v17  ;;  %v1994_v56 = vsel %vm1988_vm5, %v1992_v29, %v1993_v22  ;;  %v1947_v8 = vsel %vm1847_vm3, %v1942_v28, %v1946_v37  ;;  %v1989_v17 = vrot.slane %v8367_v14, 1  ;;  %v1763_v63 = vld [vmem:[#allocation3 + $0x8] sm:$0xe]  ;;  %v10148_v29 = vld [vmem:[#allocation7 + $0x2bc] ss:$12 sps:$4 sm:$0xff]  }
 0x1cd   : > { %9096 = vmatprep.subr.bf16.mxu0 %v10134_v23  ;;  %v2006_v23 = vrot.slane %v11352_v43, 1  ;;  %v8369_v6 = vcombine.low %v1763_v63, %v11381_v19  ;;  %v2012_v43 = vrot.slane %v11457_v34, 1  ;;  %v2014_v35 = vrot.slane %v11447_v55, 1  ;;  %v10149_v55 = vld [vmem:[#allocation7 + $0x2a0] ss:$12 sps:$4 sm:$0xff]  }
 0x1ce   : > { %9696 = vmatpush3.bf16.msra.mxu1 %v10128_v25  ;;  %v1955_v45 = vsel %vm1847_vm3, %v1950_v41, %v1954_v50  ;;  %v1964_v57 = vor.u32 %v1962_v7, %v1954_v50  ;;  %v1991_v52 = vsel %vm1988_vm5, %v1989_v17, %v1990_v5  ;;  %v2001_v25 = vsel %vm1988_vm5, %v1993_v22, %v2000_v59  ;;  %v10142_v22 = vld [vmem:[#allocation7 + $0x2ec] ss:$12 sps:$4 sm:$0xff]   ;;  %v10155_v37 = vld [vmem:[#allocation7 + $0x270] ss:$12 sps:$4 sm:$0xff]   ;;  %v10157_v14 = vld [vmem:[#allocation7 + $0x274] ss:$12 sps:$4 sm:$0xff]  }
 0x1cf   : > { %9697 = vmatprep.subr.bf16.mxu1 %v12867_v30  ;;  %v2007_v21 = vsel %vm1988_vm5, %v2000_v59, %v2006_v23  ;;  %v1995_v39 = vrot.slane %v8369_v6, 1  ;;  %v2004_v41 = vrot.slane %v11360_v16, 1  ;;  %v2013_v19 = vsel %vm1988_vm5, %v2006_v23, %v2012_v43  ;;  %v10160_v28 = vld [vmem:[#allocation7 + $0x25c] ss:$12 sps:$4 sm:$0xff]   ;;  %v10158_v7 = vld [vmem:[#allocation7 + $0x258] ss:$12 sps:$4 sm:$0xff]  }
 0x1d0   : > { %9097 = vmatpush3.bf16.msra.mxu0 %v10135_v3  ;;  %v2002_v3 = vrot.slane %v11422_v58, 1  ;;  %v2015_v58 = vsel %vm1988_vm5, %v2008_v49, %v2014_v35  ;;  %v12869_v33 = vmov 0   ;;  %v10161_v5 = vld [vmem:[#allocation7 + $0x468] ss:$12 sps:$4 sm:$0xff]   ;;  %v10164_v59 = vld [vmem:[#allocation7 + $0x240] ss:$12 sps:$4 sm:$0xff]  }
 0x1d1   : > { %2807 = vmatmul.mubr.bf16.gmra.mxu1 %v1923_v36  ;;  %v1997_v50 = vsel %vm1988_vm5, %v1995_v39, %v1996_v0  ;;  %v2005_v62 = vsel %vm1988_vm5, %v1998_v51, %v2004_v41  ;;  %v2011_v34 = vsel %vm1988_vm5, %v2004_v41, %v2010_v48  ;;  %3578 = vmatprep.subr.bf16.mxu0 %v10142_v22  ;;  %v10145_v36 = vld [vmem:[#allocation7 + $0x2d4] ss:$12 sps:$4 sm:$0xff]   ;;  %v10170_v17 = vld [vmem:[#allocation7 + $0x450] ss:$12 sps:$4 sm:$0xff]   ;;  %v10176_v51 = vld [vmem:[#allocation7 + $0x438] ss:$12 sps:$4 sm:$0xff]  }
 0x1d2   : > { %2814 = vmatprep.mubr.bf16.mxu1 %v1955_v45  ;;  %9698 = vmatpush3.bf16.msra.mxu1 %v10133_v42  ;;  %v2003_v16 = vsel %vm1988_vm5, %v1996_v0, %v2002_v3  ;;  %v2009_v42 = vsel %vm1988_vm5, %v2002_v3, %v2008_v49  ;;  %v10140_v45 = vld [vmem:[#allocation7 + $0x2e8] ss:$12 sps:$4 sm:$0xff]   ;;  %v10179_v23 = vld [vmem:[#allocation7 + $0x378] ss:$12 sps:$4 sm:$0xff]   ;;  %v10197_v3 = vld [vmem:[#allocation7 + $0x3f0] ss:$12 sps:$4 sm:$0xff]  }
 0x1d3   : > { %2751 = vmatmul.mubr.bf16.gmra.mxu0 %v8363_v10  ;;  %9699 = vmatprep.subr.bf16.mxu1 %v12867_v30  ;;  %v10146_v10 = vld [vmem:[#allocation7 + $0x2b8] ss:$12 sps:$4 sm:$0xff]   ;;  %v10181_v63 = vld [vmem:[#allocation7 + $0x37c] ss:$12 sps:$4 sm:$0xff]  }
 0x1d4   : > { %2862 = vmatprep.mubr.bf16.mxu0 %v1994_v56  ;;  %v10152_v56 = vld [vmem:[#allocation7 + $0x288] ss:$12 sps:$4 sm:$0xff]   ;;  %v10184_v6 = vld [vmem:[#allocation7 + $0x424] ss:$12 sps:$4 sm:$0xff]   ;;  %v10190_v41 = vld [vmem:[#allocation7 + $0x40c] ss:$12 sps:$4 sm:$0xff]  }
 0x1d5   : > { %v10187_v0 = vld [vmem:[#allocation7 + $0x364] ss:$12 sps:$4 sm:$0xff]   ;;  %v10188_v39 = vld [vmem:[#allocation7 + $0x408] ss:$12 sps:$4 sm:$0xff]  }
 0x1d6   : > { %9700 = vmatpush3.bf16.msra.mxu1 %v10136_v53  ;;  %v10151_v53 = vld [vmem:[#allocation7 + $0x2a4] ss:$12 sps:$4 sm:$0xff]  }
 0x1d7   : > { %9701 = vmatprep.subr.bf16.mxu1 %v12867_v30  ;;  %v10203_v49 = vld [vmem:[#allocation7 + $0x3d8] ss:$12 sps:$4 sm:$0xff]  }
 0x1d8   : > { %v10211_v22 = vld [vmem:[#allocation7 + $0x3c4] ss:$12 sps:$4 sm:$0xff]  }
 0x1d9   : > { %2815 = vmatmul.mubr.bf16.gmra.mxu1 %v1947_v8  ;;  %v10166_v8 = vld [vmem:[#allocation7 + $0x244] ss:$12 sps:$4 sm:$0xff]  }
 0x1da   : > { %2822 = vmatprep.mubr.bf16.mxu1 %v1964_v57  ;;  %9702 = vmatpush3.bf16.msra.mxu1 %v10137_v31  ;;  %v10163_v31 = vld [vmem:[#allocation7 + $0x46c] ss:$12 sps:$4 sm:$0xff]  }
 0x1db   : > { %2863 = vmatmul.mubr.bf16.vlgmr.msra.gmra.mxu0 %v1991_v52  ;;  %9703 = vmatprep.subr.bf16.mxu1 %v12867_v30  ;;  %v10169_v57 = vld [vmem:[#allocation7 + $0x3ac] ss:$12 sps:$4 sm:$0xff]   ;;  %v10167_v52 = vld [vmem:[#allocation7 + $0x3a8] ss:$12 sps:$4 sm:$0xff]  }
 0x1dc   : > { %2870 = vmatprep.mubr.bf16.mxu0 %v2001_v25  ;;  %3579 = vmatpush1.bf16.msra.mxu0 %v10140_v45  ;;  %v10175_v25 = vld [vmem:[#allocation7 + $0x394] ss:$12 sps:$4 sm:$0xff]  }
 0x1dd   : > { %3580 = vmatprep.subr.bf16.mxu0 %v10145_v36  ;;  %v10209_v45 = vld [vmem:[#allocation7 + $0x3c0] ss:$12 sps:$4 sm:$0xff]  }
 0x1de   : > { %9704 = vmatpush3.bf16.msra.mxu1 %v10138_v13  ;;  %v10172_v13 = vld [vmem:[#allocation7 + $0x454] ss:$12 sps:$4 sm:$0xff]  }
 0x1df   : > { %3659 = vmatprep.subr.bf16.mxu1 %v10163_v31 }
 0x1e0   : > { %3581 = vmatpush1.bf16.msra.mxu0 %v10143_v20  ;;  %v10212_v20 = vld [vmem:[#allocation7 + $0x3b0] ss:$12 sps:$4 sm:$0xff]  }
 0x1e1   : > { %2823 = vmatmul.mubr.bf16.gmra.mxu1 %v1961_v24  ;;  %3582 = vmatprep.subr.bf16.mxu0 %v10148_v29  ;;  %v10178_v24 = vld [vmem:[#allocation7 + $0x43c] ss:$12 sps:$4 sm:$0xff]  }
 0x1e2   : > { %9705 = vmatprep.mubr.msk.bf16.mxu1 %vm10678_vm0, %v12867_v30 }
 0x1e3   : > { %2871 = vmatmul.mubr.bf16.gmra.mxu0 %v1999_v1  ;;  %v10182_v1 = vld [vmem:[#allocation7 + $0x420] ss:$12 sps:$4 sm:$0xff]  }
 0x1e4   : > { %2878 = vmatprep.mubr.bf16.mxu0 %v2007_v21  ;;  %3583 = vmatpush1.bf16.msra.mxu0 %v10146_v10  ;;  %v10185_v21 = vld [vmem:[#allocation7 + $0x360] ss:$12 sps:$4 sm:$0xff]  }
 0x1e5   : > { %3584 = vmatprep.subr.bf16.mxu0 %v10151_v53 }
 0x1e8   : > { %3585 = vmatpush1.bf16.msra.mxu0 %v10149_v55 }
 0x1e9   : > { %9706 = vmatmul.mubr.bf16.vlgmr.msra.gmra.mxu1 %v1997_v50  ;;  %3586 = vmatprep.subr.bf16.mxu0 %v10154_v54  ;;  %v10193_v50 = vld [vmem:[#allocation7 + $0x34c] ss:$12 sps:$4 sm:$0xff]  }
 0x1ea   : > { %9709 = vmatprep.mubr.msk.bf16.mxu1 %vm10678_vm0, %v12867_v30  ;;  %3660 = vmatpush1.bf16.msra.mxu1 %v10161_v5 }
 0x1eb   : > { %2879 = vmatmul.mubr.bf16.gmra.mxu0 %v2005_v62  ;;  %3661 = vmatprep.subr.bf16.mxu1 %v10172_v13  ;;  %v10194_v62 = vld [vmem:[#allocation7 + $0x330] ss:$12 sps:$4 sm:$0xff]  }
 0x1ec   : > { %2886 = vmatprep.mubr.bf16.mxu0 %v2013_v19  ;;  %3587 = vmatpush1.bf16.msra.mxu0 %v10152_v56  ;;  %v10196_v19 = vld [vmem:[#allocation7 + $0x334] ss:$12 sps:$4 sm:$0xff]  }
 0x1ed   : > { %3588 = vmatprep.subr.bf16.mxu0 %v10157_v14 }
 0x1ee   : > { %3662 = vmatpush1.bf16.msra.mxu1 %v10170_v17 }
 0x1ef   : > { %3663 = vmatprep.subr.bf16.mxu1 %v10178_v24 }
 0x1f0   : > { %3589 = vmatpush1.bf16.msra.mxu0 %v10155_v37 }
 0x1f1   : > { %9710 = vmatmul.mubr.bf16.gmra.mxu1 %v2003_v16  ;;  %3590 = vmatprep.subr.bf16.mxu0 %v10160_v28  ;;  %v10200_v16 = vld [vmem:[#allocation7 + $0x318] ss:$12 sps:$4 sm:$0xff]  }
 0x1f2   : > { %9713 = vmatprep.mubr.msk.bf16.mxu1 %vm10678_vm0, %v12867_v30  ;;  %3664 = vmatpush1.bf16.msra.mxu1 %v10176_v51 }
 0x1f3   : > { %2887 = vmatmul.mubr.bf16.gmra.mxu0 %v2011_v34  ;;  %3665 = vmatprep.subr.bf16.mxu1 %v10184_v6  ;;  %v10202_v34 = vld [vmem:[#allocation7 + $0x31c] ss:$12 sps:$4 sm:$0xff]  }
 0x1f4   : > { %2894 = vmatprep.mubr.bf16.mxu0 %v2012_v43  ;;  %3591 = vmatpush1.bf16.msra.mxu0 %v10158_v7  ;;  %v10191_v43 = vld [vmem:[#allocation7 + $0x348] ss:$12 sps:$4 sm:$0xff]  }
 0x1f5   : > { %3592 = vmatprep.subr.bf16.mxu0 %v10166_v8 }
 0x1f6   : > { %3666 = vmatpush1.bf16.msra.mxu1 %v10182_v1 }
 0x1f7   : > { %3667 = vmatprep.subr.bf16.mxu1 %v10190_v41 }
 0x1f8   : > { %3593 = vmatpush1.bf16.msra.mxu0 %v10164_v59 }
 0x1f9   : > { %9714 = vmatmul.mubr.bf16.gmra.mxu1 %v2009_v42  ;;  %3594 = vmatprep.subr.bf16.mxu0 %v10169_v57  ;;  %v10205_v42 = vld [vmem:[#allocation7 + $0x3dc] ss:$12 sps:$4 sm:$0xff]  }
 0x1fa   : > { %9717 = vmatprep.mubr.msk.bf16.mxu1 %vm10678_vm0, %v12867_v30  ;;  %3668 = vmatpush1.bf16.msra.mxu1 %v10188_v39 }
 0x1fb   : > { %2895 = vmatmul.mubr.bf16.gmra.mxu0 %v2010_v48  ;;  %v10199_v48 = vld [vmem:[#allocation7 + $0x3f4] ss:$12 sps:$4 sm:$0xff]  }
 0x1fc   : > { %3595 = vmatpush2.bf16.msra.mxu0 %v10167_v52  ;;  %3669 = vmatprep.subr.bf16.mxu1 %v10199_v48 }
 0x1fd   : > { %3596 = vmatprep.subr.bf16.mxu0 %v10175_v25 }
 0x1fe   : > { %3670 = vmatpush1.bf16.msra.mxu1 %v10197_v3 }
 0x1ff   : > { %3671 = vmatprep.subr.bf16.mxu1 %v10205_v42 }
 0x200   : > { %3597 = vmatpush2.bf16.msra.mxu0 %v10173_v18 }
 0x201   : > { %9718 = vmatmul.mubr.bf16.gmra.mxu1 %v2015_v58  ;;  %3598 = vmatprep.subr.bf16.mxu0 %v10181_v63  ;;  %v10208_v58 = vld [vmem:[#allocation7 + $0x304] ss:$12 sps:$4 sm:$0xff]  }
 0x202   : > { %9721 = vmatprep.mubr.msk.bf16.mxu1 %vm10678_vm0, %v12867_v30  ;;  %3672 = vmatpush1.bf16.msra.mxu1 %v10203_v49 }
 0x203   : > { %3673 = vmatprep.subr.bf16.mxu1 %v10211_v22 }
 0x204   : > { %3599 = vmatpush2.bf16.msra.mxu0 %v10179_v23 }
 0x205   : > { %3600 = vmatprep.subr.bf16.mxu0 %v10187_v0 }
 0x206   : > { %3674 = vmatpush1.bf16.msra.mxu1 %v10209_v45 }
 0x207   : > { %9141 = vmatprep.subr.bf16.mxu1 %v10212_v20 }
 0x208   : > { %3601 = vmatpush2.bf16.msra.mxu0 %v10185_v21 }
 0x209   : > { %9722 = vmatmul.mubr.bf16.gmra.mxu1 %v2014_v35  ;;  %3602 = vmatprep.subr.bf16.mxu0 %v10193_v50  ;;  %v10206_v35 = vld [vmem:[#allocation7 + $0x300] ss:$12 sps:$4 sm:$0xff]  }
 0x20a   : > { %3691 = vmatprep.mubr.bf16.mxu1 %v12869_v33 }
 0x20c   : > { %3603 = vmatpush2.bf16.msra.mxu0 %v10191_v43 }
 0x20d   : > { %3604 = vmatprep.subr.bf16.mxu0 %v10196_v19 }
 0x210   : > { %3605 = vmatpush2.bf16.msra.mxu0 %v10194_v62 }
 0x211   : > { %3606 = vmatprep.subr.bf16.mxu0 %v10202_v34 }
 0x214   : > { %3607 = vmatpush2.bf16.msra.mxu0 %v10200_v16 }
 0x215   : > { %3608 = vmatprep.subr.bf16.mxu0 %v10208_v58 }
 0x218   : > { %3609 = vmatpush2.bf16.msra.mxu0 %v10206_v35 }
 0x219   : > { %9725 = vmatprep.subr.bf16.mxu0 %v12867_v30 }
 0x253   : > { %v8960_v36 = vpop.f32.mrf.mxu1 }
 0x255   : > { %v8961_v10 = vpop.f32.mrf.mxu1 }
 0x256   : > { %v11509_v29 = vadd.f32 %v8961_v10, %v8960_v36 }
 0x257   : > { %v11511_v55 = vpop.f32.mrf.mxu1 }
 0x258   : > { %v2649_v47 = vadd.f32 %v11509_v29, %v11576_v12 }
 0x259   : > { %v11513_v53 = vpop.f32.mrf.mxu1 }
 0x25a   : > { %v8965_v4 = vadd.f32 %v11513_v53, %v11511_v55 }
 0x25b   : > { %v8966_v56 = vpop.f32.mrf.mxu1 }
 0x25d   : > { %v8967_v54 = vpop.f32.mrf.mxu1 }
 0x25e   : > { %v11515_v37 = vadd.f32 %v8967_v54, %v8966_v56 }
 0x25f   : > { %v11517_v14 = vpop.f32.mrf.mxu1 }
 0x261   : > { %v11519_v28 = vpop.f32.mrf.mxu1 }
 0x263   : > { %v8972_v7 = vpop.f32.mrf.mxu1 }
 0x265   : > { %v8973_v5 = vpop.f32.mrf.mxu1 }
 0x266   : > { %v11521_v31 = vadd.f32 %v8973_v5, %v8972_v7 }
 0x267   : > { %v11523_v59 = vpop.f32.mrf.mxu1 }
 0x269   : > { %v11525_v8 = vpop.f32.mrf.mxu1 }
 0x26b   : > { %v8978_v57 = vpop.f32.mrf.mxu1 }
 0x26d   : > { %v8979_v17 = vpop.f32.mrf.mxu1 }
 0x26e   : > { %v11527_v52 = vadd.f32 %v8979_v17, %v8978_v57 }
 0x26f   : > { %v11529_v13 = vpop.f32.mrf.mxu1 }
 0x271   : > { %v11531_v25 = vpop.f32.mrf.mxu1 }
 0x272   : > { %v9006_v18 = vpop.f32.mrf.mxu0 }
 0x273   : > { %v8984_v51 = vpop.f32.mrf.mxu1 }
 0x274   : > { %v9007_v24 = vpop.f32.mrf.mxu0 }
 0x275   : > { %v8985_v23 = vpop.f32.mrf.mxu1 }
 0x276   : > { %v9009_v63 = vpop.f32.mrf.mxu0  ;;  %v11533_v1 = vadd.f32 %v8985_v23, %v8984_v51 }
 0x277   : > { %v8987_v6 = vpop.f32.mrf.mxu1 }
 0x278   : > { %12870 = vst [vmem:[#allocation28_spill] sm:$0xff] %v11533_v1  ;;  %v9010_v21 = vpop.f32.mrf.mxu0 }
 0x279   : > { %v8988_v0 = vpop.f32.mrf.mxu1  ;;  %v9011_v1 = vadd.f32 %v9010_v21, %v9009_v63 }
 0x27a   : > { %v9012_v39 = vpop.f32.mrf.mxu0 }
 0x27c   : > { %v9013_v41 = vpop.f32.mrf.mxu0 }
 0x27e   : > { %v11535_v43 = vpop.f32.mrf.mxu0 }
 0x280   : > { %v11537_v50 = vpop.f32.mrf.mxu0 }
 0x281   : > { %v9052_v62 = vpop.f32.mrf.mxu1 }
 0x282   : > { %v11539_v19 = vpop.f32.mrf.mxu0 }
 0x283   : > { %v9053_v3 = vpop.f32.mrf.mxu1 }
 0x284   : > { %v11541_v48 = vpop.f32.mrf.mxu0  ;;  %v9054_v33 = vadd.f32 %v9053_v3, %v9052_v62  ;;  %v8971_v62 = vadd.f32 %v11519_v28, %v11517_v14 }
 0x285   : > { %v9055_v16 = vpop.f32.mrf.mxu1 }
 0x286   : > { %v11543_v34 = vpop.f32.mrf.mxu0  ;;  %v2660_v14 = vadd.f32 %v8971_v62, %v11576_v12 }
 0x287   : > { %v9056_v49 = vpop.f32.mrf.mxu1 }
 0x288   : > { %v11545_v42 = vpop.f32.mrf.mxu0 }
 0x289   : > { %v9058_v35 = vpop.f32.mrf.mxu1 }
 0x28a   : > { %v11547_v58 = vpop.f32.mrf.mxu0 }
 0x28b   : > { %v9059_v45 = vpop.f32.mrf.mxu1 }
 0x28c   : > { %v11549_v22 = vpop.f32.mrf.mxu0 }
 0x28d   : > { %v9061_v20 = vpop.f32.mrf.mxu1 }
 0x28e   : > { %v11551_v36 = vpop.f32.mrf.mxu0 }
 0x28f   : > { %12871 = vst [vmem:[#allocation29_spill] sm:$0xff] %v11551_v36  ;;  %v9062_v10 = vpop.f32.mrf.mxu1 }
 0x290   : > { %v11553_v56 = vpop.f32.mrf.mxu0  ;;  %v9063_v28 = vadd.f32 %v9062_v10, %v9061_v20  ;;  %v2665_v20 = vadd.f32 %v11521_v31, %v11576_v12  ;;  %v8977_v10 = vadd.f32 %v11525_v8, %v11523_v59 }
 0x291   : > { %12872 = vst [vmem:[#allocation30_spill] sm:$0xff] %v11553_v56  ;;  %v11555_v54 = vpop.f32.mrf.mxu1  ;;  %v10490_v56 = vld [vmem:[#allocation2 + $0x1] sm:$0xff] }
 0x292   : > { %v2974_v29 = vmul.f32 3.0, %v10490_v56 }
 0x293   : > { %v11557_v7 = vpop.f32.mrf.mxu0  ;;  %v11559_v5 = vpop.f32.mrf.mxu1 }
 0x294   : > { %12873 = vst [vmem:[#allocation31_spill] sm:$0xff] %v11557_v7 }
 0x295   : > { %v11561_v57 = vpop.f32.mrf.mxu0  ;;  %v11563_v17 = vpop.f32.mrf.mxu1 }
 0x296   : > { %12874 = vst [vmem:[#allocation32_spill] sm:$0xff] %v11561_v57 }
 0x297   : > { %v9033_v51 = vpop.f32.mrf.mxu0  ;;  %v11565_v23 = vpop.f32.mrf.mxu1 }
 0x298   : > { %v9008_v51 = vadd.f32 %v9007_v24, %v9006_v18  ;;  %v2652_v18 = vadd.f32 %v8965_v4, %v11576_v12  ;;  %v9060_v4 = vadd.f32 %v9059_v45, %v9058_v35 }
 0x299   : > { %v9034_v6 = vpop.f32.mrf.mxu0  ;;  %v11567_v0 = vpop.f32.mrf.mxu1 }
 0x29a   : > { %v2721_v2 = vadd.f32 %v9008_v51, %v2649_v47  ;;  %v2724_v36 = vadd.f32 %v9011_v1, %v2652_v18  ;;  %v10491_v1 = vld [vmem:[#allocation2 + $0x9] sm:$0xff] }
 0x29b   : > { %v11569_v26 = vpop.f32.mrf.mxu1  ;;  %v9098_v38 = vpop.f32.mrf.mxu0 }
 0x29c   : > { %12875 = vst [vmem:[#allocation33_spill] sm:$0xff] %v11569_v26  ;;  %v2793_v24 = vadd.f32 %v9054_v33, %v2721_v2  ;;  %v9014_v26 = vadd.f32 %v9013_v41, %v9012_v39  ;;  %v2975_v39 = vmul.f32 3.0, %v10491_v1 }
 0x29d   : > { %v11571_v15 = vpop.f32.mrf.mxu1  ;;  %v9099_v61 = vpop.f32.mrf.mxu0 }
 0x29e   : > { %12876 = vst [vmem:[#allocation34_spill] sm:$0xff] %v11571_v15  ;;  %v9100_v57 = vadd.f32 %v9099_v61, %v9098_v38  ;;  %v2657_v61 = vadd.f32 %v11515_v37, %v11576_v12 }
 0x29f   : > { %v11578_v11 = vpop.f32.mrf.mxu1  ;;  %v9101_v9 = vpop.f32.mrf.mxu0 }
 0x2a0   : > { %12877 = vst [vmem:[#allocation35_spill] sm:$0xff] %v11578_v11  ;;  %v2865_v53 = vadd.f32 %v9100_v57, %v2793_v24 }
 0x2a1   : > { %v11580_v32 = vpop.f32.mrf.mxu1  ;;  %v9102_v6 = vpop.f32.mrf.mxu0 }
 0x2a2   : > { %12878 = vst [vmem:[#allocation36_spill] sm:$0xff] %v11580_v32  ;;  %v9057_v32 = vadd.f32 %v9056_v49, %v9055_v16  ;;  %v9103_v55 = vadd.f32 %v9102_v6, %v9101_v9  ;;  %v2729_v9 = vadd.f32 %v9014_v26, %v2657_v61 }
 0x2a3   : > { %v11586_v46 = vpop.f32.mrf.mxu1  ;;  %v9104_v30 = vpop.f32.mrf.mxu0 }
 0x2a4   : > { %v2796_v38 = vadd.f32 %v9057_v32, %v2724_v36  ;;  %v2801_v37 = vadd.f32 %v9060_v4, %v2729_v9  ;;  %v2668_v4 = vadd.f32 %v8977_v10, %v11576_v12 }
 0x2a5   : > { %v9079_v7 = vpop.f32.mrf.mxu1  ;;  %v9105_v40 = vpop.f32.mrf.mxu0 }
 0x2a6   : > { %v9106_v41 = vadd.f32 %v9105_v40, %v9104_v30  ;;  %v2868_v16 = vadd.f32 %v9103_v55, %v2796_v38  ;;  %v10492_v7 = vld [vmem:[#allocation2 + $0x11] sm:$0xff] }
 0x2a7   : > { %v9080_v11 = vpop.f32.mrf.mxu1  ;;  %v9107_v15 = vpop.f32.mrf.mxu0  ;;  %v2976_v26 = vmul.f32 3.0, %v10492_v7  ;;  %v12880_v7 = vld [vmem:[#allocation29_spill] sm:$0xff] }
 0x2a8   : > { %v9017_v11 = vadd.f32 %v11537_v50, %v11535_v43  ;;  %v9020_v43 = vadd.f32 %v11541_v48, %v11539_v19  ;;  %v2873_v51 = vadd.f32 %v9106_v41, %v2801_v37  ;;  %v9066_v19 = vadd.f32 %v11559_v5, %v11555_v54  ;;  %v10494_v41 = vld [vmem:[#allocation2 + $0x21] sm:$0xff] }
 0x2a9   : > { %v9108_v47 = vpop.f32.mrf.mxu0  ;;  %v2936_v63 = vpop.f32.mrf.mxu1  ;;  %v9069_v54 = vadd.f32 %v11565_v23, %v11563_v17 }
 0x2aa   : > { %v2937_v2 = vadd.f32 %v2936_v63, %v2865_v53  ;;  %v2732_v45 = vadd.f32 %v9017_v11, %v2660_v14  ;;  %v9109_v40 = vadd.f32 %v9108_v47, %v9107_v15  ;;  %v2737_v55 = vadd.f32 %v9020_v43, %v2665_v20  ;;  %v10493_v47 = vld [vmem:[#allocation2 + $0x19] sm:$0xff] }
 0x2ab   : > { %v9110_v33 = vpop.f32.mrf.mxu0  ;;  %v9707_v21 = vpop.f32.mrf.mxu1  ;;  %v9023_v53 = vadd.f32 %v11545_v42, %v11543_v34  ;;  %v2977_v59 = vmul.f32 3.0, %v10493_v47 }
 0x2ac   : > { %v2983_v3 = vadd.f32 %v2974_v29, %v2937_v2  ;;  %v2804_v6 = vadd.f32 %v9063_v28, %v2732_v45  ;;  %v2809_v21 = vadd.f32 %v9066_v19, %v2737_v55  ;;  %v10496_v55 = vld [vmem:[#allocation2 + $0x31] sm:$0xff] }
 0x2ad   : > { %v9111_v49 = vpop.f32.mrf.mxu0  ;;  %v2939_v56 = vpop.f32.mrf.mxu1  ;;  %v2740_v1 = vadd.f32 %v9023_v53, %v2668_v4  ;;  %v2980_v53 = vmul.f32 3.0, %v10496_v55  ;;  %v12886_v4 = vld [vmem:[#allocation32_spill] sm:$0xff] }
 0x2ae   : > { %vm2992_vm7 = vcmp.gt.f32.partialorder %v2983_v3, 0.0  ;;  %v3001_v32 = vmul.f32 0.01, %v2983_v3  ;;  %v2940_v35 = vadd.f32 %v2939_v56, %v2868_v16  ;;  %v9112_v8 = vadd.f32 %v9111_v49, %v9110_v33 }
 0x2af   : > { %v9113_v50 = vpop.f32.mrf.mxu0  ;;  %v9708_v36 = vpop.f32.mrf.mxu1  ;;  %v2876_v38 = vadd.f32 %v9109_v40, %v2804_v6  ;;  %v9026_v33 = vadd.f32 %v11549_v22, %v11547_v58  ;;  %v2673_v49 = vadd.f32 %v11527_v52, %v11576_v12  ;;  %v8983_v56 = vadd.f32 %v11531_v25, %v11529_v13  ;;  %v10495_v25 = vld [vmem:[#allocation2 + $0x29] sm:$0xff] }
 0x2b0   : > { %v3010_v30 = vsel %vm2992_vm7, %v2983_v3, %v3001_v32  ;;  %v2984_v57 = vadd.f32 %v2975_v39, %v2940_v35  ;;  %v2978_v3 = vmul.f32 3.0, %v10494_v41  ;;  %v2881_v28 = vadd.f32 %v9112_v8, %v2809_v21  ;;  %v12879_v35 = vld [vmem:[#allocation33_spill] sm:$0xff] }
 0x2b1   : > { %v3019_v18 = vmul.f32 %v3010_v30, %v11042_v27  ;;  %v9114_v24 = vpop.f32.mrf.mxu0  ;;  %v2944_v29 = vpop.f32.mrf.mxu1  ;;  %v2812_v37 = vadd.f32 %v9069_v54, %v2740_v1  ;;  %v9072_v45 = vadd.f32 %v12879_v35, %v11567_v0  ;;  %v2745_v36 = vadd.f32 %v9026_v33, %v2673_v49  ;;  %v12883_v0 = vld [vmem:[#allocation35_spill] sm:$0xff]  ;;  %v10213_v49 = vld [vmem:[#allocation7 + $0x2f0] ss:$12 sps:$4 sm:$0xff]  }
 0x2b2   : > { %vm2993_vm8 = vcmp.gt.f32.partialorder %v2984_v57, 0.0  ;;  %v3002_v48 = vmul.f32 0.01, %v2984_v57  ;;  %v2945_v15 = vadd.f32 %v2944_v29, %v2873_v51  ;;  %v9115_v17 = vadd.f32 %v9114_v24, %v9113_v50  ;;  %v12884_v29 = vld [vmem:[#allocation17_spill] sm:$0xff] }
 0x2b3   : > { %3028 = vst [vmem:[#allocation2 + $0x1] sm:$0xff] %v3019_v18  ;;  %v9116_v31 = vpop.f32.mrf.mxu0  ;;  %v9711_v62 = vpop.f32.mrf.mxu1  ;;  %v2979_v30 = vmul.f32 3.0, %v10495_v25  ;;  %v2676_v6 = vadd.f32 %v8983_v56, %v11576_v12  ;;  %v2817_v47 = vadd.f32 %v9072_v45, %v2745_v36  ;;  %v12889_v56 = vld [vmem:[#allocation36_spill] sm:$0xff]  ;;  %v10214_v36 = vld [vmem:[#allocation7 + $0x398] ss:$12 sps:$4 sm:$0xff]  }
 0x2b4   : > { %v3011_v63 = vsel %vm2993_vm8, %v2984_v57, %v3002_v48  ;;  %v2985_v61 = vadd.f32 %v2976_v26, %v2945_v15  ;;  %v12881_v26 = vld [vmem:[#allocation30_spill] sm:$0xff]  ;;  %v2884_v10 = vadd.f32 %v9115_v17, %v2812_v37  ;;  %v10216_v62 = vld [vmem:[#allocation7 + $0x470] ss:$12 sps:$4 sm:$0xff]   ;;  %v9078_v37 = vadd.f32 %v11586_v46, %v12889_v56 }
 0x2b5   : > { %v3020_v5 = vmul.f32 %v3011_v63, %v11055_v44  ;;  %v9117_v2 = vpop.f32.mrf.mxu0  ;;  %v2947_v11 = vpop.f32.mrf.mxu1  ;;  %v9029_v52 = vadd.f32 %v12881_v26, %v12880_v7  ;;  %v12888_v17 = vld [vmem:[#allocation18_spill] sm:$0xff]  ;;  %v10497_v45 = vld [vmem:[#allocation2 + $0x39] sm:$0xff]  ;;  %v12890_v7 = vmov 0.0  }
 0x2b6   : > { %vm2994_vm9 = vcmp.gt.f32.partialorder %v2985_v61, 0.0  ;;  %v3003_v34 = vmul.f32 0.01, %v2985_v61  ;;  %v2948_v42 = vadd.f32 %v2947_v11, %v2876_v38  ;;  %v9118_v57 = vadd.f32 %v9117_v2, %v9116_v31  ;;  %v12885_v38 = vld [vmem:[#allocation31_spill] sm:$0xff]  ;;  %v10218_v26 = vld [vmem:[#allocation7 + $0x458] ss:$12 sps:$4 sm:$0xff]  }
 0x2b7   : > { %3029 = vst [vmem:[#allocation2 + $0x9] sm:$0xff] %v3020_v5  ;;  %v9119_v39 = vpop.f32.mrf.mxu0  ;;  %v9712_v9 = vpop.f32.mrf.mxu1  ;;  %v11613_v16 = vpack.c.bf16 %v3020_v5, %v3019_v18  ;;  %v12882_v18 = vld [vmem:[#allocation34_spill] sm:$0xff]  ;;  %v9032_v54 = vadd.f32 %v12886_v4, %v12885_v38 }
 0x2b8   : > { %v3012_v23 = vsel %vm2994_vm9, %v2985_v61, %v3003_v34  ;;  %v2986_v14 = vadd.f32 %v2977_v59, %v2948_v42  ;;  %v9075_v24 = vadd.f32 %v12883_v0, %v12882_v18  ;;  %v2748_v61 = vadd.f32 %v9029_v52, %v2676_v6  ;;  %v12887_v9 = vld [vmem:[#allocation28_spill] sm:$0xff]  ;;  %v10219_v4 = vld [vmem:[#allocation7 + $0x2c0] ss:$12 sps:$4 sm:$0xff]  }
 0x2b9   : > { %v3021_v58 = vmul.f32 %v3012_v23, %v11067_v60  ;;  %v9120_v22 = vpop.f32.mrf.mxu0  ;;  %v2952_v32 = vpop.f32.mrf.mxu1  ;;  %3610 = vmatprep.mubr.bf16.mxu0 %v11613_v16  ;;  %v2889_v33 = vadd.f32 %v9118_v57, %v2817_v47  ;;  %v2681_v41 = vadd.f32 %v12887_v9, %v11576_v12  ;;  %v10223_v9 = vld [vmem:[#allocation7 + $0x428] ss:$12 sps:$4 sm:$0xff]  }
 0x2ba   : > { %vm2995_vm10 = vcmp.gt.f32.partialorder %v2986_v14, 0.0  ;;  %v3004_v43 = vmul.f32 0.01, %v2986_v14  ;;  %v2953_v50 = vadd.f32 %v2952_v32, %v2881_v28  ;;  %v3046_v31 = vld [vmem:[#allocation2] sm:$0xff]  ;;  %v9121_v34 = vadd.f32 %v9120_v22, %v9119_v39 }
 0x2bb   : > { %3030 = vst [vmem:[#allocation2 + $0x11] sm:$0xff] %v3021_v58  ;;  %v9122_v40 = vpop.f32.mrf.mxu0  ;;  %v9715_v13 = vpop.f32.mrf.mxu1  ;;  %v2753_v12 = vadd.f32 %v9032_v54, %v2681_v41 }
 0x2bc   : > { %v3013_v51 = vsel %vm2995_vm10, %v2986_v14, %v3004_v43  ;;  %v2987_v20 = vadd.f32 %v2978_v3, %v2953_v50  ;;  %v2820_v3 = vadd.f32 %v9075_v24, %v2748_v61  ;;  %v2981_v43 = vmul.f32 3.0, %v10497_v45 }
 0x2bd   : > { %v3022_v19 = vmul.f32 %v3013_v51, %v12884_v29  ;;  %v9123_v48 = vpop.f32.mrf.mxu0  ;;  %v2955_v15 = vpop.f32.mrf.mxu1 }
 0x2be   : > { %vm2996_vm1 = vcmp.gt.f32.partialorder %v2987_v20, 0.0  ;;  %v3005_v59 = vmul.f32 0.01, %v2987_v20  ;;  %v2956_v8 = vadd.f32 %v2955_v15, %v2884_v10  ;;  %v3047_v63 = vld [vmem:[#allocation2 + $0x8] sm:$0xff]  ;;  %v9124_v46 = vadd.f32 %v9123_v48, %v9122_v40 }
 0x2bf   : > { %3031 = vst [vmem:[#allocation2 + $0x19] sm:$0xff] %v3022_v19  ;;  %v9125_v5 = vpop.f32.mrf.mxu0  ;;  %v9716_v2 = vpop.f32.mrf.mxu1  ;;  %v11631_v11 = vpack.c.bf16 %v3047_v63, %v3046_v31  ;;  %v11633_v21 = vpack.c.bf16 %v3022_v19, %v3021_v58  ;;  %v3055_v22 = vld [vmem:[#allocation2 + $0x2] sm:$0xff]  ;;  %v2892_v25 = vadd.f32 %v9121_v34, %v2820_v3  ;;  %v2825_v10 = vadd.f32 %v9078_v37, %v2753_v12  ;;  %v12893_v63 = vld [vmem:[#allocation20_spill] sm:$0xff] }
 0x2c0   : > { %v3014_v42 = vsel %vm2996_vm1, %v2987_v20, %v3005_v59  ;;  %v2988_v1 = vadd.f32 %v2979_v30, %v2956_v8  ;;  %v12891_v30 = vld [vmem:[#allocation19_spill] sm:$0xff]  ;;  %v10215_v20 = vld [vmem:[#allocation7 + $0x2d8] ss:$12 sps:$4 sm:$0xff]   ;;  %v12892_v19 = vmov 0   ;;  %v10224_v12 = vld [vmem:[#allocation7 + $0x350] ss:$12 sps:$4 sm:$0xff]  }
 0x2c1   : > { %v3023_v23 = vmul.f32 %v3014_v42, %v12888_v17  ;;  %v9126_v14 = vpop.f32.mrf.mxu0  ;;  %v2960_v28 = vpop.f32.mrf.mxu1  ;;  %3611 = vmatmul.mubr.bf16.vlgmr.msra.gmra.mxu0 %v11631_v11  ;;  %v10217_v15 = vld [vmem:[#allocation7 + $0x380] ss:$12 sps:$4 sm:$0xff]   ;;  %v2897_v59 = vadd.f32 %v9124_v46, %v2825_v10  ;;  %v10228_v10 = vld [vmem:[#allocation7 + $0x278] ss:$12 sps:$4 sm:$0xff]  }
 0x2c2   : > { %vm2997_vm4 = vcmp.gt.f32.partialorder %v2988_v1, 0.0  ;;  %v3006_v58 = vmul.f32 0.01, %v2988_v1  ;;  %v2961_v39 = vadd.f32 %v2960_v28, %v2889_v33  ;;  %v3056_v32 = vld [vmem:[#allocation2 + $0xa] sm:$0xff]  ;;  %3620 = vmatprep.mubr.bf16.mxu0 %v11633_v21  ;;  %9726 = vmatpush3.bf16.msra.mxu0 %v10216_v62  ;;  %v10498_v8 = vld [vmem:[#allocation2 + $0x41] sm:$0xff] }
 0x2c3   : > { %3032 = vst [vmem:[#allocation2 + $0x21] sm:$0xff] %v3023_v23  ;;  %v9719_v35 = vpop.f32.mrf.mxu1  ;;  %v11642_v50 = vpack.c.bf16 %v3056_v32, %v3055_v22  ;;  %9727 = vmatprep.subr.bf16.mxu0 %v12890_v7  ;;  %v3048_v0 = vld [vmem:[#allocation2 + $0x10] sm:$0xff]  ;;  %v2982_v31 = vmul.f32 3.0, %v10498_v8 }
 0x2c4   : > { %v3015_v52 = vsel %vm2997_vm4, %v2988_v1, %v3006_v58  ;;  %v2989_v13 = vadd.f32 %v2980_v53, %v2961_v39  ;;  %v10220_v53 = vld [vmem:[#allocation7 + $0x440] ss:$12 sps:$4 sm:$0xff]   ;;  %v10221_v33 = vld [vmem:[#allocation7 + $0x368] ss:$12 sps:$4 sm:$0xff]   ;;  %v10226_v35 = vld [vmem:[#allocation7 + $0x410] ss:$12 sps:$4 sm:$0xff]  }
 0x2c5   : > { %v3024_v57 = vmul.f32 %v3015_v52, %v12891_v30  ;;  %v2963_v51 = vpop.f32.mrf.mxu1  ;;  %3692 = vmatmul.mubr.bf16.vlgmr.msra.gmra.mxu1 %v11642_v50  ;;  %v10225_v52 = vld [vmem:[#allocation7 + $0x290] ss:$12 sps:$4 sm:$0xff]  }
 0x2c6   : > { %vm2998_vm13 = vcmp.gt.f32.partialorder %v2989_v13, 0.0  ;;  %v3007_v6 = vmul.f32 0.01, %v2989_v13  ;;  %v2964_v18 = vadd.f32 %v2963_v51, %v2892_v25  ;;  %9142 = vmatpush3.bf16.msra.mxu1 %v10213_v49  ;;  %v3049_v24 = vld [vmem:[#allocation2 + $0x18] sm:$0xff]  ;;  %3701 = vmatprep.mubr.bf16.mxu1 %v12892_v19  ;;  %v10227_v25 = vld [vmem:[#allocation7 + $0x338] ss:$12 sps:$4 sm:$0xff]  }
 0x2c7   : > { %3033 = vst [vmem:[#allocation2 + $0x29] sm:$0xff] %v3024_v57  ;;  %v9720_v40 = vpop.f32.mrf.mxu1  ;;  %v11649_v48 = vpack.c.bf16 %v3049_v24, %v3048_v0  ;;  %9143 = vmatprep.subr.bf16.mxu1 %v10214_v36  ;;  %9728 = vmatpush3.bf16.msra.mxu0 %v10218_v26  ;;  %v11651_v55 = vpack.c.bf16 %v3024_v57, %v3023_v23  ;;  %v3057_v2 = vld [vmem:[#allocation2 + $0x12] sm:$0xff]  ;;  %v12894_v23 = vld [vmem:[#allocation22_spill] sm:$0xff] }
 0x2c8   : > { %v3016_v62 = vsel %vm2998_vm13, %v2989_v13, %v3007_v6  ;;  %v2990_v47 = vadd.f32 %v2981_v43, %v2964_v18  ;;  %9729 = vmatprep.subr.bf16.mxu0 %v12890_v7  ;;  %v10222_v49 = vld [vmem:[#allocation7 + $0x2a8] ss:$12 sps:$4 sm:$0xff]   ;;  %v10229_v57 = vld [vmem:[#allocation7 + $0x3f8] ss:$12 sps:$4 sm:$0xff]   ;;  %v10230_v18 = vld [vmem:[#allocation7 + $0x320] ss:$12 sps:$4 sm:$0xff]  }
 0x2c9   : > { %v3025_v61 = vmul.f32 %v3016_v62, %v12893_v63  ;;  %v2968_v38 = vpop.f32.mrf.mxu1  ;;  %3621 = vmatmul.mubr.bf16.gmra.mxu0 %v11649_v48  ;;  %v12895_v43 = vld [vmem:[#allocation24_spill] sm:$0xff]  ;;  %v10231_v0 = vld [vmem:[#allocation7 + $0x3e0] ss:$12 sps:$4 sm:$0xff]  }
 0x2ca   : > { %vm2999_vm2 = vcmp.gt.f32.partialorder %v2990_v47, 0.0  ;;  %v3008_v54 = vmul.f32 0.01, %v2990_v47  ;;  %v2969_v5 = vadd.f32 %v2968_v38, %v2897_v59  ;;  %9144 = vmatpush3.bf16.msra.mxu1 %v10215_v20  ;;  %v3058_v34 = vld [vmem:[#allocation2 + $0x1a] sm:$0xff]  ;;  %3630 = vmatprep.mubr.bf16.mxu0 %v11651_v55 }
 0x2cb   : > { %3034 = vst [vmem:[#allocation2 + $0x31] sm:$0xff] %v3025_v61  ;;  %v9723_v42 = vpop.f32.mrf.mxu1  ;;  %v11657_v1 = vpack.c.bf16 %v3058_v34, %v3057_v2  ;;  %9145 = vmatprep.subr.bf16.mxu1 %v10217_v15  ;;  %9730 = vmatpush3.bf16.msra.mxu0 %v10220_v53  ;;  %v3050_v37 = vld [vmem:[#allocation2 + $0x20] sm:$0xff]  ;;  %v10232_v53 = vld [vmem:[#allocation7 + $0x260] ss:$12 sps:$4 sm:$0xff]   ;;  %v10234_v59 = vld [vmem:[#allocation7 + $0x308] ss:$12 sps:$4 sm:$0xff]  }
 0x2cc   : > { %v3017_v41 = vsel %vm2999_vm2, %v2990_v47, %v3008_v54  ;;  %v2991_v3 = vadd.f32 %v2982_v31, %v2969_v5  ;;  %9731 = vmatprep.subr.bf16.mxu0 %v12890_v7  ;;  %v10233_v47 = vld [vmem:[#allocation7 + $0x3c8] ss:$12 sps:$4 sm:$0xff]   ;;  %v10242_v54 = vld [vmem:[#allocation9 + $0x2a0] sm:$0xff]   ;;  %v10244_v2 = vld [vmem:[#allocation9 + $0x298] sm:$0xff]  }
 0x2cd   : > { %v3026_v14 = vmul.f32 %v3017_v41, %v12894_v23  ;;  %v2971_v28 = vpop.f32.mrf.mxu1  ;;  %3702 = vmatmul.mubr.bf16.gmra.mxu1 %v11657_v1  ;;  %v10235_v31 = vld [vmem:[#allocation7 + $0x248] ss:$12 sps:$4 sm:$0xff]   ;;  %v10243_v5 = vld [vmem:[#allocation9 + $0x260] sm:$0xff]   ;;  %v10245_v34 = vld [vmem:[#allocation9 + $0x258] sm:$0xff]  }
 0x2ce   : > { %vm3000_vm7 = vcmp.gt.f32.partialorder %v2991_v3, 0.0  ;;  %v3009_v56 = vmul.f32 0.01, %v2991_v3  ;;  %9146 = vmatpush3.bf16.msra.mxu1 %v10219_v4  ;;  %v3051_v58 = vld [vmem:[#allocation2 + $0x28] sm:$0xff]  ;;  %3711 = vmatprep.mubr.bf16.mxu1 %v12892_v19  ;;  %v10246_v42 = vld [vmem:[#allocation9 + $0x290] sm:$0xff]   ;;  %v10253_v28 = vld [vmem:[#allocation9 + $0x2f8] sm:$0xff]  }
 0x2cf   : > { %3035 = vst [vmem:[#allocation2 + $0x39] sm:$0xff] %v3026_v14  ;;  %v9724_v39 = vpop.f32.mrf.mxu1  ;;  %v11663_v22 = vpack.c.bf16 %v3051_v58, %v3050_v37  ;;  %9147 = vmatprep.subr.bf16.mxu1 %v10221_v33  ;;  %9732 = vmatpush3.bf16.msra.mxu0 %v10223_v9  ;;  %v11665_v32 = vpack.c.bf16 %v3026_v14, %v3025_v61  ;;  %v3059_v26 = vld [vmem:[#allocation2 + $0x22] sm:$0xff]  ;;  %v10248_v33 = vld [vmem:[#allocation9 + $0x288] sm:$0xff]  }
 0x2d0   : > { %v3018_v45 = vsel %vm3000_vm7, %v2991_v3, %v3009_v56  ;;  %9733 = vmatprep.subr.bf16.mxu0 %v12890_v7  ;;  %v10249_v9 = vld [vmem:[#allocation9 + $0x248] sm:$0xff]   ;;  %v10250_v41 = vld [vmem:[#allocation9 + $0x280] sm:$0xff]   ;;  %v10252_v14 = vld [vmem:[#allocation9 + $0x338] sm:$0xff]  }
 0x2d1   : > { %v3027_v36 = vmul.f32 %v3018_v45, %v12895_v43  ;;  %3631 = vmatmul.mubr.bf16.gmra.mxu0 %v11663_v22  ;;  %v10251_v3 = vld [vmem:[#allocation9 + $0x240] sm:$0xff]   ;;  %v10255_v56 = vld [vmem:[#allocation9 + $0x2f0] sm:$0xff]   ;;  %v10256_v37 = vld [vmem:[#allocation9 + $0x3b8] sm:$0xff]  }
 0x2d2   : > { %v3060_v46 = vld [vmem:[#allocation2 + $0x2a] sm:$0xff]  ;;  %9148 = vmatpush3.bf16.msra.mxu1 %v10222_v49  ;;  %3640 = vmatprep.mubr.bf16.mxu0 %v11665_v32  ;;  %v10254_v49 = vld [vmem:[#allocation9 + $0x330] sm:$0xff]  }
 0x2d3   : > { %3036 = vst [vmem:[#allocation2 + $0x41] sm:$0xff] %v3027_v36  ;;  %v3072_v13 = vpack.c.bf16 %v3060_v46, %v3059_v26  ;;  %9149 = vmatprep.subr.bf16.mxu1 %v10224_v12  ;;  %9734 = vmatpush3.bf16.msra.mxu0 %v10226_v35  ;;  %v3052_v51 = vld [vmem:[#allocation2 + $0x30] sm:$0xff]  ;;  %v3077_v24 = vpack.c.bf16 %v3027_v36, %v3027_v36  ;;  %v10264_v12 = vld [vmem:[#allocation9 + $0x318] sm:$0xff]   ;;  %v10268_v45 = vld [vmem:[#allocation9 + $0x310] sm:$0xff]  }
 0x2d4   : > { %9735 = vmatprep.subr.bf16.mxu0 %v12890_v7  ;;  %v10258_v58 = vld [vmem:[#allocation9 + $0x328] sm:$0xff]   ;;  %v10266_v35 = vld [vmem:[#allocation9 + $0x2d8] sm:$0xff]   ;;  %v10269_v36 = vld [vmem:[#allocation9 + $0x2d0] sm:$0xff]  }
 0x2d5   : > { %3712 = vmatmul.mubr.bf16.gmra.mxu1 %v3072_v13  ;;  %v10259_v39 = vld [vmem:[#allocation9 + $0x2e8] sm:$0xff]  }
 0x2d6   : > { %v3053_v20 = vld [vmem:[#allocation2 + $0x38] sm:$0xff]  ;;  %9150 = vmatpush3.bf16.msra.mxu1 %v10225_v52  ;;  %3721 = vmatprep.mubr.bf16.mxu1 %v12892_v19  ;;  %v10272_v26 = vld [vmem:[#allocation9 + $0x308] sm:$0xff]   ;;  %v10276_v52 = vld [vmem:[#allocation9 + $0x300] sm:$0xff]  }
 0x2d7   : > { %v3073_v6 = vpack.c.bf16 %v3053_v20, %v3052_v51  ;;  %9151 = vmatprep.subr.bf16.mxu1 %v10227_v25  ;;  %9736 = vmatpush3.bf16.msra.mxu0 %v10229_v57  ;;  %v3061_v40 = vld [vmem:[#allocation2 + $0x32] sm:$0xff]  ;;  %v10284_v25 = vld [vmem:[#allocation9 + $0x438] sm:$0xff]   ;;  %v12896_v51 = vld [vmem:[#allocation14_spill] sm:$0xff] }
 0x2d8   : > { %9737 = vmatprep.subr.bf16.mxu0 %v12890_v7  ;;  %v10273_v46 = vld [vmem:[#allocation9 + $0x2c8] sm:$0xff]   ;;  %v11698_v57 = vld [vmem:[%s12768_s5 + $0x3] sm:$0x7] }
 0x2d9   : > { %3641 = vmatmul.mubr.bf16.gmra.mxu0 %v3073_v6  ;;  %v11702_v20 = vrot.slane %v11698_v57, %v12896_v51 }
 0x2da   : > { %3650 = vmatprep.mubr.bf16.mxu0 %v3077_v24  ;;  %v3062_v15 = vld [vmem:[#allocation2 + $0x3a] sm:$0xff]  ;;  %9152 = vmatpush3.bf16.msra.mxu1 %v10228_v10  ;;  %v3063_v38 = vld [vmem:[#allocation2 + $0x42] sm:$0xff] }
 0x2db   : > { %v3075_v62 = vpack.c.bf16 %v3062_v15, %v3061_v40  ;;  %9153 = vmatprep.subr.bf16.mxu1 %v10230_v18  ;;  %9738 = vmatpush3.bf16.msra.mxu0 %v10231_v0  ;;  %v3054_v8 = vld [vmem:[#allocation2 + $0x40] sm:$0xff]  ;;  %v3078_v4 = vpack.c.bf16 %v3063_v38, %v3063_v38 }
 0x2dc   : > { %9739 = vmatprep.subr.bf16.mxu0 %v12890_v7  ;;  %v3076_v61 = vpack.c.bf16 %v3054_v8, %v3054_v8 }
 0x2dd   : > { %3722 = vmatmul.mubr.bf16.gmra.mxu1 %v3075_v62 }
 0x2de   : > { %3731 = vmatprep.mubr.bf16.mxu1 %v12892_v19  ;;  %9154 = vmatpush3.bf16.msra.mxu1 %v10232_v53 }
 0x2df   : > { %9740 = vmatpush3.bf16.msra.mxu0 %v10233_v47  ;;  %9155 = vmatprep.subr.bf16.mxu1 %v10234_v59 }
 0x2e0   : > { %9246 = vmatprep.subr.bf16.mxu0 %v10252_v14 }
 0x2e1   : > { %3651 = vmatmul.mubr.bf16.gmra.mxu0 %v3076_v61 }
 0x2e2   : > { %9156 = vmatpush3.bf16.msra.mxu1 %v10235_v31  ;;  %9741 = vmatprep.mubr.msk.bf16.mxu0 %vm10678_vm0, %v12890_v7 }
 0x2e5   : > { %3732 = vmatmul.mubr.bf16.gmra.mxu1 %v3078_v4 }
 0x2e6   : > { %3772 = vmatprep.mubr.bf16.mxu1 %v11613_v16  ;;  %v10236_v16 = vld [vmem:[#allocation9 + $0x2b8] sm:$0xff]  }
 0x2e7   : > { %9200 = vmatprep.subr.bf16.mxu1 %v10236_v16 }
 0x2e9   : > { %9742 = vmatmul.mubr.bf16.vlgmr.msra.gmra.mxu0 %v11642_v50  ;;  %v10239_v50 = vld [vmem:[#allocation9 + $0x270] sm:$0xff]  }
 0x2ea   : > { %9745 = vmatprep.mubr.msk.bf16.mxu0 %vm10678_vm0, %v12890_v7  ;;  %9247 = vmatpush3.bf16.msra.mxu0 %v10253_v28 }
 0x2eb   : > { %9248 = vmatprep.subr.bf16.mxu0 %v10254_v49 }
 0x2ed   : > { %3773 = vmatmul.mubr.bf16.vlgmr.msra.gmra.mxu1 %v11631_v11  ;;  %v10237_v11 = vld [vmem:[#allocation9 + $0x278] sm:$0xff]  }
 0x2ee   : > { %3780 = vmatprep.mubr.bf16.mxu1 %v11633_v21  ;;  %9201 = vmatpush3.bf16.msra.mxu1 %v10237_v11  ;;  %v10238_v21 = vld [vmem:[#allocation9 + $0x2b0] sm:$0xff]  }
 0x2ef   : > { %9202 = vmatprep.subr.bf16.mxu1 %v10238_v21  ;;  %9249 = vmatpush3.bf16.msra.mxu0 %v10255_v56 }
 0x2f0   : > { %9250 = vmatprep.subr.bf16.mxu0 %v10258_v58 }
 0x2f1   : > { %9746 = vmatmul.mubr.bf16.gmra.mxu0 %v11657_v1  ;;  %v10247_v1 = vld [vmem:[#allocation9 + $0x250] sm:$0xff]  }
 0x2f2   : > { %9749 = vmatprep.mubr.msk.bf16.mxu0 %vm10678_vm0, %v12890_v7  ;;  %9203 = vmatpush3.bf16.msra.mxu1 %v10239_v50 }
 0x2f3   : > { %9251 = vmatpush3.bf16.msra.mxu0 %v10259_v39 }
 0x2f5   : > { %3781 = vmatmul.mubr.bf16.gmra.mxu1 %v11649_v48  ;;  %v10240_v48 = vld [vmem:[#allocation9 + $0x2a8] sm:$0xff]  }
 0x2f6   : > { %3788 = vmatprep.mubr.bf16.mxu1 %v11651_v55  ;;  %v10241_v55 = vld [vmem:[#allocation9 + $0x268] sm:$0xff]   ;;  %9204 = vmatprep.subr.bf16.mxu1 %v10240_v48 }
 0x2f7   : > { %9205 = vmatpush3.bf16.msra.mxu1 %v10241_v55 }
 0x2f8   : > { %9206 = vmatprep.subr.bf16.mxu1 %v10242_v54 }
 0x2f9   : > { %9750 = vmatmul.mubr.bf16.gmra.mxu0 %v3072_v13  ;;  %v10277_v13 = vld [vmem:[#allocation9 + $0x2c0] sm:$0xff]  }
 0x2fa   : > { %9753 = vmatprep.mubr.msk.bf16.mxu0 %vm10678_vm0, %v12890_v7 }
 0x2fb   : > { %9207 = vmatpush3.bf16.msra.mxu1 %v10243_v5 }
 0x2fc   : > { %9208 = vmatprep.subr.bf16.mxu1 %v10244_v2 }
 0x2fd   : > { %3789 = vmatmul.mubr.bf16.gmra.mxu1 %v11663_v22  ;;  %v10261_v22 = vld [vmem:[#allocation9 + $0x320] sm:$0xff]  }
 0x2fe   : > { %3796 = vmatprep.mubr.bf16.mxu1 %v11665_v32  ;;  %9252 = vmatprep.subr.bf16.mxu0 %v10261_v22  ;;  %v10263_v32 = vld [vmem:[#allocation9 + $0x2e0] sm:$0xff]  }
 0x2ff   : > { %9209 = vmatpush3.bf16.msra.mxu1 %v10245_v34  ;;  %9253 = vmatpush3.bf16.msra.mxu0 %v10263_v32 }
 0x300   : > { %9210 = vmatprep.subr.bf16.mxu1 %v10246_v42  ;;  %9254 = vmatprep.subr.bf16.mxu0 %v10264_v12 }
 0x301   : > { %9754 = vmatmul.mubr.bf16.gmra.mxu0 %v3075_v62 }
 0x302   : > { %9757 = vmatprep.mubr.msk.bf16.mxu0 %vm10678_vm0, %v12890_v7 }
 0x303   : > { %9211 = vmatpush3.bf16.msra.mxu1 %v10247_v1  ;;  %9255 = vmatpush3.bf16.msra.mxu0 %v10266_v35 }
 0x304   : > { %9212 = vmatprep.subr.bf16.mxu1 %v10248_v33  ;;  %9256 = vmatprep.subr.bf16.mxu0 %v10268_v45 }
 0x305   : > { %3797 = vmatmul.mubr.bf16.gmra.mxu1 %v3073_v6  ;;  %v12897_v6 = vld [vmem:[#allocation15_spill] sm:$0xff] }
 0x306   : > { %3804 = vmatprep.mubr.bf16.mxu1 %v3077_v24  ;;  %v11706_v18 = vrot.slane %v11698_v57, %v12897_v6 }
 0x307   : > { %9213 = vmatpush3.bf16.msra.mxu1 %v10249_v9  ;;  %9257 = vmatpush3.bf16.msra.mxu0 %v10269_v36 }
 0x308   : > { %9214 = vmatprep.subr.bf16.mxu1 %v10250_v41  ;;  %9258 = vmatprep.subr.bf16.mxu0 %v10272_v26 }
 0x309   : > { %9758 = vmatmul.mubr.bf16.gmra.mxu0 %v3078_v4 }
 0x30b   : > { %9215 = vmatpush3.bf16.msra.mxu1 %v10251_v3  ;;  %9259 = vmatpush3.bf16.msra.mxu0 %v10273_v46 }
 0x30c   : > { %9292 = vmatprep.subr.bf16.mxu1 %v10256_v37  ;;  %9260 = vmatprep.subr.bf16.mxu0 %v10276_v52 }
 0x30d   : > { %3805 = vmatmul.mubr.bf16.gmra.mxu1 %v3076_v61 }
 0x30f   : > { %9261 = vmatpush3.bf16.msra.mxu0 %v10277_v13 }
 0x310   : > { %9338 = vmatprep.subr.bf16.mxu0 %v10284_v25 }
 0x381   : > { %v3612_v10 = vpop.f32.mrf.mxu0 }
 0x382   : > { %v3613_v24 = vadd.f32 %v3612_v10, %v11702_v20 }
 0x383   : > { %v3614_v0 = vpop.f32.mrf.mxu0 }
 0x384   : > { %v3615_v53 = vadd.f32 %v3614_v0, %v11706_v18 }
 0x385   : > { %v3693_v40 = vpop.f32.mrf.mxu1  ;;  %v3616_v15 = vpop.f32.mrf.mxu0 }
 0x386   : > { %v3694_v62 = vadd.f32 %v3693_v40, %v3613_v24  ;;  %v3617_v31 = vadd.f32 %v3616_v15, %v11702_v20 }
 0x387   : > { %v3695_v47 = vpop.f32.mrf.mxu1  ;;  %v3618_v59 = vpop.f32.mrf.mxu0 }
 0x388   : > { %vm3884_vm8 = vcmp.gt.f32.partialorder %v3694_v62, 0.0  ;;  %v3911_v8 = vmul.f32 0.01, %v3694_v62  ;;  %v3696_v61 = vadd.f32 %v3695_v47, %v3615_v53  ;;  %v3619_v38 = vadd.f32 %v3618_v59, %v11706_v18 }
 0x389   : > { %v3697_v4 = vpop.f32.mrf.mxu1  ;;  %v3622_v16 = vpop.f32.mrf.mxu0 }
 0x38a   : > { %v3938_v11 = vsel %vm3884_vm8, %v3694_v62, %v3911_v8  ;;  %vm3885_vm9 = vcmp.gt.f32.partialorder %v3696_v61, 0.0  ;;  %v3912_v21 = vmul.f32 0.01, %v3696_v61  ;;  %v3698_v50 = vadd.f32 %v3697_v4, %v3617_v31 }
 0x38b   : > { %v3623_v48 = vadd.f32 %v3622_v16, %v11702_v20  ;;  %v3699_v55 = vpop.f32.mrf.mxu1  ;;  %v3624_v54 = vpop.f32.mrf.mxu0  ;;  %v3965_v42 = vmul.f32 %v3938_v11, %v11042_v27  ;;  %v4247_v16 = vld [vmem:[#allocation3] sm:$0xff] }
 0x38c   : > { %v3939_v5 = vsel %vm3885_vm9, %v3696_v61, %v3912_v21  ;;  %vm3887_vm10 = vcmp.gt.f32.partialorder %v3698_v50, 0.0  ;;  %v3914_v2 = vmul.f32 0.01, %v3698_v50  ;;  %v3700_v34 = vadd.f32 %v3699_v55, %v3619_v38 }
 0x38d   : > { %v3966_v1 = vmul.f32 %v3939_v5, %v11042_v27  ;;  %v3625_v33 = vadd.f32 %v3624_v54, %v11706_v18  ;;  %v3703_v9 = vpop.f32.mrf.mxu1  ;;  %v3626_v41 = vpop.f32.mrf.mxu0 }
 0x38e   : > { %v3941_v3 = vsel %vm3887_vm10, %v3698_v50, %v3914_v2  ;;  %vm3888_vm1 = vcmp.gt.f32.partialorder %v3700_v34, 0.0  ;;  %v3915_v14 = vmul.f32 0.01, %v3700_v34  ;;  %v3704_v28 = vadd.f32 %v3703_v9, %v3623_v48  ;;  %v12133_v48 = vld [vmem:[%s12770_s7 + $0x1] ss:$0 sm:$0xff] }
 0x38f   : > { %v8847_v49 = vpack.c.bf16 %v3966_v1, %v3965_v42  ;;  %v3627_v56 = vadd.f32 %v3626_v41, %v11702_v20  ;;  %v3705_v37 = vpop.f32.mrf.mxu1  ;;  %v3628_v58 = vpop.f32.mrf.mxu0  ;;  %v3968_v35 = vmul.f32 %v3941_v3, %v11055_v44 }
 0x390   : > { %v3942_v39 = vsel %vm3888_vm1, %v3700_v34, %v3915_v14  ;;  %vm3890_vm4 = vcmp.gt.f32.partialorder %v3704_v28, 0.0  ;;  %v3917_v22 = vmul.f32 0.01, %v3704_v28  ;;  %v3706_v32 = vadd.f32 %v3705_v37, %v3625_v33 }
 0x391   : > { %v4068_v12 = vshrl.u32 %v8847_v49, 16  ;;  %v3969_v45 = vmul.f32 %v3942_v39, %v11055_v44  ;;  %v3629_v36 = vadd.f32 %v3628_v58, %v11706_v18  ;;  %v3707_v26 = vpop.f32.mrf.mxu1  ;;  %v3632_v46 = vpop.f32.mrf.mxu0  ;;  %v4071_v0 = vshll.u32 %v8847_v49, 16 }
 0x392   : > { %v3944_v52 = vsel %vm3890_vm4, %v3704_v28, %v3917_v22  ;;  %vm3891_vm13 = vcmp.gt.f32.partialorder %v3706_v32, 0.0  ;;  %v3918_v13 = vmul.f32 0.01, %v3706_v32  ;;  %v3708_v25 = vadd.f32 %v3707_v26, %v3627_v56 }
 0x393   : > { %v11720_v10 = vrot.slane %v4068_v12, 7  ;;  %v8849_v24 = vpack.c.bf16 %v3969_v45, %v3968_v35  ;;  %v3709_v40 = vpop.f32.mrf.mxu1  ;;  %v3634_v15 = vpop.f32.mrf.mxu0  ;;  %v3971_v31 = vmul.f32 %v3944_v52, %v11067_v60  ;;  %v3633_v61 = vadd.f32 %v3632_v46, %v11702_v20 }
 0x394   : > { %v3945_v53 = vsel %vm3891_vm13, %v3706_v32, %v3918_v13  ;;  %vm3893_vm2 = vcmp.gt.f32.partialorder %v3708_v25, 0.0  ;;  %v3920_v62 = vmul.f32 0.01, %v3708_v25  ;;  %v3710_v47 = vadd.f32 %v3709_v40, %v3629_v36 }
 0x395   : > { %v4073_v59 = vor.u32 %v4071_v0, %v11720_v10  ;;  %v4083_v8 = vshrl.u32 %v8849_v24, 16  ;;  %v3713_v38 = vpop.f32.mrf.mxu1  ;;  %v3636_v4 = vpop.f32.mrf.mxu0  ;;  %v3972_v11 = vmul.f32 %v3945_v53, %v11067_v60  ;;  %v3635_v54 = vadd.f32 %v3634_v15, %v11706_v18 }
 0x396   : > { %v3947_v21 = vsel %vm3893_vm2, %v3708_v25, %v3920_v62  ;;  %vm3894_vm7 = vcmp.gt.f32.partialorder %v3710_v47, 0.0  ;;  %v3921_v50 = vmul.f32 0.01, %v3710_v47  ;;  %v3714_v33 = vadd.f32 %v3713_v38, %v3633_v61  ;;  %v12899_v61 = vld [vmem:[#allocation16_spill] sm:$0xff] }
 0x397   : > { %v11728_v55 = vsel %vm11207_vm14, %v4073_v59, %v4247_v16  ;;  %v3715_v5 = vpop.f32.mrf.mxu1  ;;  %v3638_v2 = vpop.f32.mrf.mxu0  ;;  %v11732_v34 = vrot.slane %v4083_v8, 7  ;;  %v8851_v42 = vpack.c.bf16 %v3972_v11, %v3971_v31  ;;  %v4086_v9 = vshll.u32 %v8849_v24, 16 }
 0x398   : > { %4249 = vst [vmem:[#allocation3] sm:$0xff] %v11728_v55  ;;  %v3948_v1 = vsel %vm3894_vm7, %v3710_v47, %v3921_v50  ;;  %v3974_v41 = vmul.f32 %v3947_v21, %v12884_v29  ;;  %v3716_v14 = vadd.f32 %v3715_v5, %v3635_v54  ;;  %vm3896_vm8 = vcmp.gt.f32.partialorder %v3714_v33, 0.0 }
 0x399   : > { %v3975_v3 = vmul.f32 %v3948_v1, %v12884_v29  ;;  %v3717_v28 = vpop.f32.mrf.mxu1  ;;  %v3642_v49 = vpop.f32.mrf.mxu0  ;;  %v4101_v56 = vshrl.u32 %v8851_v42, 16  ;;  %v3923_v37 = vmul.f32 0.01, %v3714_v33  ;;  %v3637_v58 = vadd.f32 %v3636_v4, %v11702_v20 }
 0x39a   : > { %vm3897_vm9 = vcmp.gt.f32.partialorder %v3716_v14, 0.0  ;;  %v3924_v22 = vmul.f32 0.01, %v3716_v14  ;;  %v4088_v35 = vor.u32 %v4086_v9, %v11732_v34  ;;  %v4081_v46 = vrot.slane %v11720_v10, 4 }
 0x39b   : > { %v8853_v39 = vpack.c.bf16 %v3975_v3, %v3974_v41  ;;  %v3719_v32 = vpop.f32.mrf.mxu1  ;;  %v3644_v12 = vpop.f32.mrf.mxu0  ;;  %v11738_v45 = vrot.slane %v4101_v56, 7  ;;  %v3950_v36 = vsel %vm3896_vm8, %v3714_v33, %v3923_v37  ;;  %v3718_v26 = vadd.f32 %v3717_v28, %v3637_v58 }
 0x39c   : > { %v4104_v52 = vshll.u32 %v8851_v42, 16  ;;  %v3951_v13 = vsel %vm3897_vm9, %v3716_v14, %v3924_v22  ;;  %v3639_v25 = vadd.f32 %v3638_v2, %v11706_v18  ;;  %v3977_v15 = vmul.f32 %v3950_v36, %v12888_v17 }
 0x39d   : > { %v3723_v0 = vpop.f32.mrf.mxu1  ;;  %v3646_v24 = vpop.f32.mrf.mxu0  ;;  %v4119_v40 = vshrl.u32 %v8853_v39, 16  ;;  %v3978_v53 = vmul.f32 %v3951_v13, %v12888_v17  ;;  %vm3899_vm10 = vcmp.gt.f32.partialorder %v3718_v26, 0.0  ;;  %v4099_v62 = vrot.slane %v11732_v34, 4 }
 0x39e   : > { %v3926_v47 = vmul.f32 0.01, %v3718_v26  ;;  %v3720_v59 = vadd.f32 %v3719_v32, %v3639_v25  ;;  %v11747_v10 = vrot.slane %v11698_v57, %v12899_v61  ;;  %v11751_v4 = vsel %vm11184_vm12, %v4081_v46, %v4088_v35 }
 0x39f   : > { %v3725_v8 = vpop.f32.mrf.mxu1  ;;  %v3648_v31 = vpop.f32.mrf.mxu0  ;;  %v11754_v16 = vor.u32 %v4104_v52, %v11738_v45  ;;  %v4122_v11 = vshll.u32 %v8853_v39, 16  ;;  %v8855_v21 = vpack.c.bf16 %v3978_v53, %v3977_v15  ;;  %v3643_v54 = vadd.f32 %v3642_v49, %v11702_v20 }
 0x3a0   : > { %v3953_v50 = vsel %vm3899_vm10, %v3718_v26, %v3926_v47  ;;  %vm3900_vm1 = vcmp.gt.f32.partialorder %v3720_v59, 0.0  ;;  %v3645_v5 = vadd.f32 %v3644_v12, %v11706_v18  ;;  %v11758_v1 = vrot.slane %v4119_v40, 7 }
 0x3a1   : > { %v3727_v2 = vpop.f32.mrf.mxu1  ;;  %v3652_v42 = vpop.f32.mrf.mxu0  ;;  %v4137_v57 = vshrl.u32 %v8855_v21, 16  ;;  %v3927_v33 = vmul.f32 0.01, %v3720_v59  ;;  %v3647_v9 = vadd.f32 %v3646_v24, %v11702_v20  ;;  %v4117_v41 = vrot.slane %v11738_v45, 4 }
 0x3a2   : > { %v3980_v3 = vmul.f32 %v3953_v50, %v12891_v30  ;;  %v3724_v14 = vadd.f32 %v3723_v0, %v3643_v54  ;;  %v3726_v28 = vadd.f32 %v3725_v8, %v3645_v5  ;;  %v3649_v39 = vadd.f32 %v3648_v31, %v11706_v18 }
 0x3a3   : > { %v3729_v56 = vpop.f32.mrf.mxu1  ;;  %v3654_v37 = vpop.f32.mrf.mxu0  ;;  %v11763_v49 = vrot.slane %v4137_v57, 7  ;;  %v3954_v58 = vsel %vm3900_vm1, %v3720_v59, %v3927_v33  ;;  %v3728_v22 = vadd.f32 %v3727_v2, %v3647_v9  ;;  %v4124_v45 = vor.u32 %v4122_v11, %v11758_v1 }
 0x3a4   : > { %v3981_v32 = vmul.f32 %v3954_v58, %v12891_v30  ;;  %vm3902_vm4 = vcmp.gt.f32.partialorder %v3724_v14, 0.0  ;;  %v3929_v12 = vmul.f32 0.01, %v3724_v14  ;;  %vm3903_vm13 = vcmp.gt.f32.partialorder %v3726_v28, 0.0  ;;  %v10260_v58 = vld [vmem:[#allocation9 + $0x3b0] sm:$0xff]  }
 0x3a5   : > { %v3733_v35 = vpop.f32.mrf.mxu1  ;;  %v3656_v36 = vpop.f32.mrf.mxu0  ;;  %v4140_v26 = vshll.u32 %v8855_v21, 16  ;;  %v3930_v46 = vmul.f32 0.01, %v3726_v28  ;;  %vm3905_vm2 = vcmp.gt.f32.partialorder %v3728_v22, 0.0  ;;  %v3932_v25 = vmul.f32 0.01, %v3728_v22 }
 0x3a6   : > { %v8857_v52 = vpack.c.bf16 %v3981_v32, %v3980_v3  ;;  %v3956_v13 = vsel %vm3902_vm4, %v3724_v14, %v3929_v12  ;;  %v3730_v0 = vadd.f32 %v3729_v56, %v3649_v39  ;;  %v3653_v59 = vadd.f32 %v3652_v42, %v11702_v20  ;;  %v10257_v14 = vld [vmem:[#allocation9 + $0x378] sm:$0xff]  }
 0x3a7   : > { %v3735_v24 = vpop.f32.mrf.mxu1  ;;  %v3657_v40 = vpop.f32.mrf.mxu0  ;;  %v4142_v15 = vor.u32 %v4140_v26, %v11763_v49  ;;  %v3983_v53 = vmul.f32 %v3956_v13, %v12893_v63  ;;  %v3957_v47 = vsel %vm3903_vm13, %v3726_v28, %v3930_v46  ;;  %v3655_v21 = vadd.f32 %v3654_v37, %v11706_v18 }
 0x3a8   : > { %v4155_v8 = vshrl.u32 %v8857_v52, 16  ;;  %v4158_v31 = vshll.u32 %v8857_v52, 16  ;;  %v3984_v11 = vmul.f32 %v3957_v47, %v12893_v63  ;;  %v3959_v5 = vsel %vm3905_vm2, %v3728_v22, %v3932_v25  ;;  %v10262_v52 = vld [vmem:[#allocation9 + $0x370] sm:$0xff]  }
 0x3a9   : > { %v3737_v50 = vpop.f32.mrf.mxu1  ;;  %v11773_v54 = vpop.f32.mrf.mxu0  ;;  %vm3906_vm7 = vcmp.gt.f32.partialorder %v3730_v0, 0.0  ;;  %v3933_v2 = vmul.f32 0.01, %v3730_v0  ;;  %v3734_v57 = vadd.f32 %v3733_v35, %v3653_v59  ;;  %v11780_v20 = vcombine.low %v11728_v55, %v11751_v4 }
 0x3aa   : > { %v11776_v33 = vrot.slane %v4155_v8, 7  ;;  %v8859_v9 = vpack.c.bf16 %v3984_v11, %v3983_v53  ;;  %v11784_v42 = vcombine.high %v11728_v55, %v11751_v4  ;;  %v3736_v37 = vadd.f32 %v3735_v24, %v3655_v21  ;;  %v10265_v24 = vld [vmem:[#allocation9 + $0x3a8] sm:$0xff]  }
 0x3ab   : > { %v3738_v18 = vpop.f32.mrf.mxu1  ;;  %v9743_v3 = vpop.f32.mrf.mxu0  ;;  %v3960_v28 = vsel %vm3906_vm7, %v3730_v0, %v3933_v2  ;;  %vm3908_vm8 = vcmp.gt.f32.partialorder %v3734_v57, 0.0  ;;  %v3935_v56 = vmul.f32 0.01, %v3734_v57  ;;  %v4107_v39 = vsel %vm11184_vm12, %v4099_v62, %v11754_v16 }
 0x3ac   : > { %v4125_v22 = vsel %vm11184_vm12, %v4117_v41, %v4124_v45  ;;  %v4135_v55 = vrot.slane %v11758_v1, 4  ;;  %v4173_v32 = vshrl.u32 %v8859_v9, 16  ;;  %5179 = vmatprep.mubr.bf16.mxu1 %v11784_v42  ;;  %v4153_v36 = vrot.slane %v11763_v49, 4  ;;  %v10267_v3 = vld [vmem:[#allocation9 + $0x368] sm:$0xff]  }
 0x3ad   : > { %v9157_v12 = vpop.f32.mrf.mxu1  ;;  %v11795_v35 = vpop.f32.mrf.mxu0  ;;  %v4160_v26 = vor.u32 %v4158_v31, %v11776_v33  ;;  %v3986_v34 = vmul.f32 %v3959_v5, %v12894_v23  ;;  %v3987_v46 = vmul.f32 %v3960_v28, %v12894_v23  ;;  %5180 = vmatmul.mubr.bf16.vlgmr.msra.gmra.mxu1 %v11780_v20  ;;  %v4176_v16 = vshll.u32 %v8859_v9, 16 }
 0x3ae   : > { %v4175_v62 = vrot.slane %v4173_v32, 7  ;;  %v3962_v1 = vsel %vm3908_vm8, %v3734_v57, %v3935_v56  ;;  %vm3909_vm9 = vcmp.gt.f32.partialorder %v3736_v37, 0.0  ;;  %9293 = vmatpush3.bf16.msra.mxu1 %v10257_v14  ;;  %v4143_v49 = vsel %vm11184_vm12, %v4135_v55, %v4142_v15 }
 0x3af   : > { %v9158_v41 = vpop.f32.mrf.mxu1  ;;  %v9744_v45 = vpop.f32.mrf.mxu0  ;;  %v8861_v13 = vpack.c.bf16 %v3987_v46, %v3986_v34  ;;  %v3936_v25 = vmul.f32 0.01, %v3736_v37  ;;  %v11805_v0 = vcombine.high %v4107_v39, %v4125_v22  ;;  %9294 = vmatprep.subr.bf16.mxu1 %v10260_v58  ;;  %v4171_v40 = vrot.slane %v11776_v33, 4 }
 0x3b0   : > { %v4178_v53 = vor.u32 %v4176_v16, %v4175_v62  ;;  %v9159_v47 = vadd.f32 %v9158_v41, %v9157_v12  ;;  %v11808_v59 = vcombine.low %v4107_v39, %v4125_v22  ;;  %v4161_v11 = vsel %vm11184_vm12, %v4153_v36, %v4160_v26 }
 0x3b1   : > { %v9160_v8 = vpop.f32.mrf.mxu1  ;;  %v11810_v31 = vpop.f32.mrf.mxu0  ;;  %v4191_v21 = vshrl.u32 %v8861_v13, 16  ;;  %v3989_v15 = vmul.f32 %v3962_v1, %v12895_v43  ;;  %v3963_v50 = vsel %vm3909_vm9, %v3736_v37, %v3936_v25  ;;  %5187 = vmatprep.mubr.bf16.mxu1 %v11805_v0  ;;  %v4189_v5 = vrot.slane %v4175_v62, 4  ;;  %v10270_v37 = vld [vmem:[#allocation9 + $0x3a0] sm:$0xff]  }
 0x3b2   : > { %v4194_v2 = vshll.u32 %v8861_v13, 16  ;;  %v3990_v57 = vmul.f32 %v3963_v50, %v12895_v43  ;;  %v3775_v33 = vadd.f32 %v9159_v47, %v11747_v10  ;;  %9295 = vmatpush3.bf16.msra.mxu1 %v10262_v52  ;;  %v4383_v56 = vshll.u32 %v11780_v20, 16  ;;  %v10271_v52 = vld [vmem:[#allocation9 + $0x360] sm:$0xff]  }
 0x3b3   : > { %v9161_v9 = vpop.f32.mrf.mxu1  ;;  %v9747_v18 = vpop.f32.mrf.mxu0  ;;  %v11819_v14 = vrot.slane %v4191_v21, 7  ;;  %v4388_v58 = vshll.u32 %v11808_v59, 16  ;;  %9296 = vmatprep.subr.bf16.mxu1 %v10265_v24  ;;  %v11825_v39 = vsel %vm11184_vm12, %v4171_v40, %v4178_v53  ;;  %v11830_v36 = vcombine.high %v4143_v49, %v4161_v11 }
 0x3b4   : > { %v9162_v28 = vadd.f32 %v9161_v9, %v9160_v8  ;;  %v8863_v22 = vpack.c.bf16 %v3990_v57, %v3989_v15  ;;  %v3847_v55 = vadd.f32 %v11773_v54, %v3775_v33  ;;  %v4381_v46 = vshrl.u32 %v11780_v20, 16  ;;  %v10274_v20 = vld [vmem:[#allocation9 + $0x398] sm:$0xff]  }
 0x3b5   : > { %v9163_v32 = vpop.f32.mrf.mxu1  ;;  %v11828_v12 = vpop.f32.mrf.mxu0  ;;  %v4196_v26 = vor.u32 %v4194_v2, %v11819_v14  ;;  %5188 = vmatmul.mubr.bf16.gmra.mxu1 %v11808_v59  ;;  %v4385_v62 = vrot.slane %v4383_v56, 1  ;;  %v11837_v41 = vcombine.low %v4143_v49, %v4161_v11  ;;  %v11842_v40 = vrot.slane %v4388_v58, 1  ;;  %v4269_v56 = vld [vmem:[#allocation3 + $0x6c] sm:$0x11] }
 0x3b6   : > { %v3778_v34 = vadd.f32 %v9162_v28, %v11747_v10  ;;  %v4209_v16 = vshrl.u32 %v8863_v22, 16  ;;  %vm3886_vm10 = vcmp.gt.f32.partialorder %v3847_v55, 0.0  ;;  %v3913_v1 = vmul.f32 0.01, %v3847_v55  ;;  %5195 = vmatprep.mubr.bf16.mxu1 %v11830_v36  ;;  %9297 = vmatpush3.bf16.msra.mxu1 %v10267_v3  ;;  %v10275_v3 = vld [vmem:[#allocation9 + $0x358] sm:$0xff]  }
 0x3b7   : > { %v9164_v54 = vpop.f32.mrf.mxu1  ;;  %v9748_v45 = vpop.f32.mrf.mxu0  ;;  %v4197_v13 = vsel %vm11184_vm12, %v4189_v5, %v4196_v26  ;;  %v4386_v24 = vor.u32 %v4385_v62, %v4381_v46  ;;  %9298 = vmatprep.subr.bf16.mxu1 %v10270_v37  ;;  %v4212_v47 = vshll.u32 %v8863_v22, 16  ;;  %v4395_v28 = vshll.u32 %v11784_v42, 16 }
 0x3b8   : > { %v3850_v25 = vadd.f32 %v11795_v35, %v3778_v34  ;;  %v4211_v53 = vrot.slane %v4209_v16, 7  ;;  %v3940_v8 = vsel %vm3886_vm10, %v3847_v55, %v3913_v1  ;;  %v9165_v21 = vadd.f32 %v9164_v54, %v9163_v32  ;;  %v10278_v55 = vld [vmem:[#allocation9 + $0x390] sm:$0xff]  }
 0x3b9   : > { %v9166_v49 = vpop.f32.mrf.mxu1  ;;  %v11845_v11 = vpop.f32.mrf.mxu0  ;;  %v3967_v15 = vmul.f32 %v3940_v8, %v11042_v27  ;;  %v4391_v35 = vsel %vm1847_vm3, %v4386_v24, %v11842_v40  ;;  %v11852_v18 = vcombine.high %v11825_v39, %v4197_v13  ;;  %v4207_v32 = vrot.slane %v11819_v14, 4 }
 0x3ba   : > { %vm3889_vm1 = vcmp.gt.f32.partialorder %v3850_v25, 0.0  ;;  %v3916_v50 = vmul.f32 0.01, %v3850_v25  ;;  %v4214_v5 = vor.u32 %v4212_v47, %v4211_v53  ;;  %v4225_v2 = vrot.slane %v4211_v53, 4  ;;  %5251 = vmatprep.mubr.bf16.mxu0 %v4391_v35  ;;  %9299 = vmatpush3.bf16.msra.mxu1 %v10271_v52  ;;  %v10280_v53 = vld [vmem:[#allocation9 + $0x350] sm:$0xff]  }
 0x3bb   : > { %v3783_v57 = vadd.f32 %v9165_v21, %v11747_v10  ;;  %v9167_v33 = vpop.f32.mrf.mxu1  ;;  %v9751_v9 = vpop.f32.mrf.mxu0  ;;  %v8848_v58 = vpack.c.bf16 %v3967_v15, %v3967_v15  ;;  %9300 = vmatprep.subr.bf16.mxu1 %v10274_v20  ;;  %v4393_v54 = vshrl.u32 %v11784_v42, 16  ;;  %v10281_v15 = vld [vmem:[#allocation9 + $0x388] sm:$0xff]  }
 0x3bc   : > { %v3943_v37 = vsel %vm3889_vm1, %v3850_v25, %v3916_v50  ;;  %v9168_v22 = vadd.f32 %v9167_v33, %v9166_v49  ;;  %v4270_v34 = vsel %vm11286_vm6, %v4225_v2, %v4269_v56  ;;  %v11867_v14 = vsel %vm11184_vm12, %v4207_v32, %v4214_v5 }
 0x3bd   : > { %v3970_v46 = vmul.f32 %v3943_v37, %v11055_v44  ;;  %v3855_v62 = vadd.f32 %v11810_v31, %v3783_v57  ;;  %v9169_v16 = vpop.f32.mrf.mxu1  ;;  %v11860_v1 = vpop.f32.mrf.mxu0  ;;  %4271 = vst [vmem:[#allocation3 + $0x6c] sm:$0x11] %v4270_v34  ;;  %v4075_v45 = vshrl.u32 %v8848_v58, 16  ;;  %5196 = vmatmul.mubr.bf16.gmra.mxu1 %v11837_v41  ;;  %v4078_v8 = vshll.u32 %v8848_v58, 16 }
 0x3be   : > { %v3786_v52 = vadd.f32 %v9168_v22, %v11747_v10  ;;  %5203 = vmatprep.mubr.bf16.mxu1 %v11852_v18  ;;  %9301 = vmatpush3.bf16.msra.mxu1 %v10275_v3  ;;  %v11871_v50 = vrot.slane %v4395_v28, 1  ;;  %v11874_v2 = vcombine.low %v11825_v39, %v4197_v13  ;;  %v4250_v3 = vld [vmem:[#allocation3 + $0x8] sm:$0xf]  ;;  %v10282_v39 = vld [vmem:[#allocation9 + $0x348] sm:$0xff]  }
 0x3bf   : > { %v8850_v25 = vpack.c.bf16 %v3970_v46, %v3970_v46  ;;  %vm3892_vm4 = vcmp.gt.f32.partialorder %v3855_v62, 0.0  ;;  %v3919_v24 = vmul.f32 0.01, %v3855_v62  ;;  %v9170_v31 = vpop.f32.mrf.mxu1  ;;  %v9752_v20 = vpop.f32.mrf.mxu0  ;;  %v4077_v47 = vrot.slane %v4075_v45, 7  ;;  %9302 = vmatprep.subr.bf16.mxu1 %v10278_v55  ;;  %v10285_v45 = vld [vmem:[#allocation9 + $0x380] sm:$0xff]  }
 0x3c0   : > { %v3858_v21 = vadd.f32 %v11828_v12, %v3786_v52  ;;  %v9171_v49 = vadd.f32 %v9170_v31, %v9169_v16  ;;  %v8547_v12 = vcombine.high %v11867_v14, %v11867_v14  ;;  %v4420_v16 = vshll.u32 %v11837_v41, 16 }
 0x3c1   : > { %v4092_v35 = vshrl.u32 %v8850_v25, 16  ;;  %v3946_v5 = vsel %vm3892_vm4, %v3855_v62, %v3919_v24  ;;  %v9172_v57 = vpop.f32.mrf.mxu1  ;;  %v11876_v33 = vpop.f32.mrf.mxu0  ;;  %v4080_v9 = vor.u32 %v4078_v8, %v4077_v47  ;;  %v4095_v37 = vshll.u32 %v8850_v25, 16 }
 0x3c2   : > { %v3973_v56 = vmul.f32 %v3946_v5, %v11067_v60  ;;  %vm3895_vm13 = vcmp.gt.f32.partialorder %v3858_v21, 0.0  ;;  %v3922_v28 = vmul.f32 0.01, %v3858_v21  ;;  %v3791_v22 = vadd.f32 %v9171_v49, %v11747_v10  ;;  %9303 = vmatpush3.bf16.msra.mxu1 %v10280_v53 }
 0x3c3   : > { %v4094_v58 = vrot.slane %v4092_v35, 7  ;;  %v9173_v55 = vpop.f32.mrf.mxu1  ;;  %v9755_v32 = vpop.f32.mrf.mxu0  ;;  %v4251_v34 = vsel %vm11167_vm11, %v4080_v9, %v4250_v3  ;;  %9304 = vmatprep.subr.bf16.mxu1 %v10281_v15  ;;  %v4090_v52 = vrot.slane %v4077_v47, 4  ;;  %v4416_v15 = vshrl.u32 %v11808_v59, 16  ;;  %v10287_v9 = vld [vmem:[#allocation9 + $0x340] sm:$0xff]  }
 0x3c4   : > { %v8852_v46 = vpack.c.bf16 %v3973_v56, %v3973_v56  ;;  %v9174_v62 = vadd.f32 %v9173_v55, %v9172_v57  ;;  %4252 = vst [vmem:[#allocation3 + $0x8] sm:$0xf] %v4251_v34  ;;  %v3949_v25 = vsel %vm3895_vm13, %v3858_v21, %v3922_v28  ;;  %v3863_v31 = vadd.f32 %v11845_v11, %v3791_v22 }
 0x3c5   : > { %v4097_v24 = vor.u32 %v4095_v37, %v4094_v58  ;;  %v9175_v20 = vpop.f32.mrf.mxu1  ;;  %v11887_v8 = vpop.f32.mrf.mxu0  ;;  %v3976_v49 = vmul.f32 %v3949_v25, %v12884_v29  ;;  %5204 = vmatmul.mubr.bf16.gmra.mxu1 %v11874_v2  ;;  %v8546_v55 = vcombine.low %v11867_v14, %v11867_v14 }
 0x3c6   : > { %v4110_v53 = vshrl.u32 %v8852_v46, 16  ;;  %v3794_v35 = vadd.f32 %v9174_v62, %v11747_v10  ;;  %v4113_v5 = vshll.u32 %v8852_v46, 16  ;;  %vm3898_vm2 = vcmp.gt.f32.partialorder %v3863_v31, 0.0  ;;  %5211 = vmatprep.mubr.bf16.mxu1 %v8547_v12  ;;  %9305 = vmatpush3.bf16.msra.mxu1 %v10282_v39 }
 0x3c7   : > { %v4098_v47 = vsel %vm11184_vm12, %v4090_v52, %v4097_v24  ;;  %v3925_v21 = vmul.f32 0.01, %v3863_v31  ;;  %v9176_v11 = vpop.f32.mrf.mxu1  ;;  %v9756_v57 = vpop.f32.mrf.mxu0  ;;  %v8854_v56 = vpack.c.bf16 %v3976_v49, %v3976_v49  ;;  %9306 = vmatprep.subr.bf16.mxu1 %v10285_v45  ;;  %v4418_v12 = vor.u32 %v4416_v15, %v11842_v40 }
 0x3c8   : > { %4254 = vst [vmem:[#allocation3 + $0x14] sm:$0xf] %v4098_v47  ;;  %v4112_v3 = vrot.slane %v4110_v53, 7  ;;  %v3866_v37 = vadd.f32 %v11860_v1, %v3794_v35  ;;  %v9177_v28 = vadd.f32 %v9176_v11, %v9175_v20  ;;  %v4422_v46 = vrot.slane %v4420_v16, 1 }
 0x3c9   : > { %v3952_v22 = vsel %vm3898_vm2, %v3863_v31, %v3925_v21  ;;  %v9178_v32 = vpop.f32.mrf.mxu1  ;;  %v11898_v34 = vpop.f32.mrf.mxu0  ;;  %v4108_v62 = vrot.slane %v4094_v58, 4  ;;  %v4128_v52 = vshrl.u32 %v8854_v56, 16  ;;  %v4440_v24 = vshrl.u32 %v11837_v41, 16 }
 0x3ca   : > { %v4115_v39 = vor.u32 %v4113_v5, %v4112_v3  ;;  %v3979_v25 = vmul.f32 %v3952_v22, %v12888_v17  ;;  %vm3901_vm7 = vcmp.gt.f32.partialorder %v3866_v37, 0.0  ;;  %v3928_v1 = vmul.f32 0.01, %v3866_v37  ;;  %9307 = vmatpush3.bf16.msra.mxu1 %v10287_v9 }
 0x3cb   : > { %v3799_v45 = vadd.f32 %v9177_v28, %v11747_v10  ;;  %v9179_v31 = vpop.f32.mrf.mxu1  ;;  %v9759_v20 = vpop.f32.mrf.mxu0  ;;  %v4130_v49 = vrot.slane %v4128_v52, 7  ;;  %v4131_v40 = vshll.u32 %v8854_v56, 16  ;;  %9761 = vmatprep.subr.bf16.mxu1 %v12890_v7  ;;  %v4423_v21 = vsel %vm1847_vm3, %v4418_v12, %v4422_v46  ;;  %v4276_v52 = vld [vmem:[#allocation3 + $0x8] sm:$0xf] }
 0x3cc   : > { %v4116_v53 = vsel %vm11184_vm12, %v4108_v62, %v4115_v39  ;;  %v9180_v16 = vadd.f32 %v9179_v31, %v9178_v32  ;;  %v8856_v58 = vpack.c.bf16 %v3979_v25, %v3979_v25  ;;  %v3955_v35 = vsel %vm3901_vm7, %v3866_v37, %v3928_v1 }
 0x3cd   : > { %4256 = vst [vmem:[#allocation3 + $0x20] sm:$0xf] %v4116_v53  ;;  %v3871_v15 = vadd.f32 %v11876_v33, %v3799_v45  ;;  %v9181_v47 = vpop.f32.mrf.mxu1  ;;  %v3881_v5 = vpop.f32.mrf.mxu0  ;;  %v4126_v11 = vrot.slane %v4112_v3, 4  ;;  %v4133_v57 = vor.u32 %v4131_v40, %v4130_v49  ;;  %v3982_v9 = vmul.f32 %v3955_v35, %v12891_v30  ;;  %5212 = vmatmul.mubr.bf16.gmra.mxu1 %v8546_v55  ;;  %v10286_v55 = vld [vmem:[#allocation9 + $0x3f8] sm:$0xff]  }
 0x3ce   : > { %v3802_v28 = vadd.f32 %v9180_v16, %v11747_v10  ;;  %v4146_v56 = vshrl.u32 %v8856_v58, 16  ;;  %v11911_v39 = vor.u32 %v4440_v24, %v4422_v46  ;;  %v4149_v45 = vshll.u32 %v8856_v58, 16  ;;  %v10288_v46 = vld [vmem:[#allocation9 + $0x430] sm:$0xff]  }
 0x3cf   : > { %vm3904_vm8 = vcmp.gt.f32.partialorder %v3871_v15, 0.0  ;;  %v3931_v22 = vmul.f32 0.01, %v3871_v15  ;;  %v9182_v32 = vpop.f32.mrf.mxu1  ;;  %v9760_v62 = vpop.f32.mrf.mxu0  ;;  %v4134_v33 = vsel %vm11184_vm12, %v4126_v11, %v4133_v57  ;;  %v8858_v37 = vpack.c.bf16 %v3982_v9, %v3982_v9  ;;  %v11916_v25 = vld [vmem:[#allocation3 + $0x14] sm:$0xf] }
 0x3d0   : > { %v3874_v12 = vadd.f32 %v11887_v8, %v3802_v28  ;;  %v9183_v3 = vadd.f32 %v9182_v32, %v9181_v47  ;;  %4258 = vst [vmem:[#allocation3 + $0x2c] sm:$0xf] %v4134_v33  ;;  %v4148_v1 = vrot.slane %v4146_v56, 7  ;;  %v8536_v53 = vcombine.low %v4276_v52, %v11916_v25  ;;  %v10289_v28 = vld [vmem:[#allocation9 + $0x3f0] sm:$0xff]  }
 0x3d1   : > { %v3958_v31 = vsel %vm3904_vm8, %v3871_v15, %v3931_v22  ;;  %v9184_v20 = vpop.f32.mrf.mxu1  ;;  %v4164_v24 = vshrl.u32 %v8858_v37, 16  ;;  %v4444_v16 = vshll.u32 %v11874_v2, 16  ;;  %v4144_v8 = vrot.slane %v4130_v49, 4  ;;  %v11927_v62 = vld [vmem:[#allocation3 + $0x6c] sm:$0x11] }
 0x3d2   : > { %v3985_v40 = vmul.f32 %v3958_v31, %v12893_v63  ;;  %vm3907_vm9 = vcmp.gt.f32.partialorder %v3874_v12, 0.0  ;;  %v4151_v35 = vor.u32 %v4149_v45, %v4148_v1  ;;  %v3934_v47 = vmul.f32 0.01, %v3874_v12  ;;  %5252 = vmatmul.mubr.bf16.vlgmr.msra.gmra.mxu0 %v8536_v53  ;;  %v10293_v31 = vld [vmem:[#allocation9 + $0x3e8] sm:$0xff]  }
 0x3d3   : > { %v3807_v5 = vadd.f32 %v9183_v3, %v11747_v10  ;;  %v9185_v11 = vpop.f32.mrf.mxu1  ;;  %v4166_v57 = vrot.slane %v4164_v24, 7  ;;  %v4167_v58 = vshll.u32 %v8858_v37, 16  ;;  %5259 = vmatprep.mubr.bf16.mxu0 %v4423_v21  ;;  %9339 = vmatpush3.bf16.msra.mxu0 %v10286_v55  ;;  %v4407_v9 = vshll.u32 %v8536_v53, 16  ;;  %v10292_v10 = vld [vmem:[#allocation9 + $0x428] sm:$0xff]  }
 0x3d4   : > { %v8860_v15 = vpack.c.bf16 %v3985_v40, %v3985_v40  ;;  %v4152_v56 = vsel %vm11184_vm12, %v4144_v8, %v4151_v35  ;;  %v3961_v22 = vsel %vm3907_vm9, %v3874_v12, %v3934_v47  ;;  %9340 = vmatprep.subr.bf16.mxu0 %v10288_v46  ;;  %v4400_v32 = vshll.u32 %v11805_v0, 16  ;;  %v10294_v35 = vld [vmem:[#allocation9 + $0x420] sm:$0xff]  }
 0x3d5   : > { %v3879_v49 = vadd.f32 %v11898_v34, %v3807_v5  ;;  %v4162_v33 = vrot.slane %v4148_v1, 4  ;;  %4260 = vst [vmem:[#allocation3 + $0x38] sm:$0xf] %v4152_v56  ;;  %v4169_v37 = vor.u32 %v4167_v58, %v4166_v57  ;;  %v4446_v3 = vrot.slane %v4444_v16, 1 }
 0x3d6   : > { %v4182_v21 = vshrl.u32 %v8860_v15, 16  ;;  %v4185_v52 = vshll.u32 %v8860_v15, 16  ;;  %v3988_v55 = vmul.f32 %v3961_v22, %v12894_v23  ;;  %v4409_v46 = vrot.slane %v4407_v9, 1 }
 0x3d7   : > { %vm3910_vm10 = vcmp.gt.f32.partialorder %v3879_v49, 0.0  ;;  %v3937_v45 = vmul.f32 0.01, %v3879_v49  ;;  %v4170_v34 = vsel %vm11184_vm12, %v4162_v33, %v4169_v37  ;;  %v11932_v20 = vld [vmem:[#allocation3 + $0x20] ss:$12 sps:$4 sm:$0xff]   ;;  %9341 = vmatpush3.bf16.msra.mxu0 %v10289_v28  ;;  %v11936_v1 = vcombine.low %v11867_v14, %v11927_v62 }
 0x3d8   : > { %v4184_v12 = vrot.slane %v4182_v21, 7  ;;  %4262 = vst [vmem:[#allocation3 + $0x44] sm:$0xf] %v4170_v34  ;;  %v8862_v24 = vpack.c.bf16 %v3988_v55, %v3988_v55  ;;  %v4405_v16 = vshrl.u32 %v8536_v53, 16  ;;  %v11938_v8 = vrot.slane %v4400_v32, 1  ;;  %9342 = vmatprep.subr.bf16.mxu0 %v10292_v10  ;;  %v10296_v32 = vld [vmem:[#allocation9 + $0x3e0] sm:$0xff]  }
 0x3d9   : > { %v3964_v40 = vsel %vm3910_vm10, %v3879_v49, %v3937_v45  ;;  %v4180_v47 = vrot.slane %v4166_v57, 4  ;;  %v4412_v58 = vshll.u32 %v11932_v20, 16  ;;  %v4398_v15 = vor.u32 %v11871_v50, %v4393_v54  ;;  %v10290_v50 = vld [vmem:[#allocation9 + $0x478] sm:$0xff]  }
 0x3da   : > { %v4187_v5 = vor.u32 %v4185_v52, %v4184_v12  ;;  %v3991_v11 = vmul.f32 %v3964_v40, %v12895_v43  ;;  %v4200_v9 = vshrl.u32 %v8862_v24, 16  ;;  %5260 = vmatmul.mubr.bf16.gmra.mxu0 %v11932_v20  ;;  %v4447_v53 = vsel %vm1847_vm3, %v11911_v39, %v4446_v3  ;;  %v10298_v10 = vld [vmem:[#allocation9 + $0x418] sm:$0xff]   ;;  %v4295_v52 = vld [vmem:[#allocation3] sm:$0xee] }
 0x3db   : > { %v4468_v28 = vshll.u32 %v11936_v1, 16  ;;  %5267 = vmatprep.mubr.bf16.mxu0 %v4447_v53  ;;  %v4410_v22 = vor.u32 %v4409_v46, %v4405_v16  ;;  %v4414_v49 = vrot.slane %v4412_v58, 1  ;;  %9343 = vmatpush3.bf16.msra.mxu0 %v10293_v31  ;;  %v4203_v54 = vshll.u32 %v8862_v24, 16  ;;  %v10299_v46 = vld [vmem:[#allocation9 + $0x3d8] sm:$0xff]   ;;  %v10301_v58 = vld [vmem:[#allocation9 + $0x410] sm:$0xff]  }
 0x3dc   : > { %v4188_v57 = vsel %vm11184_vm12, %v4180_v47, %v4187_v5  ;;  %v8864_v56 = vpack.c.bf16 %v3991_v11, %v3991_v11  ;;  %v4202_v42 = vrot.slane %v4200_v9, 7  ;;  %9344 = vmatprep.subr.bf16.mxu0 %v10294_v35  ;;  %v4403_v37 = vsel %vm1847_vm3, %v4398_v15, %v11938_v8 }
 0x3dd   : > { %4264 = vst [vmem:[#allocation3 + $0x50] sm:$0xf] %v4188_v57  ;;  %v4415_v39 = vsel %vm1847_vm3, %v4410_v22, %v4414_v49  ;;  %v4464_v21 = vshrl.u32 %v11874_v2, 16  ;;  %v4198_v55 = vrot.slane %v4184_v12, 4  ;;  %v11955_v31 = vrot.slane %v4468_v28, 1  ;;  %v10295_v12 = vld [vmem:[#allocation9 + $0x470] sm:$0xff]  }
 0x3de   : > { %v4218_v33 = vshrl.u32 %v8864_v56, 16  ;;  %v4205_v45 = vor.u32 %v4203_v54, %v4202_v42  ;;  %5323 = vmatprep.mubr.bf16.mxu1 %v4415_v39  ;;  %v4428_v34 = vshll.u32 %v11830_v36, 16  ;;  %v4221_v40 = vshll.u32 %v8864_v56, 16  ;;  %v4272_v57 = vld [vmem:[#allocation3 + $0x74] sm:$0x1] }
 0x3df   : > { %5324 = vmatmul.mubr.bf16.vlgmr.msra.gmra.mxu1 %v4403_v37  ;;  %v11958_v16 = vld [vmem:[#allocation3 + $0x38] ss:$12 sps:$4 sm:$0xff]   ;;  %v4466_v35 = vor.u32 %v4464_v21, %v4446_v3  ;;  %9345 = vmatpush3.bf16.msra.mxu0 %v10296_v32  ;;  %v4216_v5 = vrot.slane %v4202_v42, 4  ;;  %v4432_v11 = vshrl.u32 %v11932_v20, 16  ;;  %v8553_v15 = vcombine.high %v4295_v52, %v11751_v4 }
 0x3e0   : > { %v4220_v24 = vrot.slane %v4218_v33, 7  ;;  %v4206_v47 = vsel %vm11184_vm12, %v4198_v55, %v4205_v45  ;;  %9762 = vmatpush3.bf16.msra.mxu1 %v10290_v50  ;;  %9346 = vmatprep.subr.bf16.mxu0 %v10298_v10  ;;  %v4436_v3 = vshll.u32 %v11958_v16, 16  ;;  %v8552_v28 = vcombine.low %v4295_v52, %v11751_v4  ;;  %v10302_v4 = vld [vmem:[#allocation9 + $0x3d0] sm:$0xff]   ;;  %v10300_v37 = vld [vmem:[#allocation9 + $0x468] sm:$0xff]  }
 0x3e1   : > { %4266 = vst [vmem:[#allocation3 + $0x5c] sm:$0xf] %v4206_v47  ;;  %9763 = vmatprep.subr.bf16.mxu1 %v12890_v7  ;;  %v4471_v56 = vsel %vm1847_vm3, %v4466_v35, %v11955_v31  ;;  %v4424_v22 = vshrl.u32 %v11805_v0, 16  ;;  %v4430_v32 = vrot.slane %v4428_v34, 1  ;;  %v4434_v10 = vor.u32 %v4432_v11, %v4414_v49  ;;  %v10305_v21 = vld [vmem:[#allocation9 + $0x408] sm:$0xff]  }
 0x3e2   : > { %v4223_v9 = vor.u32 %v4221_v40, %v4220_v24  ;;  %v4226_v53 = vrot.slane %v4220_v24, 4  ;;  %5268 = vmatmul.mubr.bf16.gmra.mxu0 %v11958_v16  ;;  %v4438_v33 = vrot.slane %v4436_v3, 1  ;;  %v4523_v52 = vrot.slane %v8553_v15, 1  ;;  %v10307_v47 = vld [vmem:[#allocation9 + $0x3c8] sm:$0xff]   ;;  %v10309_v15 = vld [vmem:[#allocation9 + $0x400] sm:$0xff]  }
 0x3e3   : > { %5275 = vmatprep.mubr.bf16.mxu0 %v4471_v56  ;;  %9347 = vmatpush3.bf16.msra.mxu0 %v10299_v46  ;;  %v4426_v39 = vor.u32 %v4424_v22, %v11938_v8  ;;  %v4524_v55 = vrot.slane %v11805_v0, 1  ;;  %v4520_v34 = vrot.slane %v8552_v28, 1  ;;  %v4521_v49 = vrot.slane %v11808_v59, 1  ;;  %v10303_v0 = vld [vmem:[#allocation9 + $0x460] sm:$0xff]  }
 0x3e4   : > { %v4224_v42 = vsel %vm11184_vm12, %v4216_v5, %v4223_v9  ;;  %v4273_v50 = vsel %vm11230_vm15, %v4226_v53, %v4272_v57  ;;  %9764 = vmatpush3.bf16.msra.mxu1 %v10295_v12  ;;  %9348 = vmatprep.subr.bf16.mxu0 %v10301_v58  ;;  %v4439_v45 = vsel %vm1847_vm3, %v4434_v10, %v4438_v33  ;;  %v4531_v46 = vrot.slane %v11830_v36, 1  ;;  %v10310_v56 = vld [vmem:[#allocation9 + $0x3c0] sm:$0xff]  }
 0x3e5   : > { %4268 = vst [vmem:[#allocation3 + $0x68] sm:$0xf] %v4224_v42  ;;  %4274 = vst [vmem:[#allocation3 + $0x74] sm:$0x1] %v4273_v50  ;;  %9765 = vmatprep.subr.bf16.mxu1 %v12890_v7  ;;  %5331 = vmatprep.mubr.bf16.mxu1 %v4439_v45  ;;  %v4431_v24 = vsel %vm1847_vm3, %v4426_v39, %v4430_v32  ;;  %v4488_v8 = vshrl.u32 %v11936_v1, 16  ;;  %v4452_v40 = vshll.u32 %v11852_v18, 16 }
 0x3e6   : > { %v4525_v35 = vsel %vm1988_vm5, %v4523_v52, %v4524_v55  ;;  %v11986_v5 = vsel %vm1988_vm5, %v4520_v34, %v4521_v49  ;;  %v11989_v59 = vsel %vm1988_vm5, %v4524_v55, %v4531_v46  ;;  %v4529_v12 = vrot.slane %v11837_v41, 1 }
 0x3e7   : > { %5332 = vmatmul.mubr.bf16.gmra.mxu1 %v4431_v24  ;;  %9349 = vmatpush3.bf16.msra.mxu0 %v10302_v4  ;;  %v4537_v11 = vrot.slane %v11852_v18, 1  ;;  %v4490_v9 = vor.u32 %v4488_v8, %v11955_v31  ;;  %v4535_v41 = vrot.slane %v11874_v2, 1  ;;  %v4456_v28 = vshrl.u32 %v11958_v16, 16 }
 0x3e8   : > { %v11993_v58 = vld [vmem:[#allocation3 + $0x50] ss:$12 sps:$4 sm:$0xff]   ;;  %9766 = vmatpush3.bf16.msra.mxu1 %v10300_v37  ;;  %9350 = vmatprep.subr.bf16.mxu0 %v10305_v21  ;;  %v11998_v53 = vsel %vm1988_vm5, %v4521_v49, %v4529_v12  ;;  %v4448_v31 = vshrl.u32 %v11830_v36, 16  ;;  %v4454_v22 = vrot.slane %v4452_v40, 1  ;;  %v12012_v10 = vcombine.high %v11867_v14, %v11927_v62 }
 0x3e9   : > { %9767 = vmatprep.subr.bf16.mxu1 %v12890_v7  ;;  %v12003_v3 = vsel %vm1988_vm5, %v4531_v46, %v4537_v11  ;;  %v4460_v57 = vshll.u32 %v11993_v58, 16  ;;  %v4536_v4 = vsel %vm1988_vm5, %v4529_v12, %v4535_v41  ;;  %v4458_v39 = vor.u32 %v4456_v28, %v4438_v33  ;;  %v10308_v36 = vld [vmem:[#allocation9 + $0x458] sm:$0xff]   ;;  %v10312_v12 = vld [vmem:[#allocation9 + $0x448] sm:$0xff]   ;;  %v10313_v28 = vld [vmem:[#allocation9 + $0x440] sm:$0xff]  }
 0x3ea   : > { %5276 = vmatmul.mubr.bf16.gmra.mxu0 %v11993_v58  ;;  %v4450_v52 = vor.u32 %v4448_v31, %v4430_v32  ;;  %v4480_v45 = vshrl.u32 %v11993_v58, 16  ;;  %v4476_v33 = vshll.u32 %v12012_v10, 16  ;;  %v10311_v32 = vld [vmem:[#allocation9 + $0x450] sm:$0xff]   ;;  %v4472_v8 = vshrl.u32 %v11852_v18, 16 }
 0x3eb   : > { %5283 = vmatprep.mubr.bf16.mxu0 %v4490_v9  ;;  %9351 = vmatpush3.bf16.msra.mxu0 %v10307_v47  ;;  %v4462_v37 = vrot.slane %v4460_v57, 1  ;;  %v4539_v18 = vrot.slane %v11993_v58, 1  ;;  %v10318_v58 = vld [vmem:[#allocation7 + $0x510] ss:$12 sps:$4 sm:$0xff]  }
 0x3ec   : > { %v4292_v42 = vld [vmem:[#allocation3 + $0x68] sm:$0xf]  ;;  %v4294_v50 = vld [vmem:[#allocation3 + $0x74] sm:$0x1]  ;;  %9768 = vmatpush3.bf16.msra.mxu1 %v10303_v0  ;;  %9352 = vmatprep.subr.bf16.mxu0 %v10309_v15  ;;  %v4455_v62 = vsel %vm1847_vm3, %v4450_v52, %v4454_v22  ;;  %v4478_v40 = vrot.slane %v4476_v33, 1  ;;  %v4474_v0 = vor.u32 %v4472_v8, %v4454_v22 }
 0x3ed   : > { %v12017_v21 = vcombine.low %v4292_v42, %v4294_v50  ;;  %9769 = vmatprep.subr.bf16.mxu1 %v12890_v7  ;;  %v4463_v55 = vsel %vm1847_vm3, %v4458_v39, %v4462_v37  ;;  %v8548_v34 = vcombine.low %v4292_v42, %v4292_v42  ;;  %v4482_v49 = vor.u32 %v4480_v45, %v4462_v37  ;;  %v10323_v39 = vld [vmem:[#allocation7 + $0x4fc] ss:$12 sps:$4 sm:$0xff]   ;;  %v10324_v37 = vld [vmem:[#allocation7 + $0x4e0] ss:$12 sps:$4 sm:$0xff]   ;;  %v10338_v33 = vld [vmem:[#allocation7 + $0x484] ss:$12 sps:$4 sm:$0xff]  }
 0x3ee   : > { %5339 = vmatprep.mubr.bf16.mxu1 %v4463_v55  ;;  %v4479_v15 = vsel %vm1847_vm3, %v4474_v0, %v4478_v40  ;;  %v10327_v52 = vld [vmem:[#allocation7 + $0x4c8] ss:$12 sps:$4 sm:$0xff]   ;;  %v10330_v55 = vld [vmem:[#allocation7 + $0x4b0] ss:$12 sps:$4 sm:$0xff]  }
 0x3ef   : > { %v4484_v14 = vshll.u32 %v12017_v21, 16  ;;  %9353 = vmatpush3.bf16.msra.mxu0 %v10310_v56  ;;  %5340 = vmatmul.mubr.bf16.gmra.mxu1 %v4455_v62  ;;  %v4494_v47 = vshrl.u32 %v12017_v21, 16  ;;  %v4296_v56 = vld [vmem:[#allocation3 + $0x8] sm:$0xe]  ;;  %v10332_v45 = vld [vmem:[#allocation7 + $0x4b4] ss:$12 sps:$4 sm:$0xff]  }
 0x3f0   : > { %9770 = vmatpush3.bf16.msra.mxu1 %v10308_v36  ;;  %v8554_v31 = vcombine.low %v4296_v56, %v11916_v25  ;;  %v10329_v36 = vld [vmem:[#allocation7 + $0x4cc] ss:$12 sps:$4 sm:$0xff]   ;;  %v10345_v8 = vld [vmem:[#allocation7 + $0x690] ss:$12 sps:$4 sm:$0xff]  }
 0x3f1   : > { %v4486_v46 = vrot.slane %v4484_v14, 1  ;;  %9771 = vmatprep.subr.bf16.mxu1 %v12890_v7  ;;  %v10335_v14 = vld [vmem:[#allocation7 + $0x49c] ss:$12 sps:$4 sm:$0xff]   ;;  %v10333_v62 = vld [vmem:[#allocation7 + $0x498] ss:$12 sps:$4 sm:$0xff]  }
 0x3f2   : > { %5284 = vmatmul.mubr.bf16.gmra.mxu0 %v8548_v34  ;;  %v4526_v22 = vrot.slane %v8554_v31, 1  ;;  %v10336_v34 = vld [vmem:[#allocation7 + $0x480] ss:$12 sps:$4 sm:$0xff]   ;;  %v10348_v0 = vld [vmem:[#allocation7 + $0x5d0] ss:$12 sps:$4 sm:$0xff]  }
 0x3f3   : > { %v4487_v24 = vsel %vm1847_vm3, %v4482_v49, %v4486_v46  ;;  %5395 = vmatprep.mubr.bf16.mxu0 %v4525_v35  ;;  %v4496_v9 = vor.u32 %v4494_v47, %v4486_v46  ;;  %v4491_v35 = vshrl.u32 %v12012_v10, 16  ;;  %v10339_v49 = vld [vmem:[#allocation7 + $0x6a8] ss:$12 sps:$4 sm:$0xff]   ;;  %v10341_v46 = vld [vmem:[#allocation7 + $0x6ac] ss:$12 sps:$4 sm:$0xff]  }
 0x3f4   : > { %5347 = vmatprep.mubr.bf16.mxu1 %v4487_v24  ;;  %9772 = vmatpush3.bf16.msra.mxu1 %v10311_v32  ;;  %v10342_v32 = vld [vmem:[#allocation7 + $0x5e8] ss:$12 sps:$4 sm:$0xff]   ;;  %v10344_v24 = vld [vmem:[#allocation7 + $0x5ec] ss:$12 sps:$4 sm:$0xff]   ;;  %v10362_v31 = vld [vmem:[#allocation7 + $0x664] ss:$12 sps:$4 sm:$0xff]  }
 0x3f5   : > { %9773 = vmatprep.subr.bf16.mxu1 %v12890_v7  ;;  %v4493_v57 = vor.u32 %v4491_v35, %v4478_v40  ;;  %v10347_v40 = vld [vmem:[#allocation7 + $0x694] ss:$12 sps:$4 sm:$0xff]  }
 0x3f6   : > { %v10350_v47 = vld [vmem:[#allocation7 + $0x5d4] ss:$12 sps:$4 sm:$0xff]  }
 0x3f7   : > { %5348 = vmatmul.mubr.bf16.gmra.mxu1 %v4479_v15  ;;  %v10353_v15 = vld [vmem:[#allocation7 + $0x5bc] ss:$12 sps:$4 sm:$0xff]   ;;  %v10357_v35 = vld [vmem:[#allocation7 + $0x5a0] ss:$12 sps:$4 sm:$0xff]  }
 0x3f8   : > { %5355 = vmatprep.mubr.bf16.mxu1 %v4496_v9  ;;  %9774 = vmatpush3.bf16.msra.mxu1 %v10312_v12  ;;  %v10351_v12 = vld [vmem:[#allocation7 + $0x5b8] ss:$12 sps:$4 sm:$0xff]   ;;  %v10360_v56 = vld [vmem:[#allocation7 + $0x660] ss:$12 sps:$4 sm:$0xff]  }
 0x3f9   : > { %9775 = vmatprep.subr.bf16.mxu1 %v12890_v7  ;;  %v10354_v9 = vld [vmem:[#allocation7 + $0x678] ss:$12 sps:$4 sm:$0xff]  }
 0x3fa   : > { %5396 = vmatmul.mubr.bf16.vlgmr.msra.gmra.mxu0 %v11986_v5  ;;  %v4527_v5 = vrot.slane %v11932_v20, 1 }
 0x3fb   : > { %5403 = vmatprep.mubr.bf16.mxu0 %v11989_v59  ;;  %v4543_v59 = vrot.slane %v12012_v10, 1  ;;  %v10320_v10 = vld [vmem:[#allocation7 + $0x514] ss:$12 sps:$4 sm:$0xff]  }
 0x3fc   : > { %9776 = vmatpush3.bf16.msra.mxu1 %v10313_v28  ;;  %v4528_v42 = vsel %vm1988_vm5, %v4526_v22, %v4527_v5  ;;  %v10356_v28 = vld [vmem:[#allocation7 + $0x67c] ss:$12 sps:$4 sm:$0xff]   ;;  %v10365_v22 = vld [vmem:[#allocation7 + $0x58c] ss:$12 sps:$4 sm:$0xff]  }
 0x3fd   : > { %v4544_v25 = vsel %vm1988_vm5, %v4537_v11, %v4543_v59  ;;  %6192 = vmatprep.subr.bf16.mxu1 %v10341_v46 }
 0x3ff   : > { %5356 = vmatmul.mubr.bf16.gmra.mxu1 %v4493_v57  ;;  %v10359_v57 = vld [vmem:[#allocation7 + $0x5a4] ss:$12 sps:$4 sm:$0xff]  }
 0x400   : > { %9777 = vmatprep.mubr.msk.bf16.mxu1 %vm10678_vm0, %v12890_v7 }
 0x402   : > { %5404 = vmatmul.mubr.bf16.gmra.mxu0 %v11998_v53  ;;  %v4533_v53 = vrot.slane %v11958_v16, 1  ;;  %v10315_v16 = vld [vmem:[#allocation7 + $0x528] ss:$12 sps:$4 sm:$0xff]  }
 0x403   : > { %5411 = vmatprep.mubr.bf16.mxu0 %v12003_v3  ;;  %v4541_v3 = vrot.slane %v11936_v1, 1  ;;  %v4545_v1 = vrot.slane %v12017_v21, 1  ;;  %v10326_v21 = vld [vmem:[#allocation7 + $0x4e4] ss:$12 sps:$4 sm:$0xff]  }
 0x404   : > { %v4534_v20 = vsel %vm1988_vm5, %v4527_v5, %v4533_v53  ;;  %v4540_v11 = vsel %vm1988_vm5, %v4533_v53, %v4539_v18  ;;  %v10363_v5 = vld [vmem:[#allocation7 + $0x588] ss:$12 sps:$4 sm:$0xff]  }
 0x405   : > { %v4542_v50 = vsel %vm1988_vm5, %v4535_v41, %v4541_v3  ;;  %v4546_v2 = vsel %vm1988_vm5, %v4539_v18, %v4545_v1  ;;  %v10317_v41 = vld [vmem:[#allocation7 + $0x52c] ss:$12 sps:$4 sm:$0xff]   ;;  %v10371_v53 = vld [vmem:[#allocation7 + $0x574] ss:$12 sps:$4 sm:$0xff]   ;;  %v10377_v18 = vld [vmem:[#allocation7 + $0x55c] ss:$12 sps:$4 sm:$0xff]  }
 0x406   : > { %6111 = vmatprep.subr.bf16.mxu0 %v10317_v41  ;;  %v10384_v41 = vld [vmem:[#allocation7 + $0x600] ss:$12 sps:$4 sm:$0xff]  }
 0x407   : > { %9778 = vmatmul.mubr.bf16.vlgmr.msra.gmra.mxu1 %v4528_v42  ;;  %6112 = vmatpush1.bf16.msra.mxu0 %v10315_v16  ;;  %v10368_v42 = vld [vmem:[#allocation7 + $0x64c] ss:$12 sps:$4 sm:$0xff]   ;;  %v10383_v16 = vld [vmem:[#allocation7 + $0x544] ss:$12 sps:$4 sm:$0xff]  }
 0x408   : > { %9781 = vmatprep.mubr.msk.bf16.mxu1 %vm10678_vm0, %v12890_v7  ;;  %6113 = vmatprep.subr.bf16.mxu0 %v10320_v10  ;;  %v10387_v10 = vld [vmem:[#allocation7 + $0x5f0] ss:$12 sps:$4 sm:$0xff]  }
 0x409   : > { %6193 = vmatpush1.bf16.msra.mxu1 %v10339_v49 }
 0x40a   : > { %5412 = vmatmul.mubr.bf16.gmra.mxu0 %v4536_v4  ;;  %v10321_v4 = vld [vmem:[#allocation7 + $0x4f8] ss:$12 sps:$4 sm:$0xff]   ;;  %6194 = vmatprep.subr.bf16.mxu1 %v10347_v40 }
 0x40b   : > { %5419 = vmatprep.mubr.bf16.mxu0 %v4544_v25  ;;  %6114 = vmatpush1.bf16.msra.mxu0 %v10318_v58  ;;  %v10369_v25 = vld [vmem:[#allocation7 + $0x570] ss:$12 sps:$4 sm:$0xff]  }
 0x40c   : > { %6115 = vmatprep.subr.bf16.mxu0 %v10323_v39  ;;  %v10386_v58 = vld [vmem:[#allocation7 + $0x604] ss:$12 sps:$4 sm:$0xff]  }
 0x40d   : > { %6195 = vmatpush1.bf16.msra.mxu1 %v10345_v8 }
 0x40e   : > { %6196 = vmatprep.subr.bf16.mxu1 %v10356_v28 }
 0x40f   : > { %9782 = vmatmul.mubr.bf16.gmra.mxu1 %v4534_v20  ;;  %6116 = vmatpush1.bf16.msra.mxu0 %v10321_v4  ;;  %v10374_v20 = vld [vmem:[#allocation7 + $0x634] ss:$12 sps:$4 sm:$0xff]  }
 0x410   : > { %9785 = vmatprep.mubr.msk.bf16.mxu1 %vm10678_vm0, %v12890_v7  ;;  %6117 = vmatprep.subr.bf16.mxu0 %v10326_v21 }
 0x411   : > { %6197 = vmatpush1.bf16.msra.mxu1 %v10354_v9 }
 0x412   : > { %5420 = vmatmul.mubr.bf16.gmra.mxu0 %v4542_v50  ;;  %6198 = vmatprep.subr.bf16.mxu1 %v10362_v31  ;;  %v10375_v50 = vld [vmem:[#allocation7 + $0x558] ss:$12 sps:$4 sm:$0xff]  }
 0x413   : > { %5427 = vmatprep.mubr.bf16.mxu0 %v4543_v59  ;;  %6118 = vmatpush1.bf16.msra.mxu0 %v10324_v37  ;;  %v10366_v59 = vld [vmem:[#allocation7 + $0x648] ss:$12 sps:$4 sm:$0xff]  }
 0x414   : > { %6119 = vmatprep.subr.bf16.mxu0 %v10329_v36 }
 0x415   : > { %6199 = vmatpush1.bf16.msra.mxu1 %v10360_v56 }
 0x416   : > { %6200 = vmatprep.subr.bf16.mxu1 %v10368_v42 }
 0x417   : > { %9786 = vmatmul.mubr.bf16.gmra.mxu1 %v4540_v11  ;;  %6120 = vmatpush1.bf16.msra.mxu0 %v10327_v52  ;;  %v10378_v11 = vld [vmem:[#allocation7 + $0x618] ss:$12 sps:$4 sm:$0xff]  }
 0x418   : > { %9789 = vmatprep.mubr.msk.bf16.mxu1 %vm10678_vm0, %v12890_v7  ;;  %6121 = vmatprep.subr.bf16.mxu0 %v10332_v45 }
 0x419   : > { %6201 = vmatpush1.bf16.msra.mxu1 %v10366_v59 }
 0x41a   : > { %5428 = vmatmul.mubr.bf16.gmra.mxu0 %v4541_v3  ;;  %v10372_v3 = vld [vmem:[#allocation7 + $0x630] ss:$12 sps:$4 sm:$0xff]   ;;  %6202 = vmatprep.subr.bf16.mxu1 %v10374_v20 }
 0x41b   : > { %6122 = vmatpush1.bf16.msra.mxu0 %v10330_v55 }
 0x41c   : > { %6123 = vmatprep.subr.bf16.mxu0 %v10335_v14 }
 0x41d   : > { %6203 = vmatpush1.bf16.msra.mxu1 %v10372_v3 }
 0x41f   : > { %9790 = vmatmul.mubr.bf16.gmra.mxu1 %v4546_v2  ;;  %6124 = vmatpush1.bf16.msra.mxu0 %v10333_v62  ;;  %v10381_v2 = vld [vmem:[#allocation7 + $0x540] ss:$12 sps:$4 sm:$0xff]  }
 0x420   : > { %9793 = vmatprep.mubr.msk.bf16.mxu1 %vm10678_vm0, %v12890_v7  ;;  %6125 = vmatprep.subr.bf16.mxu0 %v10338_v33 }
 0x423   : > { %6126 = vmatpush1.bf16.msra.mxu0 %v10336_v34 }
 0x424   : > { %6127 = vmatprep.subr.bf16.mxu0 %v10344_v24 }
 0x427   : > { %9794 = vmatmul.mubr.bf16.gmra.mxu1 %v4545_v1  ;;  %6128 = vmatpush2.bf16.msra.mxu0 %v10342_v32  ;;  %v10380_v1 = vld [vmem:[#allocation7 + $0x61c] ss:$12 sps:$4 sm:$0xff]  }
 0x428   : > { %6224 = vmatprep.mubr.bf16.mxu1 %v12892_v19  ;;  %6129 = vmatprep.subr.bf16.mxu0 %v10350_v47 }
 0x429   : > { %6204 = vmatprep.subr.bf16.mxu1 %v10380_v1 }
 0x42a   : > { %6205 = vmatpush1.bf16.msra.mxu1 %v10378_v11 }
 0x42b   : > { %6130 = vmatpush2.bf16.msra.mxu0 %v10348_v0  ;;  %6206 = vmatprep.subr.bf16.mxu1 %v10386_v58 }
 0x42c   : > { %6131 = vmatprep.subr.bf16.mxu0 %v10353_v15 }
 0x42e   : > { %6207 = vmatpush1.bf16.msra.mxu1 %v10384_v41 }
 0x42f   : > { %6132 = vmatpush2.bf16.msra.mxu0 %v10351_v12  ;;  %9797 = vmatprep.subr.bf16.mxu1 %v12890_v7 }
 0x430   : > { %6133 = vmatprep.subr.bf16.mxu0 %v10359_v57 }
 0x433   : > { %6134 = vmatpush2.bf16.msra.mxu0 %v10357_v35 }
 0x434   : > { %6135 = vmatprep.subr.bf16.mxu0 %v10365_v22 }
 0x437   : > { %6136 = vmatpush2.bf16.msra.mxu0 %v10363_v5 }
 0x438   : > { %6137 = vmatprep.subr.bf16.mxu0 %v10371_v53 }
 0x43b   : > { %6138 = vmatpush2.bf16.msra.mxu0 %v10369_v25 }
 0x43c   : > { %6139 = vmatprep.subr.bf16.mxu0 %v10377_v18 }
 0x43f   : > { %6140 = vmatpush2.bf16.msra.mxu0 %v10375_v50 }
 0x440   : > { %6141 = vmatprep.subr.bf16.mxu0 %v10383_v16 }
 0x443   : > { %6142 = vmatpush2.bf16.msra.mxu0 %v10381_v2 }
 0x444   : > { %9397 = vmatprep.subr.bf16.mxu0 %v10387_v10 }
 0x46d   : > { %v9216_v4 = vpop.f32.mrf.mxu1 }
 0x46f   : > { %v9217_v39 = vpop.f32.mrf.mxu1 }
 0x470   : > { %v12066_v37 = vadd.f32 %v9217_v39, %v9216_v4 }
 0x471   : > { %v12068_v21 = vpop.f32.mrf.mxu1 }
 0x472   : > { %v5182_v23 = vadd.f32 %v12066_v37, %v12133_v48 }
 0x473   : > { %v12070_v52 = vpop.f32.mrf.mxu1 }
 0x474   : > { %v9221_v63 = vadd.f32 %v12070_v52, %v12068_v21 }
 0x475   : > { %v9222_v36 = vpop.f32.mrf.mxu1 }
 0x477   : > { %v9223_v55 = vpop.f32.mrf.mxu1 }
 0x478   : > { %v12072_v45 = vadd.f32 %v9223_v55, %v9222_v36 }
 0x479   : > { %v12074_v14 = vpop.f32.mrf.mxu1 }
 0x47b   : > { %v12076_v62 = vpop.f32.mrf.mxu1 }
 0x47c   : > { %v9227_v21 = vadd.f32 %v12076_v62, %v12074_v14 }
 0x47d   : > { %v9228_v33 = vpop.f32.mrf.mxu1 }
 0x47e   : > { %v5193_v14 = vadd.f32 %v9227_v21, %v12133_v48 }
 0x47f   : > { %v9229_v34 = vpop.f32.mrf.mxu1 }
 0x480   : > { %v12078_v49 = vadd.f32 %v9229_v34, %v9228_v33 }
 0x481   : > { %v12080_v46 = vpop.f32.mrf.mxu1 }
 0x483   : > { %v12082_v32 = vpop.f32.mrf.mxu1 }
 0x485   : > { %v9234_v24 = vpop.f32.mrf.mxu1 }
 0x487   : > { %v9235_v8 = vpop.f32.mrf.mxu1 }
 0x488   : > { %v12084_v40 = vadd.f32 %v9235_v8, %v9234_v24 }
 0x489   : > { %v12086_v0 = vpop.f32.mrf.mxu1 }
 0x48b   : > { %v12088_v47 = vpop.f32.mrf.mxu1 }
 0x48d   : > { %v9240_v12 = vpop.f32.mrf.mxu1 }
 0x48f   : > { %v9241_v15 = vpop.f32.mrf.mxu1 }
 0x490   : > { %v12090_v9 = vadd.f32 %v9241_v15, %v9240_v12 }
 0x491   : > { %v9243_v28 = vpop.f32.mrf.mxu1 }
 0x492   : > { %12904 = vst [vmem:[#allocation33_spill] sm:$0xff] %v12090_v9  ;;  %v9262_v35 = vpop.f32.mrf.mxu0 }
 0x493   : > { %v9244_v57 = vpop.f32.mrf.mxu1 }
 0x494   : > { %v9263_v56 = vpop.f32.mrf.mxu0 }
 0x496   : > { %v9265_v31 = vpop.f32.mrf.mxu0 }
 0x498   : > { %v9266_v5 = vpop.f32.mrf.mxu0 }
 0x499   : > { %v9267_v9 = vadd.f32 %v9266_v5, %v9265_v31 }
 0x49a   : > { %v9268_v22 = vpop.f32.mrf.mxu0 }
 0x49c   : > { %v9269_v59 = vpop.f32.mrf.mxu0 }
 0x49d   : > { %v9270_v37 = vadd.f32 %v9269_v59, %v9268_v22 }
 0x49e   : > { %v12092_v42 = vpop.f32.mrf.mxu0 }
 0x49f   : > { %v9308_v25 = vpop.f32.mrf.mxu1 }
 0x4a0   : > { %v12094_v53 = vpop.f32.mrf.mxu0 }
 0x4a1   : > { %v9309_v3 = vpop.f32.mrf.mxu1 }
 0x4a2   : > { %v12096_v20 = vpop.f32.mrf.mxu0  ;;  %v9310_v7 = vadd.f32 %v9309_v3, %v9308_v25 }
 0x4a3   : > { %v9311_v50 = vpop.f32.mrf.mxu1 }
 0x4a4   : > { %v12098_v18 = vpop.f32.mrf.mxu0 }
 0x4a5   : > { %v9312_v11 = vpop.f32.mrf.mxu1 }
 0x4a6   : > { %v12100_v1 = vpop.f32.mrf.mxu0 }
 0x4a7   : > { %v9314_v2 = vpop.f32.mrf.mxu1 }
 0x4a8   : > { %v12102_v16 = vpop.f32.mrf.mxu0 }
 0x4a9   : > { %v9315_v41 = vpop.f32.mrf.mxu1 }
 0x4aa   : > { %v12104_v58 = vpop.f32.mrf.mxu0 }
 0x4ab   : > { %v9317_v10 = vpop.f32.mrf.mxu1 }
 0x4ac   : > { %v12106_v4 = vpop.f32.mrf.mxu0 }
 0x4ad   : > { %v9318_v39 = vpop.f32.mrf.mxu1 }
 0x4ae   : > { %v12108_v36 = vpop.f32.mrf.mxu0  ;;  %v9319_v62 = vadd.f32 %v9318_v39, %v9317_v10  ;;  %v5198_v39 = vadd.f32 %v12078_v49, %v12133_v48 }
 0x4af   : > { %12905 = vst [vmem:[#allocation29_spill] sm:$0xff] %v12108_v36  ;;  %v12112_v33 = vpop.f32.mrf.mxu1 }
 0x4b0   : > { %v12110_v55 = vpop.f32.mrf.mxu0 }
 0x4b1   : > { %12906 = vst [vmem:[#allocation30_spill] sm:$0xff] %v12110_v55  ;;  %v12116_v24 = vpop.f32.mrf.mxu1 }
 0x4b2   : > { %v12114_v34 = vpop.f32.mrf.mxu0 }
 0x4b3   : > { %12907 = vst [vmem:[#allocation34_spill] sm:$0xff] %v12114_v34  ;;  %v12120_v12 = vpop.f32.mrf.mxu1 }
 0x4b4   : > { %v12118_v8 = vpop.f32.mrf.mxu0 }
 0x4b5   : > { %12908 = vst [vmem:[#allocation35_spill] sm:$0xff] %v12118_v8  ;;  %v12122_v28 = vpop.f32.mrf.mxu1 }
 0x4b6   : > { %v9289_v15 = vpop.f32.mrf.mxu0 }
 0x4b7   : > { %v12124_v54 = vpop.f32.mrf.mxu1  ;;  %v9264_v15 = vadd.f32 %v9263_v56, %v9262_v35  ;;  %v5185_v35 = vadd.f32 %v9221_v63, %v12133_v48  ;;  %v9316_v63 = vadd.f32 %v9315_v41, %v9314_v2 }
 0x4b8   : > { %v9290_v57 = vpop.f32.mrf.mxu0 }
 0x4b9   : > { %v12126_v13 = vpop.f32.mrf.mxu1  ;;  %v5254_v17 = vadd.f32 %v9264_v15, %v5182_v23  ;;  %v5257_v55 = vadd.f32 %v9267_v9, %v5185_v35  ;;  %v10499_v23 = vld [vmem:[#allocation2 + $0x1] sm:$0xff]  ;;  %v9233_v15 = vadd.f32 %v12082_v32, %v12080_v46 }
 0x4ba   : > { %12909 = vst [vmem:[#allocation31_spill] sm:$0xff] %v12126_v13  ;;  %v9354_v26 = vpop.f32.mrf.mxu0  ;;  %v5507_v31 = vmul.f32 3.0, %v10499_v23 }
 0x4bb   : > { %v12128_v61 = vpop.f32.mrf.mxu1  ;;  %v5326_v56 = vadd.f32 %v9310_v7, %v5254_v17  ;;  %v9273_v7 = vadd.f32 %v12094_v53, %v12092_v42  ;;  %v9276_v42 = vadd.f32 %v12098_v18, %v12096_v20  ;;  %v9322_v20 = vadd.f32 %v12116_v24, %v12112_v33 }
 0x4bc   : > { %12910 = vst [vmem:[#allocation32_spill] sm:$0xff] %v12128_v61  ;;  %v9355_v38 = vpop.f32.mrf.mxu0 }
 0x4bd   : > { %v12135_v6 = vpop.f32.mrf.mxu1  ;;  %v9356_v8 = vadd.f32 %v9355_v38, %v9354_v26  ;;  %v5190_v38 = vadd.f32 %v12072_v45, %v12133_v48  ;;  %v5265_v2 = vadd.f32 %v9273_v7, %v5193_v14  ;;  %v5270_v21 = vadd.f32 %v9276_v42, %v5198_v39 }
 0x4be   : > { %12911 = vst [vmem:[#allocation28_spill] sm:$0xff] %v12135_v6  ;;  %v9357_v51 = vpop.f32.mrf.mxu0 }
 0x4bf   : > { %v12137_v43 = vpop.f32.mrf.mxu1  ;;  %v5398_v13 = vadd.f32 %v9356_v8, %v5326_v56 }
 0x4c0   : > { %12912 = vst [vmem:[#allocation36_spill] sm:$0xff] %v12137_v43  ;;  %v9358_v57 = vpop.f32.mrf.mxu0  ;;  %v9313_v43 = vadd.f32 %v9312_v11, %v9311_v50  ;;  %v10500_v11 = vld [vmem:[#allocation2 + $0x9] sm:$0xff] }
 0x4c1   : > { %v12143_v19 = vpop.f32.mrf.mxu1  ;;  %v9359_v36 = vadd.f32 %v9358_v57, %v9357_v51  ;;  %v5262_v51 = vadd.f32 %v9270_v37, %v5190_v38  ;;  %v5337_v57 = vadd.f32 %v9319_v62, %v5265_v2  ;;  %v5201_v38 = vadd.f32 %v9233_v15, %v12133_v48 }
 0x4c2   : > { %v9360_v30 = vpop.f32.mrf.mxu0  ;;  %v5329_v26 = vadd.f32 %v9313_v43, %v5257_v55 }
 0x4c3   : > { %v9335_v34 = vpop.f32.mrf.mxu1  ;;  %v5334_v45 = vadd.f32 %v9316_v63, %v5262_v51  ;;  %v12916_v15 = vld [vmem:[#allocation32_spill] sm:$0xff] }
 0x4c4   : > { %v9361_v29 = vpop.f32.mrf.mxu0  ;;  %v5401_v59 = vadd.f32 %v9359_v36, %v5329_v26  ;;  %v5508_v34 = vmul.f32 3.0, %v10500_v11  ;;  %v9325_v26 = vadd.f32 %v12122_v28, %v12120_v12  ;;  %v5206_v11 = vadd.f32 %v12084_v40, %v12133_v48 }
 0x4c5   : > { %v9336_v6 = vpop.f32.mrf.mxu1  ;;  %v9362_v5 = vadd.f32 %v9361_v29, %v9360_v30  ;;  %v10501_v29 = vld [vmem:[#allocation2 + $0x11] sm:$0xff] }
 0x4c6   : > { %v9363_v61 = vpop.f32.mrf.mxu0  ;;  %v5509_v30 = vmul.f32 3.0, %v10501_v29  ;;  %v12914_v29 = vld [vmem:[#allocation29_spill] sm:$0xff] }
 0x4c7   : > { %v5469_v25 = vpop.f32.mrf.mxu1  ;;  %v5406_v10 = vadd.f32 %v9362_v5, %v5334_v45 }
 0x4c8   : > { %v9364_v52 = vpop.f32.mrf.mxu0  ;;  %v5470_v17 = vadd.f32 %v5469_v25, %v5398_v13 }
 0x4c9   : > { %v9779_v9 = vpop.f32.mrf.mxu1  ;;  %v9365_v36 = vadd.f32 %v9364_v52, %v9363_v61  ;;  %v9279_v52 = vadd.f32 %v12102_v16, %v12100_v1 }
 0x4ca   : > { %v9366_v6 = vpop.f32.mrf.mxu0  ;;  %v5516_v22 = vadd.f32 %v5507_v31, %v5470_v17  ;;  %v10502_v17 = vld [vmem:[#allocation2 + $0x19] sm:$0xff]  ;;  %v5342_v9 = vadd.f32 %v9322_v20, %v5270_v21 }
 0x4cb   : > { %v5472_v50 = vpop.f32.mrf.mxu1  ;;  %v5409_v31 = vadd.f32 %v9365_v36, %v5337_v57  ;;  %v5510_v7 = vmul.f32 3.0, %v10502_v17  ;;  %v5273_v51 = vadd.f32 %v9279_v52, %v5201_v38  ;;  %v12917_v57 = vld [vmem:[#allocation28_spill] sm:$0xff]  ;;  %v12920_v38 = vld [vmem:[#allocation35_spill] sm:$0xff]  ;;  %v10389_v17 = vld [vmem:[#allocation7 + $0x5d8] ss:$12 sps:$4 sm:$0xff]  }
 0x4cc   : > { %v9367_v3 = vpop.f32.mrf.mxu0  ;;  %vm5525_vm1 = vcmp.gt.f32.partialorder %v5516_v22, 0.0  ;;  %v5534_v43 = vmul.f32 0.01, %v5516_v22  ;;  %v5473_v13 = vadd.f32 %v5472_v50, %v5401_v59  ;;  %v10503_v59 = vld [vmem:[#allocation2 + $0x21] sm:$0xff] }
 0x4cd   : > { %v9780_v41 = vpop.f32.mrf.mxu1  ;;  %v9368_v23 = vadd.f32 %v9367_v3, %v9366_v6  ;;  %v9282_v6 = vadd.f32 %v12106_v4, %v12104_v58  ;;  %v5511_v14 = vmul.f32 3.0, %v10503_v59  ;;  %v5345_v45 = vadd.f32 %v9325_v26, %v5273_v51  ;;  %v10388_v21 = vld [vmem:[#allocation7 + $0x530] ss:$12 sps:$4 sm:$0xff]  }
 0x4ce   : > { %v9369_v53 = vpop.f32.mrf.mxu0  ;;  %v5543_v55 = vsel %vm5525_vm1, %v5516_v22, %v5534_v43  ;;  %v5517_v8 = vadd.f32 %v5508_v34, %v5473_v13  ;;  %v9239_v34 = vadd.f32 %v12088_v47, %v12086_v0  ;;  %v12913_v13 = vld [vmem:[#allocation31_spill] sm:$0xff] }
 0x4cf   : > { %v5552_v35 = vmul.f32 %v5543_v55, %v11042_v27  ;;  %v5477_v37 = vpop.f32.mrf.mxu1  ;;  %v5414_v50 = vadd.f32 %v9368_v23, %v5342_v9  ;;  %v9328_v2 = vadd.f32 %v12913_v13, %v12124_v54  ;;  %v5278_v41 = vadd.f32 %v9282_v6, %v5206_v11  ;;  %v12918_v54 = vld [vmem:[#allocation17_spill] sm:$0xff] }
 0x4d0   : > { %v9370_v56 = vpop.f32.mrf.mxu0  ;;  %vm5526_vm4 = vcmp.gt.f32.partialorder %v5517_v8, 0.0  ;;  %v5535_v18 = vmul.f32 0.01, %v5517_v8  ;;  %v5478_v61 = vadd.f32 %v5477_v37, %v5406_v10  ;;  %v5209_v39 = vadd.f32 %v9239_v34, %v12133_v48  ;;  %v12921_v6 = vld [vmem:[#allocation33_spill] sm:$0xff] }
 0x4d1   : > { %5561 = vst [vmem:[#allocation2 + $0x1] sm:$0xff] %v5552_v35  ;;  %v9783_v25 = vpop.f32.mrf.mxu1  ;;  %v9371_v28 = vadd.f32 %v9370_v56, %v9369_v53  ;;  %v5350_v52 = vadd.f32 %v9328_v2, %v5278_v41  ;;  %v10390_v34 = vld [vmem:[#allocation7 + $0x518] ss:$12 sps:$4 sm:$0xff]   ;;  %v10392_v41 = vld [vmem:[#allocation7 + $0x5c0] ss:$12 sps:$4 sm:$0xff]  }
 0x4d2   : > { %v9372_v49 = vpop.f32.mrf.mxu0  ;;  %v5544_v46 = vsel %vm5526_vm4, %v5517_v8, %v5535_v18  ;;  %v5518_v32 = vadd.f32 %v5509_v30, %v5478_v61  ;;  %v12915_v30 = vld [vmem:[#allocation30_spill] sm:$0xff] }
 0x4d3   : > { %v5553_v33 = vmul.f32 %v5544_v46, %v11055_v44  ;;  %v5480_v63 = vpop.f32.mrf.mxu1  ;;  %v9285_v40 = vadd.f32 %v12915_v30, %v12914_v29  ;;  %v5417_v10 = vadd.f32 %v9371_v28, %v5345_v45  ;;  %v10504_v18 = vld [vmem:[#allocation2 + $0x29] sm:$0xff]  ;;  %v10391_v45 = vld [vmem:[#allocation7 + $0x6b0] ss:$12 sps:$4 sm:$0xff]  }
 0x4d4   : > { %v9373_v24 = vpop.f32.mrf.mxu0  ;;  %vm5527_vm13 = vcmp.gt.f32.partialorder %v5518_v32, 0.0  ;;  %v5536_v1 = vmul.f32 0.01, %v5518_v32  ;;  %v5481_v16 = vadd.f32 %v5480_v63, %v5409_v31  ;;  %v5512_v61 = vmul.f32 3.0, %v10504_v18  ;;  %v12919_v31 = vld [vmem:[#allocation34_spill] sm:$0xff] }
 0x4d5   : > { %5562 = vst [vmem:[#allocation2 + $0x9] sm:$0xff] %v5553_v33  ;;  %v9784_v22 = vpop.f32.mrf.mxu1  ;;  %v12170_v12 = vpack.c.bf16 %v5553_v33, %v5552_v35  ;;  %v9374_v47 = vadd.f32 %v9373_v24, %v9372_v49  ;;  %v9331_v35 = vadd.f32 %v12917_v57, %v12916_v15  ;;  %v9288_v26 = vadd.f32 %v12920_v38, %v12919_v31  ;;  %v10394_v15 = vld [vmem:[#allocation7 + $0x698] ss:$12 sps:$4 sm:$0xff]  }
 0x4d6   : > { %v9375_v5 = vpop.f32.mrf.mxu0  ;;  %v5545_v62 = vsel %vm5527_vm13, %v5518_v32, %v5536_v1  ;;  %v5519_v3 = vadd.f32 %v5510_v7, %v5481_v16  ;;  %v5281_v32 = vadd.f32 %v9285_v40, %v5209_v39  ;;  %v5214_v22 = vadd.f32 %v12921_v6, %v12133_v48  ;;  %v10393_v39 = vld [vmem:[#allocation7 + $0x500] ss:$12 sps:$4 sm:$0xff]  }
 0x4d7   : > { %v5554_v58 = vmul.f32 %v5545_v62, %v11067_v60  ;;  %v5485_v43 = vpop.f32.mrf.mxu1  ;;  %6143 = vmatprep.mubr.bf16.mxu0 %v12170_v12  ;;  %v5422_v51 = vadd.f32 %v9374_v47, %v5350_v52  ;;  %v10395_v52 = vld [vmem:[#allocation7 + $0x5a8] ss:$12 sps:$4 sm:$0xff]  }
 0x4d8   : > { %v9376_v4 = vpop.f32.mrf.mxu0  ;;  %vm5528_vm2 = vcmp.gt.f32.partialorder %v5519_v3, 0.0  ;;  %v5537_v42 = vmul.f32 0.01, %v5519_v3  ;;  %v5486_v53 = vadd.f32 %v5485_v43, %v5414_v50  ;;  %v5579_v49 = vld [vmem:[#allocation2] sm:$0xff]  ;;  %v5353_v59 = vadd.f32 %v9331_v35, %v5281_v32  ;;  %v10505_v50 = vld [vmem:[#allocation2 + $0x31] sm:$0xff] }
 0x4d9   : > { %5563 = vst [vmem:[#allocation2 + $0x11] sm:$0xff] %v5554_v58  ;;  %v9787_v0 = vpop.f32.mrf.mxu1  ;;  %v9377_v9 = vadd.f32 %v9376_v4, %v9375_v5  ;;  %v5513_v11 = vmul.f32 3.0, %v10505_v50  ;;  %v5286_v2 = vadd.f32 %v9288_v26, %v5214_v22  ;;  %v12927_v32 = vld [vmem:[#allocation20_spill] sm:$0xff] }
 0x4da   : > { %v9378_v36 = vpop.f32.mrf.mxu0  ;;  %v5546_v55 = vsel %vm5528_vm2, %v5519_v3, %v5537_v42  ;;  %v5520_v8 = vadd.f32 %v5511_v14, %v5486_v53  ;;  %v12922_v14 = vld [vmem:[#allocation18_spill] sm:$0xff]  ;;  %v10396_v26 = vld [vmem:[#allocation7 + $0x4e8] ss:$12 sps:$4 sm:$0xff]  }
 0x4db   : > { %v5555_v56 = vmul.f32 %v5546_v55, %v12918_v54  ;;  %v5488_v20 = vpop.f32.mrf.mxu1  ;;  %v5425_v0 = vadd.f32 %v9377_v9, %v5353_v59  ;;  %v10507_v9 = vld [vmem:[#allocation2 + $0x41] sm:$0xff] }
 0x4dc   : > { %v9379_v37 = vpop.f32.mrf.mxu0  ;;  %vm5529_vm7 = vcmp.gt.f32.partialorder %v5520_v8, 0.0  ;;  %v5538_v25 = vmul.f32 0.01, %v5520_v8  ;;  %v5489_v23 = vadd.f32 %v5488_v20, %v5417_v10  ;;  %v5580_v46 = vld [vmem:[#allocation2 + $0x8] sm:$0xff]  ;;  %v10398_v59 = vld [vmem:[#allocation7 + $0x590] ss:$12 sps:$4 sm:$0xff]  }
 0x4dd   : > { %5564 = vst [vmem:[#allocation2 + $0x19] sm:$0xff] %v5555_v56  ;;  %v9788_v24 = vpop.f32.mrf.mxu1  ;;  %v12188_v63 = vpack.c.bf16 %v5580_v46, %v5579_v49  ;;  %v12190_v7 = vpack.c.bf16 %v5555_v56, %v5554_v58  ;;  %v12923_v58 = vld [vmem:[#allocation36_spill] sm:$0xff]  ;;  %v5588_v13 = vld [vmem:[#allocation2 + $0x2] sm:$0xff]  ;;  %v9380_v29 = vadd.f32 %v9379_v37, %v9378_v36  ;;  %v12926_v46 = vmov 0.0  }
 0x4de   : > { %v9381_v33 = vpop.f32.mrf.mxu0  ;;  %v5547_v1 = vsel %vm5529_vm7, %v5520_v8, %v5538_v25  ;;  %v5521_v16 = vadd.f32 %v5512_v61, %v5489_v23  ;;  %v9334_v5 = vadd.f32 %v12143_v19, %v12923_v58  ;;  %v12924_v19 = vld [vmem:[#allocation19_spill] sm:$0xff]  ;;  %v10506_v8 = vld [vmem:[#allocation2 + $0x39] sm:$0xff]  ;;  %v12925_v61 = vmov 0  }
 0x4df   : > { %v5556_v28 = vmul.f32 %v5547_v1, %v12922_v14  ;;  %v5493_v3 = vpop.f32.mrf.mxu1  ;;  %6144 = vmatmul.mubr.bf16.vlgmr.msra.gmra.mxu0 %v12188_v63  ;;  %v5514_v10 = vmul.f32 3.0, %v10506_v8  ;;  %v10397_v33 = vld [vmem:[#allocation7 + $0x680] ss:$12 sps:$4 sm:$0xff]   ;;  %v5515_v1 = vmul.f32 3.0, %v10507_v9  ;;  %v10420_v9 = vld [vmem:[#allocation9 + $0x498] sm:$0xff]  }
 0x4e0   : > { %v9382_v62 = vpop.f32.mrf.mxu0  ;;  %vm5530_vm8 = vcmp.gt.f32.partialorder %v5521_v16, 0.0  ;;  %v5539_v4 = vmul.f32 0.01, %v5521_v16  ;;  %v5494_v43 = vadd.f32 %v5493_v3, %v5422_v51  ;;  %9398 = vmatpush3.bf16.msra.mxu0 %v10388_v21  ;;  %v5589_v48 = vld [vmem:[#allocation2 + $0xa] sm:$0xff]  ;;  %6153 = vmatprep.mubr.bf16.mxu0 %v12190_v7  ;;  %v5358_v57 = vadd.f32 %v9334_v5, %v5286_v2 }
 0x4e1   : > { %5565 = vst [vmem:[#allocation2 + $0x21] sm:$0xff] %v5556_v28  ;;  %v9791_v42 = vpop.f32.mrf.mxu1  ;;  %v12199_v53 = vpack.c.bf16 %v5589_v48, %v5588_v13  ;;  %9399 = vmatprep.subr.bf16.mxu0 %v10389_v17  ;;  %v5581_v20 = vld [vmem:[#allocation2 + $0x10] sm:$0xff]  ;;  %v12928_v3 = vld [vmem:[#allocation22_spill] sm:$0xff] }
 0x4e2   : > { %v5548_v30 = vsel %vm5530_vm8, %v5521_v16, %v5539_v4  ;;  %v5522_v40 = vadd.f32 %v5513_v11, %v5494_v43  ;;  %v5430_v49 = vadd.f32 %v9380_v29, %v5358_v57  ;;  %v10401_v2 = vld [vmem:[#allocation7 + $0x578] ss:$12 sps:$4 sm:$0xff]   ;;  %v10404_v8 = vld [vmem:[#allocation7 + $0x560] ss:$12 sps:$4 sm:$0xff]  }
 0x4e3   : > { %v5557_v47 = vmul.f32 %v5548_v30, %v12924_v19  ;;  %v5496_v55 = vpop.f32.mrf.mxu1  ;;  %6225 = vmatmul.mubr.bf16.vlgmr.msra.gmra.mxu1 %v12199_v53 }
 0x4e4   : > { %vm5531_vm9 = vcmp.gt.f32.partialorder %v5522_v40, 0.0  ;;  %v5540_v35 = vmul.f32 0.01, %v5522_v40  ;;  %v5497_v56 = vadd.f32 %v5496_v55, %v5425_v0  ;;  %9400 = vmatpush3.bf16.msra.mxu0 %v10390_v34  ;;  %9798 = vmatpush3.bf16.msra.mxu1 %v10391_v45  ;;  %v5582_v36 = vld [vmem:[#allocation2 + $0x18] sm:$0xff]  ;;  %v10402_v0 = vld [vmem:[#allocation7 + $0x4b8] ss:$12 sps:$4 sm:$0xff]  }
 0x4e5   : > { %5566 = vst [vmem:[#allocation2 + $0x29] sm:$0xff] %v5557_v47  ;;  %v9792_v37 = vpop.f32.mrf.mxu1  ;;  %v12203_v18 = vpack.c.bf16 %v5582_v36, %v5581_v20  ;;  %6234 = vmatprep.mubr.bf16.mxu1 %v12925_v61  ;;  %9401 = vmatprep.subr.bf16.mxu0 %v10392_v41  ;;  %v12206_v21 = vpack.c.bf16 %v5557_v47, %v5556_v28  ;;  %v5590_v16 = vld [vmem:[#allocation2 + $0x12] sm:$0xff] }
 0x4e6   : > { %v5549_v25 = vsel %vm5531_vm9, %v5522_v40, %v5540_v35  ;;  %v5523_v23 = vadd.f32 %v5514_v10, %v5497_v56  ;;  %9799 = vmatprep.subr.bf16.mxu1 %v12926_v46  ;;  %v10399_v34 = vld [vmem:[#allocation7 + $0x4d0] ss:$12 sps:$4 sm:$0xff]   ;;  %v10400_v45 = vld [vmem:[#allocation7 + $0x668] ss:$12 sps:$4 sm:$0xff]   ;;  %v10406_v35 = vld [vmem:[#allocation7 + $0x638] ss:$12 sps:$4 sm:$0xff]  }
 0x4e7   : > { %v5558_v31 = vmul.f32 %v5549_v25, %v12927_v32  ;;  %v5501_v38 = vpop.f32.mrf.mxu1  ;;  %6154 = vmatmul.mubr.bf16.gmra.mxu0 %v12203_v18  ;;  %v12929_v41 = vld [vmem:[#allocation24_spill] sm:$0xff] }
 0x4e8   : > { %vm5532_vm10 = vcmp.gt.f32.partialorder %v5523_v23, 0.0  ;;  %v5541_v24 = vmul.f32 0.01, %v5523_v23  ;;  %v5502_v17 = vadd.f32 %v5501_v38, %v5430_v49  ;;  %v5591_v51 = vld [vmem:[#allocation2 + $0x1a] sm:$0xff]  ;;  %9402 = vmatpush3.bf16.msra.mxu0 %v10393_v39  ;;  %9800 = vmatpush3.bf16.msra.mxu1 %v10394_v15  ;;  %v10405_v15 = vld [vmem:[#allocation7 + $0x4a0] ss:$12 sps:$4 sm:$0xff]  }
 0x4e9   : > { %5567 = vst [vmem:[#allocation2 + $0x31] sm:$0xff] %v5558_v31  ;;  %v9795_v6 = vpop.f32.mrf.mxu1  ;;  %v12211_v22 = vpack.c.bf16 %v5591_v51, %v5590_v16  ;;  %6163 = vmatprep.mubr.bf16.mxu0 %v12206_v21  ;;  %9403 = vmatprep.subr.bf16.mxu0 %v10395_v52  ;;  %v5583_v5 = vld [vmem:[#allocation2 + $0x20] sm:$0xff]  ;;  %v10407_v56 = vld [vmem:[#allocation7 + $0x548] ss:$12 sps:$4 sm:$0xff]  }
 0x4ea   : > { %v5550_v28 = vsel %vm5532_vm10, %v5523_v23, %v5541_v24  ;;  %v5524_v62 = vadd.f32 %v5515_v1, %v5502_v17  ;;  %9801 = vmatprep.subr.bf16.mxu1 %v12926_v46  ;;  %v10403_v55 = vld [vmem:[#allocation7 + $0x650] ss:$12 sps:$4 sm:$0xff]   ;;  %v10408_v52 = vld [vmem:[#allocation7 + $0x488] ss:$12 sps:$4 sm:$0xff]   ;;  %v10409_v23 = vld [vmem:[#allocation7 + $0x620] ss:$12 sps:$4 sm:$0xff]  }
 0x4eb   : > { %v5559_v50 = vmul.f32 %v5550_v28, %v12928_v3  ;;  %v5504_v11 = vpop.f32.mrf.mxu1  ;;  %6235 = vmatmul.mubr.bf16.gmra.mxu1 %v12211_v22  ;;  %v10410_v38 = vld [vmem:[#allocation7 + $0x608] ss:$12 sps:$4 sm:$0xff]   ;;  %v10418_v24 = vld [vmem:[#allocation9 + $0x4a0] sm:$0xff]   ;;  %v10419_v17 = vld [vmem:[#allocation9 + $0x4d8] sm:$0xff]  }
 0x4ec   : > { %vm5533_vm1 = vcmp.gt.f32.partialorder %v5524_v62, 0.0  ;;  %v5542_v58 = vmul.f32 0.01, %v5524_v62  ;;  %v5584_v4 = vld [vmem:[#allocation2 + $0x28] sm:$0xff]  ;;  %9404 = vmatpush3.bf16.msra.mxu0 %v10396_v26  ;;  %9802 = vmatpush3.bf16.msra.mxu1 %v10397_v33  ;;  %v10421_v1 = vld [vmem:[#allocation9 + $0x4d0] sm:$0xff]   ;;  %v10423_v51 = vld [vmem:[#allocation9 + $0x4c8] sm:$0xff]  }
 0x4ed   : > { %5568 = vst [vmem:[#allocation2 + $0x39] sm:$0xff] %v5559_v50  ;;  %v9796_v43 = vpop.f32.mrf.mxu1  ;;  %v12217_v13 = vpack.c.bf16 %v5584_v4, %v5583_v5  ;;  %6244 = vmatprep.mubr.bf16.mxu1 %v12925_v61  ;;  %9405 = vmatprep.subr.bf16.mxu0 %v10398_v59  ;;  %v12220_v48 = vpack.c.bf16 %v5559_v50, %v5558_v31  ;;  %v5592_v30 = vld [vmem:[#allocation2 + $0x22] sm:$0xff]  ;;  %v10422_v16 = vld [vmem:[#allocation9 + $0x490] sm:$0xff]   ;;  %v10424_v6 = vld [vmem:[#allocation9 + $0x488] sm:$0xff]  }
 0x4ee   : > { %v5551_v42 = vsel %vm5533_vm1, %v5524_v62, %v5542_v58  ;;  %9803 = vmatprep.subr.bf16.mxu1 %v12926_v46  ;;  %v10426_v59 = vld [vmem:[#allocation9 + $0x480] sm:$0xff]   ;;  %v10427_v28 = vld [vmem:[#allocation9 + $0x578] sm:$0xff]   ;;  %v10429_v50 = vld [vmem:[#allocation9 + $0x570] sm:$0xff]  }
 0x4ef   : > { %v5560_v29 = vmul.f32 %v5551_v42, %v12929_v41  ;;  %6164 = vmatmul.mubr.bf16.gmra.mxu0 %v12217_v13  ;;  %v10428_v62 = vld [vmem:[#allocation9 + $0x538] sm:$0xff]   ;;  %v10430_v11 = vld [vmem:[#allocation9 + $0x530] sm:$0xff]   ;;  %v10433_v58 = vld [vmem:[#allocation9 + $0x560] sm:$0xff]  }
 0x4f0   : > { %v5593_v40 = vld [vmem:[#allocation2 + $0x2a] sm:$0xff]  ;;  %9406 = vmatpush3.bf16.msra.mxu0 %v10399_v34  ;;  %9804 = vmatpush3.bf16.msra.mxu1 %v10400_v45  ;;  %v10435_v4 = vld [vmem:[#allocation9 + $0x558] sm:$0xff]  }
 0x4f1   : > { %5569 = vst [vmem:[#allocation2 + $0x41] sm:$0xff] %v5560_v29  ;;  %v5605_v47 = vpack.c.bf16 %v5593_v40, %v5592_v30  ;;  %6173 = vmatprep.mubr.bf16.mxu0 %v12220_v48  ;;  %9407 = vmatprep.subr.bf16.mxu0 %v10401_v2  ;;  %v5585_v10 = vld [vmem:[#allocation2 + $0x30] sm:$0xff]  ;;  %v5610_v20 = vpack.c.bf16 %v5560_v29, %v5560_v29  ;;  %v10434_v5 = vld [vmem:[#allocation9 + $0x520] sm:$0xff]   ;;  %v10436_v43 = vld [vmem:[#allocation9 + $0x518] sm:$0xff]  }
 0x4f2   : > { %9805 = vmatprep.subr.bf16.mxu1 %v12926_v46  ;;  %v10431_v34 = vld [vmem:[#allocation9 + $0x568] sm:$0xff]   ;;  %v10440_v2 = vld [vmem:[#allocation9 + $0x510] sm:$0xff]   ;;  %v10448_v30 = vld [vmem:[#allocation9 + $0x540] sm:$0xff]  }
 0x4f3   : > { %6245 = vmatmul.mubr.bf16.gmra.mxu1 %v5605_v47  ;;  %v10432_v45 = vld [vmem:[#allocation9 + $0x528] sm:$0xff]   ;;  %v10450_v40 = vld [vmem:[#allocation9 + $0x500] sm:$0xff]  }
 0x4f4   : > { %v5586_v39 = vld [vmem:[#allocation2 + $0x38] sm:$0xff]  ;;  %6254 = vmatprep.mubr.bf16.mxu1 %v12925_v61  ;;  %9408 = vmatpush3.bf16.msra.mxu0 %v10402_v0  ;;  %v10443_v42 = vld [vmem:[#allocation9 + $0x548] sm:$0xff]   ;;  %v10454_v0 = vld [vmem:[#allocation9 + $0x678] sm:$0xff]  }
 0x4f5   : > { %v5606_v57 = vpack.c.bf16 %v5586_v39, %v5585_v10  ;;  %9806 = vmatpush3.bf16.msra.mxu1 %v10403_v55  ;;  %9409 = vmatprep.subr.bf16.mxu0 %v10404_v8  ;;  %v5594_v36 = vld [vmem:[#allocation2 + $0x32] sm:$0xff]  ;;  %v12930_v55 = vld [vmem:[#allocation14_spill] sm:$0xff] }
 0x4f6   : > { %9807 = vmatprep.subr.bf16.mxu1 %v12926_v46  ;;  %v10445_v29 = vld [vmem:[#allocation9 + $0x508] sm:$0xff]  }
 0x4f7   : > { %6174 = vmatmul.mubr.bf16.gmra.mxu0 %v5606_v57  ;;  %v12931_v39 = vld [vmem:[#allocation15_spill] sm:$0xff] }
 0x4f8   : > { %6183 = vmatprep.mubr.bf16.mxu0 %v5610_v20  ;;  %v5595_v37 = vld [vmem:[#allocation2 + $0x3a] sm:$0xff]  ;;  %9410 = vmatpush3.bf16.msra.mxu0 %v10405_v15  ;;  %v5596_v26 = vld [vmem:[#allocation2 + $0x42] sm:$0xff] }
 0x4f9   : > { %v5608_v25 = vpack.c.bf16 %v5595_v37, %v5594_v36  ;;  %9808 = vmatpush3.bf16.msra.mxu1 %v10406_v35  ;;  %9411 = vmatprep.subr.bf16.mxu0 %v10407_v56  ;;  %v5587_v49 = vld [vmem:[#allocation2 + $0x40] sm:$0xff]  ;;  %v5611_v33 = vpack.c.bf16 %v5596_v26, %v5596_v26 }
 0x4fa   : > { %9809 = vmatprep.subr.bf16.mxu1 %v12926_v46  ;;  %v5609_v31 = vpack.c.bf16 %v5587_v49, %v5587_v49 }
 0x4fb   : > { %6255 = vmatmul.mubr.bf16.gmra.mxu1 %v5608_v25 }
 0x4fc   : > { %6264 = vmatprep.mubr.bf16.mxu1 %v12925_v61  ;;  %9412 = vmatpush3.bf16.msra.mxu0 %v10408_v52  ;;  %v10416_v61 = vld [vmem:[#allocation9 + $0x4a8] sm:$0xff]  }
 0x4fd   : > { %9810 = vmatpush3.bf16.msra.mxu1 %v10409_v23 }
 0x4fe   : > { %9811 = vmatprep.subr.bf16.mxu1 %v12926_v46 }
 0x4ff   : > { %6184 = vmatmul.mubr.bf16.gmra.mxu0 %v5609_v31 }
 0x500   : > { %6305 = vmatprep.mubr.bf16.mxu0 %v12170_v12  ;;  %v10411_v12 = vld [vmem:[#allocation9 + $0x4f8] sm:$0xff]  }
 0x501   : > { %9812 = vmatpush3.bf16.msra.mxu1 %v10410_v38  ;;  %9456 = vmatprep.subr.bf16.mxu0 %v10411_v12 }
 0x502   : > { %9502 = vmatprep.subr.bf16.mxu1 %v10427_v28 }
 0x503   : > { %6265 = vmatmul.mubr.bf16.gmra.mxu1 %v5611_v33 }
 0x504   : > { %9813 = vmatprep.mubr.msk.bf16.mxu1 %vm10678_vm0, %v12926_v46 }
 0x507   : > { %6306 = vmatmul.mubr.bf16.vlgmr.msra.gmra.mxu0 %v12188_v63  ;;  %v10412_v63 = vld [vmem:[#allocation9 + $0x4b8] sm:$0xff]  }
 0x508   : > { %6313 = vmatprep.mubr.bf16.mxu0 %v12190_v7  ;;  %9457 = vmatpush3.bf16.msra.mxu0 %v10412_v63  ;;  %v10413_v7 = vld [vmem:[#allocation9 + $0x4f0] sm:$0xff]  }
 0x509   : > { %9458 = vmatprep.subr.bf16.mxu0 %v10413_v7 }
 0x50b   : > { %9814 = vmatmul.mubr.bf16.vlgmr.msra.gmra.mxu1 %v12199_v53  ;;  %v10414_v53 = vld [vmem:[#allocation9 + $0x4b0] sm:$0xff]  }
 0x50c   : > { %9817 = vmatprep.mubr.msk.bf16.mxu1 %vm10678_vm0, %v12926_v46  ;;  %9459 = vmatpush3.bf16.msra.mxu0 %v10414_v53 }
 0x50d   : > { %9503 = vmatpush3.bf16.msra.mxu1 %v10428_v62 }
 0x50e   : > { %9504 = vmatprep.subr.bf16.mxu1 %v10429_v50 }
 0x50f   : > { %6314 = vmatmul.mubr.bf16.gmra.mxu0 %v12203_v18  ;;  %v10415_v18 = vld [vmem:[#allocation9 + $0x4e8] sm:$0xff]  }
 0x510   : > { %6321 = vmatprep.mubr.bf16.mxu0 %v12206_v21  ;;  %9460 = vmatprep.subr.bf16.mxu0 %v10415_v18  ;;  %v10417_v21 = vld [vmem:[#allocation9 + $0x4e0] sm:$0xff]  }
 0x511   : > { %9461 = vmatpush3.bf16.msra.mxu0 %v10416_v61  ;;  %9505 = vmatpush3.bf16.msra.mxu1 %v10430_v11 }
 0x512   : > { %9462 = vmatprep.subr.bf16.mxu0 %v10417_v21  ;;  %9506 = vmatprep.subr.bf16.mxu1 %v10431_v34 }
 0x513   : > { %9818 = vmatmul.mubr.bf16.gmra.mxu1 %v12211_v22  ;;  %v10425_v22 = vld [vmem:[#allocation9 + $0x4c0] sm:$0xff]  }
 0x514   : > { %9821 = vmatprep.mubr.msk.bf16.mxu1 %vm10678_vm0, %v12926_v46 }
 0x515   : > { %9463 = vmatpush3.bf16.msra.mxu0 %v10418_v24  ;;  %9507 = vmatpush3.bf16.msra.mxu1 %v10432_v45 }
 0x516   : > { %9464 = vmatprep.subr.bf16.mxu0 %v10419_v17  ;;  %9508 = vmatprep.subr.bf16.mxu1 %v10433_v58 }
 0x517   : > { %6322 = vmatmul.mubr.bf16.gmra.mxu0 %v12217_v13  ;;  %v10437_v13 = vld [vmem:[#allocation9 + $0x5f8] sm:$0xff]  }
 0x518   : > { %6329 = vmatprep.mubr.bf16.mxu0 %v12220_v48  ;;  %v10439_v48 = vld [vmem:[#allocation9 + $0x550] sm:$0xff]  }
 0x519   : > { %9465 = vmatpush3.bf16.msra.mxu0 %v10420_v9  ;;  %9509 = vmatpush3.bf16.msra.mxu1 %v10434_v5 }
 0x51a   : > { %9466 = vmatprep.subr.bf16.mxu0 %v10421_v1  ;;  %9510 = vmatprep.subr.bf16.mxu1 %v10435_v4 }
 0x51b   : > { %9822 = vmatmul.mubr.bf16.gmra.mxu1 %v5605_v47  ;;  %v12254_v47 = vld [vmem:[%s12768_s5 + $0x6] sm:$0x7] }
 0x51c   : > { %9825 = vmatprep.mubr.msk.bf16.mxu1 %vm10678_vm0, %v12926_v46  ;;  %v12258_v8 = vrot.slane %v12254_v47, %v12930_v55  ;;  %v12262_v15 = vrot.slane %v12254_v47, %v12931_v39 }
 0x51d   : > { %9467 = vmatpush3.bf16.msra.mxu0 %v10422_v16  ;;  %9511 = vmatpush3.bf16.msra.mxu1 %v10436_v43 }
 0x51e   : > { %9468 = vmatprep.subr.bf16.mxu0 %v10423_v51  ;;  %9512 = vmatprep.subr.bf16.mxu1 %v10439_v48 }
 0x51f   : > { %6330 = vmatmul.mubr.bf16.gmra.mxu0 %v5606_v57 }
 0x520   : > { %6337 = vmatprep.mubr.bf16.mxu0 %v5610_v20 }
 0x521   : > { %9469 = vmatpush3.bf16.msra.mxu0 %v10424_v6  ;;  %9513 = vmatpush3.bf16.msra.mxu1 %v10440_v2 }
 0x522   : > { %9470 = vmatprep.subr.bf16.mxu0 %v10425_v22  ;;  %9514 = vmatprep.subr.bf16.mxu1 %v10443_v42 }
 0x523   : > { %9826 = vmatmul.mubr.bf16.gmra.mxu1 %v5608_v25 }
 0x524   : > { %9829 = vmatprep.mubr.msk.bf16.mxu1 %vm10678_vm0, %v12926_v46 }
 0x525   : > { %9471 = vmatpush3.bf16.msra.mxu0 %v10426_v59  ;;  %9515 = vmatpush3.bf16.msra.mxu1 %v10445_v29 }
 0x526   : > { %9548 = vmatprep.subr.bf16.mxu0 %v10437_v13  ;;  %9516 = vmatprep.subr.bf16.mxu1 %v10448_v30 }
 0x527   : > { %6338 = vmatmul.mubr.bf16.gmra.mxu0 %v5609_v31 }
 0x529   : > { %9517 = vmatpush3.bf16.msra.mxu1 %v10450_v40 }
 0x52a   : > { %9594 = vmatprep.subr.bf16.mxu1 %v10454_v0 }
 0x52b   : > { %9830 = vmatmul.mubr.bf16.gmra.mxu1 %v5611_v33 }
 0x59f   : > { %v6145_v10 = vpop.f32.mrf.mxu0 }
 0x5a0   : > { %v6146_v35 = vadd.f32 %v6145_v10, %v12258_v8 }
 0x5a1   : > { %v6147_v57 = vpop.f32.mrf.mxu0 }
 0x5a2   : > { %v6148_v36 = vadd.f32 %v6147_v57, %v12262_v15 }
 0x5a3   : > { %v6226_v56 = vpop.f32.mrf.mxu1  ;;  %v6149_v20 = vpop.f32.mrf.mxu0 }
 0x5a4   : > { %v6227_v37 = vadd.f32 %v6226_v56, %v6146_v35  ;;  %v6150_v49 = vadd.f32 %v6149_v20, %v12258_v8 }
 0x5a5   : > { %v6228_v52 = vpop.f32.mrf.mxu1  ;;  %v6151_v25 = vpop.f32.mrf.mxu0 }
 0x5a6   : > { %vm6417_vm4 = vcmp.gt.f32.partialorder %v6227_v37, 0.0  ;;  %v6444_v23 = vmul.f32 0.01, %v6227_v37  ;;  %v6229_v31 = vadd.f32 %v6228_v52, %v6148_v36  ;;  %v6152_v38 = vadd.f32 %v6151_v25, %v12262_v15 }
 0x5a7   : > { %v6230_v26 = vpop.f32.mrf.mxu1  ;;  %v6155_v33 = vpop.f32.mrf.mxu0 }
 0x5a8   : > { %v6471_v12 = vsel %vm6417_vm4, %v6227_v37, %v6444_v23  ;;  %vm6418_vm13 = vcmp.gt.f32.partialorder %v6229_v31, 0.0  ;;  %v6445_v63 = vmul.f32 0.01, %v6229_v31  ;;  %v6231_v7 = vadd.f32 %v6230_v26, %v6150_v49 }
 0x5a9   : > { %v6156_v53 = vadd.f32 %v6155_v33, %v12258_v8  ;;  %v6232_v18 = vpop.f32.mrf.mxu1  ;;  %v6157_v61 = vpop.f32.mrf.mxu0  ;;  %v6498_v9 = vmul.f32 %v6471_v12, %v11042_v27 }
 0x5aa   : > { %v6472_v21 = vsel %vm6418_vm13, %v6229_v31, %v6445_v63  ;;  %vm6420_vm2 = vcmp.gt.f32.partialorder %v6231_v7, 0.0  ;;  %v6447_v24 = vmul.f32 0.01, %v6231_v7  ;;  %v6233_v17 = vadd.f32 %v6232_v18, %v6152_v38  ;;  %v6780_v31 = vld [vmem:[#allocation3] sm:$0xff] }
 0x5ab   : > { %v6499_v1 = vmul.f32 %v6472_v21, %v11042_v27  ;;  %v6158_v16 = vadd.f32 %v6157_v61, %v12262_v15  ;;  %v6236_v51 = vpop.f32.mrf.mxu1  ;;  %v6159_v6 = vpop.f32.mrf.mxu0 }
 0x5ac   : > { %v6474_v22 = vsel %vm6420_vm2, %v6231_v7, %v6447_v24  ;;  %vm6421_vm7 = vcmp.gt.f32.partialorder %v6233_v17, 0.0  ;;  %v6448_v59 = vmul.f32 0.01, %v6233_v17  ;;  %v6237_v28 = vadd.f32 %v6236_v51, %v6156_v53 }
 0x5ad   : > { %v8865_v62 = vpack.c.bf16 %v6499_v1, %v6498_v9  ;;  %v6160_v50 = vadd.f32 %v6159_v6, %v12258_v8  ;;  %v6238_v11 = vpop.f32.mrf.mxu1  ;;  %v6161_v34 = vpop.f32.mrf.mxu0  ;;  %v6501_v43 = vmul.f32 %v6474_v22, %v11055_v44 }
 0x5ae   : > { %v6475_v45 = vsel %vm6421_vm7, %v6233_v17, %v6448_v59  ;;  %vm6423_vm8 = vcmp.gt.f32.partialorder %v6237_v28, 0.0  ;;  %v6450_v58 = vmul.f32 0.01, %v6237_v28  ;;  %v6239_v5 = vadd.f32 %v6238_v11, %v6158_v16 }
 0x5af   : > { %v6601_v4 = vshrl.u32 %v8865_v62, 16  ;;  %v6502_v13 = vmul.f32 %v6475_v45, %v11055_v44  ;;  %v6162_v48 = vadd.f32 %v6161_v34, %v12262_v15  ;;  %v6240_v2 = vpop.f32.mrf.mxu1  ;;  %v6165_v42 = vpop.f32.mrf.mxu0  ;;  %v6604_v55 = vshll.u32 %v8865_v62, 16 }
 0x5b0   : > { %v6477_v29 = vsel %vm6423_vm8, %v6237_v28, %v6450_v58  ;;  %vm6424_vm9 = vcmp.gt.f32.partialorder %v6239_v5, 0.0  ;;  %v6451_v30 = vmul.f32 0.01, %v6239_v5  ;;  %v6241_v40 = vadd.f32 %v6240_v2, %v6160_v50 }
 0x5b1   : > { %v6603_v0 = vrot.slane %v6601_v4, 7  ;;  %v8867_v10 = vpack.c.bf16 %v6502_v13, %v6501_v43  ;;  %v6242_v39 = vpop.f32.mrf.mxu1  ;;  %v6167_v57 = vpop.f32.mrf.mxu0  ;;  %v6504_v52 = vmul.f32 %v6477_v29, %v11067_v60  ;;  %v6166_v25 = vadd.f32 %v6165_v42, %v12258_v8 }
 0x5b2   : > { %v6478_v35 = vsel %vm6424_vm9, %v6239_v5, %v6451_v30  ;;  %vm6426_vm10 = vcmp.gt.f32.partialorder %v6241_v40, 0.0  ;;  %v6453_v56 = vmul.f32 0.01, %v6241_v40  ;;  %v6243_v20 = vadd.f32 %v6242_v39, %v6162_v48 }
 0x5b3   : > { %v6606_v36 = vor.u32 %v6604_v55, %v6603_v0  ;;  %v6616_v37 = vshrl.u32 %v8867_v10, 16  ;;  %v6246_v23 = vpop.f32.mrf.mxu1  ;;  %v6169_v49 = vpop.f32.mrf.mxu0  ;;  %v6505_v38 = vmul.f32 %v6478_v35, %v11067_v60  ;;  %v6619_v53 = vshll.u32 %v8867_v10, 16 }
 0x5b4   : > { %v6480_v26 = vsel %vm6426_vm10, %v6241_v40, %v6453_v56  ;;  %vm6427_vm1 = vcmp.gt.f32.partialorder %v6243_v20, 0.0  ;;  %v6454_v33 = vmul.f32 0.01, %v6243_v20  ;;  %v6168_v18 = vadd.f32 %v6167_v57, %v12262_v15 }
 0x5b5   : > { %v12281_v63 = vsel %vm11207_vm14, %v6606_v36, %v6780_v31  ;;  %v6618_v7 = vrot.slane %v6616_v37, 7  ;;  %v6248_v61 = vpop.f32.mrf.mxu1  ;;  %v6171_v21 = vpop.f32.mrf.mxu0  ;;  %v6614_v24 = vrot.slane %v6603_v0, 4  ;;  %v8869_v17 = vpack.c.bf16 %v6505_v38, %v6504_v52 }
 0x5b6   : > { %6782 = vst [vmem:[#allocation3] sm:$0xff] %v12281_v63  ;;  %v6481_v9 = vsel %vm6427_vm1, %v6243_v20, %v6454_v33  ;;  %v6247_v1 = vadd.f32 %v6246_v23, %v6166_v25  ;;  %v6507_v51 = vmul.f32 %v6480_v26, %v12918_v54  ;;  %v6249_v22 = vadd.f32 %v6248_v61, %v6168_v18 }
 0x5b7   : > { %v6621_v16 = vor.u32 %v6619_v53, %v6618_v7  ;;  %v6508_v6 = vmul.f32 %v6481_v9, %v12918_v54  ;;  %v6250_v59 = vpop.f32.mrf.mxu1  ;;  %v6175_v28 = vpop.f32.mrf.mxu0  ;;  %v6634_v62 = vshrl.u32 %v8869_v17, 16  ;;  %v6170_v11 = vadd.f32 %v6169_v49, %v12258_v8 }
 0x5b8   : > { %vm6429_vm14 = vcmp.gt.f32.partialorder %v6247_v1, 0.0  ;;  %v6456_v50 = vmul.f32 0.01, %v6247_v1  ;;  %vm6430_vm4 = vcmp.gt.f32.partialorder %v6249_v22, 0.0  ;;  %v6457_v5 = vmul.f32 0.01, %v6249_v22 }
 0x5b9   : > { %v12290_v45 = vsel %vm11184_vm12, %v6614_v24, %v6621_v16  ;;  %v8871_v58 = vpack.c.bf16 %v6508_v6, %v6507_v51  ;;  %v6252_v4 = vpop.f32.mrf.mxu1  ;;  %v6177_v43 = vpop.f32.mrf.mxu0  ;;  %v6636_v13 = vrot.slane %v6634_v62, 7  ;;  %v6637_v48 = vshll.u32 %v8869_v17, 16 }
 0x5ba   : > { %v6483_v2 = vsel %vm6429_vm14, %v6247_v1, %v6456_v50  ;;  %v6251_v42 = vadd.f32 %v6250_v59, %v6170_v11  ;;  %v6632_v29 = vrot.slane %v6618_v7, 4  ;;  %v6484_v40 = vsel %vm6430_vm4, %v6249_v22, %v6457_v5 }
 0x5bb   : > { %v6652_v30 = vshrl.u32 %v8871_v58, 16  ;;  %v6172_v0 = vadd.f32 %v6171_v21, %v12262_v15  ;;  %v6256_v55 = vpop.f32.mrf.mxu1  ;;  %v6179_v10 = vpop.f32.mrf.mxu0  ;;  %v6639_v39 = vor.u32 %v6637_v48, %v6636_v13  ;;  %v6510_v57 = vmul.f32 %v6483_v2, %v12922_v14 }
 0x5bc   : > { %v6511_v35 = vmul.f32 %v6484_v40, %v12922_v14  ;;  %vm6432_vm13 = vcmp.gt.f32.partialorder %v6251_v42, 0.0  ;;  %v6655_v20 = vshll.u32 %v8871_v58, 16  ;;  %v6459_v36 = vmul.f32 0.01, %v6251_v42 }
 0x5bd   : > { %v6654_v56 = vrot.slane %v6652_v30, 7  ;;  %v6253_v37 = vadd.f32 %v6252_v4, %v6172_v0  ;;  %v6258_v52 = vpop.f32.mrf.mxu1  ;;  %v6181_v25 = vpop.f32.mrf.mxu0  ;;  %v12297_v23 = vsel %vm11184_vm12, %v6632_v29, %v6639_v39  ;;  %v6650_v49 = vrot.slane %v6636_v13, 4 }
 0x5be   : > { %v8873_v31 = vpack.c.bf16 %v6511_v35, %v6510_v57  ;;  %v6176_v38 = vadd.f32 %v6175_v28, %v12258_v8  ;;  %v6486_v33 = vsel %vm6432_vm13, %v6251_v42, %v6459_v36  ;;  %v6178_v12 = vadd.f32 %v6177_v43, %v12262_v15 }
 0x5bf   : > { %v6657_v26 = vor.u32 %v6655_v20, %v6654_v56  ;;  %vm6433_vm2 = vcmp.gt.f32.partialorder %v6253_v37, 0.0  ;;  %v6260_v7 = vpop.f32.mrf.mxu1  ;;  %v6185_v53 = vpop.f32.mrf.mxu0  ;;  %v6460_v21 = vmul.f32 0.01, %v6253_v37  ;;  %v6180_v24 = vadd.f32 %v6179_v10, %v12258_v8 }
 0x5c0   : > { %v6670_v18 = vshrl.u32 %v8873_v31, 16  ;;  %v6673_v61 = vshll.u32 %v8873_v31, 16  ;;  %v6513_v9 = vmul.f32 %v6486_v33, %v12924_v19  ;;  %v6257_v1 = vadd.f32 %v6256_v55, %v6176_v38 }
 0x5c1   : > { %v12304_v17 = vsel %vm11184_vm12, %v6650_v49, %v6657_v26  ;;  %v6259_v16 = vadd.f32 %v6258_v52, %v6178_v12  ;;  %v6262_v51 = vpop.f32.mrf.mxu1  ;;  %v6187_v6 = vpop.f32.mrf.mxu0  ;;  %v6487_v59 = vsel %vm6433_vm2, %v6253_v37, %v6460_v21  ;;  %v6182_v28 = vadd.f32 %v6181_v25, %v12262_v15 }
 0x5c2   : > { %v6672_v22 = vrot.slane %v6670_v18, 7  ;;  %v6261_v62 = vadd.f32 %v6260_v7, %v6180_v24  ;;  %v6514_v50 = vmul.f32 %v6487_v59, %v12924_v19  ;;  %vm6435_vm7 = vcmp.gt.f32.partialorder %v6257_v1, 0.0  ;;  %v12934_v59 = vld [vmem:[#allocation16_spill] sm:$0xff] }
 0x5c3   : > { %v6462_v11 = vmul.f32 0.01, %v6257_v1  ;;  %vm6436_vm8 = vcmp.gt.f32.partialorder %v6259_v16, 0.0  ;;  %v6266_v58 = vpop.f32.mrf.mxu1  ;;  %v6189_v5 = vpop.f32.mrf.mxu0  ;;  %v6668_v4 = vrot.slane %v6654_v56, 4  ;;  %v6463_v13 = vmul.f32 0.01, %v6259_v16 }
 0x5c4   : > { %v6675_v43 = vor.u32 %v6673_v61, %v6672_v22  ;;  %vm6438_vm9 = vcmp.gt.f32.partialorder %v6261_v62, 0.0  ;;  %v8875_v48 = vpack.c.bf16 %v6514_v50, %v6513_v9  ;;  %v6465_v42 = vmul.f32 0.01, %v6261_v62  ;;  %v10441_v61 = vld [vmem:[#allocation9 + $0x5f0] sm:$0xff]  }
 0x5c5   : > { %v6489_v2 = vsel %vm6435_vm7, %v6257_v1, %v6462_v11  ;;  %v6263_v29 = vadd.f32 %v6262_v51, %v6182_v28  ;;  %v6268_v30 = vpop.f32.mrf.mxu1  ;;  %v6190_v40 = vpop.f32.mrf.mxu0  ;;  %v6490_v10 = vsel %vm6436_vm8, %v6259_v16, %v6463_v13  ;;  %v6186_v39 = vadd.f32 %v6185_v53, %v12258_v8 }
 0x5c6   : > { %v12311_v0 = vsel %vm11184_vm12, %v6668_v4, %v6675_v43  ;;  %v6516_v55 = vmul.f32 %v6489_v2, %v12927_v32  ;;  %v6688_v57 = vshrl.u32 %v8875_v48, 16  ;;  %v6691_v35 = vshll.u32 %v8875_v48, 16  ;;  %v10442_v48 = vld [vmem:[#allocation9 + $0x5b0] sm:$0xff]  }
 0x5c7   : > { %v6517_v56 = vmul.f32 %v6490_v10, %v12927_v32  ;;  %v6188_v20 = vadd.f32 %v6187_v6, %v12262_v15  ;;  %v6270_v36 = vpop.f32.mrf.mxu1  ;;  %v9413_v37 = vpop.f32.mrf.mxu0  ;;  %v6492_v52 = vsel %vm6438_vm9, %v6261_v62, %v6465_v42  ;;  %vm6439_vm10 = vcmp.gt.f32.partialorder %v6263_v29, 0.0  ;;  %v10438_v15 = vld [vmem:[#allocation9 + $0x5b8] sm:$0xff]  }
 0x5c8   : > { %v6466_v25 = vmul.f32 0.01, %v6263_v29  ;;  %v6267_v49 = vadd.f32 %v6266_v58, %v6186_v39  ;;  %v6690_v31 = vrot.slane %v6688_v57, 7  ;;  %v12320_v26 = vcombine.low %v12281_v63, %v12290_v45 }
 0x5c9   : > { %v8877_v38 = vpack.c.bf16 %v6517_v56, %v6516_v55  ;;  %v12324_v8 = vcombine.high %v12281_v63, %v12290_v45  ;;  %v6271_v33 = vpop.f32.mrf.mxu1  ;;  %v9414_v12 = vpop.f32.mrf.mxu0  ;;  %v6269_v18 = vadd.f32 %v6268_v30, %v6188_v20  ;;  %v6686_v21 = vrot.slane %v6672_v22, 4  ;;  %v10444_v55 = vld [vmem:[#allocation9 + $0x5e8] sm:$0xff]  }
 0x5ca   : > { %v6493_v7 = vsel %vm6439_vm10, %v6263_v29, %v6466_v25  ;;  %vm6441_vm1 = vcmp.gt.f32.partialorder %v6267_v49, 0.0  ;;  %v6468_v53 = vmul.f32 0.01, %v6267_v49  ;;  %v6693_v24 = vor.u32 %v6691_v35, %v6690_v31 }
 0x5cb   : > { %v6706_v9 = vshrl.u32 %v8877_v38, 16  ;;  %7712 = vmatprep.mubr.bf16.mxu0 %v12324_v8  ;;  %v6379_v1 = vpop.f32.mrf.mxu1  ;;  %v9416_v16 = vpop.f32.mrf.mxu0  ;;  %v6519_v51 = vmul.f32 %v6492_v52, %v12928_v3  ;;  %v6520_v63 = vmul.f32 %v6493_v7, %v12928_v3  ;;  %v12332_v28 = vrot.slane %v12254_v47, %v12934_v59 }
 0x5cc   : > { %v6495_v6 = vsel %vm6441_vm1, %v6267_v49, %v6468_v53  ;;  %7713 = vmatmul.mubr.bf16.vlgmr.msra.gmra.mxu0 %v12320_v26  ;;  %v12336_v22 = vsel %vm11184_vm12, %v6686_v21, %v6693_v24  ;;  %v6709_v50 = vshll.u32 %v8877_v38, 16  ;;  %vm6442_vm14 = vcmp.gt.f32.partialorder %v6269_v18, 0.0  ;;  %v10446_v38 = vld [vmem:[#allocation9 + $0x5a8] sm:$0xff]  }
 0x5cd   : > { %v6708_v62 = vrot.slane %v6706_v9, 7  ;;  %v9815_v11 = vpop.f32.mrf.mxu1  ;;  %v9417_v58 = vpop.f32.mrf.mxu0  ;;  %9549 = vmatpush3.bf16.msra.mxu0 %v10438_v15  ;;  %v6704_v5 = vrot.slane %v6690_v31, 4  ;;  %v8879_v4 = vpack.c.bf16 %v6520_v63, %v6519_v51  ;;  %v6469_v43 = vmul.f32 0.01, %v6269_v18 }
 0x5ce   : > { %v9415_v13 = vadd.f32 %v9414_v12, %v9413_v37  ;;  %9550 = vmatprep.subr.bf16.mxu0 %v10441_v61  ;;  %v6522_v47 = vmul.f32 %v6495_v6, %v12929_v41  ;;  %v12341_v42 = vcombine.high %v12297_v23, %v12304_v17  ;;  %v12345_v29 = vcombine.low %v12297_v23, %v12304_v17  ;;  %v10447_v61 = vld [vmem:[#allocation9 + $0x5e0] sm:$0xff]  }
 0x5cf   : > { %v6711_v2 = vor.u32 %v6709_v50, %v6708_v62  ;;  %v6382_v30 = vpop.f32.mrf.mxu1  ;;  %v9419_v40 = vpop.f32.mrf.mxu0  ;;  %v6722_v10 = vrot.slane %v6708_v62, 4  ;;  %v6724_v39 = vshrl.u32 %v8879_v4, 16  ;;  %v6727_v57 = vshll.u32 %v8879_v4, 16 }
 0x5d0   : > { %v6496_v35 = vsel %vm6442_vm14, %v6269_v18, %v6469_v43  ;;  %v6308_v36 = vadd.f32 %v9415_v13, %v12332_v28  ;;  %7720 = vmatprep.mubr.bf16.mxu0 %v12341_v42  ;;  %v9418_v23 = vadd.f32 %v9417_v58, %v9416_v16  ;;  %v6914_v25 = vshrl.u32 %v12320_v26, 16  ;;  %v10449_v58 = vld [vmem:[#allocation9 + $0x5a0] sm:$0xff]  }
 0x5d1   : > { %v12350_v56 = vsel %vm11184_vm12, %v6704_v5, %v6711_v2  ;;  %v6523_v20 = vmul.f32 %v6496_v35, %v12929_v41  ;;  %v9816_v17 = vpop.f32.mrf.mxu1  ;;  %v9420_v37 = vpop.f32.mrf.mxu0  ;;  %v6726_v52 = vrot.slane %v6724_v39, 7  ;;  %v6916_v49 = vshll.u32 %v12320_v26, 16  ;;  %9551 = vmatpush3.bf16.msra.mxu0 %v10442_v48 }
 0x5d2   : > { %v6921_v31 = vshll.u32 %v12345_v29, 16  ;;  %v6380_v12 = vadd.f32 %v6379_v1, %v6308_v36  ;;  %v6311_v15 = vadd.f32 %v9418_v23, %v12332_v28  ;;  %v9421_v7 = vadd.f32 %v9420_v37, %v9419_v40  ;;  %9552 = vmatprep.subr.bf16.mxu0 %v10444_v55 }
 0x5d3   : > { %v8881_v33 = vpack.c.bf16 %v6523_v20, %v6522_v47  ;;  %v6387_v53 = vpop.f32.mrf.mxu1  ;;  %v9422_v18 = vpop.f32.mrf.mxu0  ;;  %v6729_v21 = vor.u32 %v6727_v57, %v6726_v52  ;;  %v6740_v24 = vrot.slane %v6726_v52, 4  ;;  %v6918_v9 = vrot.slane %v6916_v49, 1  ;;  %v10451_v47 = vld [vmem:[#allocation9 + $0x5d8] sm:$0xff]  }
 0x5d4   : > { %7721 = vmatmul.mubr.bf16.gmra.mxu0 %v12345_v29  ;;  %v12360_v16 = vrot.slane %v6921_v31, 1  ;;  %vm6419_vm4 = vcmp.gt.f32.partialorder %v6380_v12, 0.0  ;;  %v6446_v63 = vmul.f32 0.01, %v6380_v12  ;;  %v6383_v62 = vadd.f32 %v6382_v30, %v6311_v15  ;;  %v6802_v20 = vld [vmem:[#allocation3 + $0x6c] sm:$0x11] }
 0x5d5   : > { %v6742_v26 = vshrl.u32 %v8881_v33, 16  ;;  %v6745_v51 = vshll.u32 %v8881_v33, 16  ;;  %v9819_v6 = vpop.f32.mrf.mxu1  ;;  %v9423_v1 = vpop.f32.mrf.mxu0  ;;  %v6730_v59 = vsel %vm11184_vm12, %v6722_v10, %v6729_v21  ;;  %v6919_v50 = vor.u32 %v6918_v9, %v6914_v25  ;;  %9553 = vmatpush3.bf16.msra.mxu0 %v10446_v38  ;;  %v10452_v52 = vld [vmem:[#allocation9 + $0x598] sm:$0xff]   ;;  %v10456_v15 = vld [vmem:[#allocation9 + $0x5d0] sm:$0xff]  }
 0x5d6   : > { %v6316_v11 = vadd.f32 %v9421_v7, %v12332_v28  ;;  %v6473_v4 = vsel %vm6419_vm4, %v6380_v12, %v6446_v63  ;;  %v12367_v43 = vcombine.high %v12311_v0, %v12336_v22  ;;  %v12371_v13 = vcombine.low %v12311_v0, %v12336_v22  ;;  %9554 = vmatprep.subr.bf16.mxu0 %v10447_v61 }
 0x5d7   : > { %v6744_v5 = vrot.slane %v6742_v26, 7  ;;  %v6390_v48 = vpop.f32.mrf.mxu1  ;;  %v9425_v2 = vpop.f32.mrf.mxu0  ;;  %v6500_v30 = vmul.f32 %v6473_v4, %v11042_v27  ;;  %vm6422_vm13 = vcmp.gt.f32.partialorder %v6383_v62, 0.0  ;;  %v6449_v40 = vmul.f32 0.01, %v6383_v62 }
 0x5d8   : > { %v6924_v55 = vsel %vm1847_vm3, %v6919_v50, %v12360_v16  ;;  %v6388_v57 = vadd.f32 %v6387_v53, %v6316_v11  ;;  %7728 = vmatprep.mubr.bf16.mxu0 %v12367_v43  ;;  %v9424_v35 = vadd.f32 %v9423_v1, %v9422_v18  ;;  %v12378_v37 = vcombine.high %v12350_v56, %v6730_v59  ;;  %v10457_v11 = vld [vmem:[#allocation9 + $0x590] sm:$0xff]  }
 0x5d9   : > { %v6747_v10 = vor.u32 %v6745_v51, %v6744_v5  ;;  %v6758_v39 = vrot.slane %v6744_v5, 4  ;;  %7784 = vmatprep.mubr.bf16.mxu1 %v6924_v55  ;;  %v9820_v0 = vpop.f32.mrf.mxu1  ;;  %v9426_v22 = vpop.f32.mrf.mxu0  ;;  %v8866_v36 = vpack.c.bf16 %v6500_v30, %v6500_v30  ;;  %v6476_v23 = vsel %vm6422_vm13, %v6383_v62, %v6449_v40  ;;  %9555 = vmatpush3.bf16.msra.mxu0 %v10449_v58 }
 0x5da   : > { %v9427_v17 = vadd.f32 %v9426_v22, %v9425_v2  ;;  %v6503_v38 = vmul.f32 %v6476_v23, %v11055_v44  ;;  %vm6425_vm2 = vcmp.gt.f32.partialorder %v6388_v57, 0.0  ;;  %9556 = vmatprep.subr.bf16.mxu0 %v10451_v47  ;;  %v6928_v7 = vshll.u32 %v12324_v8, 16 }
 0x5db   : > { %v12382_v25 = vsel %vm11184_vm12, %v6740_v24, %v6747_v10  ;;  %v6803_v31 = vsel %vm11286_vm6, %v6758_v39, %v6802_v20  ;;  %v6395_v33 = vpop.f32.mrf.mxu1  ;;  %v9428_v12 = vpop.f32.mrf.mxu0  ;;  %v6608_v53 = vshrl.u32 %v8866_v36, 16  ;;  %v6452_v18 = vmul.f32 0.01, %v6388_v57  ;;  %v6783_v10 = vld [vmem:[#allocation3 + $0x8] sm:$0xf] }
 0x5dc   : > { %6804 = vst [vmem:[#allocation3 + $0x6c] sm:$0x11] %v6803_v31  ;;  %7729 = vmatmul.mubr.bf16.gmra.mxu0 %v12371_v13  ;;  %v6319_v61 = vadd.f32 %v9424_v35, %v12332_v28  ;;  %v6611_v21 = vshll.u32 %v8866_v36, 16  ;;  %v8868_v24 = vpack.c.bf16 %v6503_v38, %v6503_v38  ;;  %v6324_v9 = vadd.f32 %v9427_v17, %v12332_v28 }
 0x5dd   : > { %7736 = vmatprep.mubr.bf16.mxu0 %v12378_v37  ;;  %v9823_v26 = vpop.f32.mrf.mxu1  ;;  %v12393_v51 = vcombine.low %v12350_v56, %v6730_v59  ;;  %v9429_v63 = vpop.f32.mrf.mxu0  ;;  %v6610_v6 = vrot.slane %v6608_v53, 7  ;;  %v6479_v1 = vsel %vm6425_vm2, %v6388_v57, %v6452_v18  ;;  %9557 = vmatpush3.bf16.msra.mxu0 %v10452_v52  ;;  %v8733_v30 = vcombine.high %v12382_v25, %v12382_v25  ;;  %v10459_v56 = vld [vmem:[#allocation9 + $0x5c8] sm:$0xff]   ;;  %v10463_v53 = vld [vmem:[#allocation9 + $0x5c0] sm:$0xff]  }
 0x5de   : > { %v6391_v62 = vadd.f32 %v6390_v48, %v6319_v61  ;;  %v9430_v50 = vadd.f32 %v9429_v63, %v9428_v12  ;;  %v6625_v58 = vshrl.u32 %v8868_v24, 16  ;;  %v6506_v5 = vmul.f32 %v6479_v1, %v11067_v60  ;;  %9558 = vmatprep.subr.bf16.mxu0 %v10456_v15  ;;  %v10461_v52 = vld [vmem:[#allocation9 + $0x588] sm:$0xff]  }
 0x5df   : > { %v6396_v4 = vadd.f32 %v6395_v33, %v6324_v9  ;;  %v6398_v2 = vpop.f32.mrf.mxu1  ;;  %v9431_v47 = vpop.f32.mrf.mxu0  ;;  %v6613_v59 = vor.u32 %v6611_v21, %v6610_v6  ;;  %v6628_v40 = vshll.u32 %v8868_v24, 16  ;;  %v6926_v49 = vshrl.u32 %v12324_v8, 16 }
 0x5e0   : > { %vm6428_vm6 = vcmp.gt.f32.partialorder %v6391_v62, 0.0  ;;  %v6455_v55 = vmul.f32 0.01, %v6391_v62  ;;  %v6627_v48 = vrot.slane %v6625_v58, 7  ;;  %v8870_v39 = vpack.c.bf16 %v6506_v5, %v6506_v5  ;;  %v10465_v5 = vld [vmem:[#allocation9 + $0x580] sm:$0xff]  }
 0x5e1   : > { %vm6431_vm7 = vcmp.gt.f32.partialorder %v6396_v4, 0.0  ;;  %v6458_v57 = vmul.f32 0.01, %v6396_v4  ;;  %v9824_v35 = vpop.f32.mrf.mxu1  ;;  %v9432_v0 = vpop.f32.mrf.mxu0  ;;  %v6784_v20 = vsel %vm11167_vm11, %v6613_v59, %v6783_v10  ;;  %v6327_v23 = vadd.f32 %v9430_v50, %v12332_v28  ;;  %9559 = vmatpush3.bf16.msra.mxu0 %v10457_v11 }
 0x5e2   : > { %v6482_v36 = vsel %vm6428_vm6, %v6391_v62, %v6455_v55  ;;  %v9433_v17 = vadd.f32 %v9432_v0, %v9431_v47  ;;  %v6623_v31 = vrot.slane %v6610_v6, 4  ;;  %6785 = vst [vmem:[#allocation3 + $0x8] sm:$0xf] %v6784_v20  ;;  %v6630_v38 = vor.u32 %v6628_v40, %v6627_v48  ;;  %9560 = vmatprep.subr.bf16.mxu0 %v10459_v56 }
 0x5e3   : > { %v6643_v33 = vshrl.u32 %v8870_v39, 16  ;;  %v6403_v12 = vpop.f32.mrf.mxu1  ;;  %v9434_v15 = vpop.f32.mrf.mxu0  ;;  %v6646_v18 = vshll.u32 %v8870_v39, 16  ;;  %v6509_v61 = vmul.f32 %v6482_v36, %v12918_v54  ;;  %v6485_v21 = vsel %vm6431_vm7, %v6396_v4, %v6458_v57 }
 0x5e4   : > { %7737 = vmatmul.mubr.bf16.gmra.mxu0 %v12393_v51  ;;  %v6399_v24 = vadd.f32 %v6398_v2, %v6327_v23  ;;  %v6631_v9 = vsel %vm11184_vm12, %v6623_v31, %v6630_v38  ;;  %v6512_v63 = vmul.f32 %v6485_v21, %v12922_v14  ;;  %v6332_v6 = vadd.f32 %v9433_v17, %v12332_v28 }
 0x5e5   : > { %v6645_v26 = vrot.slane %v6643_v33, 7  ;;  %7744 = vmatprep.mubr.bf16.mxu0 %v8733_v30  ;;  %v9827_v1 = vpop.f32.mrf.mxu1  ;;  %v9435_v62 = vpop.f32.mrf.mxu0  ;;  %v12412_v50 = vrot.slane %v6928_v7, 1  ;;  %6787 = vst [vmem:[#allocation3 + $0x14] sm:$0xf] %v6631_v9  ;;  %v8872_v11 = vpack.c.bf16 %v6509_v61, %v6509_v61  ;;  %9561 = vmatpush3.bf16.msra.mxu0 %v10461_v52  ;;  %v6641_v4 = vrot.slane %v6627_v48, 4 }
 0x5e6   : > { %vm6434_vm11 = vcmp.gt.f32.partialorder %v6399_v24, 0.0  ;;  %v6461_v58 = vmul.f32 0.01, %v6399_v24  ;;  %v8874_v47 = vpack.c.bf16 %v6512_v63, %v6512_v63  ;;  %v6404_v56 = vadd.f32 %v6403_v12, %v6332_v6  ;;  %9562 = vmatprep.subr.bf16.mxu0 %v10463_v53 }
 0x5e7   : > { %v6648_v2 = vor.u32 %v6646_v18, %v6645_v26  ;;  %v6406_v59 = vpop.f32.mrf.mxu1  ;;  %v9437_v30 = vpop.f32.mrf.mxu0  ;;  %v6661_v40 = vshrl.u32 %v8872_v11, 16  ;;  %v8732_v10 = vcombine.low %v12382_v25, %v12382_v25  ;;  %v9436_v7 = vadd.f32 %v9435_v62, %v9434_v15 }
 0x5e8   : > { %v6488_v55 = vsel %vm6434_vm11, %v6399_v24, %v6461_v58  ;;  %v6664_v57 = vshll.u32 %v8872_v11, 16  ;;  %v6679_v35 = vshrl.u32 %v8874_v47, 16  ;;  %vm6437_vm8 = vcmp.gt.f32.partialorder %v6404_v56, 0.0 }
 0x5e9   : > { %v6649_v39 = vsel %vm11184_vm12, %v6641_v4, %v6648_v2  ;;  %v6515_v0 = vmul.f32 %v6488_v55, %v12924_v19  ;;  %v9828_v48 = vpop.f32.mrf.mxu1  ;;  %v9438_v22 = vpop.f32.mrf.mxu0  ;;  %v6663_v20 = vrot.slane %v6661_v40, 7  ;;  %v6464_v36 = vmul.f32 0.01, %v6404_v56  ;;  %9563 = vmatpush3.bf16.msra.mxu0 %v10465_v5  ;;  %v10455_v4 = vld [vmem:[#allocation9 + $0x638] sm:$0xff]   ;;  %v10458_v40 = vld [vmem:[#allocation9 + $0x670] sm:$0xff]  }
 0x5ea   : > { %6789 = vst [vmem:[#allocation3 + $0x20] sm:$0xf] %v6649_v39  ;;  %v6335_v23 = vadd.f32 %v9436_v7, %v12332_v28  ;;  %v6681_v17 = vrot.slane %v6679_v35, 7  ;;  %v6682_v52 = vshll.u32 %v8874_v47, 16  ;;  %v9439_v38 = vadd.f32 %v9438_v22, %v9437_v30  ;;  %9833 = vmatprep.subr.bf16.mxu0 %v12926_v46 }
 0x5eb   : > { %v8876_v31 = vpack.c.bf16 %v6515_v0, %v6515_v0  ;;  %v6411_v33 = vpop.f32.mrf.mxu1  ;;  %v9440_v12 = vpop.f32.mrf.mxu0  ;;  %v6659_v15 = vrot.slane %v6645_v26, 4  ;;  %v6666_v53 = vor.u32 %v6664_v57, %v6663_v20  ;;  %v6491_v18 = vsel %vm6437_vm8, %v6404_v56, %v6464_v36  ;;  %v6809_v26 = vld [vmem:[#allocation3 + $0x8] sm:$0xf] }
 0x5ec   : > { %7745 = vmatmul.mubr.bf16.gmra.mxu0 %v8732_v10  ;;  %v6407_v61 = vadd.f32 %v6406_v59, %v6335_v23  ;;  %v6677_v21 = vrot.slane %v6663_v20, 4  ;;  %v6684_v24 = vor.u32 %v6682_v52, %v6681_v17  ;;  %v12421_v1 = vld [vmem:[#allocation3 + $0x14] sm:$0xf]  ;;  %v6518_v58 = vmul.f32 %v6491_v18, %v12927_v32  ;;  %v10460_v23 = vld [vmem:[#allocation9 + $0x630] sm:$0xff]   ;;  %v10464_v12 = vld [vmem:[#allocation9 + $0x668] sm:$0xff]  }
 0x5ed   : > { %v6697_v9 = vshrl.u32 %v8876_v31, 16  ;;  %v6700_v63 = vshll.u32 %v8876_v31, 16  ;;  %v9831_v6 = vpop.f32.mrf.mxu1  ;;  %v9441_v62 = vpop.f32.mrf.mxu0  ;;  %v6667_v11 = vsel %vm11184_vm12, %v6659_v15, %v6666_v53  ;;  %v6340_v56 = vadd.f32 %v9439_v38, %v12332_v28 }
 0x5ee   : > { %vm6440_vm9 = vcmp.gt.f32.partialorder %v6407_v61, 0.0  ;;  %v6467_v5 = vmul.f32 0.01, %v6407_v61  ;;  %6791 = vst [vmem:[#allocation3 + $0x2c] sm:$0xf] %v6667_v11  ;;  %v6685_v2 = vsel %vm11184_vm12, %v6677_v21, %v6684_v24  ;;  %v12430_v59 = vcombine.low %v6809_v26, %v12421_v1 }
 0x5ef   : > { %v6699_v47 = vrot.slane %v6697_v9, 7  ;;  %v6414_v30 = vpop.f32.mrf.mxu1  ;;  %6793 = vst [vmem:[#allocation3 + $0x38] sm:$0xf] %v6685_v2  ;;  %v8878_v55 = vpack.c.bf16 %v6518_v58, %v6518_v58  ;;  %v6949_v7 = vshrl.u32 %v12345_v29, 16  ;;  %v6953_v39 = vshll.u32 %v12371_v13, 16 }
 0x5f0   : > { %v6494_v10 = vsel %vm6440_vm9, %v6407_v61, %v6467_v5  ;;  %v6695_v57 = vrot.slane %v6681_v17, 4  ;;  %v6412_v48 = vadd.f32 %v6411_v33, %v6340_v56  ;;  %7785 = vmatmul.mubr.bf16.vlgmr.msra.gmra.mxu1 %v12430_v59  ;;  %v6973_v52 = vshrl.u32 %v12371_v13, 16  ;;  %v12440_v33 = vld [vmem:[#allocation3 + $0x6c] sm:$0x11] }
 0x5f1   : > { %v6702_v35 = vor.u32 %v6700_v63, %v6699_v47  ;;  %v6521_v0 = vmul.f32 %v6494_v10, %v12928_v3  ;;  %v9832_v28 = vpop.f32.mrf.mxu1  ;;  %v6715_v22 = vshrl.u32 %v8878_v55, 16  ;;  %v6951_v20 = vor.u32 %v6949_v7, %v12360_v16  ;;  %9595 = vmatpush3.bf16.msra.mxu1 %v10455_v4  ;;  %v10466_v63 = vld [vmem:[#allocation9 + $0x628] sm:$0xff]  }
 0x5f2   : > { %v6955_v36 = vrot.slane %v6953_v39, 1  ;;  %vm6443_vm10 = vcmp.gt.f32.partialorder %v6412_v48, 0.0  ;;  %v6470_v17 = vmul.f32 0.01, %v6412_v48  ;;  %9596 = vmatprep.subr.bf16.mxu1 %v10458_v40  ;;  %v6718_v53 = vshll.u32 %v8878_v55, 16 }
 0x5f3   : > { %v6703_v31 = vsel %vm11184_vm12, %v6695_v57, %v6702_v35  ;;  %v8880_v38 = vpack.c.bf16 %v6521_v0, %v6521_v0  ;;  %v6717_v15 = vrot.slane %v6715_v22, 7  ;;  %v6977_v18 = vshll.u32 %v12393_v51, 16  ;;  %v10469_v22 = vld [vmem:[#allocation9 + $0x620] sm:$0xff]  }
 0x5f4   : > { %6795 = vst [vmem:[#allocation3 + $0x44] sm:$0xf] %v6703_v31  ;;  %v6956_v16 = vsel %vm1847_vm3, %v6951_v20, %v6955_v36  ;;  %v6713_v61 = vrot.slane %v6699_v47, 4  ;;  %v6497_v24 = vsel %vm6443_vm10, %v6412_v48, %v6470_v17  ;;  %v6975_v9 = vor.u32 %v6973_v52, %v6955_v36  ;;  %v10467_v47 = vld [vmem:[#allocation9 + $0x660] sm:$0xff]   ;;  %v10470_v31 = vld [vmem:[#allocation9 + $0x658] sm:$0xff]  }
 0x5f5   : > { %v6733_v21 = vshrl.u32 %v8880_v38, 16  ;;  %7792 = vmatprep.mubr.bf16.mxu1 %v6956_v16  ;;  %v6720_v6 = vor.u32 %v6718_v53, %v6717_v15  ;;  %v6736_v62 = vshll.u32 %v8880_v38, 16  ;;  %v6524_v11 = vmul.f32 %v6497_v24, %v12929_v41  ;;  %9597 = vmatpush3.bf16.msra.mxu1 %v10460_v23  ;;  %v12445_v58 = vld [vmem:[#allocation3 + $0x20] ss:$12 sps:$4 sm:$0xff]   ;;  %v12468_v53 = vld [vmem:[#allocation9 + $0x6b8] sm:$0xff]  }
 0x5f6   : > { %v6979_v5 = vrot.slane %v6977_v18, 1  ;;  %9598 = vmatprep.subr.bf16.mxu1 %v10464_v12  ;;  %v6940_v4 = vshll.u32 %v12430_v59, 16  ;;  %v6933_v2 = vshll.u32 %v12341_v42, 16  ;;  %v12451_v56 = vcombine.low %v12382_v25, %v12440_v33 }
 0x5f7   : > { %v6735_v26 = vrot.slane %v6733_v21, 7  ;;  %v6721_v30 = vsel %vm11184_vm12, %v6713_v61, %v6720_v6  ;;  %v8882_v40 = vpack.c.bf16 %v6524_v11, %v6524_v11  ;;  %v6938_v55 = vshrl.u32 %v12430_v59, 16  ;;  %v10471_v11 = vld [vmem:[#allocation9 + $0x618] sm:$0xff]  }
 0x5f8   : > { %v6945_v10 = vshll.u32 %v12445_v58, 16  ;;  %v6731_v7 = vrot.slane %v6717_v15, 4  ;;  %6797 = vst [vmem:[#allocation3 + $0x50] sm:$0xf] %v6721_v30  ;;  %7793 = vmatmul.mubr.bf16.gmra.mxu1 %v12445_v58  ;;  %v6980_v57 = vsel %vm1847_vm3, %v6975_v9, %v6979_v5  ;;  %v6942_v35 = vrot.slane %v6940_v4, 1  ;;  %v12480_v30 = vld [vmem:[#allocation9 + $0x6b0] sm:$0xff]  }
 0x5f9   : > { %v6738_v39 = vor.u32 %v6736_v62, %v6735_v26  ;;  %v6751_v0 = vshrl.u32 %v8882_v40, 16  ;;  %7800 = vmatprep.mubr.bf16.mxu1 %v6980_v57  ;;  %9599 = vmatpush3.bf16.msra.mxu1 %v10466_v63  ;;  %v6935_v28 = vrot.slane %v6933_v2, 1  ;;  %v6931_v59 = vor.u32 %v12412_v50, %v6926_v49  ;;  %v6805_v9 = vld [vmem:[#allocation3 + $0x74] sm:$0x1]  ;;  %v10477_v57 = vld [vmem:[#allocation9 + $0x648] sm:$0xff]  }
 0x5fa   : > { %v6947_v48 = vrot.slane %v6945_v10, 1  ;;  %v6943_v36 = vor.u32 %v6942_v35, %v6938_v55  ;;  %9600 = vmatprep.subr.bf16.mxu1 %v10467_v47  ;;  %v7001_v52 = vshll.u32 %v12451_v56, 16  ;;  %v6749_v38 = vrot.slane %v6735_v26, 4  ;;  %v10474_v47 = vld [vmem:[#allocation9 + $0x650] sm:$0xff]   ;;  %v12490_v35 = vld [vmem:[#allocation9 + $0x6a8] sm:$0xff]  }
 0x5fb   : > { %v6739_v20 = vsel %vm11184_vm12, %v6731_v7, %v6738_v39  ;;  %v12464_v23 = vld [vmem:[#allocation3 + $0x38] ss:$12 sps:$4 sm:$0xff]   ;;  %v6753_v17 = vrot.slane %v6751_v0, 7  ;;  %v6754_v12 = vshll.u32 %v8882_v40, 16  ;;  %v6997_v15 = vshrl.u32 %v12393_v51, 16  ;;  %v10475_v7 = vld [vmem:[#allocation9 + $0x610] sm:$0xff]  }
 0x5fc   : > { %6799 = vst [vmem:[#allocation3 + $0x5c] sm:$0xf] %v6739_v20  ;;  %v6948_v8 = vsel %vm1847_vm3, %v6943_v36, %v6947_v48  ;;  %v7003_v49 = vrot.slane %v7001_v52, 1  ;;  %v6965_v50 = vshrl.u32 %v12445_v58, 16  ;;  %v6969_v16 = vshll.u32 %v12464_v23, 16  ;;  %v10478_v52 = vld [vmem:[#allocation9 + $0x608] sm:$0xff]  }
 0x5fd   : > { %v6756_v18 = vor.u32 %v6754_v12, %v6753_v17  ;;  %v6759_v61 = vrot.slane %v6753_v17, 4  ;;  %7856 = vmatprep.mubr.bf16.mxu0 %v6948_v8  ;;  %v6936_v21 = vsel %vm1847_vm3, %v6931_v59, %v6935_v28  ;;  %9601 = vmatpush3.bf16.msra.mxu1 %v10469_v22  ;;  %v6961_v24 = vshll.u32 %v12367_v43, 16 }
 0x5fe   : > { %7857 = vmatmul.mubr.bf16.vlgmr.msra.gmra.mxu0 %v6936_v21  ;;  %v6999_v63 = vor.u32 %v6997_v15, %v6979_v5  ;;  %9602 = vmatprep.subr.bf16.mxu1 %v10470_v31  ;;  %v6967_v6 = vor.u32 %v6965_v50, %v6947_v48  ;;  %v6971_v62 = vrot.slane %v6969_v16, 1  ;;  %v6957_v34 = vshrl.u32 %v12341_v42, 16  ;;  %v6828_v31 = vld [vmem:[#allocation3] sm:$0xee]  ;;  %v12500_v50 = vld [vmem:[#allocation9 + $0x6a0] sm:$0xff]  }
 0x5ff   : > { %v6757_v26 = vsel %vm11184_vm12, %v6749_v38, %v6756_v18  ;;  %v6806_v2 = vsel %vm11230_vm15, %v6759_v61, %v6805_v9  ;;  %9834 = vmatpush3.bf16.msra.mxu0 %v12468_v53  ;;  %v6963_v55 = vrot.slane %v6961_v24, 1  ;;  %v6989_v0 = vshrl.u32 %v12464_v23, 16  ;;  %v10482_v38 = vld [vmem:[#allocation9 + $0x640] sm:$0xff]  }
 0x600   : > { %6801 = vst [vmem:[#allocation3 + $0x68] sm:$0xf] %v6757_v26  ;;  %6807 = vst [vmem:[#allocation3 + $0x74] sm:$0x1] %v6806_v2  ;;  %7801 = vmatmul.mubr.bf16.gmra.mxu1 %v12464_v23  ;;  %v7004_v5 = vsel %vm1847_vm3, %v6999_v63, %v7003_v49  ;;  %v6972_v40 = vsel %vm1847_vm3, %v6967_v6, %v6971_v62  ;;  %9835 = vmatprep.subr.bf16.mxu0 %v12926_v46  ;;  %v7021_v59 = vshrl.u32 %v12451_v56, 16  ;;  %v10484_v6 = vld [vmem:[#allocation9 + $0x600] sm:$0xff]  }
 0x601   : > { %7808 = vmatprep.mubr.bf16.mxu1 %v7004_v5  ;;  %7864 = vmatprep.mubr.bf16.mxu0 %v6972_v40  ;;  %v6959_v39 = vor.u32 %v6957_v34, %v6935_v28  ;;  %v6985_v20 = vshll.u32 %v12378_v37, 16  ;;  %v6991_v28 = vor.u32 %v6989_v0, %v6971_v62  ;;  %v7062_v17 = vrot.slane %v12371_v13, 1  ;;  %v12521_v62 = vld [vmem:[#allocation9 + $0x698] sm:$0xff]  }
 0x602   : > { %9603 = vmatpush3.bf16.msra.mxu1 %v10471_v11  ;;  %v7023_v12 = vor.u32 %v7021_v59, %v7003_v49  ;;  %v7054_v16 = vrot.slane %v12345_v29, 1  ;;  %v12509_v21 = vcombine.high %v12382_v25, %v12440_v33  ;;  %v6981_v13 = vshrl.u32 %v12367_v43, 16  ;;  %v10487_v59 = vld [vmem:[#allocation9 + $0x688] sm:$0xff]  }
 0x603   : > { %v12487_v10 = vld [vmem:[#allocation3 + $0x50] ss:$12 sps:$4 sm:$0xff]   ;;  %9604 = vmatprep.subr.bf16.mxu1 %v10474_v47  ;;  %9836 = vmatpush3.bf16.msra.mxu0 %v12480_v30  ;;  %v6964_v22 = vsel %vm1847_vm3, %v6959_v39, %v6963_v55  ;;  %v6987_v49 = vrot.slane %v6985_v20, 1  ;;  %v8739_v63 = vcombine.high %v6828_v31, %v12290_v45  ;;  %v7068_v25 = vrot.slane %v12393_v51, 1 }
 0x604   : > { %v6993_v48 = vshll.u32 %v12487_v10, 16  ;;  %9837 = vmatprep.subr.bf16.mxu0 %v12926_v46  ;;  %v12513_v24 = vsel %vm1988_vm5, %v7054_v16, %v7062_v17  ;;  %v7013_v29 = vshrl.u32 %v12487_v10, 16  ;;  %v6983_v33 = vor.u32 %v6981_v13, %v6963_v55 }
 0x605   : > { %v7057_v4 = vrot.slane %v12341_v42, 1  ;;  %v7069_v2 = vsel %vm1988_vm5, %v7062_v17, %v7068_v25  ;;  %v7009_v5 = vshll.u32 %v12509_v21, 16  ;;  %v7056_v55 = vrot.slane %v8739_v63, 1  ;;  %v10486_v42 = vld [vmem:[#allocation9 + $0x690] sm:$0xff]  }
 0x606   : > { %7865 = vmatmul.mubr.bf16.gmra.mxu0 %v6964_v22  ;;  %9605 = vmatpush3.bf16.msra.mxu1 %v10475_v7  ;;  %v6995_v36 = vrot.slane %v6993_v48, 1  ;;  %v6988_v47 = vsel %vm1847_vm3, %v6983_v33, %v6987_v49  ;;  %v8738_v39 = vcombine.low %v6828_v31, %v12290_v45  ;;  %v7064_v20 = vrot.slane %v12367_v43, 1  ;;  %v10488_v31 = vld [vmem:[#allocation9 + $0x680] sm:$0xff]  }
 0x607   : > { %9606 = vmatprep.subr.bf16.mxu1 %v10477_v57  ;;  %9838 = vmatpush3.bf16.msra.mxu0 %v12490_v35  ;;  %v6825_v15 = vld [vmem:[#allocation3 + $0x68] sm:$0xf]  ;;  %v6827_v8 = vld [vmem:[#allocation3 + $0x74] sm:$0x1]  ;;  %v7058_v7 = vsel %vm1988_vm5, %v7056_v55, %v7057_v4  ;;  %v7005_v57 = vshrl.u32 %v12378_v37, 16  ;;  %v7011_v0 = vrot.slane %v7009_v5, 1 }
 0x608   : > { %7809 = vmatmul.mubr.bf16.gmra.mxu1 %v12487_v10  ;;  %v6996_v18 = vsel %vm1847_vm3, %v6991_v28, %v6995_v36  ;;  %v12505_v61 = vcombine.low %v6825_v15, %v6827_v8  ;;  %9839 = vmatprep.subr.bf16.mxu0 %v12926_v46  ;;  %v7015_v11 = vor.u32 %v7013_v29, %v6995_v36  ;;  %v7053_v28 = vrot.slane %v8738_v39, 1 }
 0x609   : > { %7816 = vmatprep.mubr.bf16.mxu1 %v7023_v12  ;;  %7872 = vmatprep.mubr.bf16.mxu0 %v6996_v18  ;;  %v8734_v40 = vcombine.low %v6825_v15, %v6825_v15  ;;  %v7007_v48 = vor.u32 %v7005_v57, %v6987_v49  ;;  %v7024_v43 = vshrl.u32 %v12509_v21, 16  ;;  %v7070_v12 = vrot.slane %v12378_v37, 1  ;;  %v6829_v15 = vld [vmem:[#allocation3 + $0x8] sm:$0xe] }
 0x60a   : > { %9607 = vmatpush3.bf16.msra.mxu1 %v10478_v52  ;;  %v7017_v9 = vshll.u32 %v12505_v61, 16  ;;  %v7027_v22 = vshrl.u32 %v12505_v61, 16  ;;  %v7055_v45 = vsel %vm1988_vm5, %v7053_v28, %v7054_v16  ;;  %v8740_v8 = vcombine.low %v6829_v15, %v12421_v1 }
 0x60b   : > { %9608 = vmatprep.subr.bf16.mxu1 %v10482_v38  ;;  %9840 = vmatpush3.bf16.msra.mxu0 %v12500_v50  ;;  %v7012_v36 = vsel %vm1847_vm3, %v7007_v48, %v7011_v0  ;;  %v7065_v38 = vsel %vm1988_vm5, %v7057_v4, %v7064_v20  ;;  %v7026_v17 = vor.u32 %v7024_v43, %v7011_v0  ;;  %v7060_v37 = vrot.slane %v12445_v58, 1 }
 0x60c   : > { %v7019_v26 = vrot.slane %v7017_v9, 1  ;;  %9841 = vmatprep.subr.bf16.mxu0 %v12926_v46  ;;  %v7076_v16 = vrot.slane %v12509_v21, 1  ;;  %v7066_v58 = vrot.slane %v12464_v23, 1  ;;  %v7072_v23 = vrot.slane %v12487_v10, 1 }
 0x60d   : > { %v7078_v51 = vrot.slane %v12505_v61, 1 }
 0x60e   : > { %7873 = vmatmul.mubr.bf16.gmra.mxu0 %v6988_v47  ;;  %v7020_v34 = vsel %vm1847_vm3, %v7015_v11, %v7019_v26  ;;  %9609 = vmatpush3.bf16.msra.mxu1 %v10484_v6  ;;  %v7029_v52 = vor.u32 %v7027_v22, %v7019_v26  ;;  %v7077_v1 = vsel %vm1988_vm5, %v7070_v12, %v7076_v16 }
 0x60f   : > { %7880 = vmatprep.mubr.bf16.mxu0 %v7020_v34  ;;  %9842 = vmatpush3.bf16.msra.mxu0 %v12521_v62  ;;  %v7079_v13 = vsel %vm1988_vm5, %v7072_v23, %v7078_v51 }
 0x610   : > { %7817 = vmatmul.mubr.bf16.gmra.mxu1 %v8734_v40  ;;  %9869 = vmatprep.subr.bf16.mxu1 %v12926_v46 }
 0x611   : > { %7928 = vmatprep.mubr.bf16.mxu1 %v7058_v7  ;;  %9843 = vmatprep.subr.bf16.mxu0 %v12926_v46 }
 0x613   : > { %9844 = vmatpush3.bf16.msra.mxu0 %v10486_v42 }
 0x614   : > { %9845 = vmatprep.subr.bf16.mxu0 %v12926_v46 }
 0x616   : > { %7881 = vmatmul.mubr.bf16.gmra.mxu0 %v7012_v36 }
 0x617   : > { %7888 = vmatprep.mubr.bf16.mxu0 %v7029_v52  ;;  %9846 = vmatpush3.bf16.msra.mxu0 %v10487_v59 }
 0x618   : > { %7929 = vmatmul.mubr.bf16.vlgmr.msra.gmra.mxu1 %v7055_v45  ;;  %9847 = vmatprep.subr.bf16.mxu0 %v12926_v46 }
 0x619   : > { %7936 = vmatprep.mubr.bf16.mxu1 %v7065_v38  ;;  %9877 = vmatpush3.bf16.msra.mxu1 %v12468_v53  ;;  %v7071_v53 = vsel %vm1988_vm5, %v7064_v20, %v7070_v12 }
 0x61a   : > { %9870 = vmatprep.subr.bf16.mxu1 %v12926_v46 }
 0x61b   : > { %9848 = vmatpush3.bf16.msra.mxu0 %v10488_v31 }
 0x61d   : > { %9878 = vmatpush3.bf16.msra.mxu1 %v12480_v30  ;;  %v7059_v30 = vrot.slane %v8740_v8, 1 }
 0x61e   : > { %7889 = vmatmul.mubr.bf16.gmra.mxu0 %v7026_v17  ;;  %9871 = vmatprep.subr.bf16.mxu1 %v12926_v46 }
 0x61f   : > { %9849 = vmatprep.mubr.msk.bf16.mxu0 %vm10678_vm0, %v12926_v46  ;;  %v7061_v18 = vsel %vm1988_vm5, %v7059_v30, %v7060_v37 }
 0x620   : > { %7937 = vmatmul.mubr.bf16.gmra.mxu1 %v12513_v24 }
 0x621   : > { %7944 = vmatprep.mubr.bf16.mxu1 %v7071_v53  ;;  %9879 = vmatpush3.bf16.msra.mxu1 %v12490_v35  ;;  %v7074_v35 = vrot.slane %v12451_v56, 1  ;;  %v7073_v56 = vsel %vm1988_vm5, %v7066_v58, %v7072_v23 }
 0x622   : > { %9872 = vmatprep.subr.bf16.mxu1 %v12926_v46 }
 0x623   : > { %v7075_v21 = vsel %vm1988_vm5, %v7068_v25, %v7074_v35 }
 0x625   : > { %9880 = vmatpush3.bf16.msra.mxu1 %v12500_v50  ;;  %v7067_v50 = vsel %vm1988_vm5, %v7060_v37, %v7066_v58 }
 0x626   : > { %9850 = vmatmul.mubr.bf16.vlgmr.msra.gmra.mxu0 %v7061_v18  ;;  %9873 = vmatprep.subr.bf16.mxu1 %v12926_v46 }
 0x627   : > { %9853 = vmatprep.mubr.msk.bf16.mxu0 %vm10678_vm0, %v12926_v46 }
 0x628   : > { %7945 = vmatmul.mubr.bf16.gmra.mxu1 %v7069_v2 }
 0x629   : > { %7952 = vmatprep.mubr.bf16.mxu1 %v7077_v1  ;;  %9881 = vmatpush3.bf16.msra.mxu1 %v12521_v62 }
 0x62a   : > { %9874 = vmatprep.subr.bf16.mxu1 %v12926_v46 }
 0x62d   : > { %9882 = vmatpush3.bf16.msra.mxu1 %v10486_v42 }
 0x62e   : > { %9854 = vmatmul.mubr.bf16.gmra.mxu0 %v7067_v50  ;;  %9875 = vmatprep.subr.bf16.mxu1 %v12926_v46 }
 0x62f   : > { %9857 = vmatprep.mubr.msk.bf16.mxu0 %vm10678_vm0, %v12926_v46 }
 0x630   : > { %7953 = vmatmul.mubr.bf16.gmra.mxu1 %v7075_v21 }
 0x631   : > { %7960 = vmatprep.mubr.bf16.mxu1 %v7076_v16  ;;  %9883 = vmatpush3.bf16.msra.mxu1 %v10487_v59 }
 0x632   : > { %9876 = vmatprep.subr.bf16.mxu1 %v12926_v46 }
 0x635   : > { %9884 = vmatpush3.bf16.msra.mxu1 %v10488_v31 }
 0x636   : > { %9858 = vmatmul.mubr.bf16.gmra.mxu0 %v7073_v56 }
 0x638   : > { %7961 = vmatmul.mubr.bf16.gmra.mxu1 %v7074_v35 }
 0x639   : > { %9861 = vmatprep.mubr.msk.bf16.mxu1 %vm10678_vm0, %v12926_v46 }
 0x640   : > { %9862 = vmatmul.mubr.bf16.vlgmr.msra.gmra.mxu1 %v7079_v13 }
 0x641   : > { %9865 = vmatprep.mubr.msk.bf16.mxu1 %vm10678_vm0, %v12926_v46 }
 0x648   : > { %9866 = vmatmul.mubr.bf16.gmra.mxu1 %v7078_v51 }
 0x68c   : > { %v9472_v10 = vpop.f32.mrf.mxu0 }
 0x68e   : > { %v9473_v49 = vpop.f32.mrf.mxu0 }
 0x68f   : > { %v12585_v24 = vadd.f32 %v9473_v49, %v9472_v10 }
 0x690   : > { %v9475_v29 = vpop.f32.mrf.mxu0 }
 0x692   : > { %v9476_v9 = vpop.f32.mrf.mxu0 }
 0x693   : > { %v12587_v63 = vadd.f32 %v9476_v9, %v9475_v29 }
 0x694   : > { %v9478_v6 = vpop.f32.mrf.mxu0 }
 0x696   : > { %v9479_v25 = vpop.f32.mrf.mxu0 }
 0x697   : > { %v12589_v33 = vadd.f32 %v9479_v25, %v9478_v6 }
 0x698   : > { %v9481_v61 = vpop.f32.mrf.mxu0 }
 0x69a   : > { %v9482_v62 = vpop.f32.mrf.mxu0 }
 0x69b   : > { %v12591_v11 = vadd.f32 %v9482_v62, %v9481_v61 }
 0x69c   : > { %v9484_v26 = vpop.f32.mrf.mxu0 }
 0x69e   : > { %v9485_v4 = vpop.f32.mrf.mxu0 }
 0x69f   : > { %v12593_v46 = vadd.f32 %v9485_v4, %v9484_v26 }
 0x6a0   : > { %v9487_v2 = vpop.f32.mrf.mxu0 }
 0x6a2   : > { %v9488_v47 = vpop.f32.mrf.mxu0 }
 0x6a3   : > { %v12595_v5 = vadd.f32 %v9488_v47, %v9487_v2  ;;  %v12644_v47 = vld [vmem:[%s12770_s7 + $0x2] ss:$0 sm:$0xff] }
 0x6a4   : > { %v9490_v40 = vpop.f32.mrf.mxu0 }
 0x6a6   : > { %v9491_v34 = vpop.f32.mrf.mxu0 }
 0x6a7   : > { %v12597_v55 = vadd.f32 %v9491_v34, %v9490_v40 }
 0x6a8   : > { %v9493_v42 = vpop.f32.mrf.mxu0 }
 0x6aa   : > { %v9494_v7 = vpop.f32.mrf.mxu0 }
 0x6ab   : > { %v12599_v39 = vadd.f32 %v9494_v7, %v9493_v42 }
 0x6ac   : > { %v9496_v57 = vpop.f32.mrf.mxu0 }
 0x6ae   : > { %v9497_v0 = vpop.f32.mrf.mxu0 }
 0x6af   : > { %v12601_v48 = vadd.f32 %v9497_v0, %v9496_v57  ;;  %v7715_v0 = vadd.f32 %v12585_v24, %v12644_v47 }
 0x6b0   : > { %v9499_v22 = vpop.f32.mrf.mxu0  ;;  %v9518_v59 = vpop.f32.mrf.mxu1 }
 0x6b1   : > { %12938 = vst [vmem:[#allocation31_spill] sm:$0xff] %v12601_v48  ;;  %v7718_v48 = vadd.f32 %v12587_v63, %v12644_v47 }
 0x6b2   : > { %v9500_v20 = vpop.f32.mrf.mxu0  ;;  %v9519_v28 = vpop.f32.mrf.mxu1 }
 0x6b3   : > { %v9520_v42 = vadd.f32 %v9519_v28, %v9518_v59 }
 0x6b4   : > { %v9521_v36 = vpop.f32.mrf.mxu1 }
 0x6b6   : > { %v9522_v52 = vpop.f32.mrf.mxu1 }
 0x6b7   : > { %v9523_v41 = vadd.f32 %v9522_v52, %v9521_v36 }
 0x6b8   : > { %v9524_v45 = vpop.f32.mrf.mxu1 }
 0x6ba   : > { %v9525_v31 = vpop.f32.mrf.mxu1 }
 0x6bb   : > { %v9526_v28 = vadd.f32 %v9525_v31, %v9524_v45 }
 0x6bc   : > { %v12603_v38 = vpop.f32.mrf.mxu1 }
 0x6be   : > { %v12605_v43 = vpop.f32.mrf.mxu1  ;;  %v9564_v17 = vpop.f32.mrf.mxu0 }
 0x6bf   : > { %v9529_v63 = vadd.f32 %v12605_v43, %v12603_v38 }
 0x6c0   : > { %v12607_v12 = vpop.f32.mrf.mxu1  ;;  %v9565_v15 = vpop.f32.mrf.mxu0 }
 0x6c1   : > { %v9566_v22 = vadd.f32 %v9565_v15, %v9564_v17  ;;  %v7723_v17 = vadd.f32 %v12589_v33, %v12644_v47 }
 0x6c2   : > { %v12609_v8 = vpop.f32.mrf.mxu1  ;;  %v9567_v53 = vpop.f32.mrf.mxu0 }
 0x6c3   : > { %v9532_v38 = vadd.f32 %v12609_v8, %v12607_v12 }
 0x6c4   : > { %v12611_v37 = vpop.f32.mrf.mxu1  ;;  %v9568_v30 = vpop.f32.mrf.mxu0 }
 0x6c5   : > { %v9569_v59 = vadd.f32 %v9568_v30, %v9567_v53 }
 0x6c6   : > { %v12613_v16 = vpop.f32.mrf.mxu1  ;;  %v9570_v18 = vpop.f32.mrf.mxu0 }
 0x6c8   : > { %v12615_v1 = vpop.f32.mrf.mxu1  ;;  %v9571_v58 = vpop.f32.mrf.mxu0 }
 0x6c9   : > { %v9572_v15 = vadd.f32 %v9571_v58, %v9570_v18  ;;  %v10509_v18 = vld [vmem:[#allocation2 + $0x9] sm:$0xff] }
 0x6ca   : > { %v12617_v35 = vpop.f32.mrf.mxu1  ;;  %v9573_v50 = vpop.f32.mrf.mxu0  ;;  %v8041_v58 = vmul.f32 3.0, %v10509_v18 }
 0x6cc   : > { %v12619_v21 = vpop.f32.mrf.mxu1  ;;  %v9574_v23 = vpop.f32.mrf.mxu0 }
 0x6ce   : > { %v12621_v56 = vpop.f32.mrf.mxu1  ;;  %v12623_v51 = vpop.f32.mrf.mxu0 }
 0x6d0   : > { %v12625_v13 = vpop.f32.mrf.mxu1  ;;  %v12627_v10 = vpop.f32.mrf.mxu0 }
 0x6d1   : > { %12939 = vst [vmem:[#allocation29_spill] sm:$0xff] %v12625_v13  ;;  %v7790_v13 = vadd.f32 %v9523_v41, %v7718_v48 }
 0x6d2   : > { %v12629_v49 = vpop.f32.mrf.mxu1  ;;  %v12631_v29 = vpop.f32.mrf.mxu0 }
 0x6d3   : > { %12940 = vst [vmem:[#allocation30_spill] sm:$0xff] %v12629_v49  ;;  %v7862_v52 = vadd.f32 %v9569_v59, %v7790_v13  ;;  %v9575_v13 = vadd.f32 %v9574_v23, %v9573_v50  ;;  %v9578_v59 = vadd.f32 %v12627_v10, %v12623_v51 }
 0x6d4   : > { %v9545_v9 = vpop.f32.mrf.mxu1  ;;  %v12633_v6 = vpop.f32.mrf.mxu0 }
 0x6d6   : > { %v9546_v25 = vpop.f32.mrf.mxu1  ;;  %v12635_v61 = vpop.f32.mrf.mxu0 }
 0x6d7   : > { %v7787_v25 = vadd.f32 %v9520_v42, %v7715_v0  ;;  %v7795_v0 = vadd.f32 %v9526_v28, %v7723_v17 }
 0x6d8   : > { %v12637_v62 = vpop.f32.mrf.mxu0  ;;  %v9610_v26 = vpop.f32.mrf.mxu1 }
 0x6d9   : > { %v7859_v14 = vadd.f32 %v9566_v22, %v7787_v25 }
 0x6da   : > { %v12639_v4 = vpop.f32.mrf.mxu0  ;;  %v9611_v2 = vpop.f32.mrf.mxu1 }
 0x6db   : > { %v9612_v3 = vadd.f32 %v9611_v2, %v9610_v26  ;;  %v10508_v26 = vld [vmem:[#allocation2 + $0x1] sm:$0xff] }
 0x6dc   : > { %v12646_v40 = vpop.f32.mrf.mxu0  ;;  %v9613_v34 = vpop.f32.mrf.mxu1  ;;  %v8040_v2 = vmul.f32 3.0, %v10508_v26  ;;  %v7734_v26 = vadd.f32 %v12595_v5, %v12644_v47 }
 0x6dd   : > { %12941 = vst [vmem:[#allocation32_spill] sm:$0xff] %v12646_v40  ;;  %v7931_v24 = vadd.f32 %v9612_v3, %v7859_v14  ;;  %v7726_v14 = vadd.f32 %v12591_v11, %v12644_v47  ;;  %v7867_v3 = vadd.f32 %v9572_v15, %v7795_v0  ;;  %v7731_v11 = vadd.f32 %v12593_v46, %v12644_v47 }
 0x6de   : > { %v12648_v7 = vpop.f32.mrf.mxu0  ;;  %v9614_v57 = vpop.f32.mrf.mxu1 }
 0x6df   : > { %12942 = vst [vmem:[#allocation28_spill] sm:$0xff] %v12648_v7  ;;  %v9615_v40 = vadd.f32 %v9614_v57, %v9613_v34  ;;  %v7798_v57 = vadd.f32 %v9529_v63, %v7726_v14 }
 0x6e0   : > { %v12652_v20 = vpop.f32.mrf.mxu0  ;;  %v9616_v9 = vpop.f32.mrf.mxu1 }
 0x6e1   : > { %v7934_v48 = vadd.f32 %v9615_v40, %v7862_v52  ;;  %v7870_v15 = vadd.f32 %v9575_v13, %v7798_v57 }
 0x6e2   : > { %v9591_v32 = vpop.f32.mrf.mxu0  ;;  %v9617_v19 = vpop.f32.mrf.mxu1 }
 0x6e3   : > { %v9618_v53 = vadd.f32 %v9617_v19, %v9616_v9 }
 0x6e4   : > { %v9592_v7 = vpop.f32.mrf.mxu0  ;;  %v9619_v49 = vpop.f32.mrf.mxu1 }
 0x6e5   : > { %v7939_v25 = vadd.f32 %v9618_v53, %v7867_v3  ;;  %v10511_v53 = vld [vmem:[#allocation2 + $0x19] sm:$0xff] }
 0x6e6   : > { %v9620_v42 = vpop.f32.mrf.mxu1  ;;  %v8002_v36 = vpop.f32.mrf.mxu0 }
 0x6e7   : > { %v8003_v32 = vadd.f32 %v8002_v36, %v7931_v24  ;;  %v9621_v22 = vadd.f32 %v9620_v42, %v9619_v49  ;;  %v10510_v24 = vld [vmem:[#allocation2 + $0x11] sm:$0xff]  ;;  %v7803_v49 = vadd.f32 %v9532_v38, %v7731_v11  ;;  %v9535_v42 = vadd.f32 %v12613_v16, %v12611_v37 }
 0x6e8   : > { %v9622_v45 = vpop.f32.mrf.mxu1  ;;  %v9851_v31 = vpop.f32.mrf.mxu0  ;;  %v8042_v17 = vmul.f32 3.0, %v10510_v24  ;;  %v9581_v37 = vadd.f32 %v12633_v6, %v12631_v29  ;;  %v10512_v6 = vld [vmem:[#allocation2 + $0x21] sm:$0xff]  ;;  %v9541_v11 = vadd.f32 %v12621_v56, %v12619_v21 }
 0x6e9   : > { %v8049_v41 = vadd.f32 %v8040_v2, %v8003_v32  ;;  %v7942_v32 = vadd.f32 %v9621_v22, %v7870_v15  ;;  %v7875_v2 = vadd.f32 %v9578_v59, %v7803_v49  ;;  %v7806_v5 = vadd.f32 %v9535_v42, %v7734_v26  ;;  %v12943_v49 = vld [vmem:[#allocation32_spill] sm:$0xff] }
 0x6ea   : > { %v9623_v33 = vpop.f32.mrf.mxu1  ;;  %v8005_v30 = vpop.f32.mrf.mxu0  ;;  %v9587_v21 = vadd.f32 %v12943_v49, %v12639_v4 }
 0x6eb   : > { %vm8058_vm0 = vcmp.gt.f32.partialorder %v8049_v41, 0.0  ;;  %v8067_v34 = vmul.f32 0.01, %v8049_v41  ;;  %v8006_v7 = vadd.f32 %v8005_v30, %v7934_v48  ;;  %v9624_v51 = vadd.f32 %v9623_v33, %v9622_v45 }
 0x6ec   : > { %v9625_v43 = vpop.f32.mrf.mxu1  ;;  %v9852_v19 = vpop.f32.mrf.mxu0  ;;  %v7878_v57 = vadd.f32 %v9581_v37, %v7806_v5  ;;  %v12949_v5 = vld [vmem:[#allocation19_spill] sm:$0xff] }
 0x6ed   : > { %v8076_v40 = vsel %vm8058_vm0, %v8049_v41, %v8067_v34  ;;  %v8050_v9 = vadd.f32 %v8041_v58, %v8006_v7  ;;  %v8043_v41 = vmul.f32 3.0, %v10511_v53  ;;  %v7947_v18 = vadd.f32 %v9624_v51, %v7875_v2  ;;  %v12947_v2 = vld [vmem:[#allocation31_spill] sm:$0xff] }
 0x6ee   : > { %v8085_v50 = vmul.f32 %v8076_v40, %v11042_v27  ;;  %v9626_v23 = vpop.f32.mrf.mxu1  ;;  %v8010_v28 = vpop.f32.mrf.mxu0  ;;  %v9538_v58 = vadd.f32 %v12617_v35, %v12615_v1  ;;  %v8044_v7 = vmul.f32 3.0, %v10512_v6  ;;  %v9584_v1 = vadd.f32 %v12637_v62, %v12635_v61 }
 0x6ef   : > { %vm8059_vm12 = vcmp.gt.f32.partialorder %v8050_v9, 0.0  ;;  %v8068_v12 = vmul.f32 0.01, %v8050_v9  ;;  %v8011_v8 = vadd.f32 %v8010_v28, %v7939_v25  ;;  %v9627_v3 = vadd.f32 %v9626_v23, %v9625_v43  ;;  %v10513_v28 = vld [vmem:[#allocation2 + $0x29] sm:$0xff] }
 0x6f0   : > { %8094 = vst [vmem:[#allocation2 + $0x1] sm:$0xff] %v8085_v50  ;;  %v9628_v46 = vpop.f32.mrf.mxu1  ;;  %v9855_v36 = vpop.f32.mrf.mxu0  ;;  %v8105_v52 = vmul.f32 0.33333334, %v8085_v50  ;;  %v7739_v43 = vadd.f32 %v12597_v55, %v12644_v47  ;;  %v8045_v24 = vmul.f32 3.0, %v10513_v28  ;;  %v7742_v61 = vadd.f32 %v12599_v39, %v12644_v47 }
 0x6f1   : > { %v8077_v10 = vsel %vm8059_vm12, %v8050_v9, %v8068_v12  ;;  %v8051_v27 = vadd.f32 %v8042_v17, %v8011_v8  ;;  %v7950_v9 = vadd.f32 %v9627_v3, %v7878_v57  ;;  %v12944_v36 = vld [vmem:[#allocation29_spill] sm:$0xff] }
 0x6f2   : > { %v8086_v0 = vmul.f32 %v8077_v10, %v11055_v44  ;;  %v9629_v63 = vpop.f32.mrf.mxu1  ;;  %v8013_v31 = vpop.f32.mrf.mxu0  ;;  %8107 = vst [vmem:[%s12676_s18] sm:$0xff] %v8105_v52  ;;  %v7811_v25 = vadd.f32 %v9538_v58, %v7739_v43  ;;  %v7814_v42 = vadd.f32 %v9541_v11, %v7742_v61  ;;  %v12945_v52 = vld [vmem:[#allocation30_spill] sm:$0xff]  ;;  %v10515_v58 = vld [vmem:[#allocation2 + $0x39] sm:$0xff] }
 0x6f3   : > { %vm8060_vm15 = vcmp.gt.f32.partialorder %v8051_v27, 0.0  ;;  %v8069_v16 = vmul.f32 0.01, %v8051_v27  ;;  %v8014_v45 = vadd.f32 %v8013_v31, %v7942_v32  ;;  %v9630_v55 = vadd.f32 %v9629_v63, %v9628_v46  ;;  %v12946_v46 = vld [vmem:[#allocation18_spill] sm:$0xff]  ;;  %v10514_v31 = vld [vmem:[#allocation2 + $0x31] sm:$0xff] }
 0x6f4   : > { %8095 = vst [vmem:[#allocation2 + $0x9] sm:$0xff] %v8086_v0  ;;  %v9631_v48 = vpop.f32.mrf.mxu1  ;;  %v9856_v44 = vpop.f32.mrf.mxu0  ;;  %v8106_v14 = vmul.f32 0.33333334, %v8086_v0  ;;  %v7883_v8 = vadd.f32 %v9584_v1, %v7811_v25  ;;  %v9544_v51 = vadd.f32 %v12945_v52, %v12944_v36  ;;  %v7747_v0 = vadd.f32 %v12947_v2, %v12644_v47  ;;  %v10516_v25 = vld [vmem:[#allocation2 + $0x41] sm:$0xff] }
 0x6f5   : > { %v8078_v33 = vsel %vm8060_vm15, %v8051_v27, %v8069_v16  ;;  %v8052_v30 = vadd.f32 %v8043_v41, %v8014_v45  ;;  %v8046_v4 = vmul.f32 3.0, %v10514_v31  ;;  %v7886_v53 = vadd.f32 %v9587_v21, %v7814_v42  ;;  %v12948_v41 = vld [vmem:[#allocation28_spill] sm:$0xff] }
 0x6f6   : > { %v8087_v13 = vmul.f32 %v8078_v33, %v11067_v60  ;;  %v9632_v34 = vpop.f32.mrf.mxu1  ;;  %v8018_v29 = vpop.f32.mrf.mxu0  ;;  %8108 = vst [vmem:[%s12676_s18 + $0x8] sm:$0xff] %v8106_v14  ;;  %v7955_v39 = vadd.f32 %v9630_v55, %v7883_v8  ;;  %v9590_v37 = vadd.f32 %v12652_v20, %v12948_v41  ;;  %v8048_v11 = vmul.f32 3.0, %v10516_v25  ;;  %v12952_v8 = vld [vmem:[#allocation24_spill] sm:$0xff] }
 0x6f7   : > { %vm8061_vm3 = vcmp.gt.f32.partialorder %v8052_v30, 0.0  ;;  %v8070_v38 = vmul.f32 0.01, %v8052_v30  ;;  %v8019_v19 = vadd.f32 %v8018_v29, %v7947_v18  ;;  %v9633_v32 = vadd.f32 %v9632_v34, %v9631_v48 }
 0x6f8   : > { %8096 = vst [vmem:[#allocation2 + $0x11] sm:$0xff] %v8087_v13  ;;  %v9634_v22 = vpop.f32.mrf.mxu1  ;;  %v9859_v40 = vpop.f32.mrf.mxu0  ;;  %v7819_v48 = vadd.f32 %v9544_v51, %v7747_v0  ;;  %v8047_v13 = vmul.f32 3.0, %v10515_v58 }
 0x6f9   : > { %v8079_v35 = vsel %vm8061_vm3, %v8052_v30, %v8070_v38  ;;  %v8053_v60 = vadd.f32 %v8044_v7, %v8019_v19  ;;  %v7958_v30 = vadd.f32 %v9633_v32, %v7886_v53 }
 0x6fa   : > { %v8088_v59 = vmul.f32 %v8079_v35, %v12918_v54  ;;  %v9635_v50 = vpop.f32.mrf.mxu1  ;;  %v8021_v23 = vpop.f32.mrf.mxu0  ;;  %v7891_v29 = vadd.f32 %v9590_v37, %v7819_v48 }
 0x6fb   : > { %vm8062_vm5 = vcmp.gt.f32.partialorder %v8053_v60, 0.0  ;;  %v8071_v17 = vmul.f32 0.01, %v8053_v60  ;;  %v8022_v15 = vadd.f32 %v8021_v23, %v7950_v9  ;;  %v9636_v3 = vadd.f32 %v9635_v50, %v9634_v22  ;;  %v12950_v22 = vld [vmem:[#allocation20_spill] sm:$0xff] }
 0x6fc   : > { %8097 = vst [vmem:[#allocation2 + $0x19] sm:$0xff] %v8088_v59  ;;  %v9637_v62 = vpop.f32.mrf.mxu1  ;;  %v9860_v12 = vpop.f32.mrf.mxu0 }
 0x6fd   : > { %v8080_v56 = vsel %vm8062_vm5, %v8053_v60, %v8071_v17  ;;  %v8054_v54 = vadd.f32 %v8045_v24, %v8022_v15  ;;  %v7963_v19 = vadd.f32 %v9636_v3, %v7891_v29  ;;  %v12951_v24 = vld [vmem:[#allocation22_spill] sm:$0xff] }
 0x6fe   : > { %v8089_v10 = vmul.f32 %v8080_v56, %v12946_v46  ;;  %v9638_v27 = vpop.f32.mrf.mxu1 }
 0x6ff   : > { %vm8063_vm1 = vcmp.gt.f32.partialorder %v8054_v54, 0.0  ;;  %v8072_v26 = vmul.f32 0.01, %v8054_v54 }
 0x700   : > { %8098 = vst [vmem:[#allocation2 + $0x21] sm:$0xff] %v8089_v10  ;;  %v8026_v63 = vpop.f32.mrf.mxu1 }
 0x701   : > { %v8081_v16 = vsel %vm8063_vm1, %v8054_v54, %v8072_v26  ;;  %v8027_v45 = vadd.f32 %v8026_v63, %v7955_v39 }
 0x702   : > { %v8090_v44 = vmul.f32 %v8081_v16, %v12949_v5  ;;  %v9863_v14 = vpop.f32.mrf.mxu1 }
 0x703   : > { %v8055_v33 = vadd.f32 %v8046_v4, %v8027_v45  ;;  %v8109_v18 = vld [vmem:[#allocation2 + $0x13] sm:$0xff] }
 0x704   : > { %8099 = vst [vmem:[#allocation2 + $0x29] sm:$0xff] %v8090_v44  ;;  %v8029_v47 = vpop.f32.mrf.mxu1  ;;  %v8111_v34 = vmul.f32 0.33333334, %v8109_v18 }
 0x705   : > { %vm8064_vm14 = vcmp.gt.f32.partialorder %v8055_v33, 0.0  ;;  %v8073_v6 = vmul.f32 0.01, %v8055_v33  ;;  %v8030_v20 = vadd.f32 %v8029_v47, %v7958_v30 }
 0x706   : > { %v9864_v7 = vpop.f32.mrf.mxu1  ;;  %8815 = vst [vmem:[%s12676_s18 + $0x10] sm:$0xff] %v8111_v34 }
 0x707   : > { %v8082_v57 = vsel %vm8064_vm14, %v8055_v33, %v8073_v6  ;;  %v8056_v38 = vadd.f32 %v8047_v13, %v8030_v20  ;;  %v8110_v43 = vld [vmem:[#allocation2 + $0x1b] sm:$0xff] }
 0x708   : > { %v8091_v40 = vmul.f32 %v8082_v57, %v12950_v22  ;;  %v8034_v1 = vpop.f32.mrf.mxu1  ;;  %v8112_v35 = vmul.f32 0.33333334, %v8110_v43 }
 0x709   : > { %vm8065_vm4 = vcmp.gt.f32.partialorder %v8056_v38, 0.0  ;;  %v8074_v60 = vmul.f32 0.01, %v8056_v38  ;;  %v8035_v9 = vadd.f32 %v8034_v1, %v7963_v19 }
 0x70a   : > { %8100 = vst [vmem:[#allocation2 + $0x31] sm:$0xff] %v8091_v40  ;;  %v9867_v59 = vpop.f32.mrf.mxu1  ;;  %8816 = vst [vmem:[%s12676_s18 + $0x18] sm:$0xff] %v8112_v35 }
 0x70b   : > { %v8083_v50 = vsel %vm8065_vm4, %v8056_v38, %v8074_v60  ;;  %v8057_v23 = vadd.f32 %v8048_v11, %v8035_v9  ;;  %v8116_v28 = vld [vmem:[#allocation2 + $0x25] sm:$0xff] }
 0x70c   : > { %v8092_v55 = vmul.f32 %v8083_v50, %v12951_v24  ;;  %v8037_v17 = vpop.f32.mrf.mxu1  ;;  %v8118_v15 = vmul.f32 0.33333334, %v8116_v28 }
 0x70d   : > { %vm8066_vm13 = vcmp.gt.f32.partialorder %v8057_v23, 0.0  ;;  %v8075_v61 = vmul.f32 0.01, %v8057_v23 }
 0x70e   : > { %8101 = vst [vmem:[#allocation2 + $0x39] sm:$0xff] %v8092_v55  ;;  %v9868_v62 = vpop.f32.mrf.mxu1  ;;  %8817 = vst [vmem:[%s12676_s18 + $0x20] sm:$0xff] %v8118_v15 }
 0x70f   : > { %v8084_v12 = vsel %vm8066_vm13, %v8057_v23, %v8075_v61 }
 0x710   : > { %v8093_v49 = vmul.f32 %v8084_v12, %v12952_v8 }
 0x711   : > { %v8117_v21 = vld [vmem:[#allocation2 + $0x2d] sm:$0xff] }
 0x712   : > { %8102 = vst [vmem:[#allocation2 + $0x41] sm:$0xff] %v8093_v49  ;;  %v8119_v56 = vmul.f32 0.33333334, %v8117_v21 }
 0x714   : > { %8818 = vst [vmem:[%s12676_s18 + $0x28] sm:$0xff] %v8119_v56 }
 0x715   : > { %v8123_v54 = vld [vmem:[#allocation2 + $0x37] sm:$0xff] }
 0x716   : > { %v8125_v42 = vmul.f32 0.33333334, %v8123_v54 }
 0x718   : > { %8819 = vst [vmem:[%s12676_s18 + $0x30] sm:$0xff] %v8125_v42 }
 0x719   : > { %v8124_v36 = vld [vmem:[#allocation2 + $0x3f] sm:$0xff] }
 0x71a   : > { %v8126_v52 = vmul.f32 0.33333334, %v8124_v36 }
 0x71c   : > { %8820 = vst [vmem:[%s12676_s18 + $0x38] sm:$0xff] %v8126_v52 }
 0x71d   : > { %10610 = shalt.err (!%p10607_p9)
}
 0x71e   : > { %s10611_s14 = scalar_lea.hbm %s12717_s24, 1024  ;;  %s10615_s16 = scalar_lea.hbm %s12771_s8, 2048 }
 0x71f   : > { %p10612_p13 = scmp.ne.s32.totalorder %s12717_s24, %s10611_s14  ;;  %p10616_p4 = scmp.lt.s32.totalorder %s12717_s24, %s12771_s8 }
 0x720   : > { %p10617_p8 = scmp.lt.s32.totalorder %s10615_s16, %s10611_s14 }
 0x721   : > { %p10613_p5 = pnand %p10612_p13, %p12953_p10 }
 0x722   : > { %p10618_p7 = por %p10617_p8, %p10616_p4 }
 0x723   : > { %p10614_p0 = pneg %p10613_p5 }
 0x725   : > { %p10619_p11 = pnand %p10618_p7, %p10614_p0 }
 0x727   : > { %10622 = shalt.err (!%p10619_p11)
}
 0x728   : > { %s10680_s23 = smov 128   ;;  %s10681_s22 = smov 8  }
 0x729   : > { %9895 = dma.vmem_to_hbm [thread:$0]  (%p12953_p10), %s12719_s19, 1024, %s12717_s24, %s8131_s11, %s10680_s23, %s10680_s23, %s10681_s22  }
 0x72a PF: > { %s8160_s13 = sand.u32 1, %s10653_s27   ;;  %p12954_p1 = scmp.ne.s32.totalorder %s12826_s12, 0 }
 0x72b   : > { %p12955_p2 = scmp.ge.s32.totalorder %s10665_s30, 2  ;;  %s8161_s9 = scalar_lea.sflag [#allocation6], %s8160_s13 }
 0x72d   : > { %p9909_p6 = pnand %p12955_p2, %p12954_p1 }
 0x72f   : > { %p9910_p12 = pneg %p9909_p6 }
 0x731   : > { %10648 = dma.done.wait (%p9910_p12), %s8161_s9, 1024  }
 0x732   : > { %10650 = vsyncadd (%p9910_p12), %s8161_s9, 4294966272  ;;  %p22_p3 = scmp.ge.s32.totalorder %s10799_s15, 4   ;;  %s12956_s27 = smov %s10657_s28 }
 0x733   : > { %s12957_s28 = smov %s10661_s29  ;;  %s12958_s29 = smov %s10808_s20 }
 0x734   : > { %s12959_s30 = smov %s10799_s15  ;;  %24 = sbr.rel (!%p22_p3) target bundleno = 9 (0x9), region = 119 }
 0x739   :  { %8166 = vsyncpa [#allocation5], 1 }
 0x73a   :  { %8168 = vsyncpa [#allocation5 + $0x1], 1 }
 0x73b   :  { %8169 = vsyncpa [#allocation8], 1 }
 0x73c   :  { %8170 = vsyncpa [#allocation6], 1 }
 0x73d   :  { %8172 = vsyncpa [#allocation6 + $0x1], 1 }

</bundles_post_ra>
